<compile_context>
chip_gen: v7x
topology: tpu7x:2x2x1
jax: 0.10.0
libtpu: 0.0.40
codegen_flags: <defaults>
</compile_context>

<pallas_src>
from functools import partial

import jax
import jax.numpy as jnp
from jax import lax
from jax.experimental import pallas as pl
from jax.experimental.pallas import tpu as pltpu


_VMEM_LIMIT = None


def _vmem_limit_bytes():
    """Generation-dependent scoped-VMEM cap (~3/4 of physical, <=100 MiB)."""
    global _VMEM_LIMIT
    if _VMEM_LIMIT is None:
        try:
            cap = pltpu.get_tpu_info().vmem_capacity_bytes
        except Exception:
            cap = 64 * 1024 * 1024  # conservative (v7x physical VMEM)
        _VMEM_LIMIT = min(int(cap * 3 // 4), 100 * 1024 * 1024)
    return _VMEM_LIMIT


def _compiler_params(dim_sem):
    return pltpu.CompilerParams(dimension_semantics=dim_sem,
                                vmem_limit_bytes=_vmem_limit_bytes())


# ----------------------------- in-kernel helpers -----------------------------

def _layernorm_f32(x, g, b, eps):
    x = x.astype(jnp.float32)
    mu = jnp.mean(x, axis=-1, keepdims=True)
    xc = x - mu
    var = jnp.mean(xc * xc, axis=-1, keepdims=True)
    return xc * lax.rsqrt(var + eps) * g + b


def _gelu_new(x):
    # GPT-2 "gelu_new" (tanh approximation), computed in f32.
    c = jnp.float32(0.7978845608028654)  # sqrt(2/pi)
    return 0.5 * x * (1.0 + jnp.tanh(c * (x + 0.044715 * x * x * x)))


# --------------------- fused attention block (one call) ----------------------

def _attn_block_kernel(x_ref, g1_ref, b1_ref, wqkv_ref, bqkv_ref,
                       wproj_ref, bproj_ref, m_ref, o_ref, qkv_ref,
                       *, n_head, head_dim, scale, eps):
    S = x_ref.shape[1]
    H = n_head * head_dim

    # ln_1 -> c_attn (+bias); fold 1/sqrt(Dh) into the Q columns so the [S,S]
    # score matrices need no extra scaling multiplies.
    xn = _layernorm_f32(x_ref[0], g1_ref[...], b1_ref[...], eps).astype(wqkv_ref.dtype)
    qkv = jnp.dot(xn, wqkv_ref[...], preferred_element_type=jnp.float32)
    qkv = qkv + bqkv_ref[...].astype(jnp.float32)
    col3 = lax.broadcasted_iota(jnp.int32, (1, 3 * H), 1)
    qscale = jnp.where(col3 < H, jnp.float32(scale), jnp.float32(1.0))
    qkv_ref[...] = (qkv * qscale).astype(qkv_ref.dtype)

    # Causal mask & key-padding mask fused into one select (finite -1e30).
    keep = m_ref[0] > 0.0                                    # [1, S]
    row = lax.broadcasted_iota(jnp.int32, (S, S), 0)
    col = lax.broadcasted_iota(jnp.int32, (S, S), 1)
    mask = jnp.logical_and(col <= row, keep)
    neg = jnp.float32(-1e30)

    # Residual + projection bias accumulated in f32; every head adds its
    # (attn_out @ W_proj[h]) contribution so the block finishes with a single
    # lane-dense [S, H] store.
    acc = x_ref[0].astype(jnp.float32) + bproj_ref[...].astype(jnp.float32)

    # TODO(synk): for larger configs, batch the heads into one dot_general
    # ([nH, S, Dh] layout) and use a flash-style KV-tiled loop (running
    # max/sum scratch) instead of materializing SxS scores per head.
    for hh in range(n_head):
        lo = hh * head_dim
        hi = lo + head_dim
        q = qkv_ref[:, lo:hi]                                # [S, Dh] bf16 (pre-scaled)
        k = qkv_ref[:, H + lo:H + hi]                        # [S, Dh] bf16
        v = qkv_ref[:, 2 * H + lo:2 * H + hi]                # [S, Dh] bf16

        s = lax.dot_general(q, k, (((1,), (1,)), ((), ())),
                            preferred_element_type=jnp.float32)
        s = jnp.where(mask, s, neg)
        s_max = jnp.max(s, axis=-1, keepdims=True)
        p = jnp.exp(s - s_max)
        denom = jnp.sum(p, axis=-1, keepdims=True)
        p = p * pl.reciprocal(denom, approx=True)

        out = jnp.dot(p.astype(v.dtype), v, preferred_element_type=jnp.float32)
        acc = acc + jnp.dot(out.astype(jnp.bfloat16), wproj_ref[lo:hi, :],
                            preferred_element_type=jnp.float32)

    o_ref[0] = acc.astype(o_ref.dtype)


def attention_block(h3, mask3, layer, *, n_head, head_dim, eps=1e-5):
    """Fused ln_1 -> c_attn -> attention -> c_proj -> +residual.
    h3: [B, S, H] bf16; mask3: [B, 1, S] f32. Returns [B, S, H] bf16."""
    B, S, H = h3.shape
    scale = 1.0 / float(head_dim) ** 0.5
    kernel = partial(_attn_block_kernel, n_head=n_head, head_dim=head_dim,
                     scale=scale, eps=eps)
    return pl.pallas_call(
        kernel,
        out_shape=jax.ShapeDtypeStruct((B, S, H), jnp.bfloat16),
        grid=(B,),
        in_specs=[
            pl.BlockSpec((1, S, H), lambda b: (b, 0, 0)),     # h (residual)
            pl.BlockSpec((1, H), lambda b: (0, 0)),           # ln1 gamma
            pl.BlockSpec((1, H), lambda b: (0, 0)),           # ln1 beta
            pl.BlockSpec((H, 3 * H), lambda b: (0, 0)),       # c_attn W
            pl.BlockSpec((1, 3 * H), lambda b: (0, 0)),       # c_attn b
            pl.BlockSpec((H, H), lambda b: (0, 0)),           # c_proj W
            pl.BlockSpec((1, H), lambda b: (0, 0)),           # c_proj b
            pl.BlockSpec((1, 1, S), lambda b: (b, 0, 0)),     # attention mask
        ],
        out_specs=pl.BlockSpec((1, S, H), lambda b: (b, 0, 0)),
        scratch_shapes=[pltpu.VMEM((S, 3 * H), jnp.bfloat16)],
        compiler_params=_compiler_params(("parallel",)),
    )(h3,
      layer["ln1_g"].reshape(1, H).astype(jnp.float32),
      layer["ln1_b"].reshape(1, H).astype(jnp.float32),
      layer["attn_w"],
      layer["attn_b"].reshape(1, 3 * H).astype(jnp.float32),
      layer["attn_proj_w"],
      layer["attn_proj_b"].reshape(1, H).astype(jnp.float32),
      mask3)


# ------------------------ fused MLP block (one call) -------------------------

def _mlp_block_kernel(x_ref, g2_ref, b2_ref, wfc_ref, bfc_ref,
                      wproj_ref, bproj_ref, o_ref, *, eps):
    x = x_ref[...]                                            # [tm, H] bf16
    xn = _layernorm_f32(x, g2_ref[...], b2_ref[...], eps).astype(wfc_ref.dtype)
    hmid = jnp.dot(xn, wfc_ref[...], preferred_element_type=jnp.float32)
    hmid = _gelu_new(hmid + bfc_ref[...].astype(jnp.float32))
    y = jnp.dot(hmid.astype(wproj_ref.dtype), wproj_ref[...],
                preferred_element_type=jnp.float32)
    y = y + bproj_ref[...].astype(jnp.float32) + x.astype(jnp.float32)
    o_ref[...] = y.astype(o_ref.dtype)


def mlp_block(h, layer, *, eps=1e-5, tm=128):
    """Fused ln_2 -> c_fc(+bias) -> gelu_new -> c_proj(+bias) -> +residual.
    h: [M, H] bf16 (token-major). Returns [M, H] bf16."""
    M, H = h.shape
    tm = min(tm, M)
    assert M % tm == 0 and tm % 8 == 0
    F = layer["fc_w"].shape[1]
    return pl.pallas_call(
        partial(_mlp_block_kernel, eps=eps),
        out_shape=jax.ShapeDtypeStruct((M, H), jnp.bfloat16),
        grid=(M // tm,),
        in_specs=[
            pl.BlockSpec((tm, H), lambda i: (i, 0)),
            pl.BlockSpec((1, H), lambda i: (0, 0)),
            pl.BlockSpec((1, H), lambda i: (0, 0)),
            pl.BlockSpec((H, F), lambda i: (0, 0)),
            pl.BlockSpec((1, F), lambda i: (0, 0)),
            pl.BlockSpec((F, H), lambda i: (0, 0)),
            pl.BlockSpec((1, H), lambda i: (0, 0)),
        ],
        out_specs=pl.BlockSpec((tm, H), lambda i: (i, 0)),
        compiler_params=_compiler_params(("parallel",)),
    )(h,
      layer["ln2_g"].reshape(1, H).astype(jnp.float32),
      layer["ln2_b"].reshape(1, H).astype(jnp.float32),
      layer["fc_w"],
      layer["fc_b"].reshape(1, F).astype(jnp.float32),
      layer["mlp_proj_w"],
      layer["mlp_proj_b"].reshape(1, H).astype(jnp.float32))


# --------------------- final LayerNorm + LM head matmul -----------------------

def _ln_matmul_kernel(x_ref, g_ref, b_ref, w_ref, o_ref, xn_ref, *, eps, cache_ln):
    if cache_ln:
        # Compute the LayerNorm of this row tile only once (j == 0) and reuse
        # the cached bf16 result for every output-column tile.
        @pl.when(pl.program_id(1) == 0)
        def _():
            xn_ref[...] = _layernorm_f32(x_ref[...], g_ref[...], b_ref[...],
                                         eps).astype(xn_ref.dtype)
        xin = xn_ref[...]
    else:
        xin = _layernorm_f32(x_ref[...], g_ref[...], b_ref[...],
                             eps).astype(w_ref.dtype)
    o_ref[...] = jnp.dot(xin, w_ref[...],
                         preferred_element_type=jnp.float32).astype(o_ref.dtype)


def _pick_tile_n(n_pad, tn_max=512):
    for cand in (512, 384, 256, 128):
        if cand <= tn_max and n_pad % cand == 0:
            return cand
    return 128  # n_pad is always a multiple of 128


def ln_matmul(x, g, b, w, *, eps=1e-5, out_dtype=jnp.float32, tm=128, tn_max=512):
    """out = LayerNorm(x; g, b) @ w   (bf16 MXU operands, f32 accumulate)."""
    M, K = x.shape
    Kw, N = w.shape
    assert K == Kw
    tm = min(tm, M)
    assert M % tm == 0 and tm % 8 == 0

    n_pad = -(-N // 128) * 128
    if n_pad != N:
        # Keep every weight/output tile lane-dense even for odd vocab sizes.
        # TODO(synk): for GPT-2-scale vocab (50257) also K-tile with an f32
        # VMEM accumulator ("arbitrary" reduction axis) instead of streaming
        # the full [K, tn] column block.
        w = jnp.pad(w, ((0, 0), (0, n_pad - N)))
    tn = _pick_tile_n(n_pad, tn_max)
    grid = (M // tm, n_pad // tn)
    cache_ln = grid[1] > 1

    out = pl.pallas_call(
        partial(_ln_matmul_kernel, eps=eps, cache_ln=cache_ln),
        out_shape=jax.ShapeDtypeStruct((M, n_pad), out_dtype),
        grid=grid,
        in_specs=[
            pl.BlockSpec((tm, K), lambda i, j: (i, 0)),
            pl.BlockSpec((1, K), lambda i, j: (0, 0)),
            pl.BlockSpec((1, K), lambda i, j: (0, 0)),
            pl.BlockSpec((K, tn), lambda i, j: (0, j)),
        ],
        out_specs=pl.BlockSpec((tm, tn), lambda i, j: (i, j)),
        scratch_shapes=[pltpu.VMEM((tm, K), jnp.bfloat16)],
        # j ("arbitrary") iterates innermost so the cached LayerNorm tile is
        # valid; i stays "parallel" with >=2 blocks for v7x megacore.
        compiler_params=_compiler_params(("parallel", "arbitrary")),
    )(x,
      g.reshape(1, K).astype(jnp.float32),
      b.reshape(1, K).astype(jnp.float32),
      w)
    return out[:, :N] if n_pad != N else out


# ---------------------------------- Model ------------------------------------

class Config:
    hidden_size = 128
    num_layers = 2
    num_heads = 4
    max_seq_len = 128
    vocab_size = 256


def init_params(key, cfg):
    H, V, P, L = cfg.hidden_size, cfg.vocab_size, cfg.max_seq_len, cfg.num_layers
    std = 0.02
    keys = jax.random.split(key, 2 + 4 * L)
    ki = iter(keys)

    def nrm(k, shape, dtype=jnp.bfloat16):
        return (std * jax.random.normal(k, shape, dtype=jnp.float32)).astype(dtype)

    wte = nrm(next(ki), (V, H), jnp.float32)
    params = {
        "wte": wte,                                  # [V, H] f32 (embedding gather)
        "wte_t": wte.T.astype(jnp.bfloat16),         # [H, V] bf16, tied LM head (pre-transposed)
        "wpe": nrm(next(ki), (P, H), jnp.float32),
        "lnf_g": jnp.ones((H,), jnp.float32),
        "lnf_b": jnp.zeros((H,), jnp.float32),
        "layers": [],
    }
    for _ in range(L):
        params["layers"].append({
            "ln1_g": jnp.ones((H,), jnp.float32),
            "ln1_b": jnp.zeros((H,), jnp.float32),
            "attn_w": nrm(next(ki), (H, 3 * H)),
            "attn_b": jnp.zeros((3 * H,), jnp.float32),
            "attn_proj_w": nrm(next(ki), (H, H)),
            "attn_proj_b": jnp.zeros((H,), jnp.float32),
            "ln2_g": jnp.ones((H,), jnp.float32),
            "ln2_b": jnp.zeros((H,), jnp.float32),
            "fc_w": nrm(next(ki), (H, 4 * H)),
            "fc_b": jnp.zeros((4 * H,), jnp.float32),
            "mlp_proj_w": nrm(next(ki), (4 * H, H)),
            "mlp_proj_b": jnp.zeros((H,), jnp.float32),
        })
    return params


def gpt_lm_forward(params, input_ids, attention_mask, cfg):
    """Returns logits [B, S, vocab] — equivalent to GPTLMModel.forward(...)[0]."""
    B, S = input_ids.shape
    H, nH = cfg.hidden_size, cfg.num_heads
    Dh = H // nH
    V = cfg.vocab_size

    # Embedding gathers are glue (plain JAX); everything else runs in Pallas.
    h = jnp.take(params["wte"], input_ids, axis=0) + params["wpe"][None, :S, :]
    h = h.astype(jnp.bfloat16)                                # [B, S, H]
    mask3 = attention_mask.reshape(B, 1, S).astype(jnp.float32)

    # TODO(synk): dropout layers are identity (inference semantics).
    for layer in params["layers"]:
        h = attention_block(h, mask3, layer, n_head=nH, head_dim=Dh)    # [B, S, H]
        h = mlp_block(h.reshape(B * S, H), layer).reshape(B, S, H)      # [B, S, H]

    # ln_f + tied LM head (wte^T, no bias); logits back in f32.
    logits = ln_matmul(h.reshape(B * S, H), params["lnf_g"], params["lnf_b"],
                       params["wte_t"], out_dtype=jnp.float32)
    return logits.reshape(B, S, V)


# ----------------------------------- Main -------------------------------------

if __name__ == "__main__":
    cfg = Config()
    B, S = 2, cfg.max_seq_len

    key = jax.random.PRNGKey(0)
    pkey, ikey = jax.random.split(key)
    params = init_params(pkey, cfg)

    input_ids = jax.random.randint(ikey, (B, S), 0, cfg.vocab_size, dtype=jnp.int32)
    attention_mask = jnp.ones((B, S), dtype=jnp.int32)

    fwd = jax.jit(partial(gpt_lm_forward, cfg=cfg))
    logits = fwd(params, input_ids, attention_mask)
    jax.block_until_ready(logits)

    assert logits.shape == (B, S, cfg.vocab_size)
    assert logits.dtype == jnp.float32
    assert bool(jnp.all(jnp.isfinite(logits)))
    print("KERNEL_OK")
</pallas_src>

<mosaic_0001>
module attributes {stable_mosaic.version = 11 : i64} {
  func.func @_attn_block_kernel(%arg0: i32, %arg1: memref<1x128x128xbf16, #tpu.memory_space<vmem>>, %arg2: memref<1x128xf32, #tpu.memory_space<vmem>>, %arg3: memref<1x128xf32, #tpu.memory_space<vmem>>, %arg4: memref<128x384xbf16, #tpu.memory_space<vmem>>, %arg5: memref<1x384xf32, #tpu.memory_space<vmem>>, %arg6: memref<128x128xbf16, #tpu.memory_space<vmem>>, %arg7: memref<1x128xf32, #tpu.memory_space<vmem>>, %arg8: memref<1x1x128xf32, #tpu.memory_space<vmem>>, %arg9: memref<1x128x128xbf16, #tpu.memory_space<vmem>>, %arg10: memref<128x384xbf16, #tpu.memory_space<vmem>>) attributes {dimension_semantics = [#tpu.dimension_semantics<parallel>], iteration_bounds = array<i64: 2>, scalar_prefetch = 0 : i64, scratch_operands = 1 : i64, tpu.core_type = #tpu.core_type<tc>, window_params = [{transform_indices = @transform_0, window_bounds = array<i64: 1, 128, 128>}, {pipeline_mode = #tpu.pipeline_mode<synchronous>, transform_indices = @transform_1, window_bounds = array<i64: 1, 128>}, {pipeline_mode = #tpu.pipeline_mode<synchronous>, transform_indices = @transform_2, window_bounds = array<i64: 1, 128>}, {pipeline_mode = #tpu.pipeline_mode<synchronous>, transform_indices = @transform_3, window_bounds = array<i64: 128, 384>}, {pipeline_mode = #tpu.pipeline_mode<synchronous>, transform_indices = @transform_4, window_bounds = array<i64: 1, 384>}, {pipeline_mode = #tpu.pipeline_mode<synchronous>, transform_indices = @transform_5, window_bounds = array<i64: 128, 128>}, {pipeline_mode = #tpu.pipeline_mode<synchronous>, transform_indices = @transform_6, window_bounds = array<i64: 1, 128>}, {transform_indices = @transform_7, window_bounds = array<i64: 1, 1, 128>}, {transform_indices = @transform_8, window_bounds = array<i64: 1, 128, 128>}]} {
    %c0 = arith.constant 0 : index
    %c0_0 = arith.constant 0 : index
    %c0_1 = arith.constant 0 : index
    %0 = vector.load %arg1[%c0, %c0_0, %c0_1] : memref<1x128x128xbf16, #tpu.memory_space<vmem>>, vector<1x128x128xbf16>
    %1 = vector.shape_cast %0 : vector<1x128x128xbf16> to vector<128x128xbf16>
    %c0_2 = arith.constant 0 : index
    %c0_3 = arith.constant 0 : index
    %2 = vector.load %arg2[%c0_2, %c0_3] : memref<1x128xf32, #tpu.memory_space<vmem>>, vector<1x128xf32>
    %c0_4 = arith.constant 0 : index
    %c0_5 = arith.constant 0 : index
    %3 = vector.load %arg3[%c0_4, %c0_5] : memref<1x128xf32, #tpu.memory_space<vmem>>, vector<1x128xf32>
    %4 = arith.extf %1 : vector<128x128xbf16> to vector<128x128xf32>
    %cst = arith.constant dense<0.000000e+00> : vector<128xf32>
    %5 = vector.multi_reduction <add>, %4, %cst [1] : vector<128x128xf32> to vector<128xf32>
    %6 = vector.shape_cast %5 : vector<128xf32> to vector<128x1xf32>
    %cst_6 = arith.constant 1.280000e+02 : f32
    %7 = vector.broadcast %cst_6 : f32 to vector<128x1xf32>
    %8 = arith.divf %6, %7 : vector<128x1xf32>
    %9 = vector.broadcast %8 : vector<128x1xf32> to vector<128x128xf32>
    %10 = arith.subf %4, %9 : vector<128x128xf32>
    %11 = arith.mulf %10, %10 : vector<128x128xf32>
    %cst_7 = arith.constant dense<0.000000e+00> : vector<128xf32>
    %12 = vector.multi_reduction <add>, %11, %cst_7 [1] : vector<128x128xf32> to vector<128xf32>
    %13 = vector.shape_cast %12 : vector<128xf32> to vector<128x1xf32>
    %cst_8 = arith.constant 1.280000e+02 : f32
    %14 = vector.broadcast %cst_8 : f32 to vector<128x1xf32>
    %15 = arith.divf %13, %14 : vector<128x1xf32>
    %cst_9 = arith.constant 9.99999974E-6 : f32
    %16 = vector.broadcast %cst_9 : f32 to vector<128x1xf32>
    %17 = arith.addf %15, %16 : vector<128x1xf32>
    %18 = math.rsqrt %17 : vector<128x1xf32>
    %19 = vector.broadcast %18 : vector<128x1xf32> to vector<128x128xf32>
    %20 = arith.mulf %10, %19 : vector<128x128xf32>
    %21 = vector.broadcast %2 : vector<1x128xf32> to vector<128x128xf32>
    %22 = arith.mulf %20, %21 : vector<128x128xf32>
    %23 = vector.broadcast %3 : vector<1x128xf32> to vector<128x128xf32>
    %24 = arith.addf %22, %23 : vector<128x128xf32>
    %25 = arith.truncf %24 : vector<128x128xf32> to vector<128x128xbf16>
    %c0_10 = arith.constant 0 : index
    %c0_11 = arith.constant 0 : index
    %26 = vector.load %arg4[%c0_10, %c0_11] : memref<128x384xbf16, #tpu.memory_space<vmem>>, vector<128x384xbf16>
    %cst_12 = arith.constant dense<0.000000e+00> : vector<128x384xf32>
    %27 = tpu.matmul %25, %26, %cst_12 {dimension_numbers = #tpu.dot_dimension_numbers<[1], [0], [0], [1], [0, 0, 1, 1], [], []>} : vector<128x128xbf16>, vector<128x384xbf16>, vector<128x384xf32> -> vector<128x384xf32>
    %c0_13 = arith.constant 0 : index
    %c0_14 = arith.constant 0 : index
    %28 = vector.load %arg5[%c0_13, %c0_14] : memref<1x384xf32, #tpu.memory_space<vmem>>, vector<1x384xf32>
    %29 = vector.broadcast %28 : vector<1x384xf32> to vector<128x384xf32>
    %30 = arith.addf %27, %29 : vector<128x384xf32>
    %31 = tpu.iota {dimensions = array<i32: 1>} : vector<1x384xi32>
    %c128_i32 = arith.constant 128 : i32
    %32 = vector.broadcast %c128_i32 : i32 to vector<1x384xi32>
    %33 = arith.cmpi slt, %31, %32 : vector<1x384xi32>
    %cst_15 = arith.constant 0.176776692 : f32
    %cst_16 = arith.constant 1.000000e+00 : f32
    %34 = vector.broadcast %cst_15 : f32 to vector<1x384xf32>
    %35 = vector.broadcast %cst_16 : f32 to vector<1x384xf32>
    %36 = arith.select %33, %34, %35 : vector<1x384xi1>, vector<1x384xf32>
    %37 = vector.broadcast %36 : vector<1x384xf32> to vector<128x384xf32>
    %38 = arith.mulf %30, %37 : vector<128x384xf32>
    %39 = arith.truncf %38 : vector<128x384xf32> to vector<128x384xbf16>
    %c0_17 = arith.constant 0 : index
    %c0_18 = arith.constant 0 : index
    %40 = vector.load %arg10[%c0_17, %c0_18] : memref<128x384xbf16, #tpu.memory_space<vmem>>, vector<128x384xbf16>
    tpu.vector_store %arg10[%c0_17, %c0_18], %39 {strides = array<i32>} : memref<128x384xbf16, #tpu.memory_space<vmem>>, vector<128x384xbf16>,
    %c0_19 = arith.constant 0 : index
    %c0_20 = arith.constant 0 : index
    %c0_21 = arith.constant 0 : index
    %41 = vector.load %arg8[%c0_19, %c0_20, %c0_21] : memref<1x1x128xf32, #tpu.memory_space<vmem>>, vector<1x1x128xf32>
    %42 = vector.shape_cast %41 : vector<1x1x128xf32> to vector<1x128xf32>
    %cst_22 = arith.constant 0.000000e+00 : f32
    %43 = vector.broadcast %cst_22 : f32 to vector<1x128xf32>
    %44 = arith.cmpf ogt, %42, %43 : vector<1x128xf32>
    %45 = tpu.iota {dimensions = array<i32: 0>} : vector<128x128xi32>
    %46 = tpu.iota {dimensions = array<i32: 1>} : vector<128x128xi32>
    %47 = arith.cmpi sle, %46, %45 : vector<128x128xi32>
    %48 = vector.broadcast %44 : vector<1x128xi1> to vector<128x128xi1>
    %49 = arith.andi %47, %48 : vector<128x128xi1>
    %c0_23 = arith.constant 0 : index
    %c0_24 = arith.constant 0 : index
    %c0_25 = arith.constant 0 : index
    %50 = vector.load %arg1[%c0_23, %c0_24, %c0_25] : memref<1x128x128xbf16, #tpu.memory_space<vmem>>, vector<1x128x128xbf16>
    %51 = vector.shape_cast %50 : vector<1x128x128xbf16> to vector<128x128xbf16>
    %52 = arith.extf %51 : vector<128x128xbf16> to vector<128x128xf32>
    %c0_26 = arith.constant 0 : index
    %c0_27 = arith.constant 0 : index
    %53 = vector.load %arg7[%c0_26, %c0_27] : memref<1x128xf32, #tpu.memory_space<vmem>>, vector<1x128xf32>
    %54 = vector.broadcast %53 : vector<1x128xf32> to vector<128x128xf32>
    %55 = arith.addf %52, %54 : vector<128x128xf32>
    %c0_28 = arith.constant 0 : index
    %c0_29 = arith.constant 0 : index
    %56 = vector.load %arg10[%c0_28, %c0_29] : memref<128x384xbf16, #tpu.memory_space<vmem>>, vector<128x32xbf16>
    %c0_30 = arith.constant 0 : index
    %c128 = arith.constant 128 : index
    %57 = vector.load %arg10[%c0_30, %c128] : memref<128x384xbf16, #tpu.memory_space<vmem>>, vector<128x32xbf16>
    %c0_31 = arith.constant 0 : index
    %c256 = arith.constant 256 : index
    %58 = vector.load %arg10[%c0_31, %c256] : memref<128x384xbf16, #tpu.memory_space<vmem>>, vector<128x32xbf16>
    %cst_32 = arith.constant dense<0.000000e+00> : vector<128x128xf32>
    %59 = tpu.matmul %56, %57, %cst_32 {dimension_numbers = #tpu.dot_dimension_numbers<[1], [1], [0], [0], [0, 0, 1, 0], [], []>} : vector<128x32xbf16>, vector<128x32xbf16>, vector<128x128xf32> -> vector<128x128xf32>
    %cst_33 = arith.constant -1.000000e+30 : f32
    %60 = vector.broadcast %cst_33 : f32 to vector<128x128xf32>
    %61 = arith.select %49, %59, %60 : vector<128x128xi1>, vector<128x128xf32>
    %cst_34 = arith.constant dense<0xFF800000> : vector<128xf32>
    %62 = vector.multi_reduction <maximumf>, %61, %cst_34 [1] : vector<128x128xf32> to vector<128xf32>
    %63 = vector.shape_cast %62 : vector<128xf32> to vector<128x1xf32>
    %64 = vector.broadcast %63 : vector<128x1xf32> to vector<128x128xf32>
    %65 = arith.subf %61, %64 : vector<128x128xf32>
    %66 = math.exp %65 : vector<128x128xf32>
    %cst_35 = arith.constant dense<0.000000e+00> : vector<128xf32>
    %67 = vector.multi_reduction <add>, %66, %cst_35 [1] : vector<128x128xf32> to vector<128xf32>
    %68 = vector.shape_cast %67 : vector<128xf32> to vector<128x1xf32>
    %69 = tpu.reciprocal %68 {approx = true} : vector<128x1xf32> -> vector<128x1xf32>
    %70 = vector.broadcast %69 : vector<128x1xf32> to vector<128x128xf32>
    %71 = arith.mulf %66, %70 : vector<128x128xf32>
    %72 = arith.truncf %71 : vector<128x128xf32> to vector<128x128xbf16>
    %cst_36 = arith.constant dense<0.000000e+00> : vector<128x32xf32>
    %73 = tpu.matmul %72, %58, %cst_36 {dimension_numbers = #tpu.dot_dimension_numbers<[1], [0], [0], [1], [0, 0, 1, 1], [], []>} : vector<128x128xbf16>, vector<128x32xbf16>, vector<128x32xf32> -> vector<128x32xf32>
    %74 = arith.truncf %73 : vector<128x32xf32> to vector<128x32xbf16>
    %c0_37 = arith.constant 0 : index
    %c0_38 = arith.constant 0 : index
    %75 = vector.load %arg6[%c0_37, %c0_38] : memref<128x128xbf16, #tpu.memory_space<vmem>>, vector<32x128xbf16>
    %cst_39 = arith.constant dense<0.000000e+00> : vector<128x128xf32>
    %76 = tpu.matmul %74, %75, %cst_39 {dimension_numbers = #tpu.dot_dimension_numbers<[1], [0], [0], [1], [0, 0, 1, 1], [], []>} : vector<128x32xbf16>, vector<32x128xbf16>, vector<128x128xf32> -> vector<128x128xf32>
    %77 = arith.addf %55, %76 : vector<128x128xf32>
    %c0_40 = arith.constant 0 : index
    %c32 = arith.constant 32 : index
    %78 = vector.load %arg10[%c0_40, %c32] : memref<128x384xbf16, #tpu.memory_space<vmem>>, vector<128x32xbf16>
    %c0_41 = arith.constant 0 : index
    %c160 = arith.constant 160 : index
    %79 = vector.load %arg10[%c0_41, %c160] : memref<128x384xbf16, #tpu.memory_space<vmem>>, vector<128x32xbf16>
    %c0_42 = arith.constant 0 : index
    %c288 = arith.constant 288 : index
    %80 = vector.load %arg10[%c0_42, %c288] : memref<128x384xbf16, #tpu.memory_space<vmem>>, vector<128x32xbf16>
    %cst_43 = arith.constant dense<0.000000e+00> : vector<128x128xf32>
    %81 = tpu.matmul %78, %79, %cst_43 {dimension_numbers = #tpu.dot_dimension_numbers<[1], [1], [0], [0], [0, 0, 1, 0], [], []>} : vector<128x32xbf16>, vector<128x32xbf16>, vector<128x128xf32> -> vector<128x128xf32>
    %cst_44 = arith.constant -1.000000e+30 : f32
    %82 = vector.broadcast %cst_44 : f32 to vector<128x128xf32>
    %83 = arith.select %49, %81, %82 : vector<128x128xi1>, vector<128x128xf32>
    %cst_45 = arith.constant dense<0xFF800000> : vector<128xf32>
    %84 = vector.multi_reduction <maximumf>, %83, %cst_45 [1] : vector<128x128xf32> to vector<128xf32>
    %85 = vector.shape_cast %84 : vector<128xf32> to vector<128x1xf32>
    %86 = vector.broadcast %85 : vector<128x1xf32> to vector<128x128xf32>
    %87 = arith.subf %83, %86 : vector<128x128xf32>
    %88 = math.exp %87 : vector<128x128xf32>
    %cst_46 = arith.constant dense<0.000000e+00> : vector<128xf32>
    %89 = vector.multi_reduction <add>, %88, %cst_46 [1] : vector<128x128xf32> to vector<128xf32>
    %90 = vector.shape_cast %89 : vector<128xf32> to vector<128x1xf32>
    %91 = tpu.reciprocal %90 {approx = true} : vector<128x1xf32> -> vector<128x1xf32>
    %92 = vector.broadcast %91 : vector<128x1xf32> to vector<128x128xf32>
    %93 = arith.mulf %88, %92 : vector<128x128xf32>
    %94 = arith.truncf %93 : vector<128x128xf32> to vector<128x128xbf16>
    %cst_47 = arith.constant dense<0.000000e+00> : vector<128x32xf32>
    %95 = tpu.matmul %94, %80, %cst_47 {dimension_numbers = #tpu.dot_dimension_numbers<[1], [0], [0], [1], [0, 0, 1, 1], [], []>} : vector<128x128xbf16>, vector<128x32xbf16>, vector<128x32xf32> -> vector<128x32xf32>
    %96 = arith.truncf %95 : vector<128x32xf32> to vector<128x32xbf16>
    %c32_48 = arith.constant 32 : index
    %c0_49 = arith.constant 0 : index
    %97 = vector.load %arg6[%c32_48, %c0_49] : memref<128x128xbf16, #tpu.memory_space<vmem>>, vector<32x128xbf16>
    %cst_50 = arith.constant dense<0.000000e+00> : vector<128x128xf32>
    %98 = tpu.matmul %96, %97, %cst_50 {dimension_numbers = #tpu.dot_dimension_numbers<[1], [0], [0], [1], [0, 0, 1, 1], [], []>} : vector<128x32xbf16>, vector<32x128xbf16>, vector<128x128xf32> -> vector<128x128xf32>
    %99 = arith.addf %77, %98 : vector<128x128xf32>
    %c0_51 = arith.constant 0 : index
    %c64 = arith.constant 64 : index
    %100 = vector.load %arg10[%c0_51, %c64] : memref<128x384xbf16, #tpu.memory_space<vmem>>, vector<128x32xbf16>
    %c0_52 = arith.constant 0 : index
    %c192 = arith.constant 192 : index
    %101 = vector.load %arg10[%c0_52, %c192] : memref<128x384xbf16, #tpu.memory_space<vmem>>, vector<128x32xbf16>
    %c0_53 = arith.constant 0 : index
    %c320 = arith.constant 320 : index
    %102 = vector.load %arg10[%c0_53, %c320] : memref<128x384xbf16, #tpu.memory_space<vmem>>, vector<128x32xbf16>
    %cst_54 = arith.constant dense<0.000000e+00> : vector<128x128xf32>
    %103 = tpu.matmul %100, %101, %cst_54 {dimension_numbers = #tpu.dot_dimension_numbers<[1], [1], [0], [0], [0, 0, 1, 0], [], []>} : vector<128x32xbf16>, vector<128x32xbf16>, vector<128x128xf32> -> vector<128x128xf32>
    %cst_55 = arith.constant -1.000000e+30 : f32
    %104 = vector.broadcast %cst_55 : f32 to vector<128x128xf32>
    %105 = arith.select %49, %103, %104 : vector<128x128xi1>, vector<128x128xf32>
    %cst_56 = arith.constant dense<0xFF800000> : vector<128xf32>
    %106 = vector.multi_reduction <maximumf>, %105, %cst_56 [1] : vector<128x128xf32> to vector<128xf32>
    %107 = vector.shape_cast %106 : vector<128xf32> to vector<128x1xf32>
    %108 = vector.broadcast %107 : vector<128x1xf32> to vector<128x128xf32>
    %109 = arith.subf %105, %108 : vector<128x128xf32>
    %110 = math.exp %109 : vector<128x128xf32>
    %cst_57 = arith.constant dense<0.000000e+00> : vector<128xf32>
    %111 = vector.multi_reduction <add>, %110, %cst_57 [1] : vector<128x128xf32> to vector<128xf32>
    %112 = vector.shape_cast %111 : vector<128xf32> to vector<128x1xf32>
    %113 = tpu.reciprocal %112 {approx = true} : vector<128x1xf32> -> vector<128x1xf32>
    %114 = vector.broadcast %113 : vector<128x1xf32> to vector<128x128xf32>
    %115 = arith.mulf %110, %114 : vector<128x128xf32>
    %116 = arith.truncf %115 : vector<128x128xf32> to vector<128x128xbf16>
    %cst_58 = arith.constant dense<0.000000e+00> : vector<128x32xf32>
    %117 = tpu.matmul %116, %102, %cst_58 {dimension_numbers = #tpu.dot_dimension_numbers<[1], [0], [0], [1], [0, 0, 1, 1], [], []>} : vector<128x128xbf16>, vector<128x32xbf16>, vector<128x32xf32> -> vector<128x32xf32>
    %118 = arith.truncf %117 : vector<128x32xf32> to vector<128x32xbf16>
    %c64_59 = arith.constant 64 : index
    %c0_60 = arith.constant 0 : index
    %119 = vector.load %arg6[%c64_59, %c0_60] : memref<128x128xbf16, #tpu.memory_space<vmem>>, vector<32x128xbf16>
    %cst_61 = arith.constant dense<0.000000e+00> : vector<128x128xf32>
    %120 = tpu.matmul %118, %119, %cst_61 {dimension_numbers = #tpu.dot_dimension_numbers<[1], [0], [0], [1], [0, 0, 1, 1], [], []>} : vector<128x32xbf16>, vector<32x128xbf16>, vector<128x128xf32> -> vector<128x128xf32>
    %121 = arith.addf %99, %120 : vector<128x128xf32>
    %c0_62 = arith.constant 0 : index
    %c96 = arith.constant 96 : index
    %122 = vector.load %arg10[%c0_62, %c96] : memref<128x384xbf16, #tpu.memory_space<vmem>>, vector<128x32xbf16>
    %c0_63 = arith.constant 0 : index
    %c224 = arith.constant 224 : index
    %123 = vector.load %arg10[%c0_63, %c224] : memref<128x384xbf16, #tpu.memory_space<vmem>>, vector<128x32xbf16>
    %c0_64 = arith.constant 0 : index
    %c352 = arith.constant 352 : index
    %124 = vector.load %arg10[%c0_64, %c352] : memref<128x384xbf16, #tpu.memory_space<vmem>>, vector<128x32xbf16>
    %cst_65 = arith.constant dense<0.000000e+00> : vector<128x128xf32>
    %125 = tpu.matmul %122, %123, %cst_65 {dimension_numbers = #tpu.dot_dimension_numbers<[1], [1], [0], [0], [0, 0, 1, 0], [], []>} : vector<128x32xbf16>, vector<128x32xbf16>, vector<128x128xf32> -> vector<128x128xf32>
    %cst_66 = arith.constant -1.000000e+30 : f32
    %126 = vector.broadcast %cst_66 : f32 to vector<128x128xf32>
    %127 = arith.select %49, %125, %126 : vector<128x128xi1>, vector<128x128xf32>
    %cst_67 = arith.constant dense<0xFF800000> : vector<128xf32>
    %128 = vector.multi_reduction <maximumf>, %127, %cst_67 [1] : vector<128x128xf32> to vector<128xf32>
    %129 = vector.shape_cast %128 : vector<128xf32> to vector<128x1xf32>
    %130 = vector.broadcast %129 : vector<128x1xf32> to vector<128x128xf32>
    %131 = arith.subf %127, %130 : vector<128x128xf32>
    %132 = math.exp %131 : vector<128x128xf32>
    %cst_68 = arith.constant dense<0.000000e+00> : vector<128xf32>
    %133 = vector.multi_reduction <add>, %132, %cst_68 [1] : vector<128x128xf32> to vector<128xf32>
    %134 = vector.shape_cast %133 : vector<128xf32> to vector<128x1xf32>
    %135 = tpu.reciprocal %134 {approx = true} : vector<128x1xf32> -> vector<128x1xf32>
    %136 = vector.broadcast %135 : vector<128x1xf32> to vector<128x128xf32>
    %137 = arith.mulf %132, %136 : vector<128x128xf32>
    %138 = arith.truncf %137 : vector<128x128xf32> to vector<128x128xbf16>
    %cst_69 = arith.constant dense<0.000000e+00> : vector<128x32xf32>
    %139 = tpu.matmul %138, %124, %cst_69 {dimension_numbers = #tpu.dot_dimension_numbers<[1], [0], [0], [1], [0, 0, 1, 1], [], []>} : vector<128x128xbf16>, vector<128x32xbf16>, vector<128x32xf32> -> vector<128x32xf32>
    %140 = arith.truncf %139 : vector<128x32xf32> to vector<128x32xbf16>
    %c96_70 = arith.constant 96 : index
    %c0_71 = arith.constant 0 : index
    %141 = vector.load %arg6[%c96_70, %c0_71] : memref<128x128xbf16, #tpu.memory_space<vmem>>, vector<32x128xbf16>
    %cst_72 = arith.constant dense<0.000000e+00> : vector<128x128xf32>
    %142 = tpu.matmul %140, %141, %cst_72 {dimension_numbers = #tpu.dot_dimension_numbers<[1], [0], [0], [1], [0, 0, 1, 1], [], []>} : vector<128x32xbf16>, vector<32x128xbf16>, vector<128x128xf32> -> vector<128x128xf32>
    %143 = arith.addf %121, %142 : vector<128x128xf32>
    %144 = arith.truncf %143 : vector<128x128xf32> to vector<128x128xbf16>
    %c0_73 = arith.constant 0 : index
    %c0_74 = arith.constant 0 : index
    %c0_75 = arith.constant 0 : index
    %145 = vector.load %arg9[%c0_73, %c0_74, %c0_75] : memref<1x128x128xbf16, #tpu.memory_space<vmem>>, vector<1x128x128xbf16>
    %146 = vector.shape_cast %145 : vector<1x128x128xbf16> to vector<128x128xbf16>
    %147 = vector.shape_cast %144 : vector<128x128xbf16> to vector<1x128x128xbf16>
    tpu.vector_store %arg9[%c0_73, %c0_74, %c0_75], %147 {strides = array<i32>} : memref<1x128x128xbf16, #tpu.memory_space<vmem>>, vector<1x128x128xbf16>,
    return
  }
  func.func @transform_0(%arg0: i32) -> (i32, i32, i32) {
    %c0_i32 = arith.constant 0 : i32
    %c0_i32_0 = arith.constant 0 : i32
    %c0_i32_1 = arith.constant 0 : i32
    return %arg0, %c0_i32, %c0_i32_0 : i32, i32, i32
  }
  func.func @transform_1(%arg0: i32) -> (i32, i32) {
    %c0_i32 = arith.constant 0 : i32
    %c0_i32_0 = arith.constant 0 : i32
    %c0_i32_1 = arith.constant 0 : i32
    return %c0_i32, %c0_i32_0 : i32, i32
  }
  func.func @transform_2(%arg0: i32) -> (i32, i32) {
    %c0_i32 = arith.constant 0 : i32
    %c0_i32_0 = arith.constant 0 : i32
    %c0_i32_1 = arith.constant 0 : i32
    return %c0_i32, %c0_i32_0 : i32, i32
  }
  func.func @transform_3(%arg0: i32) -> (i32, i32) {
    %c0_i32 = arith.constant 0 : i32
    %c0_i32_0 = arith.constant 0 : i32
    %c0_i32_1 = arith.constant 0 : i32
    return %c0_i32, %c0_i32_0 : i32, i32
  }
  func.func @transform_4(%arg0: i32) -> (i32, i32) {
    %c0_i32 = arith.constant 0 : i32
    %c0_i32_0 = arith.constant 0 : i32
    %c0_i32_1 = arith.constant 0 : i32
    return %c0_i32, %c0_i32_0 : i32, i32
  }
  func.func @transform_5(%arg0: i32) -> (i32, i32) {
    %c0_i32 = arith.constant 0 : i32
    %c0_i32_0 = arith.constant 0 : i32
    %c0_i32_1 = arith.constant 0 : i32
    return %c0_i32, %c0_i32_0 : i32, i32
  }
  func.func @transform_6(%arg0: i32) -> (i32, i32) {
    %c0_i32 = arith.constant 0 : i32
    %c0_i32_0 = arith.constant 0 : i32
    %c0_i32_1 = arith.constant 0 : i32
    return %c0_i32, %c0_i32_0 : i32, i32
  }
  func.func @transform_7(%arg0: i32) -> (i32, i32, i32) {
    %c0_i32 = arith.constant 0 : i32
    %c0_i32_0 = arith.constant 0 : i32
    %c0_i32_1 = arith.constant 0 : i32
    return %arg0, %c0_i32, %c0_i32_0 : i32, i32, i32
  }
  func.func @transform_8(%arg0: i32) -> (i32, i32, i32) {
    %c0_i32 = arith.constant 0 : i32
    %c0_i32_0 = arith.constant 0 : i32
    %c0_i32_1 = arith.constant 0 : i32
    return %arg0, %c0_i32, %c0_i32_0 : i32, i32, i32
  }
}

module attributes {stable_mosaic.version = 11 : i64} {
  func.func @_mlp_block_kernel(%arg0: i32, %arg1: memref<128x128xbf16, #tpu.memory_space<vmem>>, %arg2: memref<1x128xf32, #tpu.memory_space<vmem>>, %arg3: memref<1x128xf32, #tpu.memory_space<vmem>>, %arg4: memref<128x512xbf16, #tpu.memory_space<vmem>>, %arg5: memref<1x512xf32, #tpu.memory_space<vmem>>, %arg6: memref<512x128xbf16, #tpu.memory_space<vmem>>, %arg7: memref<1x128xf32, #tpu.memory_space<vmem>>, %arg8: memref<128x128xbf16, #tpu.memory_space<vmem>>) attributes {dimension_semantics = [#tpu.dimension_semantics<parallel>], iteration_bounds = array<i64: 2>, scalar_prefetch = 0 : i64, scratch_operands = 0 : i64, tpu.core_type = #tpu.core_type<tc>, window_params = [{transform_indices = @transform_0, window_bounds = array<i64: 128, 128>}, {pipeline_mode = #tpu.pipeline_mode<synchronous>, transform_indices = @transform_1, window_bounds = array<i64: 1, 128>}, {pipeline_mode = #tpu.pipeline_mode<synchronous>, transform_indices = @transform_2, window_bounds = array<i64: 1, 128>}, {pipeline_mode = #tpu.pipeline_mode<synchronous>, transform_indices = @transform_3, window_bounds = array<i64: 128, 512>}, {pipeline_mode = #tpu.pipeline_mode<synchronous>, transform_indices = @transform_4, window_bounds = array<i64: 1, 512>}, {pipeline_mode = #tpu.pipeline_mode<synchronous>, transform_indices = @transform_5, window_bounds = array<i64: 512, 128>}, {pipeline_mode = #tpu.pipeline_mode<synchronous>, transform_indices = @transform_6, window_bounds = array<i64: 1, 128>}, {transform_indices = @transform_7, window_bounds = array<i64: 128, 128>}]} {
    %c0 = arith.constant 0 : index
    %c0_0 = arith.constant 0 : index
    %0 = vector.load %arg1[%c0, %c0_0] : memref<128x128xbf16, #tpu.memory_space<vmem>>, vector<128x128xbf16>
    %c0_1 = arith.constant 0 : index
    %c0_2 = arith.constant 0 : index
    %1 = vector.load %arg2[%c0_1, %c0_2] : memref<1x128xf32, #tpu.memory_space<vmem>>, vector<1x128xf32>
    %c0_3 = arith.constant 0 : index
    %c0_4 = arith.constant 0 : index
    %2 = vector.load %arg3[%c0_3, %c0_4] : memref<1x128xf32, #tpu.memory_space<vmem>>, vector<1x128xf32>
    %3 = arith.extf %0 : vector<128x128xbf16> to vector<128x128xf32>
    %cst = arith.constant dense<0.000000e+00> : vector<128xf32>
    %4 = vector.multi_reduction <add>, %3, %cst [1] : vector<128x128xf32> to vector<128xf32>
    %5 = vector.shape_cast %4 : vector<128xf32> to vector<128x1xf32>
    %cst_5 = arith.constant 1.280000e+02 : f32
    %6 = vector.broadcast %cst_5 : f32 to vector<128x1xf32>
    %7 = arith.divf %5, %6 : vector<128x1xf32>
    %8 = vector.broadcast %7 : vector<128x1xf32> to vector<128x128xf32>
    %9 = arith.subf %3, %8 : vector<128x128xf32>
    %10 = arith.mulf %9, %9 : vector<128x128xf32>
    %cst_6 = arith.constant dense<0.000000e+00> : vector<128xf32>
    %11 = vector.multi_reduction <add>, %10, %cst_6 [1] : vector<128x128xf32> to vector<128xf32>
    %12 = vector.shape_cast %11 : vector<128xf32> to vector<128x1xf32>
    %cst_7 = arith.constant 1.280000e+02 : f32
    %13 = vector.broadcast %cst_7 : f32 to vector<128x1xf32>
    %14 = arith.divf %12, %13 : vector<128x1xf32>
    %cst_8 = arith.constant 9.99999974E-6 : f32
    %15 = vector.broadcast %cst_8 : f32 to vector<128x1xf32>
    %16 = arith.addf %14, %15 : vector<128x1xf32>
    %17 = math.rsqrt %16 : vector<128x1xf32>
    %18 = vector.broadcast %17 : vector<128x1xf32> to vector<128x128xf32>
    %19 = arith.mulf %9, %18 : vector<128x128xf32>
    %20 = vector.broadcast %1 : vector<1x128xf32> to vector<128x128xf32>
    %21 = arith.mulf %19, %20 : vector<128x128xf32>
    %22 = vector.broadcast %2 : vector<1x128xf32> to vector<128x128xf32>
    %23 = arith.addf %21, %22 : vector<128x128xf32>
    %24 = arith.truncf %23 : vector<128x128xf32> to vector<128x128xbf16>
    %c0_9 = arith.constant 0 : index
    %c0_10 = arith.constant 0 : index
    %25 = vector.load %arg4[%c0_9, %c0_10] : memref<128x512xbf16, #tpu.memory_space<vmem>>, vector<128x512xbf16>
    %cst_11 = arith.constant dense<0.000000e+00> : vector<128x512xf32>
    %26 = tpu.matmul %24, %25, %cst_11 {dimension_numbers = #tpu.dot_dimension_numbers<[1], [0], [0], [1], [0, 0, 1, 1], [], []>} : vector<128x128xbf16>, vector<128x512xbf16>, vector<128x512xf32> -> vector<128x512xf32>
    %c0_12 = arith.constant 0 : index
    %c0_13 = arith.constant 0 : index
    %27 = vector.load %arg5[%c0_12, %c0_13] : memref<1x512xf32, #tpu.memory_space<vmem>>, vector<1x512xf32>
    %28 = vector.broadcast %27 : vector<1x512xf32> to vector<128x512xf32>
    %29 = arith.addf %26, %28 : vector<128x512xf32>
    %cst_14 = arith.constant 5.000000e-01 : f32
    %30 = vector.broadcast %cst_14 : f32 to vector<128x512xf32>
    %31 = arith.mulf %30, %29 : vector<128x512xf32>
    %cst_15 = arith.constant 4.471500e-02 : f32
    %32 = vector.broadcast %cst_15 : f32 to vector<128x512xf32>
    %33 = arith.mulf %32, %29 : vector<128x512xf32>
    %34 = arith.mulf %33, %29 : vector<128x512xf32>
    %35 = arith.mulf %34, %29 : vector<128x512xf32>
    %36 = arith.addf %29, %35 : vector<128x512xf32>
    %cst_16 = arith.constant 0.797884583 : f32
    %37 = vector.broadcast %cst_16 : f32 to vector<128x512xf32>
    %38 = arith.mulf %37, %36 : vector<128x512xf32>
    %39 = math.tanh %38 : vector<128x512xf32>
    %cst_17 = arith.constant 1.000000e+00 : f32
    %40 = vector.broadcast %cst_17 : f32 to vector<128x512xf32>
    %41 = arith.addf %40, %39 : vector<128x512xf32>
    %42 = arith.mulf %31, %41 : vector<128x512xf32>
    %43 = arith.truncf %42 : vector<128x512xf32> to vector<128x512xbf16>
    %c0_18 = arith.constant 0 : index
    %c0_19 = arith.constant 0 : index
    %44 = vector.load %arg6[%c0_18, %c0_19] : memref<512x128xbf16, #tpu.memory_space<vmem>>, vector<512x128xbf16>
    %cst_20 = arith.constant dense<0.000000e+00> : vector<128x128xf32>
    %45 = tpu.matmul %43, %44, %cst_20 {dimension_numbers = #tpu.dot_dimension_numbers<[1], [0], [0], [1], [0, 0, 1, 1], [], []>} : vector<128x512xbf16>, vector<512x128xbf16>, vector<128x128xf32> -> vector<128x128xf32>
    %c0_21 = arith.constant 0 : index
    %c0_22 = arith.constant 0 : index
    %46 = vector.load %arg7[%c0_21, %c0_22] : memref<1x128xf32, #tpu.memory_space<vmem>>, vector<1x128xf32>
    %47 = vector.broadcast %46 : vector<1x128xf32> to vector<128x128xf32>
    %48 = arith.addf %45, %47 : vector<128x128xf32>
    %49 = arith.extf %0 : vector<128x128xbf16> to vector<128x128xf32>
    %50 = arith.addf %48, %49 : vector<128x128xf32>
    %51 = arith.truncf %50 : vector<128x128xf32> to vector<128x128xbf16>
    %c0_23 = arith.constant 0 : index
    %c0_24 = arith.constant 0 : index
    %52 = vector.load %arg8[%c0_23, %c0_24] : memref<128x128xbf16, #tpu.memory_space<vmem>>, vector<128x128xbf16>
    tpu.vector_store %arg8[%c0_23, %c0_24], %51 {strides = array<i32>} : memref<128x128xbf16, #tpu.memory_space<vmem>>, vector<128x128xbf16>,
    return
  }
  func.func @transform_0(%arg0: i32) -> (i32, i32) {
    %c0_i32 = arith.constant 0 : i32
    %c0_i32_0 = arith.constant 0 : i32
    return %arg0, %c0_i32 : i32, i32
  }
  func.func @transform_1(%arg0: i32) -> (i32, i32) {
    %c0_i32 = arith.constant 0 : i32
    %c0_i32_0 = arith.constant 0 : i32
    %c0_i32_1 = arith.constant 0 : i32
    return %c0_i32, %c0_i32_0 : i32, i32
  }
  func.func @transform_2(%arg0: i32) -> (i32, i32) {
    %c0_i32 = arith.constant 0 : i32
    %c0_i32_0 = arith.constant 0 : i32
    %c0_i32_1 = arith.constant 0 : i32
    return %c0_i32, %c0_i32_0 : i32, i32
  }
  func.func @transform_3(%arg0: i32) -> (i32, i32) {
    %c0_i32 = arith.constant 0 : i32
    %c0_i32_0 = arith.constant 0 : i32
    %c0_i32_1 = arith.constant 0 : i32
    return %c0_i32, %c0_i32_0 : i32, i32
  }
  func.func @transform_4(%arg0: i32) -> (i32, i32) {
    %c0_i32 = arith.constant 0 : i32
    %c0_i32_0 = arith.constant 0 : i32
    %c0_i32_1 = arith.constant 0 : i32
    return %c0_i32, %c0_i32_0 : i32, i32
  }
  func.func @transform_5(%arg0: i32) -> (i32, i32) {
    %c0_i32 = arith.constant 0 : i32
    %c0_i32_0 = arith.constant 0 : i32
    %c0_i32_1 = arith.constant 0 : i32
    return %c0_i32, %c0_i32_0 : i32, i32
  }
  func.func @transform_6(%arg0: i32) -> (i32, i32) {
    %c0_i32 = arith.constant 0 : i32
    %c0_i32_0 = arith.constant 0 : i32
    %c0_i32_1 = arith.constant 0 : i32
    return %c0_i32, %c0_i32_0 : i32, i32
  }
  func.func @transform_7(%arg0: i32) -> (i32, i32) {
    %c0_i32 = arith.constant 0 : i32
    %c0_i32_0 = arith.constant 0 : i32
    return %arg0, %c0_i32 : i32, i32
  }
}

module attributes {stable_mosaic.version = 11 : i64} {
  func.func @_ln_matmul_kernel(%arg0: i32, %arg1: i32, %arg2: memref<128x128xbf16, #tpu.memory_space<vmem>>, %arg3: memref<1x128xf32, #tpu.memory_space<vmem>>, %arg4: memref<1x128xf32, #tpu.memory_space<vmem>>, %arg5: memref<128x256xbf16, #tpu.memory_space<vmem>>, %arg6: memref<128x256xf32, #tpu.memory_space<vmem>>, %arg7: memref<128x128xbf16, #tpu.memory_space<vmem>>) attributes {dimension_semantics = [#tpu.dimension_semantics<parallel>, #tpu.dimension_semantics<arbitrary>], iteration_bounds = array<i64: 2, 1>, scalar_prefetch = 0 : i64, scratch_operands = 1 : i64, tpu.core_type = #tpu.core_type<tc>, window_params = [{transform_indices = @transform_0, window_bounds = array<i64: 128, 128>}, {pipeline_mode = #tpu.pipeline_mode<synchronous>, transform_indices = @transform_1, window_bounds = array<i64: 1, 128>}, {pipeline_mode = #tpu.pipeline_mode<synchronous>, transform_indices = @transform_2, window_bounds = array<i64: 1, 128>}, {transform_indices = @transform_3, window_bounds = array<i64: 128, 256>}, {transform_indices = @transform_4, window_bounds = array<i64: 128, 256>}]} {
    %c0 = arith.constant 0 : index
    %c0_0 = arith.constant 0 : index
    %0 = vector.load %arg2[%c0, %c0_0] : memref<128x128xbf16, #tpu.memory_space<vmem>>, vector<128x128xbf16>
    %c0_1 = arith.constant 0 : index
    %c0_2 = arith.constant 0 : index
    %1 = vector.load %arg3[%c0_1, %c0_2] : memref<1x128xf32, #tpu.memory_space<vmem>>, vector<1x128xf32>
    %c0_3 = arith.constant 0 : index
    %c0_4 = arith.constant 0 : index
    %2 = vector.load %arg4[%c0_3, %c0_4] : memref<1x128xf32, #tpu.memory_space<vmem>>, vector<1x128xf32>
    %3 = arith.extf %0 : vector<128x128xbf16> to vector<128x128xf32>
    %cst = arith.constant dense<0.000000e+00> : vector<128xf32>
    %4 = vector.multi_reduction <add>, %3, %cst [1] : vector<128x128xf32> to vector<128xf32>
    %5 = vector.shape_cast %4 : vector<128xf32> to vector<128x1xf32>
    %cst_5 = arith.constant 1.280000e+02 : f32
    %6 = vector.broadcast %cst_5 : f32 to vector<128x1xf32>
    %7 = arith.divf %5, %6 : vector<128x1xf32>
    %8 = vector.broadcast %7 : vector<128x1xf32> to vector<128x128xf32>
    %9 = arith.subf %3, %8 : vector<128x128xf32>
    %10 = arith.mulf %9, %9 : vector<128x128xf32>
    %cst_6 = arith.constant dense<0.000000e+00> : vector<128xf32>
    %11 = vector.multi_reduction <add>, %10, %cst_6 [1] : vector<128x128xf32> to vector<128xf32>
    %12 = vector.shape_cast %11 : vector<128xf32> to vector<128x1xf32>
    %cst_7 = arith.constant 1.280000e+02 : f32
    %13 = vector.broadcast %cst_7 : f32 to vector<128x1xf32>
    %14 = arith.divf %12, %13 : vector<128x1xf32>
    %cst_8 = arith.constant 9.99999974E-6 : f32
    %15 = vector.broadcast %cst_8 : f32 to vector<128x1xf32>
    %16 = arith.addf %14, %15 : vector<128x1xf32>
    %17 = math.rsqrt %16 : vector<128x1xf32>
    %18 = vector.broadcast %17 : vector<128x1xf32> to vector<128x128xf32>
    %19 = arith.mulf %9, %18 : vector<128x128xf32>
    %20 = vector.broadcast %1 : vector<1x128xf32> to vector<128x128xf32>
    %21 = arith.mulf %19, %20 : vector<128x128xf32>
    %22 = vector.broadcast %2 : vector<1x128xf32> to vector<128x128xf32>
    %23 = arith.addf %21, %22 : vector<128x128xf32>
    %24 = arith.truncf %23 : vector<128x128xf32> to vector<128x128xbf16>
    %c0_9 = arith.constant 0 : index
    %c0_10 = arith.constant 0 : index
    %25 = vector.load %arg5[%c0_9, %c0_10] : memref<128x256xbf16, #tpu.memory_space<vmem>>, vector<128x256xbf16>
    %cst_11 = arith.constant dense<0.000000e+00> : vector<128x256xf32>
    %26 = tpu.matmul %24, %25, %cst_11 {dimension_numbers = #tpu.dot_dimension_numbers<[1], [0], [0], [1], [0, 0, 1, 1], [], []>} : vector<128x128xbf16>, vector<128x256xbf16>, vector<128x256xf32> -> vector<128x256xf32>
    %c0_12 = arith.constant 0 : index
    %c0_13 = arith.constant 0 : index
    %27 = vector.load %arg6[%c0_12, %c0_13] : memref<128x256xf32, #tpu.memory_space<vmem>>, vector<128x256xf32>
    tpu.vector_store %arg6[%c0_12, %c0_13], %26 {strides = array<i32>} : memref<128x256xf32, #tpu.memory_space<vmem>>, vector<128x256xf32>,
    return
  }
  func.func @transform_0(%arg0: i32, %arg1: i32) -> (i32, i32) {
    %c0_i32 = arith.constant 0 : i32
    %c0_i32_0 = arith.constant 0 : i32
    return %arg0, %c0_i32 : i32, i32
  }
  func.func @transform_1(%arg0: i32, %arg1: i32) -> (i32, i32) {
    %c0_i32 = arith.constant 0 : i32
    %c0_i32_0 = arith.constant 0 : i32
    %c0_i32_1 = arith.constant 0 : i32
    return %c0_i32, %c0_i32_0 : i32, i32
  }
  func.func @transform_2(%arg0: i32, %arg1: i32) -> (i32, i32) {
    %c0_i32 = arith.constant 0 : i32
    %c0_i32_0 = arith.constant 0 : i32
    %c0_i32_1 = arith.constant 0 : i32
    return %c0_i32, %c0_i32_0 : i32, i32
  }
  func.func @transform_3(%arg0: i32, %arg1: i32) -> (i32, i32) {
    %c0_i32 = arith.constant 0 : i32
    %c0_i32_0 = arith.constant 0 : i32
    return %c0_i32, %arg1 : i32, i32
  }
  func.func @transform_4(%arg0: i32, %arg1: i32) -> (i32, i32) {
    %c0_i32 = arith.constant 0 : i32
    return %arg0, %arg1 : i32, i32
  }
}

</mosaic_0001>

<bundles_post_ra>
// kernel: gpt_lm_forward.9
= control target key start
LH: loop header
LB: loop body
LE: loop exit
PB: predicated region body
PF: predicated region fallthrough
CT: control target
= control target key end

     0   :  { %9 = vsyncpa [#allocation4], 0  ;;  %s1564_s0 = inlined_call_operand.vmem [shape: bf16[256,128], index: 0, kind: input, shape index: {}]   ;;  %s1565_s1 = inlined_call_operand.vmem [shape: f32[1,128], index: 1, kind: input, shape index: {}]   ;;  %s1566_s2 = inlined_call_operand.vmem [shape: f32[1,128], index: 2, kind: input, shape index: {}]   ;;  %s1567_s3 = inlined_call_operand.vmem [shape: bf16[128,256], index: 3, kind: input, shape index: {}]   ;;  %s1568_s4 = inlined_call_operand.hbm [shape: f32[256,256], index: 4, kind: output, shape index: {}]  }
   0x1   :  { %11 = vsyncpa [#allocation4 + $0x1], 0  ;;  %s1159_s15 = smov 0   ;;  %s1161_s16 = smov 0  }
   0x2   :  { %s1163_s17 = smov 0   ;;  %s1165_s18 = smov 0  }
   0x3   :  { %s1167_s19 = smov 0   ;;  %s1169_s20 = smov 0  }
   0x4 LB: > { %s846_s21 = sadd.s32 4294967295, %s1128_s20   ;;  %s847_s22 = sadd.s32 4294967294, %s1128_s20   ;;  %s1128_s20 = sphi %s1169_s20, %s17_s20   ;;  %s1124_s19 = sphi %s1167_s19, %s1575_s19   ;;  %s1120_s18 = sphi %s1165_s18, %s1574_s18   ;;  %s1116_s17 = sphi %s1163_s17, %s1573_s17   ;;  %s1112_s16 = sphi %s1161_s16, %s1572_s16   ;;  %s1108_s15 = sphi %s1159_s15, %s1571_s15  }
   0x5   : > { %s29_s23 = sadd.s32 1, %s1124_s19  ;;  %s132_s24 = sadd.s32 1, %s1116_s17 }
   0x6   : > { %p31_p0 = scmp.ge.s32.totalorder %s29_s23, 2  ;;  %p142_p1 = scmp.ne.s32.totalorder %s1116_s17, %s1112_s16 }
   0x7   : > { %p143_p2 = scmp.eq.s32.totalorder %s846_s21, 1  ;;  %p148_p3 = scmp.ne.s32.totalorder %s1112_s16, %s1108_s15 }
   0x8   : > { %s1577_s23 = smov (%p31_p0, %s29_s23), 0  ;;  %p149_p5 = scmp.eq.s32.totalorder %s847_s22, 1 }
   0x9   : > { %p1199_p4 = por %p143_p2, %p142_p1  ;;  %s127_s26 = ssub.s32 %s1124_s19, %s1577_s23 }
   0xa   : > { %p851_p6 = scmp.ge.s32.totalorder %s1128_s20, 1  ;;  %p130_p7 = scmp.eq.s32.totalorder %s127_s26, 0 }
   0xb   : > { %p1206_p8 = por %p149_p5, %p148_p3  ;;  %p191_p9 = scmp.lt.s32.totalorder %s1128_s20, 3 }
   0xc   : > { %s1212_s28 = scalar_select %p130_p7, %s1116_s17, %s132_s24  }
   0xd   : > { %p192_p10 = pnand %p851_p6, %p191_p9 }
   0xe   : > { %s853_s29 = sshll.u32 (!%p192_p10), %s1120_s18, 4  ;;  %v994_v24 = vld [vmem:[%s1567_s3 + $0x4] ss:$8 sps:$4 sm:$0xff] (!%p192_p10)   ;;  %v996_v25 = vld [vmem:[%s1567_s3] ss:$8 sps:$4 sm:$0xff] (!%p192_p10)   ;;  %s219_s12 = sand.u32 (!%p192_p10), 1, %s1112_s16  }
   0xf   : > { %195 = sbr.rel (%p192_p10) target bundleno = 603 (0x25b), region = 36  ;;  %p223_p11 = scmp.lt.s32.totalorder (!%p192_p10), %s853_s29, 31  ;;  %v997_v26 = vld [vmem:[%s1567_s3 + $0x14] ss:$8 sps:$4 sm:$0xff] (!%p192_p10)   ;;  %596 = vmatprep.subr.bf16.mxu0 (!%p192_p10), %v994_v24  ;;  %920 = vmatprep.subr.bf16.mxu1 (!%p192_p10), %v994_v24 }
  0x10   : > { %597 = vmatpush1.bf16.msra.mxu0 (!%p192_p10), %v996_v25  ;;  %928 = vmatpush1.bf16.msra.mxu1 (!%p192_p10), %v996_v25  ;;  %s852_s13 = sshll.u32 (!%p192_p10), %s219_s12, 8  ;;  %s880_s21 = sshll.u32 (!%p192_p10), %s1120_s18, 12 }
  0x11   : > { %598 = vmatprep.subr.bf16.mxu0 (!%p192_p10), %v997_v26  ;;  %921 = vmatprep.subr.bf16.mxu1 (!%p192_p10), %v997_v26  ;;  %v1003_v26 = vld [vmem:[%s1567_s3 + $0x34] ss:$8 sps:$4 sm:$0xff] (!%p192_p10)   ;;  %s1473_s14 = scalar_lea.vmem (!%p192_p10), [#allocation3], %s852_s13  ;;  %s1518_s18 = scalar_lea.sflag (!%p192_p10), [#allocation4], %s219_s12 }
  0x12   : > { %s758_s22 = sshll.u32 (!%p192_p10), %s1473_s14, 4  ;;  %s1131_s5 = smov (!%p192_p10), [#allocation3]   ;;  %s1511_s22 = int_to_ptr.vmem [resolvable:$true] %s758_s22 }
  0x13   : > { %s1054_s6 = sshll.u32 (!%p192_p10), %s1131_s5, 4  ;;  %s1055_s6 = int_to_ptr.vmem [resolvable:$false] %s1054_s6 }
  0x14   : > { %p1057_p1 = scmp.lt.s32.totalorder (!%p192_p10), %s1511_s22, %s1055_s6 }
  0x16   : > { %s1579_s29 = smov (!%p223_p11, %s853_s29), 31 }
  0x17   : > { %s854_s30 = sshll.u32 %s1579_s29, 2  ;;  %s1509_s29 = scalar_lea.hbm %s1568_s4, %s880_s21 }
  0x18   : > { %s1218_s7 = scalar_lea.vmem %s1564_s0, %s854_s30  ;;  %s1050_s30 = scalar_lea.vmem %s1511_s22, 4096 }
  0x19   : > { %v882_v0 = vld [vmem:[%s1218_s7] sm:$0xff]   ;;  %v1223_v6 = vld [vmem:[%s1218_s7 + $0x8] sm:$0xff]   ;;  %v1233_v12 = vld [vmem:[%s1218_s7 + $0x10] sm:$0xff]   ;;  %p1051_p12 = scmp.ne.s32.totalorder %s1511_s22, %s1050_s30 }
  0x1a   : > { %v916_v1 = vld [vmem:[%s1218_s7 + $0x20] sm:$0xff]   ;;  %v883_v2 = vunpack.c.l.bf16 %v882_v0  ;;  %v884_v4 = vunpack.c.h.bf16 %v882_v0  ;;  %v887_v7 = vunpack.c.l.bf16 %v1223_v6  ;;  %v888_v8 = vunpack.c.h.bf16 %v1223_v6  ;;  %v1228_v9 = vld [vmem:[%s1218_s7 + $0x28] sm:$0xff]   ;;  %v1242_v15 = vld [vmem:[%s1218_s7 + $0x30] sm:$0xff]  }
  0x1b   : > { %v899_v3 = vunpack.c.l.bf16 %v916_v1  ;;  %v900_v5 = vunpack.c.h.bf16 %v916_v1  ;;  %v903_v10 = vunpack.c.l.bf16 %v1228_v9  ;;  %v904_v11 = vunpack.c.h.bf16 %v1228_v9  ;;  %v1251_v18 = vld [vmem:[%s1218_s7 + $0x18] sm:$0xff]   ;;  %p1052_p13 = pnand %p1051_p12, %p1199_p4 }
  0x1c   : > { %271 = vadd.xlane.f32.xlu0 %v883_v2  ;;  %v891_v13 = vunpack.c.l.bf16 %v1233_v12  ;;  %v892_v14 = vunpack.c.h.bf16 %v1233_v12  ;;  %v907_v16 = vunpack.c.l.bf16 %v1242_v15  ;;  %v908_v17 = vunpack.c.h.bf16 %v1242_v15  ;;  %v1260_v21 = vld [vmem:[%s1218_s7 + $0x38] sm:$0xff]   ;;  %s1056_s7 = scalar_lea.vmem %s1055_s6, 8192 }
  0x1d   : > { %287 = vadd.xlane.f32.xlu1 %v899_v3  ;;  %v895_v19 = vunpack.c.l.bf16 %v1251_v18  ;;  %v896_v20 = vunpack.c.h.bf16 %v1251_v18  ;;  %v911_v22 = vunpack.c.l.bf16 %v1260_v21  ;;  %v912_v23 = vunpack.c.h.bf16 %v1260_v21  ;;  %v999_v1 = vld [vmem:[%s1567_s3 + $0x10] ss:$8 sps:$4 sm:$0xff]   ;;  %p1053_p0 = pneg %p1052_p13  ;;  %p1058_p2 = scmp.lt.s32.totalorder %s1056_s7, %s1050_s30 }
  0x1e   : > { %599 = vmatpush1.bf16.msra.mxu0 %v999_v1  ;;  %929 = vmatpush1.bf16.msra.mxu1 %v999_v1 }
  0x1f   : > { %p1059_p3 = por %p1058_p2, %p1057_p1 }
  0x20   : > { %273 = vadd.xlane.f32.xlu0 %v884_v4 }
  0x21   : > { %289 = vadd.xlane.f32.xlu1 %v900_v5  ;;  %p1060_p5 = pnand %p1059_p3, %p1053_p0 }
  0x24   : > { %275 = vadd.xlane.f32.xlu0 %v887_v7 }
  0x25   : > { %277 = vadd.xlane.f32.xlu1 %v888_v8 }
  0x28   : > { %291 = vadd.xlane.f32.xlu0 %v903_v10 }
  0x29   : > { %293 = vadd.xlane.f32.xlu1 %v904_v11 }
  0x2c   : > { %279 = vadd.xlane.f32.xlu0 %v891_v13 }
  0x2d   : > { %281 = vadd.xlane.f32.xlu1 %v892_v14 }
  0x30   : > { %295 = vadd.xlane.f32.xlu0 %v907_v16 }
  0x31   : > { %297 = vadd.xlane.f32.xlu1 %v908_v17 }
  0x34   : > { %283 = vadd.xlane.f32.xlu0 %v895_v19 }
  0x35   : > { %285 = vadd.xlane.f32.xlu1 %v896_v20 }
  0x38   : > { %299 = vadd.xlane.f32.xlu0 %v911_v22 }
  0x39   : > { %301 = vadd.xlane.f32.xlu1 %v912_v23 }
  0xa9   : > { %v272_v27 = vpop.xlane.xlu0 %271 }
  0xaa   : > { %v288_v28 = vpop.xlane.xlu1 %287  ;;  %v304_v29 = vmul.f32 0.0078125, %v272_v27 }
  0xab   : > { %v312_v30 = vmul.f32 0.0078125, %v288_v28 }
  0xac   : > { %v1281_v31 = vsub.f32 %v883_v2, %v304_v29 }
  0xad   : > { %v1283_v32 = vsub.f32 %v899_v3, %v312_v30  ;;  %v274_v33 = vpop.xlane.xlu0 %273 }
  0xae   : > { %v290_v34 = vpop.xlane.xlu1 %289  ;;  %v305_v35 = vmul.f32 0.0078125, %v274_v33  ;;  %v336_v36 = vmul.f32 %v1281_v31, %v1281_v31 }
  0xaf   : > { %v313_v37 = vmul.f32 0.0078125, %v290_v34  ;;  %v344_v40 = vmul.f32 %v1283_v32, %v1283_v32 }
  0xb0   : > { %v1287_v38 = vsub.f32 %v884_v4, %v305_v35  ;;  %352 = vadd.xlane.f32.xlu0 %v336_v36  ;;  %v1006_v35 = vld [vmem:[%s1567_s3 + $0x44] ss:$8 sps:$4 sm:$0xff]   ;;  %v1008_v36 = vld [vmem:[%s1567_s3 + $0x40] ss:$8 sps:$4 sm:$0xff]  }
  0xb1   : > { %v1289_v39 = vsub.f32 %v900_v5, %v313_v37  ;;  %v276_v41 = vpop.xlane.xlu0 %275  ;;  %v1011_v37 = vld [vmem:[%s1567_s3 + $0x50] ss:$8 sps:$4 sm:$0xff]  }
  0xb2   : > { %v278_v42 = vpop.xlane.xlu1 %277  ;;  %v306_v43 = vmul.f32 0.0078125, %v276_v41  ;;  %v337_v44 = vmul.f32 %v1287_v38, %v1287_v38  ;;  %v1014_v41 = vld [vmem:[%s1567_s3 + $0x60] ss:$8 sps:$4 sm:$0xff]  }
  0xb3   : > { %v307_v45 = vmul.f32 0.0078125, %v278_v42  ;;  %v345_v48 = vmul.f32 %v1289_v39, %v1289_v39  ;;  %v1015_v42 = vld [vmem:[%s1567_s3 + $0x74] ss:$8 sps:$4 sm:$0xff]  }
  0xb4   : > { %v1295_v46 = vsub.f32 %v887_v7, %v306_v43  ;;  %368 = vadd.xlane.f32.xlu0 %v344_v40  ;;  %354 = vadd.xlane.f32.xlu1 %v337_v44  ;;  %v1000_v7 = vld [vmem:[%s1567_s3 + $0x24] ss:$8 sps:$4 sm:$0xff]   ;;  %v1017_v43 = vld [vmem:[%s1567_s3 + $0x70] ss:$8 sps:$4 sm:$0xff]   ;;  %v1130_v44 = vmov 0  }
  0xb5   : > { %v1297_v47 = vsub.f32 %v888_v8, %v307_v45  ;;  %v292_v49 = vpop.xlane.xlu0 %291  ;;  %600 = vmatprep.subr.bf16.mxu0 %v1000_v7  ;;  %922 = vmatprep.subr.bf16.mxu1 %v1000_v7  ;;  %v1012_v40 = vld [vmem:[%s1567_s3 + $0x64] ss:$8 sps:$4 sm:$0xff]  }
  0xb6   : > { %v294_v50 = vpop.xlane.xlu1 %293  ;;  %v314_v51 = vmul.f32 0.0078125, %v292_v49  ;;  %v338_v52 = vmul.f32 %v1295_v46, %v1295_v46  ;;  %628 = vmatprep.mubr.bf16.mxu0 %v1130_v44  ;;  %668 = vmatprep.mubr.bf16.mxu1 %v1130_v44 }
  0xb7   : > { %v315_v53 = vmul.f32 0.0078125, %v294_v50  ;;  %v339_v56 = vmul.f32 %v1297_v47, %v1297_v47 }
  0xb8   : > { %v1305_v54 = vsub.f32 %v903_v10, %v314_v51  ;;  %370 = vadd.xlane.f32.xlu1 %v345_v48  ;;  %356 = vadd.xlane.f32.xlu0 %v338_v52 }
  0xb9   : > { %v1309_v55 = vsub.f32 %v904_v11, %v315_v53  ;;  %v280_v57 = vpop.xlane.xlu0 %279 }
  0xba   : > { %v282_v58 = vpop.xlane.xlu1 %281  ;;  %v308_v59 = vmul.f32 0.0078125, %v280_v57  ;;  %v346_v60 = vmul.f32 %v1305_v54, %v1305_v54 }
  0xbb   : > { %v309_v61 = vmul.f32 0.0078125, %v282_v58  ;;  %v347_v0 = vmul.f32 %v1309_v55, %v1309_v55 }
  0xbc   : > { %v1317_v62 = vsub.f32 %v891_v13, %v308_v59  ;;  %358 = vadd.xlane.f32.xlu1 %v339_v56  ;;  %372 = vadd.xlane.f32.xlu0 %v346_v60  ;;  %v1002_v13 = vld [vmem:[%s1567_s3 + $0x20] ss:$8 sps:$4 sm:$0xff]  }
  0xbd   : > { %v1321_v63 = vsub.f32 %v892_v14, %v309_v61  ;;  %v296_v2 = vpop.xlane.xlu0 %295  ;;  %601 = vmatpush1.bf16.msra.mxu0 %v1002_v13  ;;  %930 = vmatpush1.bf16.msra.mxu1 %v1002_v13 }
  0xbe   : > { %v298_v3 = vpop.xlane.xlu1 %297  ;;  %v316_v4 = vmul.f32 0.0078125, %v296_v2  ;;  %v340_v5 = vmul.f32 %v1317_v62, %v1317_v62  ;;  %602 = vmatprep.subr.bf16.mxu0 %v1003_v26  ;;  %923 = vmatprep.subr.bf16.mxu1 %v1003_v26 }
  0xbf   : > { %v317_v6 = vmul.f32 0.0078125, %v298_v3  ;;  %v341_v10 = vmul.f32 %v1321_v63, %v1321_v63 }
  0xc0   : > { %v1335_v8 = vsub.f32 %v907_v16, %v316_v4  ;;  %374 = vadd.xlane.f32.xlu1 %v347_v0  ;;  %360 = vadd.xlane.f32.xlu0 %v340_v5 }
  0xc1   : > { %v1339_v9 = vsub.f32 %v908_v17, %v317_v6  ;;  %v284_v11 = vpop.xlane.xlu0 %283 }
  0xc2   : > { %v286_v12 = vpop.xlane.xlu1 %285  ;;  %v310_v14 = vmul.f32 0.0078125, %v284_v11  ;;  %v348_v16 = vmul.f32 %v1335_v8, %v1335_v8 }
  0xc3   : > { %v311_v24 = vmul.f32 0.0078125, %v286_v12  ;;  %v349_v25 = vmul.f32 %v1339_v9, %v1339_v9 }
  0xc4   : > { %v1350_v15 = vsub.f32 %v895_v19, %v310_v14  ;;  %362 = vadd.xlane.f32.xlu1 %v341_v10  ;;  %376 = vadd.xlane.f32.xlu0 %v348_v16  ;;  %v1005_v19 = vld [vmem:[%s1567_s3 + $0x30] ss:$8 sps:$4 sm:$0xff]  }
  0xc5   : > { %v1354_v17 = vsub.f32 %v896_v20, %v311_v24  ;;  %v300_v27 = vpop.xlane.xlu0 %299  ;;  %603 = vmatpush1.bf16.msra.mxu0 %v1005_v19  ;;  %931 = vmatpush1.bf16.msra.mxu1 %v1005_v19  ;;  %v1410_v24 = vld [vmem:[%s1565_s1] ss:$0 sm:$0xff] }
  0xc6   : > { %v302_v28 = vpop.xlane.xlu1 %301  ;;  %v318_v29 = vmul.f32 0.0078125, %v300_v27  ;;  %v342_v30 = vmul.f32 %v1350_v15, %v1350_v15  ;;  %604 = vmatprep.subr.bf16.mxu0 %v1006_v35  ;;  %924 = vmatprep.subr.bf16.mxu1 %v1006_v35  ;;  %v1417_v35 = vld [vmem:[%s1566_s2] ss:$0 sm:$0xff] }
  0xc7   : > { %v319_v18 = vmul.f32 0.0078125, %v302_v28  ;;  %v343_v34 = vmul.f32 %v1354_v17, %v1354_v17 }
  0xc8   : > { %v1368_v20 = vsub.f32 %v911_v22, %v318_v29  ;;  %378 = vadd.xlane.f32.xlu1 %v349_v25  ;;  %364 = vadd.xlane.f32.xlu0 %v342_v30 }
  0xc9   : > { %v1372_v33 = vsub.f32 %v912_v23, %v319_v18  ;;  %605 = vmatpush1.bf16.msra.mxu0 %v1008_v36  ;;  %932 = vmatpush1.bf16.msra.mxu1 %v1008_v36  ;;  %v1009_v23 = vld [vmem:[%s1567_s3 + $0x54] ss:$8 sps:$4 sm:$0xff]  }
  0xca   : > { %v350_v22 = vmul.f32 %v1368_v20, %v1368_v20  ;;  %606 = vmatprep.subr.bf16.mxu0 %v1009_v23  ;;  %925 = vmatprep.subr.bf16.mxu1 %v1009_v23 }
  0xcb   : > { %v351_v21 = vmul.f32 %v1372_v33, %v1372_v33 }
  0xcc   : > { %366 = vadd.xlane.f32.xlu1 %v343_v34  ;;  %380 = vadd.xlane.f32.xlu0 %v350_v22 }
  0xcd   : > { %607 = vmatpush1.bf16.msra.mxu0 %v1011_v37  ;;  %933 = vmatpush1.bf16.msra.mxu1 %v1011_v37 }
  0xce   : > { %608 = vmatprep.subr.bf16.mxu0 %v1012_v40  ;;  %926 = vmatprep.subr.bf16.mxu1 %v1012_v40 }
  0xd0   : > { %382 = vadd.xlane.f32.xlu1 %v351_v21 }
  0xd1   : > { %609 = vmatpush1.bf16.msra.mxu0 %v1014_v41  ;;  %934 = vmatpush1.bf16.msra.mxu1 %v1014_v41 }
  0xd2   : > { %610 = vmatprep.subr.bf16.mxu0 %v1015_v42  ;;  %927 = vmatprep.subr.bf16.mxu1 %v1015_v42 }
  0xd5   : > { %611 = vmatpush1.bf16.msra.mxu0 %v1017_v43  ;;  %935 = vmatpush1.bf16.msra.mxu1 %v1017_v43 }
 0x13d   : > { %v353_v45 = vpop.xlane.xlu0 %352 }
 0x13e   : > { %v384_v48 = vmul.f32 0.0078125, %v353_v45 }
 0x140   : > { %v400_v49 = vadd.f32 1e-05, %v384_v48 }
 0x141   : > { %v355_v50 = vpop.xlane.xlu1 %354  ;;  %v369_v51 = vpop.xlane.xlu0 %368 }
 0x142   : > { %1018 = vrsqrt.f32 %v400_v49  ;;  %v385_v52 = vmul.f32 0.0078125, %v355_v50  ;;  %v392_v53 = vmul.f32 0.0078125, %v369_v51 }
 0x144   : > { %v401_v56 = vadd.f32 1e-05, %v385_v52  ;;  %v408_v57 = vadd.f32 1e-05, %v392_v53 }
 0x145   : > { %v371_v58 = vpop.xlane.xlu1 %370  ;;  %v357_v59 = vpop.xlane.xlu0 %356 }
 0x146   : > { %1020 = vrsqrt.f32 %v401_v56  ;;  %v393_v60 = vmul.f32 0.0078125, %v371_v58  ;;  %v386_v61 = vmul.f32 0.0078125, %v357_v59 }
 0x147   : > { %1022 = vrsqrt.f32 %v408_v57 }
 0x148   : > { %v409_v0 = vadd.f32 1e-05, %v393_v60  ;;  %v402_v1 = vadd.f32 1e-05, %v386_v61 }
 0x149   : > { %v359_v2 = vpop.xlane.xlu1 %358  ;;  %v373_v3 = vpop.xlane.xlu0 %372 }
 0x14a   : > { %1024 = vrsqrt.f32 %v409_v0  ;;  %v387_v4 = vmul.f32 0.0078125, %v359_v2  ;;  %v394_v5 = vmul.f32 0.0078125, %v373_v3 }
 0x14b   : > { %1026 = vrsqrt.f32 %v402_v1 }
 0x14c   : > { %v1019_v6 = vpop.eup %1018  ;;  %v403_v7 = vadd.f32 1e-05, %v387_v4  ;;  %v410_v10 = vadd.f32 1e-05, %v394_v5 }
 0x14d   : > { %v375_v11 = vpop.xlane.xlu1 %374  ;;  %v361_v12 = vpop.xlane.xlu0 %360  ;;  %v432_v13 = vmul.f32 %v1019_v6, %v1281_v31 }
 0x14e   : > { %1028 = vrsqrt.f32 %v403_v7  ;;  %v395_v14 = vmul.f32 0.0078125, %v375_v11  ;;  %v388_v16 = vmul.f32 0.0078125, %v361_v12 }
 0x14f   : > { %1030 = vrsqrt.f32 %v410_v10  ;;  %v454_v18 = vmul.f32 %v1410_v24, %v432_v13 }
 0x150   : > { %v1021_v25 = vpop.eup %1020  ;;  %v411_v26 = vadd.f32 1e-05, %v395_v14  ;;  %v404_v27 = vadd.f32 1e-05, %v388_v16 }
 0x151   : > { %v1023_v28 = vpop.eup %1022  ;;  %v363_v19 = vpop.xlane.xlu1 %362  ;;  %v433_v30 = vmul.f32 %v1021_v25, %v1287_v38  ;;  %v476_v42 = vadd.f32 %v1417_v35, %v454_v18 }
 0x152   : > { %v377_v29 = vpop.xlane.xlu0 %376  ;;  %1032 = vrsqrt.f32 %v411_v26  ;;  %v389_v31 = vmul.f32 0.0078125, %v363_v19  ;;  %v440_v36 = vmul.f32 %v1023_v28, %v1283_v32 }
 0x153   : > { %v396_v34 = vmul.f32 0.0078125, %v377_v29  ;;  %1034 = vrsqrt.f32 %v404_v27  ;;  %v455_v22 = vmul.f32 %v1410_v24, %v433_v30 }
 0x154   : > { %v1025_v21 = vpop.eup %1024  ;;  %v405_v23 = vadd.f32 1e-05, %v389_v31  ;;  %v462_v48 = vmul.f32 %v1410_v24, %v440_v36 }
 0x155   : > { %v412_v37 = vadd.f32 1e-05, %v396_v34  ;;  %v1027_v40 = vpop.eup %1026  ;;  %v379_v38 = vpop.xlane.xlu1 %378  ;;  %v477_v43 = vadd.f32 %v1417_v35, %v455_v22  ;;  %v441_v45 = vmul.f32 %v1025_v21, %v1289_v39 }
 0x156   : > { %v365_v41 = vpop.xlane.xlu0 %364  ;;  %1036 = vrsqrt.f32 %v405_v23  ;;  %v397_v49 = vmul.f32 0.0078125, %v379_v38  ;;  %v434_v52 = vmul.f32 %v1027_v40, %v1295_v46  ;;  %v484_v39 = vadd.f32 %v1417_v35, %v462_v48 }
 0x157   : > { %v390_v32 = vmul.f32 0.0078125, %v365_v41  ;;  %1038 = vrsqrt.f32 %v412_v37  ;;  %v492_v50 = vpack.c.bf16 %v477_v43, %v476_v42  ;;  %v463_v51 = vmul.f32 %v1410_v24, %v441_v45 }
 0x158   : > { %v1029_v53 = vpop.eup %1028  ;;  %v413_v56 = vadd.f32 1e-05, %v397_v49  ;;  %v456_v1 = vmul.f32 %v1410_v24, %v434_v52 }
 0x159   : > { %v406_v57 = vadd.f32 1e-05, %v390_v32  ;;  %v1031_v58 = vpop.eup %1030  ;;  %v367_v59 = vpop.xlane.xlu1 %366  ;;  %629 = vmatmul.mubr.bf16.vlgmr.msra.gmra.mrb[0].mxu0 %v492_v50  ;;  %v485_v61 = vadd.f32 %v1417_v35, %v463_v51  ;;  %v435_v0 = vmul.f32 %v1029_v53, %v1297_v47 }
 0x15a   : > { %v381_v60 = vpop.xlane.xlu0 %380  ;;  %1040 = vrsqrt.f32 %v413_v56  ;;  %v391_v2 = vmul.f32 0.0078125, %v367_v59  ;;  %638 = vmatprep.mubr.bf16.mxu0 %v1130_v44  ;;  %v442_v46 = vmul.f32 %v1031_v58, %v1305_v54  ;;  %v478_v47 = vadd.f32 %v1417_v35, %v456_v1 }
 0x15b   : > { %v398_v3 = vmul.f32 0.0078125, %v381_v60  ;;  %1042 = vrsqrt.f32 %v406_v57  ;;  %v496_v4 = vpack.c.bf16 %v485_v61, %v484_v39  ;;  %v457_v5 = vmul.f32 %v1410_v24, %v435_v0 }
 0x15c   : > { %v1033_v6 = vpop.eup %1032  ;;  %v407_v7 = vadd.f32 1e-05, %v391_v2  ;;  %v464_v16 = vmul.f32 %v1410_v24, %v442_v46 }
 0x15d   : > { %v414_v10 = vadd.f32 1e-05, %v398_v3  ;;  %v1035_v11 = vpop.eup %1034  ;;  %v383_v12 = vpop.xlane.xlu1 %382  ;;  %669 = vmatmul.mubr.bf16.vlgmr.msra.gmra.mrb[0].mxu1 %v496_v4  ;;  %v479_v13 = vadd.f32 %v1417_v35, %v457_v5  ;;  %v443_v14 = vmul.f32 %v1033_v6, %v1309_v55 }
 0x15e   : > { %1044 = vrsqrt.f32 %v407_v7  ;;  %v399_v54 = vmul.f32 0.0078125, %v383_v12  ;;  %678 = vmatprep.mubr.bf16.mxu1 %v1130_v44  ;;  %v436_v25 = vmul.f32 %v1035_v11, %v1317_v62  ;;  %v486_v30 = vadd.f32 %v1417_v35, %v464_v16 }
 0x15f   : > { %1046 = vrsqrt.f32 %v414_v10  ;;  %v493_v26 = vpack.c.bf16 %v479_v13, %v478_v47  ;;  %v465_v27 = vmul.f32 %v1410_v24, %v443_v14 }
 0x160   : > { %v1037_v28 = vpop.eup %1036  ;;  %v415_v19 = vadd.f32 1e-05, %v399_v54  ;;  %v458_v31 = vmul.f32 %v1410_v24, %v436_v25 }
 0x161   : > { %v1039_v29 = vpop.eup %1038  ;;  %639 = vmatmul.mubr.bf16.gmra.mrb[4].mxu0 %v493_v26  ;;  %v487_v55 = vadd.f32 %v1417_v35, %v465_v27  ;;  %v437_v18 = vmul.f32 %v1037_v28, %v1321_v63 }
 0x162   : > { %1048 = vrsqrt.f32 %v415_v19  ;;  %648 = vmatprep.mubr.bf16.mxu0 %v1130_v44  ;;  %v444_v62 = vmul.f32 %v1039_v29, %v1335_v8  ;;  %v480_v23 = vadd.f32 %v1417_v35, %v458_v31 }
 0x163   : > { %v497_v34 = vpack.c.bf16 %v487_v55, %v486_v30  ;;  %v459_v36 = vmul.f32 %v1410_v24, %v437_v18 }
 0x164   : > { %v1041_v22 = vpop.eup %1040  ;;  %v466_v63 = vmul.f32 %v1410_v24, %v444_v62 }
 0x165   : > { %v1043_v21 = vpop.eup %1042  ;;  %679 = vmatmul.mubr.bf16.gmra.mrb[4].mxu1 %v497_v34  ;;  %v481_v37 = vadd.f32 %v1417_v35, %v459_v36  ;;  %v445_v40 = vmul.f32 %v1041_v22, %v1339_v9 }
 0x166   : > { %688 = vmatprep.mubr.bf16.mxu1 %v1130_v44  ;;  %v438_v38 = vmul.f32 %v1043_v21, %v1350_v15  ;;  %v488_v45 = vadd.f32 %v1417_v35, %v466_v63 }
 0x167   : > { %v494_v41 = vpack.c.bf16 %v481_v37, %v480_v23  ;;  %v467_v8 = vmul.f32 %v1410_v24, %v445_v40 }
 0x168   : > { %v1045_v42 = vpop.eup %1044  ;;  %v460_v9 = vmul.f32 %v1410_v24, %v438_v38 }
 0x169   : > { %v1047_v43 = vpop.eup %1046  ;;  %649 = vmatmul.mubr.bf16.gmra.mrb[8].mxu0 %v494_v41  ;;  %v489_v48 = vadd.f32 %v1417_v35, %v467_v8  ;;  %v439_v49 = vmul.f32 %v1045_v42, %v1354_v17 }
 0x16a   : > { %658 = vmatprep.mubr.bf16.mxu0 %v1130_v44  ;;  %v446_v32 = vmul.f32 %v1047_v43, %v1368_v20  ;;  %v482_v52 = vadd.f32 %v1417_v35, %v460_v9 }
 0x16b   : > { %v498_v50 = vpack.c.bf16 %v489_v48, %v488_v45  ;;  %v461_v15 = vmul.f32 %v1410_v24, %v439_v49 }
 0x16c   : > { %v1049_v51 = vpop.eup %1048  ;;  %v468_v17 = vmul.f32 %v1410_v24, %v446_v32 }
 0x16d   : > { %689 = vmatmul.mubr.bf16.gmra.mrb[8].mxu1 %v498_v50  ;;  %v483_v53 = vadd.f32 %v1417_v35, %v461_v15  ;;  %v447_v56 = vmul.f32 %v1049_v51, %v1372_v33 }
 0x16e   : > { %698 = vmatprep.mubr.bf16.mxu1 %v1130_v44  ;;  %v490_v58 = vadd.f32 %v1417_v35, %v468_v17 }
 0x16f   : > { %v495_v57 = vpack.c.bf16 %v483_v53, %v482_v52  ;;  %v469_v20 = vmul.f32 %v1410_v24, %v447_v56 }
 0x171   : > { %659 = vmatmul.mubr.bf16.gmra.mrb[12].mxu0 %v495_v57  ;;  %v491_v59 = vadd.f32 %v1417_v35, %v469_v20 }
 0x173   : > { %v499_v60 = vpack.c.bf16 %v491_v59, %v490_v58 }
 0x175   : > { %699 = vmatmul.mubr.bf16.gmra.mrb[12].mxu1 %v499_v60 }
 0x22c   : > { %v630_v39 = vpop.f32.mrb[0].mxu0 }
 0x22d   : > { %709 = vst [vmem:[%s1473_s14] sm:$0xff] %v630_v39  ;;  %v632_v33 = vpop.f32.mrb[1].mxu0 }
 0x22e   : > { %710 = vst [vmem:[%s1473_s14 + $0x8] sm:$0xff] %v632_v33  ;;  %v634_v44 = vpop.f32.mrb[2].mxu0 }
 0x22f   : > { %711 = vst [vmem:[%s1473_s14 + $0x10] sm:$0xff] %v634_v44  ;;  %v636_v24 = vpop.f32.mrb[3].mxu0 }
 0x230   : > { %712 = vst [vmem:[%s1473_s14 + $0x18] sm:$0xff] %v636_v24  ;;  %v670_v35 = vpop.f32.mrb[0].mxu1 }
 0x231   : > { %725 = vst [vmem:[%s1473_s14 + $0x80] sm:$0xff] %v670_v35  ;;  %v672_v61 = vpop.f32.mrb[1].mxu1 }
 0x232   : > { %726 = vst [vmem:[%s1473_s14 + $0x88] sm:$0xff] %v672_v61  ;;  %v674_v0 = vpop.f32.mrb[2].mxu1 }
 0x233   : > { %727 = vst [vmem:[%s1473_s14 + $0x90] sm:$0xff] %v674_v0  ;;  %v676_v1 = vpop.f32.mrb[3].mxu1 }
 0x234   : > { %728 = vst [vmem:[%s1473_s14 + $0x98] sm:$0xff] %v676_v1  ;;  %v640_v2 = vpop.f32.mrb[4].mxu0 }
 0x235   : > { %713 = vst [vmem:[%s1473_s14 + $0x20] sm:$0xff] %v640_v2  ;;  %v642_v3 = vpop.f32.mrb[5].mxu0 }
 0x236   : > { %714 = vst [vmem:[%s1473_s14 + $0x28] sm:$0xff] %v642_v3  ;;  %v644_v46 = vpop.f32.mrb[6].mxu0 }
 0x237   : > { %715 = vst [vmem:[%s1473_s14 + $0x30] sm:$0xff] %v644_v46  ;;  %v646_v4 = vpop.f32.mrb[7].mxu0 }
 0x238   : > { %716 = vst [vmem:[%s1473_s14 + $0x38] sm:$0xff] %v646_v4  ;;  %v680_v5 = vpop.f32.mrb[4].mxu1 }
 0x239   : > { %729 = vst [vmem:[%s1473_s14 + $0xa0] sm:$0xff] %v680_v5  ;;  %v682_v6 = vpop.f32.mrb[5].mxu1 }
 0x23a   : > { %730 = vst [vmem:[%s1473_s14 + $0xa8] sm:$0xff] %v682_v6  ;;  %v684_v7 = vpop.f32.mrb[6].mxu1 }
 0x23b   : > { %731 = vst [vmem:[%s1473_s14 + $0xb0] sm:$0xff] %v684_v7  ;;  %v686_v10 = vpop.f32.mrb[7].mxu1 }
 0x23c   : > { %732 = vst [vmem:[%s1473_s14 + $0xb8] sm:$0xff] %v686_v10  ;;  %v650_v11 = vpop.f32.mrb[8].mxu0 }
 0x23d   : > { %717 = vst [vmem:[%s1473_s14 + $0x40] sm:$0xff] %v650_v11  ;;  %v652_v12 = vpop.f32.mrb[9].mxu0 }
 0x23e   : > { %718 = vst [vmem:[%s1473_s14 + $0x48] sm:$0xff] %v652_v12  ;;  %v654_v47 = vpop.f32.mrb[10].mxu0 }
 0x23f   : > { %719 = vst [vmem:[%s1473_s14 + $0x50] sm:$0xff] %v654_v47  ;;  %v656_v13 = vpop.f32.mrb[11].mxu0 }
 0x240   : > { %720 = vst [vmem:[%s1473_s14 + $0x58] sm:$0xff] %v656_v13  ;;  %v690_v14 = vpop.f32.mrb[8].mxu1 }
 0x241   : > { %733 = vst [vmem:[%s1473_s14 + $0xc0] sm:$0xff] %v690_v14  ;;  %v692_v16 = vpop.f32.mrb[9].mxu1 }
 0x242   : > { %734 = vst [vmem:[%s1473_s14 + $0xc8] sm:$0xff] %v692_v16  ;;  %v694_v54 = vpop.f32.mrb[10].mxu1 }
 0x243   : > { %735 = vst [vmem:[%s1473_s14 + $0xd0] sm:$0xff] %v694_v54  ;;  %v696_v25 = vpop.f32.mrb[11].mxu1 }
 0x244   : > { %736 = vst [vmem:[%s1473_s14 + $0xd8] sm:$0xff] %v696_v25  ;;  %v660_v26 = vpop.f32.mrb[12].mxu0 }
 0x245   : > { %721 = vst [vmem:[%s1473_s14 + $0x60] sm:$0xff] %v660_v26  ;;  %v662_v27 = vpop.f32.mrb[13].mxu0 }
 0x246   : > { %722 = vst [vmem:[%s1473_s14 + $0x68] sm:$0xff] %v662_v27  ;;  %v664_v28 = vpop.f32.mrb[14].mxu0 }
 0x247   : > { %723 = vst [vmem:[%s1473_s14 + $0x70] sm:$0xff] %v664_v28  ;;  %v666_v19 = vpop.f32.mrb[15].mxu0 }
 0x248   : > { %724 = vst [vmem:[%s1473_s14 + $0x78] sm:$0xff] %v666_v19  ;;  %v700_v29 = vpop.f32.mrb[12].mxu1 }
 0x249   : > { %737 = vst [vmem:[%s1473_s14 + $0xe0] sm:$0xff] %v700_v29  ;;  %v702_v30 = vpop.f32.mrb[13].mxu1 }
 0x24a   : > { %738 = vst [vmem:[%s1473_s14 + $0xe8] sm:$0xff] %v702_v30  ;;  %v704_v55 = vpop.f32.mrb[14].mxu1 }
 0x24b   : > { %739 = vst [vmem:[%s1473_s14 + $0xf0] sm:$0xff] %v704_v55  ;;  %v706_v18 = vpop.f32.mrb[15].mxu1 }
 0x24c   : > { %740 = vst [vmem:[%s1473_s14 + $0xf8] sm:$0xff] %v706_v18 }
 0x24d   : > { %1063 = shalt.err (!%p1060_p5)
}
 0x24e   : > { %s1064_s8 = scalar_lea.hbm %s1509_s29, 4096  ;;  %s1068_s11 = scalar_lea.hbm %s1568_s4, 8192 }
 0x24f   : > { %p1065_p6 = scmp.ne.s32.totalorder %s1509_s29, %s1064_s8  ;;  %p1069_p10 = scmp.lt.u32.totalorder %s1509_s29, %s1568_s4 }
 0x250   : > { %p1070_p11 = scmp.lt.u32.totalorder %s1068_s11, %s1064_s8  ;;  %p1072_p13 = scmp.lt.u32.totalorder %s1064_s8, %s1509_s29 }
 0x251   : > { %p1066_p7 = pnand %p1065_p6, %p1199_p4 }
 0x252   : > { %p1071_p12 = por %p1070_p11, %p1069_p10 }
 0x253   : > { %p1067_p9 = pneg %p1066_p7 }
 0x254   : > { %p1073_p0 = por %p1072_p13, %p1071_p12 }
 0x256   : > { %p1074_p1 = pnand %p1073_p0, %p1067_p9 }
 0x258   : > { %1077 = shalt.err (!%p1074_p1)
}
 0x259   : > { %s1132_s14 = smov 256   ;;  %s1133_s21 = smov 16  }
 0x25a   : > { %936 = dma.vmem_to_hbm [thread:$0]  (%p1199_p4), %s1511_s22, 4096, %s1509_s29, %s1518_s18, %s1132_s14, %s1132_s14, %s1133_s21  }
 0x25b PF: > { %p942_p2 = scmp.ge.s32.totalorder %s1128_s20, 2  ;;  %s773_s24 = sand.u32 1, %s1108_s15  }
 0x25c   : > { %s774_s26 = scalar_lea.sflag [#allocation4], %s773_s24 }
 0x25d   : > { %p939_p3 = pnand %p942_p2, %p1206_p8 }
 0x25f   : > { %1103 = dma.done.wait (!%p939_p3), %s774_s26, 4096  }
 0x260   : > { %1105 = vsyncadd (!%p939_p3), %s774_s26, 4294963200  ;;  %s17_s20 = sadd.s32 1, %s1128_s20   ;;  %s1571_s15 = smov %s1112_s16 }
 0x261   : > { %p14_p5 = scmp.ge.s32.totalorder %s17_s20, 4   ;;  %s1572_s16 = smov %s1116_s17 }
 0x262   : > { %s1573_s17 = smov %s1212_s28  ;;  %s1574_s18 = smov %s1124_s19 }
 0x263   : > { %s1575_s19 = smov %s1577_s23  ;;  %16 = sbr.rel (!%p14_p5) target bundleno = 4 (0x4), region = 74 }
 0x26a   :  { %779 = vsyncpa [#allocation4], 1 }
 0x26b   :  { %781 = vsyncpa [#allocation4 + $0x1], 1 }

// kernel: gpt_lm_forward.6
= control target key start
LH: loop header
LB: loop body
LE: loop exit
PB: predicated region body
PF: predicated region fallthrough
CT: control target
= control target key end

     0   :  { %s2825_s24 = smov 0   ;;  %s4091_s0 = inlined_call_operand.vmem [shape: bf16[256,128], index: 0, kind: input, shape index: {}]   ;;  %s4092_s1 = inlined_call_operand.vmem [shape: f32[1,128], index: 1, kind: input, shape index: {}]   ;;  %s4093_s2 = inlined_call_operand.vmem [shape: f32[1,128], index: 2, kind: input, shape index: {}]   ;;  %s4094_s3 = inlined_call_operand.vmem [shape: bf16[128,512], index: 3, kind: input, shape index: {}]   ;;  %s4095_s4 = inlined_call_operand.vmem [shape: f32[1,512], index: 4, kind: input, shape index: {}]   ;;  %s4096_s5 = inlined_call_operand.vmem [shape: bf16[512,128], index: 5, kind: input, shape index: {}]   ;;  %s4097_s6 = inlined_call_operand.vmem [shape: f32[1,128], index: 6, kind: input, shape index: {}]   ;;  %s4098_s7 = inlined_call_operand.vmem [shape: bf16[256,128], index: 7, kind: output, shape index: {}]  }
   0x1 LB: > { %s2203_s25 = sadd.s32 4294967295, %s2782_s24   ;;  %p2207_p0 = scmp.ge.s32.totalorder %s2782_s24, 1  ;;  %s2782_s24 = sphi %s2825_s24, %s17_s24  }
   0x2   : > { %p238_p1 = scmp.lt.s32.totalorder %s2782_s24, 3 }
   0x4   : > { %p239_p2 = pnand %p2207_p0, %p238_p1 }
   0x6   : > { %242 = sbr.rel (%p239_p2) target bundleno = 955 (0x3bb), region = 48 }
   0xd   : > { %s2208_s26 = sshll.u32 %s2203_s25, 4  ;;  %v2536_v24 = vld [vmem:[%s4094_s3 + $0x4] ss:$16 sps:$4 sm:$0xff]   ;;  %v2538_v25 = vld [vmem:[%s4094_s3 + $0xc] ss:$16 sps:$4 sm:$0xff]  }
   0xe   : > { %p271_p3 = scmp.lt.s32.totalorder %s2208_s26, 31  ;;  %v2540_v26 = vld [vmem:[%s4094_s3] ss:$16 sps:$4 sm:$0xff]   ;;  %v2541_v27 = vld [vmem:[%s4094_s3 + $0x8] ss:$16 sps:$4 sm:$0xff]   ;;  %760 = vmatprep.subr.bf16.mxu0 %v2536_v24  ;;  %873 = vmatprep.subr.bf16.mxu1 %v2538_v25 }
   0xf   : > { %v2542_v28 = vld [vmem:[%s4094_s3 + $0x24] ss:$16 sps:$4 sm:$0xff]   ;;  %v2544_v29 = vld [vmem:[%s4094_s3 + $0x2c] ss:$16 sps:$4 sm:$0xff]   ;;  %761 = vmatpush1.bf16.msra.mxu0 %v2540_v26  ;;  %874 = vmatpush1.bf16.msra.mxu1 %v2541_v27 }
  0x10   : > { %s4354_s26 = smov (!%p271_p3, %s2208_s26), 31  ;;  %762 = vmatprep.subr.bf16.mxu0 %v2542_v28  ;;  %875 = vmatprep.subr.bf16.mxu1 %v2544_v29  ;;  %v2548_v27 = vld [vmem:[%s4094_s3 + $0x44] ss:$16 sps:$4 sm:$0xff]   ;;  %v2550_v28 = vld [vmem:[%s4094_s3 + $0x4c] ss:$16 sps:$4 sm:$0xff]  }
  0x11   : > { %s2209_s27 = sshll.u32 %s4354_s26, 2 }
  0x12   : > { %s274_s30 = scalar_lea.vmem %s4091_s0, %s2209_s27  ;;  %s4050_s29 = scalar_lea.vmem %s4098_s7, %s2209_s27 }
  0x13   : > { %v2314_v0 = vld [vmem:[%s274_s30] sm:$0xff]   ;;  %v2385_v1 = vld [vmem:[%s274_s30 + $0x8] sm:$0xff]   ;;  %v2386_v4 = vld [vmem:[%s274_s30 + $0x10] sm:$0xff]  }
  0x14   : > { %v2841_v2 = vunpack.c.l.bf16 %v2314_v0  ;;  %v2843_v3 = vunpack.c.l.bf16 %v2385_v1  ;;  %v2847_v5 = vunpack.c.h.bf16 %v2314_v0  ;;  %v2849_v6 = vunpack.c.h.bf16 %v2385_v1  ;;  %v2387_v7 = vld [vmem:[%s274_s30 + $0x18] sm:$0xff]   ;;  %v2388_v10 = vld [vmem:[%s274_s30 + $0x20] sm:$0xff]   ;;  %v2389_v13 = vld [vmem:[%s274_s30 + $0x28] sm:$0xff]  }
  0x15   : > { %v2853_v8 = vunpack.c.l.bf16 %v2386_v4  ;;  %v2855_v9 = vunpack.c.h.bf16 %v2386_v4  ;;  %v2859_v11 = vunpack.c.l.bf16 %v2387_v7  ;;  %v2861_v12 = vunpack.c.h.bf16 %v2387_v7  ;;  %v2390_v16 = vld [vmem:[%s274_s30 + $0x30] sm:$0xff]   ;;  %v2391_v19 = vld [vmem:[%s274_s30 + $0x38] sm:$0xff]  }
  0x16   : > { %4177 = vst [vmem:[#allocation2_spill] sm:$0xff] %v2841_v2  ;;  %4178 = vst [vmem:[#allocation3_spill] sm:$0xff] %v2843_v3  ;;  %317 = vadd.xlane.f32.xlu0 %v2841_v2  ;;  %321 = vadd.xlane.f32.xlu1 %v2843_v3  ;;  %v2865_v14 = vunpack.c.l.bf16 %v2388_v10  ;;  %v2867_v15 = vunpack.c.h.bf16 %v2388_v10  ;;  %v2871_v17 = vunpack.c.l.bf16 %v2389_v13  ;;  %v2873_v18 = vunpack.c.h.bf16 %v2389_v13  ;;  %v2546_v10 = vld [vmem:[%s4094_s3 + $0x20] ss:$16 sps:$4 sm:$0xff]   ;;  %v2547_v13 = vld [vmem:[%s4094_s3 + $0x28] ss:$16 sps:$4 sm:$0xff]  }
  0x17   : > { %4179 = vst [vmem:[#allocation4_spill] sm:$0xff] %v2847_v5  ;;  %4180 = vst [vmem:[#allocation5_spill] sm:$0xff] %v2849_v6  ;;  %v2877_v20 = vunpack.c.l.bf16 %v2390_v16  ;;  %v2879_v21 = vunpack.c.h.bf16 %v2390_v16  ;;  %v2883_v22 = vunpack.c.l.bf16 %v2391_v19  ;;  %v2885_v23 = vunpack.c.h.bf16 %v2391_v19  ;;  %763 = vmatpush1.bf16.msra.mxu0 %v2546_v10  ;;  %876 = vmatpush1.bf16.msra.mxu1 %v2547_v13 }
  0x18   : > { %4181 = vst [vmem:[#allocation6_spill] sm:$0xff] %v2853_v8  ;;  %4182 = vst [vmem:[#allocation7_spill] sm:$0xff] %v2855_v9  ;;  %764 = vmatprep.subr.bf16.mxu0 %v2548_v27  ;;  %877 = vmatprep.subr.bf16.mxu1 %v2550_v28  ;;  %v2574_v27 = vld [vmem:[%s4094_s3 + $0xcc] ss:$16 sps:$4 sm:$0xff]   ;;  %v2576_v28 = vld [vmem:[%s4094_s3 + $0xc0] ss:$16 sps:$4 sm:$0xff]  }
  0x19   : > { %4183 = vst [vmem:[#allocation8_spill] sm:$0xff] %v2859_v11  ;;  %4184 = vst [vmem:[#allocation9_spill] sm:$0xff] %v2861_v12 }
  0x1a   : > { %319 = vadd.xlane.f32.xlu0 %v2847_v5  ;;  %323 = vadd.xlane.f32.xlu1 %v2849_v6  ;;  %4185 = vst [vmem:[#allocation10_spill] sm:$0xff] %v2865_v14  ;;  %4186 = vst [vmem:[#allocation11_spill] sm:$0xff] %v2867_v15 }
  0x1b   : > { %4187 = vst [vmem:[#allocation12_spill] sm:$0xff] %v2871_v17  ;;  %4188 = vst [vmem:[#allocation13_spill] sm:$0xff] %v2873_v18 }
  0x1c   : > { %4189 = vst [vmem:[#allocation14_spill] sm:$0xff] %v2877_v20  ;;  %4190 = vst [vmem:[#allocation15_spill] sm:$0xff] %v2879_v21 }
  0x1d   : > { %4191 = vst [vmem:[#allocation16_spill] sm:$0xff] %v2883_v22  ;;  %4192 = vst [vmem:[#allocation17_spill] sm:$0xff] %v2885_v23 }
  0x1e   : > { %325 = vadd.xlane.f32.xlu0 %v2853_v8  ;;  %327 = vadd.xlane.f32.xlu1 %v2855_v9 }
  0x22   : > { %329 = vadd.xlane.f32.xlu0 %v2859_v11  ;;  %331 = vadd.xlane.f32.xlu1 %v2861_v12 }
  0x26   : > { %333 = vadd.xlane.f32.xlu0 %v2865_v14  ;;  %335 = vadd.xlane.f32.xlu1 %v2867_v15 }
  0x2a   : > { %337 = vadd.xlane.f32.xlu0 %v2871_v17  ;;  %339 = vadd.xlane.f32.xlu1 %v2873_v18 }
  0x2e   : > { %341 = vadd.xlane.f32.xlu0 %v2877_v20  ;;  %343 = vadd.xlane.f32.xlu1 %v2879_v21 }
  0x32   : > { %345 = vadd.xlane.f32.xlu0 %v2883_v22  ;;  %347 = vadd.xlane.f32.xlu1 %v2885_v23 }
  0xa3   : > { %v318_v30 = vpop.xlane.xlu0 %317  ;;  %v322_v31 = vpop.xlane.xlu1 %321 }
  0xa4   : > { %v350_v32 = vmul.f32 0.0078125, %v318_v30  ;;  %v352_v33 = vmul.f32 0.0078125, %v322_v31 }
  0xa6   : > { %v2908_v34 = vsub.f32 %v2841_v2, %v350_v32  ;;  %v2911_v35 = vsub.f32 %v2843_v3, %v352_v33 }
  0xa7   : > { %v320_v36 = vpop.xlane.xlu0 %319  ;;  %v324_v37 = vpop.xlane.xlu1 %323 }
  0xa8   : > { %v351_v38 = vmul.f32 0.0078125, %v320_v36  ;;  %v382_v39 = vmul.f32 %v2908_v34, %v2908_v34  ;;  %v353_v40 = vmul.f32 0.0078125, %v324_v37  ;;  %v384_v43 = vmul.f32 %v2911_v35, %v2911_v35  ;;  %v2552_v36 = vld [vmem:[%s4094_s3 + $0x40] ss:$16 sps:$4 sm:$0xff]   ;;  %v2553_v37 = vld [vmem:[%s4094_s3 + $0x48] ss:$16 sps:$4 sm:$0xff]  }
  0xa9   : > { %765 = vmatpush1.bf16.msra.mxu0 %v2552_v36  ;;  %878 = vmatpush1.bf16.msra.mxu1 %v2553_v37  ;;  %v2582_v36 = vld [vmem:[%s4094_s3 + $0xe0] ss:$16 sps:$4 sm:$0xff]   ;;  %v2583_v37 = vld [vmem:[%s4094_s3 + $0xe8] ss:$16 sps:$4 sm:$0xff]  }
  0xaa   : > { %v2916_v41 = vsub.f32 %v2847_v5, %v351_v38  ;;  %398 = vadd.xlane.f32.xlu0 %v382_v39  ;;  %v2919_v42 = vsub.f32 %v2849_v6, %v353_v40 }
  0xab   : > { %v326_v44 = vpop.xlane.xlu0 %325  ;;  %v328_v45 = vpop.xlane.xlu1 %327 }
  0xac   : > { %v354_v46 = vmul.f32 0.0078125, %v326_v44  ;;  %v383_v47 = vmul.f32 %v2916_v41, %v2916_v41  ;;  %v355_v48 = vmul.f32 0.0078125, %v328_v45  ;;  %v385_v51 = vmul.f32 %v2919_v42, %v2919_v42 }
  0xae   : > { %v2926_v49 = vsub.f32 %v2853_v8, %v354_v46  ;;  %402 = vadd.xlane.f32.xlu0 %v384_v43  ;;  %400 = vadd.xlane.f32.xlu1 %v383_v47  ;;  %v2929_v50 = vsub.f32 %v2855_v9, %v355_v48  ;;  %v2554_v46 = vld [vmem:[%s4094_s3 + $0x64] ss:$16 sps:$4 sm:$0xff]   ;;  %v2556_v47 = vld [vmem:[%s4094_s3 + $0x6c] ss:$16 sps:$4 sm:$0xff]  }
  0xaf   : > { %v330_v52 = vpop.xlane.xlu0 %329  ;;  %v332_v53 = vpop.xlane.xlu1 %331  ;;  %766 = vmatprep.subr.bf16.mxu0 %v2554_v46  ;;  %879 = vmatprep.subr.bf16.mxu1 %v2556_v47 }
  0xb0   : > { %v356_v54 = vmul.f32 0.0078125, %v330_v52  ;;  %v386_v55 = vmul.f32 %v2926_v49, %v2926_v49  ;;  %v357_v56 = vmul.f32 0.0078125, %v332_v53  ;;  %v387_v59 = vmul.f32 %v2929_v50, %v2929_v50  ;;  %v2558_v52 = vld [vmem:[%s4094_s3 + $0x60] ss:$16 sps:$4 sm:$0xff]   ;;  %v2559_v53 = vld [vmem:[%s4094_s3 + $0x68] ss:$16 sps:$4 sm:$0xff]  }
  0xb1   : > { %767 = vmatpush1.bf16.msra.mxu0 %v2558_v52  ;;  %880 = vmatpush1.bf16.msra.mxu1 %v2559_v53 }
  0xb2   : > { %v2936_v57 = vsub.f32 %v2859_v11, %v356_v54  ;;  %404 = vadd.xlane.f32.xlu1 %v385_v51  ;;  %406 = vadd.xlane.f32.xlu0 %v386_v55  ;;  %v2939_v58 = vsub.f32 %v2861_v12, %v357_v56 }
  0xb3   : > { %v334_v60 = vpop.xlane.xlu0 %333  ;;  %v336_v61 = vpop.xlane.xlu1 %335 }
  0xb4   : > { %v358_v62 = vmul.f32 0.0078125, %v334_v60  ;;  %v388_v63 = vmul.f32 %v2936_v57, %v2936_v57  ;;  %v359_v0 = vmul.f32 0.0078125, %v336_v61  ;;  %v389_v7 = vmul.f32 %v2939_v58, %v2939_v58 }
  0xb6   : > { %v2946_v1 = vsub.f32 %v2865_v14, %v358_v62  ;;  %408 = vadd.xlane.f32.xlu1 %v387_v59  ;;  %410 = vadd.xlane.f32.xlu0 %v388_v63  ;;  %v2949_v4 = vsub.f32 %v2867_v15, %v359_v0  ;;  %v2560_v62 = vld [vmem:[%s4094_s3 + $0x84] ss:$16 sps:$4 sm:$0xff]   ;;  %v2562_v63 = vld [vmem:[%s4094_s3 + $0x8c] ss:$16 sps:$4 sm:$0xff]   ;;  %v2564_v0 = vld [vmem:[%s4094_s3 + $0x80] ss:$16 sps:$4 sm:$0xff]  }
  0xb7   : > { %v338_v16 = vpop.xlane.xlu0 %337  ;;  %v340_v19 = vpop.xlane.xlu1 %339  ;;  %768 = vmatprep.subr.bf16.mxu0 %v2560_v62  ;;  %881 = vmatprep.subr.bf16.mxu1 %v2562_v63 }
  0xb8   : > { %v360_v24 = vmul.f32 0.0078125, %v338_v16  ;;  %v390_v25 = vmul.f32 %v2946_v1, %v2946_v1  ;;  %v361_v26 = vmul.f32 0.0078125, %v340_v19  ;;  %v391_v31 = vmul.f32 %v2949_v4, %v2949_v4  ;;  %769 = vmatpush1.bf16.msra.mxu0 %v2564_v0  ;;  %v2566_v16 = vld [vmem:[%s4094_s3 + $0xa4] ss:$16 sps:$4 sm:$0xff]   ;;  %v2568_v19 = vld [vmem:[%s4094_s3 + $0xac] ss:$16 sps:$4 sm:$0xff]  }
  0xb9   : > { %770 = vmatprep.subr.bf16.mxu0 %v2566_v16 }
  0xba   : > { %v2968_v29 = vsub.f32 %v2871_v17, %v360_v24  ;;  %412 = vadd.xlane.f32.xlu1 %v389_v7  ;;  %414 = vadd.xlane.f32.xlu0 %v390_v25  ;;  %v2971_v30 = vsub.f32 %v2873_v18, %v361_v26  ;;  %v2565_v7 = vld [vmem:[%s4094_s3 + $0x88] ss:$16 sps:$4 sm:$0xff]   ;;  %v2570_v24 = vld [vmem:[%s4094_s3 + $0xa0] ss:$16 sps:$4 sm:$0xff]   ;;  %v2572_v26 = vld [vmem:[%s4094_s3 + $0xc4] ss:$16 sps:$4 sm:$0xff]  }
  0xbb   : > { %v342_v32 = vpop.xlane.xlu0 %341  ;;  %v344_v33 = vpop.xlane.xlu1 %343  ;;  %882 = vmatpush1.bf16.msra.mxu1 %v2565_v7  ;;  %v2571_v25 = vld [vmem:[%s4094_s3 + $0xa8] ss:$16 sps:$4 sm:$0xff]  }
  0xbc   : > { %v362_v38 = vmul.f32 0.0078125, %v342_v32  ;;  %v392_v39 = vmul.f32 %v2968_v29, %v2968_v29  ;;  %v363_v40 = vmul.f32 0.0078125, %v344_v33  ;;  %v393_v45 = vmul.f32 %v2971_v30, %v2971_v30  ;;  %883 = vmatprep.subr.bf16.mxu1 %v2568_v19  ;;  %771 = vmatpush1.bf16.msra.mxu0 %v2570_v24  ;;  %v2578_v32 = vld [vmem:[%s4094_s3 + $0xe4] ss:$16 sps:$4 sm:$0xff]   ;;  %v2580_v33 = vld [vmem:[%s4094_s3 + $0xec] ss:$16 sps:$4 sm:$0xff]  }
  0xbd   : > { %772 = vmatprep.subr.bf16.mxu0 %v2572_v26 }
  0xbe   : > { %v2984_v43 = vsub.f32 %v2877_v20, %v362_v38  ;;  %416 = vadd.xlane.f32.xlu1 %v391_v31  ;;  %418 = vadd.xlane.f32.xlu0 %v392_v39  ;;  %v2987_v44 = vsub.f32 %v2879_v21, %v363_v40  ;;  %v2577_v31 = vld [vmem:[%s4094_s3 + $0xc8] ss:$16 sps:$4 sm:$0xff]   ;;  %v2784_v38 = vmov 0   ;;  %v2584_v39 = vld [vmem:[%s4096_s5 + $0x40] sm:$0xff]  }
  0xbf   : > { %v346_v48 = vpop.xlane.xlu0 %345  ;;  %v348_v51 = vpop.xlane.xlu1 %347  ;;  %884 = vmatpush1.bf16.msra.mxu1 %v2571_v25  ;;  %792 = vmatprep.mubr.bf16.mxu0 %v2784_v38  ;;  %v2586_v40 = vld [vmem:[%s4096_s5 + $0xc0] sm:$0xff]  }
  0xc0   : > { %v364_v54 = vmul.f32 0.0078125, %v346_v48  ;;  %v394_v55 = vmul.f32 %v2984_v43, %v2984_v43  ;;  %v365_v56 = vmul.f32 0.0078125, %v348_v51  ;;  %v395_v61 = vmul.f32 %v2987_v44, %v2987_v44  ;;  %885 = vmatprep.subr.bf16.mxu1 %v2574_v27  ;;  %773 = vmatpush1.bf16.msra.mxu0 %v2576_v28  ;;  %v3077_v28 = vld [vmem:[%s4092_s1] ss:$0 sm:$0xff] }
  0xc1   : > { %774 = vmatprep.subr.bf16.mxu0 %v2578_v32  ;;  %905 = vmatprep.mubr.bf16.mxu1 %v2784_v38 }
  0xc2   : > { %v3006_v59 = vsub.f32 %v2883_v22, %v364_v54  ;;  %420 = vadd.xlane.f32.xlu1 %v393_v45  ;;  %422 = vadd.xlane.f32.xlu0 %v394_v55  ;;  %v3009_v60 = vsub.f32 %v2885_v23, %v365_v56 }
  0xc3   : > { %886 = vmatpush1.bf16.msra.mxu1 %v2577_v31 }
  0xc4   : > { %v396_v10 = vmul.f32 %v3006_v59, %v3006_v59  ;;  %v397_v13 = vmul.f32 %v3009_v60, %v3009_v60  ;;  %887 = vmatprep.subr.bf16.mxu1 %v2580_v33  ;;  %775 = vmatpush1.bf16.msra.mxu0 %v2582_v36 }
  0xc5   : > { %2399 = vmatprep.subr.bf16.mxu0 %v2584_v39 }
  0xc6   : > { %424 = vadd.xlane.f32.xlu1 %v395_v61  ;;  %426 = vadd.xlane.f32.xlu0 %v396_v10 }
  0xc7   : > { %888 = vmatpush1.bf16.msra.mxu1 %v2583_v37 }
  0xc8   : > { %2463 = vmatprep.subr.bf16.mxu1 %v2586_v40 }
  0xca   : > { %428 = vadd.xlane.f32.xlu1 %v397_v13 }
 0x137   : > { %v399_v45 = vpop.xlane.xlu0 %398 }
 0x138   : > { %v430_v46 = vmul.f32 0.0078125, %v399_v45 }
 0x13a   : > { %v446_v47 = vadd.f32 1e-05, %v430_v46 }
 0x13b   : > { %v401_v48 = vpop.xlane.xlu1 %400  ;;  %v403_v51 = vpop.xlane.xlu0 %402 }
 0x13c   : > { %2616 = vrsqrt.f32 %v446_v47  ;;  %v431_v52 = vmul.f32 0.0078125, %v401_v48  ;;  %v432_v53 = vmul.f32 0.0078125, %v403_v51 }
 0x13e   : > { %v447_v54 = vadd.f32 1e-05, %v431_v52  ;;  %v448_v55 = vadd.f32 1e-05, %v432_v53 }
 0x13f   : > { %v405_v56 = vpop.xlane.xlu1 %404  ;;  %v407_v61 = vpop.xlane.xlu0 %406 }
 0x140   : > { %2618 = vrsqrt.f32 %v447_v54  ;;  %v433_v62 = vmul.f32 0.0078125, %v405_v56  ;;  %v434_v0 = vmul.f32 0.0078125, %v407_v61  ;;  %v2585_v61 = vld [vmem:[%s4096_s5] sm:$0xff]  }
 0x141   : > { %2620 = vrsqrt.f32 %v448_v55 }
 0x142   : > { %v449_v63 = vadd.f32 1e-05, %v433_v62  ;;  %v450_v16 = vadd.f32 1e-05, %v434_v0  ;;  %v2587_v62 = vld [vmem:[%s4096_s5 + $0x80] sm:$0xff]  }
 0x143   : > { %v409_v7 = vpop.xlane.xlu1 %408  ;;  %v411_v24 = vpop.xlane.xlu0 %410 }
 0x144   : > { %2622 = vrsqrt.f32 %v449_v63  ;;  %v435_v10 = vmul.f32 0.0078125, %v409_v7  ;;  %v436_v32 = vmul.f32 0.0078125, %v411_v24 }
 0x146   : > { %v2617_v13 = vpop.eup %2616  ;;  %v451_v19 = vadd.f32 1e-05, %v435_v10  ;;  %v452_v47 = vadd.f32 1e-05, %v436_v32 }
 0x147   : > { %v413_v25 = vpop.xlane.xlu1 %412  ;;  %v478_v26 = vmul.f32 %v2617_v13, %v2908_v34  ;;  %v3084_v34 = vld [vmem:[%s4093_s2] ss:$0 sm:$0xff]  ;;  %v415_v48 = vpop.xlane.xlu0 %414 }
 0x148   : > { %2624 = vrsqrt.f32 %v451_v19  ;;  %v437_v27 = vmul.f32 0.0078125, %v413_v25  ;;  %v438_v0 = vmul.f32 0.0078125, %v415_v48  ;;  %v2589_v25 = vld [vmem:[%s4096_s5 + $0x8] sm:$0xff]  }
 0x149   : > { %2626 = vrsqrt.f32 %v450_v16  ;;  %v500_v36 = vmul.f32 %v3077_v28, %v478_v26  ;;  %v2591_v26 = vld [vmem:[%s4096_s5 + $0x88] sm:$0xff]  }
 0x14a   : > { %v2619_v31 = vpop.eup %2618  ;;  %v453_v39 = vadd.f32 1e-05, %v437_v27  ;;  %v454_v27 = vadd.f32 1e-05, %v438_v0 }
 0x14b   : > { %v479_v33 = vmul.f32 %v2619_v31, %v2916_v41  ;;  %v2621_v37 = vpop.eup %2620  ;;  %v417_v40 = vpop.xlane.xlu1 %416  ;;  %v522_v51 = vadd.f32 %v3084_v34, %v500_v36  ;;  %v2592_v31 = vld [vmem:[%s4096_s5 + $0x50] sm:$0xff]  }
 0x14c   : > { %v480_v41 = vmul.f32 %v2621_v37, %v2911_v35  ;;  %2628 = vrsqrt.f32 %v453_v39  ;;  %v439_v54 = vmul.f32 0.0078125, %v417_v40  ;;  %v2588_v35 = vld [vmem:[%s4096_s5 + $0x48] sm:$0xff]   ;;  %v419_v32 = vpop.xlane.xlu0 %418 }
 0x14d   : > { %v501_v45 = vmul.f32 %v3077_v28, %v479_v33  ;;  %2630 = vrsqrt.f32 %v452_v47  ;;  %v440_v48 = vmul.f32 0.0078125, %v419_v32 }
 0x14e   : > { %v2623_v46 = vpop.eup %2622  ;;  %v502_v7 = vmul.f32 %v3077_v28, %v480_v41  ;;  %v455_v13 = vadd.f32 1e-05, %v439_v54 }
 0x14f   : > { %v523_v52 = vadd.f32 %v3084_v34, %v501_v45  ;;  %v481_v53 = vmul.f32 %v2623_v46, %v2919_v42  ;;  %v2590_v42 = vld [vmem:[%s4096_s5 + $0xc8] sm:$0xff]   ;;  %v421_v16 = vpop.xlane.xlu1 %420  ;;  %v2593_v45 = vld [vmem:[%s4096_s5 + $0x10] sm:$0xff]  }
 0x150   : > { %v524_v33 = vadd.f32 %v3084_v34, %v502_v7  ;;  %2632 = vrsqrt.f32 %v455_v13  ;;  %v441_v37 = vmul.f32 0.0078125, %v421_v16  ;;  %v2595_v46 = vld [vmem:[%s4096_s5 + $0x90] sm:$0xff]   ;;  %v423_v0 = vpop.xlane.xlu0 %422 }
 0x151   : > { %v538_v55 = vpack.c.bf16 %v523_v52, %v522_v51  ;;  %v503_v56 = vmul.f32 %v3077_v28, %v481_v53  ;;  %2634 = vrsqrt.f32 %v454_v27  ;;  %v2598_v51 = vld [vmem:[%s4096_s5 + $0xd8] sm:$0xff]   ;;  %v442_v16 = vmul.f32 0.0078125, %v423_v0 }
 0x152   : > { %v2625_v63 = vpop.eup %2624  ;;  %v457_v53 = vadd.f32 1e-05, %v441_v37 }
 0x153   : > { %793 = vmatmul.mubr.bf16.vlgmr.msra.gmra.mrb[0].mxu0 %v538_v55  ;;  %906 = vmatmul.mubr.bf16.vlgmr.msra.gmra.mrb[0].mxu1 %v538_v55  ;;  %v2627_v10 = vpop.eup %2626  ;;  %v525_v19 = vadd.f32 %v3084_v34, %v503_v56  ;;  %v483_v24 = vmul.f32 %v2625_v63, %v2929_v50  ;;  %v2594_v50 = vld [vmem:[%s4096_s5 + $0xd0] sm:$0xff]   ;;  %v425_v54 = vpop.xlane.xlu1 %424  ;;  %v456_v63 = vadd.f32 1e-05, %v440_v48 }
 0x154   : > { %802 = vmatprep.mubr.bf16.mxu0 %v2784_v38  ;;  %915 = vmatprep.mubr.bf16.mxu1 %v2784_v38  ;;  %v482_v36 = vmul.f32 %v2627_v10, %v2926_v49  ;;  %v2596_v49 = vld [vmem:[%s4096_s5 + $0x58] sm:$0xff]   ;;  %2636 = vrsqrt.f32 %v457_v53 }
 0x155   : > { %2400 = vmatpush3.bf16.msra.mxu0 %v2585_v61  ;;  %2464 = vmatpush3.bf16.msra.mxu1 %v2587_v62  ;;  %v539_v39 = vpack.c.bf16 %v525_v19, %v524_v33  ;;  %v505_v40 = vmul.f32 %v3077_v28, %v483_v24  ;;  %v2597_v61 = vld [vmem:[%s4096_s5 + $0x18] sm:$0xff]   ;;  %2638 = vrsqrt.f32 %v456_v63 }
 0x156   : > { %2401 = vmatprep.subr.bf16.mxu0 %v2588_v35  ;;  %2465 = vmatprep.subr.bf16.mxu1 %v2590_v42  ;;  %v2629_v47 = vpop.eup %2628  ;;  %v504_v52 = vmul.f32 %v3077_v28, %v482_v36  ;;  %v2599_v62 = vld [vmem:[%s4096_s5 + $0x98] sm:$0xff]  }
 0x157   : > { %v2631_v41 = vpop.eup %2630  ;;  %v527_v55 = vadd.f32 %v3084_v34, %v505_v40  ;;  %v485_v56 = vmul.f32 %v2629_v47, %v2939_v58  ;;  %v443_v58 = vmul.f32 0.0078125, %v425_v54 }
 0x158   : > { %v526_v35 = vadd.f32 %v3084_v34, %v504_v52  ;;  %v484_v42 = vmul.f32 %v2631_v41, %v2936_v57  ;;  %v429_v57 = vpop.xlane.xlu1 %428 }
 0x159   : > { %2402 = vmatpush3.bf16.msra.mxu0 %v2589_v25  ;;  %2466 = vmatpush3.bf16.msra.mxu1 %v2591_v26  ;;  %v507_v10 = vmul.f32 %v3077_v28, %v485_v56  ;;  %v459_v25 = vadd.f32 1e-05, %v443_v58  ;;  %v445_v36 = vmul.f32 0.0078125, %v429_v57  ;;  %v2604_v57 = vld [vmem:[%s4096_s5 + $0x68] sm:$0xff]  }
 0x15a   : > { %2403 = vmatprep.subr.bf16.mxu0 %v2592_v31  ;;  %2467 = vmatprep.subr.bf16.mxu1 %v2594_v50  ;;  %v540_v7 = vpack.c.bf16 %v527_v55, %v526_v35  ;;  %v2633_v13 = vpop.eup %2632  ;;  %v506_v19 = vmul.f32 %v3077_v28, %v484_v42  ;;  %v458_v31 = vadd.f32 1e-05, %v442_v16  ;;  %v427_v50 = vpop.xlane.xlu0 %426 }
 0x15b   : > { %803 = vmatmul.mubr.bf16.gmra.mrb[4].mxu0 %v539_v39  ;;  %916 = vmatmul.mubr.bf16.gmra.mrb[4].mxu1 %v539_v39  ;;  %v2635_v24 = vpop.eup %2634  ;;  %v529_v26 = vadd.f32 %v3084_v34, %v507_v10  ;;  %v487_v27 = vmul.f32 %v2633_v13, %v2949_v4  ;;  %2640 = vrsqrt.f32 %v459_v25  ;;  %v461_v4 = vadd.f32 1e-05, %v445_v36  ;;  %v2611_v36 = vld [vmem:[%s4096_s5 + $0xb0] sm:$0xff]  }
 0x15c   : > { %812 = vmatprep.mubr.bf16.mxu0 %v2784_v38  ;;  %925 = vmatprep.mubr.bf16.mxu1 %v2784_v38  ;;  %v528_v32 = vadd.f32 %v3084_v34, %v506_v19  ;;  %v486_v33 = vmul.f32 %v2635_v24, %v2946_v1  ;;  %2642 = vrsqrt.f32 %v458_v31  ;;  %v2607_v31 = vld [vmem:[%s4096_s5 + $0xa8] sm:$0xff]  }
 0x15d   : > { %2404 = vmatpush3.bf16.msra.mxu0 %v2593_v45  ;;  %2468 = vmatpush3.bf16.msra.mxu1 %v2595_v46  ;;  %v509_v39 = vmul.f32 %v3077_v28, %v487_v27  ;;  %v444_v45 = vmul.f32 0.0078125, %v427_v50  ;;  %2644 = vrsqrt.f32 %v461_v4  ;;  %v2606_v27 = vld [vmem:[%s4096_s5 + $0xe8] sm:$0xff]   ;;  %v2608_v50 = vld [vmem:[%s4096_s5 + $0x70] sm:$0xff]  }
 0x15e   : > { %2405 = vmatprep.subr.bf16.mxu0 %v2596_v49  ;;  %2469 = vmatprep.subr.bf16.mxu1 %v2598_v51  ;;  %v541_v37 = vpack.c.bf16 %v529_v26, %v528_v32  ;;  %v2637_v40 = vpop.eup %2636  ;;  %v508_v46 = vmul.f32 %v3077_v28, %v486_v33  ;;  %v2605_v26 = vld [vmem:[%s4096_s5 + $0x28] sm:$0xff]   ;;  %v2609_v32 = vld [vmem:[%s4096_s5 + $0x30] sm:$0xff]  }
 0x15f   : > { %v2639_v47 = vpop.eup %2638  ;;  %v531_v1 = vadd.f32 %v3084_v34, %v509_v39  ;;  %v489_v48 = vmul.f32 %v2637_v40, %v2971_v30  ;;  %v460_v49 = vadd.f32 1e-05, %v444_v45  ;;  %v2610_v33 = vld [vmem:[%s4096_s5 + $0xf0] sm:$0xff]   ;;  %v2614_v39 = vld [vmem:[%s4096_s5 + $0xf8] sm:$0xff]  }
 0x160   : > { %v530_v51 = vadd.f32 %v3084_v34, %v508_v46  ;;  %v488_v52 = vmul.f32 %v2639_v47, %v2968_v29  ;;  %v2613_v40 = vld [vmem:[%s4096_s5 + $0x38] sm:$0xff]   ;;  %v580_v46 = vlaneseq }
 0x161   : > { %2406 = vmatpush3.bf16.msra.mxu0 %v2597_v61  ;;  %2470 = vmatpush3.bf16.msra.mxu1 %v2599_v62  ;;  %v511_v53 = vmul.f32 %v3077_v28, %v489_v48  ;;  %2646 = vrsqrt.f32 %v460_v49  ;;  %v2615_v45 = vld [vmem:[%s4096_s5 + $0xb8] sm:$0xff]   ;;  %v578_v48 = vld [vmem:[%s4095_s4] sm:$0xf] }
 0x162   : > { %v542_v41 = vpack.c.bf16 %v531_v1, %v530_v51  ;;  %v510_v55 = vmul.f32 %v3077_v28, %v488_v52  ;;  %v581_v47 = vshrl.u32 %v580_v46, 7 }
 0x163   : > { %813 = vmatmul.mubr.bf16.gmra.mrb[8].mxu0 %v540_v7  ;;  %926 = vmatmul.mubr.bf16.gmra.mrb[8].mxu1 %v540_v7  ;;  %v533_v30 = vadd.f32 %v3084_v34, %v511_v53 }
 0x164   : > { %822 = vmatprep.mubr.bf16.mxu0 %v2784_v38  ;;  %935 = vmatprep.mubr.bf16.mxu1 %v2784_v38  ;;  %v532_v29 = vadd.f32 %v3084_v34, %v510_v55  ;;  %v582_v4 = vsub.s32 0, %v581_v47  ;;  %v590_v1 = vsub.s32 2, %v581_v47  ;;  %v586_v49 = vsub.s32 1, %v581_v47 }
 0x165   : > { %v2641_v54 = vpop.eup %2640  ;;  %v594_v51 = vsub.s32 3, %v581_v47 }
 0x166   : > { %v2643_v56 = vpop.eup %2642  ;;  %v491_v61 = vmul.f32 %v2641_v54, %v2987_v44  ;;  %v543_v63 = vpack.c.bf16 %v533_v30, %v532_v29  ;;  %v3238_v52 = vrot.slane %v578_v48, %v582_v4  ;;  %v3242_v53 = vrot.slane %v578_v48, %v586_v49 }
 0x167   : > { %v490_v62 = vmul.f32 %v2643_v56, %v2984_v43  ;;  %v2645_v35 = vpop.eup %2644  ;;  %v3244_v54 = vrot.slane %v578_v48, %v594_v51 }
 0x168   : > { %v513_v0 = vmul.f32 %v3077_v28, %v491_v61  ;;  %v493_v44 = vmul.f32 %v2645_v35, %v3009_v60 }
 0x169   : > { %v512_v42 = vmul.f32 %v3077_v28, %v490_v62 }
 0x16a   : > { %v535_v7 = vadd.f32 %v3084_v34, %v513_v0  ;;  %v515_v16 = vmul.f32 %v3077_v28, %v493_v44 }
 0x16b   : > { %823 = vmatmul.mubr.bf16.gmra.mrb[12].mxu0 %v541_v37  ;;  %936 = vmatmul.mubr.bf16.gmra.mrb[12].mxu1 %v541_v37  ;;  %v2647_v58 = vpop.eup %2646  ;;  %v534_v10 = vadd.f32 %v3084_v34, %v512_v42  ;;  %v2612_v37 = vld [vmem:[%s4096_s5 + $0x78] sm:$0xff]  }
 0x16c   : > { %832 = vmatprep.mubr.bf16.mxu0 %v2784_v38  ;;  %945 = vmatprep.mubr.bf16.mxu1 %v2784_v38  ;;  %v492_v43 = vmul.f32 %v2647_v58, %v3006_v59  ;;  %v537_v24 = vadd.f32 %v3084_v34, %v515_v16  ;;  %v2600_v59 = vld [vmem:[%s4096_s5 + $0x60] sm:$0xff]  }
 0x16d   : > { %v544_v13 = vpack.c.bf16 %v535_v7, %v534_v10  ;;  %2407 = vmatprep.subr.bf16.mxu0 %v2600_v59 }
 0x16e   : > { %v514_v19 = vmul.f32 %v3077_v28, %v492_v43  ;;  %v2601_v28 = vld [vmem:[%s4096_s5 + $0x20] sm:$0xff]  }
 0x16f   : > { %2408 = vmatpush3.bf16.msra.mxu0 %v2601_v28 }
 0x170   : > { %v536_v25 = vadd.f32 %v3084_v34, %v514_v19  ;;  %v2603_v34 = vld [vmem:[%s4096_s5 + $0xa0] sm:$0xff]   ;;  %2409 = vmatprep.subr.bf16.mxu0 %v2604_v57 }
 0x172   : > { %v545_v60 = vpack.c.bf16 %v537_v24, %v536_v25 }
 0x173   : > { %833 = vmatmul.mubr.bf16.gmra.mrb[16].mxu0 %v542_v41  ;;  %946 = vmatmul.mubr.bf16.gmra.mrb[16].mxu1 %v542_v41  ;;  %v3240_v41 = vrot.slane %v578_v48, %v590_v1 }
 0x174   : > { %842 = vmatprep.mubr.bf16.mxu0 %v2784_v38  ;;  %955 = vmatprep.mubr.bf16.mxu1 %v2784_v38 }
 0x175   : > { %2410 = vmatpush3.bf16.msra.mxu0 %v2605_v26 }
 0x176   : > { %2411 = vmatprep.subr.bf16.mxu0 %v2608_v50 }
 0x179   : > { %2412 = vmatpush3.bf16.msra.mxu0 %v2609_v32 }
 0x17a   : > { %2413 = vmatprep.subr.bf16.mxu0 %v2612_v37 }
 0x17b   : > { %843 = vmatmul.mubr.bf16.gmra.mrb[20].mxu0 %v543_v63  ;;  %956 = vmatmul.mubr.bf16.gmra.mrb[20].mxu1 %v543_v63 }
 0x17c   : > { %852 = vmatprep.mubr.bf16.mxu0 %v2784_v38  ;;  %965 = vmatprep.mubr.bf16.mxu1 %v2784_v38 }
 0x17d   : > { %2414 = vmatpush3.bf16.msra.mxu0 %v2613_v40 }
 0x183   : > { %853 = vmatmul.mubr.bf16.gmra.mrb[24].mxu0 %v544_v13  ;;  %966 = vmatmul.mubr.bf16.gmra.mrb[24].mxu1 %v544_v13 }
 0x184   : > { %862 = vmatprep.mubr.bf16.mxu0 %v2784_v38  ;;  %975 = vmatprep.mubr.bf16.mxu1 %v2784_v38  ;;  %v2602_v38 = vld [vmem:[%s4096_s5 + $0xe0] sm:$0xff]  }
 0x185   : > { %2471 = vmatprep.subr.bf16.mxu1 %v2602_v38 }
 0x186   : > { %2472 = vmatpush3.bf16.msra.mxu1 %v2603_v34 }
 0x187   : > { %2473 = vmatprep.subr.bf16.mxu1 %v2606_v27 }
 0x18a   : > { %2474 = vmatpush3.bf16.msra.mxu1 %v2607_v31 }
 0x18b   : > { %863 = vmatmul.mubr.bf16.gmra.mrb[28].mxu0 %v545_v60  ;;  %976 = vmatmul.mubr.bf16.gmra.mrb[28].mxu1 %v545_v60 }
 0x18c   : > { %2475 = vmatprep.subr.bf16.mxu1 %v2610_v33 }
 0x18e   : > { %2476 = vmatpush3.bf16.msra.mxu1 %v2611_v36 }
 0x18f   : > { %2477 = vmatprep.subr.bf16.mxu1 %v2614_v39 }
 0x192   : > { %2478 = vmatpush3.bf16.msra.mxu1 %v2615_v45 }
 0x226   : > { %v794_v55 = vpop.f32.mrb[0].mxu0  ;;  %v907_v56 = vpop.f32.mrb[0].mxu1 }
 0x227   : > { %v795_v30 = vadd.f32 %v794_v55, %v3238_v52  ;;  %v908_v61 = vadd.f32 %v907_v56, %v3240_v41  ;;  %v796_v29 = vpop.f32.mrb[1].mxu0  ;;  %v909_v62 = vpop.f32.mrb[1].mxu1 }
 0x228   : > { %v3249_v63 = vadd.f32 %v796_v29, %v3242_v53  ;;  %v3252_v0 = vadd.f32 %v909_v62, %v3244_v54  ;;  %v798_v35 = vpop.f32.mrb[2].mxu0  ;;  %v911_v42 = vpop.f32.mrb[2].mxu1 }
 0x229   : > { %v1050_v58 = vmul.f32 0.044715, %v795_v30  ;;  %v1052_v7 = vmul.f32 0.044715, %v908_v61  ;;  %v799_v44 = vadd.f32 %v798_v35, %v3238_v52  ;;  %v912_v10 = vadd.f32 %v911_v42, %v3240_v41  ;;  %v800_v43 = vpop.f32.mrb[3].mxu0  ;;  %v913_v13 = vpop.f32.mrb[3].mxu1 }
 0x22a   : > { %v1051_v24 = vmul.f32 0.044715, %v3249_v63  ;;  %v1053_v25 = vmul.f32 0.044715, %v3252_v0  ;;  %v3259_v34 = vadd.f32 %v800_v43, %v3242_v53  ;;  %v3262_v26 = vadd.f32 %v913_v13, %v3244_v54 }
 0x22b   : > { %v1114_v16 = vmul.f32 %v1050_v58, %v795_v30  ;;  %v1116_v19 = vmul.f32 %v1052_v7, %v908_v61  ;;  %v1054_v60 = vmul.f32 0.044715, %v799_v44  ;;  %v1056_v38 = vmul.f32 0.044715, %v912_v10 }
 0x22c   : > { %v1115_v32 = vmul.f32 %v1051_v24, %v3249_v63  ;;  %v1117_v39 = vmul.f32 %v1053_v25, %v3252_v0  ;;  %v3272_v1 = vmul.f32 0.5, %v795_v30  ;;  %v1055_v51 = vmul.f32 0.044715, %v3259_v34 }
 0x22d   : > { %v1178_v59 = vmul.f32 %v1114_v16, %v795_v30  ;;  %v1180_v28 = vmul.f32 %v1116_v19, %v908_v61  ;;  %v1118_v57 = vmul.f32 %v1054_v60, %v799_v44  ;;  %v1120_v33 = vmul.f32 %v1056_v38, %v912_v10 }
 0x22e   : > { %v804_v27 = vpop.f32.mrb[4].mxu0  ;;  %v917_v31 = vpop.f32.mrb[4].mxu1  ;;  %v3275_v62 = vmul.f32 0.5, %v908_v61  ;;  %v1057_v42 = vmul.f32 0.044715, %v3262_v26  ;;  %v3284_v13 = vmul.f32 %v1115_v32, %v3249_v63  ;;  %v3287_v16 = vmul.f32 %v1117_v39, %v3252_v0 }
 0x22f   : > { %v1242_v50 = vadd.f32 %v1178_v59, %v795_v30  ;;  %v806_v36 = vpop.f32.mrb[5].mxu0  ;;  %v919_v37 = vpop.f32.mrb[5].mxu1  ;;  %v1182_v40 = vmul.f32 %v1118_v57, %v799_v44  ;;  %v3267_v45 = vadd.f32 %v804_v27, %v3238_v52  ;;  %v3270_v46 = vadd.f32 %v917_v31, %v3240_v41 }
 0x230   : > { %v808_v47 = vpop.f32.mrb[6].mxu0  ;;  %v921_v4 = vpop.f32.mrb[6].mxu1  ;;  %v1244_v48 = vadd.f32 %v1180_v28, %v908_v61  ;;  %v1184_v49 = vmul.f32 %v1120_v33, %v912_v10  ;;  %v3281_v30 = vadd.f32 %v806_v36, %v3242_v53  ;;  %v3289_v19 = vmul.f32 0.5, %v799_v44 }
 0x231   : > { %4193 = vst [vmem:[#allocation18_spill] sm:$0xff] %v3267_v45  ;;  %4194 = vst [vmem:[#allocation19_spill] sm:$0xff] %v3270_v46  ;;  %v810_v55 = vpop.f32.mrb[7].mxu0  ;;  %v923_v56 = vpop.f32.mrb[7].mxu1  ;;  %v1306_v29 = vmul.f32 0.7978846, %v1242_v50  ;;  %v1246_v35 = vadd.f32 %v1182_v40, %v799_v44  ;;  %v1119_v25 = vmul.f32 %v1055_v51, %v3259_v34  ;;  %v3295_v60 = vadd.f32 %v919_v37, %v3244_v54 }
 0x232   : > { %v1248_v58 = vadd.f32 %v1184_v49, %v912_v10  ;;  %v1058_v7 = vmul.f32 0.044715, %v3267_v45  ;;  %v1060_v43 = vmul.f32 0.044715, %v3270_v46  ;;  %v3291_v61 = vmul.f32 0.5, %v912_v10 }
 0x233   : > { %v1308_v24 = vmul.f32 0.7978846, %v1244_v48  ;;  %4195 = vst [vmem:[#allocation20_spill] sm:$0xff] %v3295_v60  ;;  %v3298_v59 = vadd.f32 %v808_v47, %v3238_v52  ;;  %v1310_v28 = vmul.f32 0.7978846, %v1246_v35  ;;  %v1121_v38 = vmul.f32 %v1057_v42, %v3262_v26 }
 0x234   : > { %v1059_v57 = vmul.f32 0.044715, %v3281_v30  ;;  %v3303_v27 = vadd.f32 %v921_v4, %v3240_v41  ;;  %2648 = vtanh.f32 %v1306_v29  ;;  %v1312_v31 = vmul.f32 0.7978846, %v1248_v58 }
 0x235   : > { %4196 = vst [vmem:[#allocation21_spill] sm:$0xff] %v3298_v59  ;;  %v1122_v50 = vmul.f32 %v1058_v7, %v3267_v45  ;;  %v1124_v32 = vmul.f32 %v1060_v43, %v3270_v46  ;;  %v1061_v37 = vmul.f32 0.044715, %v3295_v60  ;;  %v3309_v39 = vadd.f32 %v810_v55, %v3242_v53 }
 0x236   : > { %4197 = vst [vmem:[#allocation22_spill] sm:$0xff] %v3303_v27  ;;  %v814_v44 = vpop.f32.mrb[8].mxu0  ;;  %v927_v10 = vpop.f32.mrb[8].mxu1  ;;  %v3312_v40 = vadd.f32 %v923_v56, %v3244_v54  ;;  %2650 = vtanh.f32 %v1308_v24  ;;  %v1062_v49 = vmul.f32 0.044715, %v3298_v59  ;;  %v3323_v55 = vmul.f32 %v1119_v25, %v3259_v34 }
 0x237   : > { %v816_v33 = vpop.f32.mrb[9].mxu0  ;;  %v929_v36 = vpop.f32.mrb[9].mxu1  ;;  %v3315_v47 = vadd.f32 %v814_v44, %v3238_v52  ;;  %v1064_v51 = vmul.f32 0.044715, %v3303_v27  ;;  %v3320_v29 = vadd.f32 %v927_v10, %v3240_v41  ;;  %2652 = vtanh.f32 %v1310_v28 }
 0x238   : > { %4198 = vst [vmem:[#allocation23_spill] sm:$0xff] %v3312_v40  ;;  %v818_v4 = vpop.f32.mrb[10].mxu0  ;;  %v931_v48 = vpop.f32.mrb[10].mxu1  ;;  %v1123_v56 = vmul.f32 %v1059_v57, %v3281_v30  ;;  %v1063_v58 = vmul.f32 0.044715, %v3309_v39  ;;  %v3331_v44 = vadd.f32 %v816_v33, %v3242_v53  ;;  %2654 = vtanh.f32 %v1312_v31 }
 0x239   : > { %4199 = vst [vmem:[#allocation24_spill] sm:$0xff] %v3315_v47  ;;  %4200 = vst [vmem:[#allocation25_spill] sm:$0xff] %v3320_v29  ;;  %v820_v35 = vpop.f32.mrb[11].mxu0  ;;  %v933_v42 = vpop.f32.mrb[11].mxu1  ;;  %v1065_v7 = vmul.f32 0.044715, %v3312_v40  ;;  %v3334_v10 = vmul.f32 %v1121_v38, %v3262_v26  ;;  %v3337_v25 = vmul.f32 %v1122_v50, %v3267_v45  ;;  %v3340_v28 = vmul.f32 %v1124_v32, %v3270_v46 }
 0x23a   : > { %v1066_v43 = vmul.f32 0.044715, %v3315_v47  ;;  %v1068_v24 = vmul.f32 0.044715, %v3320_v29  ;;  %4201 = vst [vmem:[#allocation26_spill] sm:$0xff] %v3331_v44  ;;  %v1125_v57 = vmul.f32 %v1061_v37, %v3295_v60  ;;  %v1126_v23 = vmul.f32 %v1062_v49, %v3298_v59 }
 0x23b   : > { %4202 = vst [vmem:[#allocation27_spill] sm:$0xff] %v3337_v25  ;;  %4203 = vst [vmem:[#allocation28_spill] sm:$0xff] %v3340_v28  ;;  %v1128_v22 = vmul.f32 %v1064_v51, %v3303_v27  ;;  %v1067_v21 = vmul.f32 0.044715, %v3331_v44  ;;  %v1127_v33 = vmul.f32 %v1063_v58, %v3309_v39  ;;  %v3348_v31 = vadd.f32 %v929_v36, %v3244_v54 }
 0x23c   : > { %v3351_v38 = vadd.f32 %v818_v4, %v3238_v52  ;;  %v3354_v50 = vadd.f32 %v931_v48, %v3240_v41  ;;  %v3357_v37 = vmul.f32 %v1123_v56, %v3281_v30  ;;  %v1129_v49 = vmul.f32 %v1065_v7, %v3312_v40 }
 0x23d   : > { %4204 = vst [vmem:[#allocation29_spill] sm:$0xff] %v3348_v31  ;;  %v1130_v51 = vmul.f32 %v1066_v43, %v3315_v47  ;;  %v1132_v58 = vmul.f32 %v1068_v24, %v3320_v29  ;;  %v1131_v17 = vmul.f32 %v1067_v21, %v3331_v44  ;;  %v3364_v4 = vadd.f32 %v820_v35, %v3242_v53 }
 0x23e   : > { %v824_v32 = vpop.f32.mrb[12].mxu0  ;;  %v937_v20 = vpop.f32.mrb[12].mxu1  ;;  %v3367_v48 = vadd.f32 %v933_v42, %v3244_v54  ;;  %v3375_v43 = vmul.f32 %v1125_v57, %v3295_v60  ;;  %v3378_v24 = vmul.f32 %v1126_v23, %v3298_v59  ;;  %v3381_v21 = vmul.f32 %v1128_v22, %v3303_v27 }
 0x23f   : > { %v826_v18 = vpop.f32.mrb[13].mxu0  ;;  %v939_v36 = vpop.f32.mrb[13].mxu1  ;;  %v3370_v15 = vadd.f32 %v824_v32, %v3238_v52  ;;  %v3384_v35 = vadd.f32 %v937_v20, %v3240_v41  ;;  %v3387_v32 = vmul.f32 %v1127_v33, %v3309_v39  ;;  %v1069_v11 = vmul.f32 0.044715, %v3348_v31 }
 0x240   : > { %v828_v56 = vpop.f32.mrb[14].mxu0  ;;  %v941_v14 = vpop.f32.mrb[14].mxu1  ;;  %4206 = vst [vmem:[#allocation31_spill] sm:$0xff] %v3375_v43  ;;  %4207 = vst [vmem:[#allocation32_spill] sm:$0xff] %v3378_v24  ;;  %v1070_v9 = vmul.f32 0.044715, %v3351_v38  ;;  %v3395_v23 = vmul.f32 %v1129_v49, %v3312_v40  ;;  %v3400_v6 = vadd.f32 %v826_v18, %v3242_v53  ;;  %v3405_v3 = vmul.f32 %v1130_v51, %v3315_v47 }
 0x241   : > { %4205 = vst [vmem:[#allocation30_spill] sm:$0xff] %v3370_v15  ;;  %v3372_v7 = vpop.eup %2648  ;;  %4208 = vst [vmem:[#allocation33_spill] sm:$0xff] %v3381_v21  ;;  %v830_v42 = vpop.f32.mrb[15].mxu0  ;;  %v1072_v57 = vmul.f32 0.044715, %v3354_v50  ;;  %v3408_v5 = vmul.f32 %v1132_v58, %v3320_v29  ;;  %v3411_v2 = vmul.f32 %v1131_v17, %v3331_v44  ;;  %v3417_v18 = vadd.f32 %v939_v36, %v3244_v54 }
 0x242   : > { %4209 = vst [vmem:[#allocation34_spill] sm:$0xff] %v3384_v35  ;;  %v943_v12 = vpop.f32.mrb[15].mxu1  ;;  %4210 = vst [vmem:[#allocation35_spill] sm:$0xff] %v3387_v32  ;;  %v3392_v8 = vpop.eup %2650  ;;  %v1071_v22 = vmul.f32 0.044715, %v3364_v4  ;;  %v3420_v28 = vadd.f32 %v828_v56, %v3238_v52  ;;  %v1133_v58 = vmul.f32 %v1069_v11, %v3348_v31  ;;  %v3428_v29 = vadd.f32 %v941_v14, %v3240_v41 }
 0x243   : > { %4211 = vst [vmem:[#allocation36_spill] sm:$0xff] %v3395_v23  ;;  %v1073_v20 = vmul.f32 0.044715, %v3367_v48  ;;  %4212 = vst [vmem:[#allocation37_spill] sm:$0xff] %v3400_v6  ;;  %v3402_v33 = vpop.eup %2652  ;;  %v1074_v49 = vmul.f32 0.044715, %v3370_v15  ;;  %v1136_v17 = vmul.f32 %v1072_v57, %v3354_v50  ;;  %v3439_v14 = vadd.f32 %v943_v12, %v3244_v54 }
 0x244   : > { %4213 = vst [vmem:[#allocation38_spill] sm:$0xff] %v3405_v3  ;;  %4214 = vst [vmem:[#allocation39_spill] sm:$0xff] %v3408_v5  ;;  %v1076_v21 = vmul.f32 0.044715, %v3384_v35  ;;  %v1075_v27 = vmul.f32 0.044715, %v3400_v6  ;;  %v3422_v51 = vpop.eup %2654  ;;  %v1134_v5 = vmul.f32 %v1070_v9, %v3351_v38  ;;  %v3436_v9 = vadd.f32 %v830_v42, %v3242_v53 }
 0x245   : > { %4215 = vst [vmem:[#allocation40_spill] sm:$0xff] %v3411_v2  ;;  %4216 = vst [vmem:[#allocation41_spill] sm:$0xff] %v3417_v18  ;;  %v1135_v2 = vmul.f32 %v1071_v22, %v3364_v4  ;;  %v1137_v36 = vmul.f32 %v1073_v20, %v3367_v48  ;;  %v1077_v56 = vmul.f32 0.044715, %v3417_v18  ;;  %v1078_v44 = vmul.f32 0.044715, %v3420_v28 }
 0x246   : > { %4217 = vst [vmem:[#allocation42_spill] sm:$0xff] %v3420_v28  ;;  %4218 = vst [vmem:[#allocation43_spill] sm:$0xff] %v3428_v29  ;;  %v834_v3 = vpop.f32.mrb[16].mxu0  ;;  %v947_v47 = vpop.f32.mrb[16].mxu1  ;;  %v1080_v11 = vmul.f32 0.044715, %v3428_v29  ;;  %v1138_v20 = vmul.f32 %v1074_v49, %v3370_v15  ;;  %v1140_v25 = vmul.f32 %v1076_v21, %v3384_v35  ;;  %v1139_v45 = vmul.f32 %v1075_v27, %v3400_v6 }
 0x247   : > { %v836_v46 = vpop.f32.mrb[17].mxu0  ;;  %v949_v24 = vpop.f32.mrb[17].mxu1  ;;  %4219 = vst [vmem:[#allocation44_spill] sm:$0xff] %v3436_v9  ;;  %4220 = vst [vmem:[#allocation45_spill] sm:$0xff] %v3439_v14  ;;  %v3442_v57 = vadd.f32 %v834_v3, %v3238_v52  ;;  %v3448_v23 = vadd.f32 %v947_v47, %v3240_v41  ;;  %v1141_v12 = vmul.f32 %v1077_v56, %v3417_v18  ;;  %v1079_v60 = vmul.f32 0.044715, %v3436_v9 }
 0x248   : > { %v838_v22 = vpop.f32.mrb[18].mxu0  ;;  %v951_v59 = vpop.f32.mrb[18].mxu1  ;;  %v1142_v3 = vmul.f32 %v1078_v44, %v3420_v28  ;;  %v1144_v43 = vmul.f32 %v1080_v11, %v3428_v29  ;;  %v3459_v49 = vmul.f32 %v1133_v58, %v3348_v31  ;;  %v1081_v27 = vmul.f32 0.044715, %v3439_v14 }
 0x249   : > { %4221 = vst [vmem:[#allocation46_spill] sm:$0xff] %v3442_v57  ;;  %4222 = vst [vmem:[#allocation47_spill] sm:$0xff] %v3448_v23  ;;  %v3450_v40 = vpop.f32.mrb[19].mxu0  ;;  %v3452_v42 = vpop.f32.mrb[19].mxu1  ;;  %v1082_v47 = vmul.f32 0.044715, %v3442_v57  ;;  %v3465_v32 = vmul.f32 %v1134_v5, %v3351_v38  ;;  %v3468_v56 = vmul.f32 %v1136_v17, %v3354_v50  ;;  %v3471_v44 = vmul.f32 %v1135_v2, %v3364_v4 }
 0x24a   : > { %4223 = vst [vmem:[#allocation48_spill] sm:$0xff] %v3459_v49  ;;  %v1084_v21 = vmul.f32 0.044715, %v3448_v23  ;;  %v3474_v11 = vadd.f32 %v836_v46, %v3242_v53  ;;  %v3477_v58 = vmul.f32 %v1137_v36, %v3367_v48  ;;  %v3480_v49 = vmul.f32 %v1138_v20, %v3370_v15 }
 0x24b   : > { %4224 = vst [vmem:[#allocation49_spill] sm:$0xff] %v3468_v56  ;;  %v3483_v31 = vmul.f32 %v1140_v25, %v3384_v35  ;;  %v1143_v5 = vmul.f32 %v1079_v60, %v3436_v9  ;;  %v3487_v17 = vmul.f32 %v1139_v45, %v3400_v6  ;;  %v3490_v2 = vmul.f32 %v1141_v12, %v3417_v18 }
 0x24c   : > { %4225 = vst [vmem:[#allocation50_spill] sm:$0xff] %v3474_v11  ;;  %4226 = vst [vmem:[#allocation51_spill] sm:$0xff] %v3480_v49  ;;  %v3493_v46 = vmul.f32 %v1142_v3, %v3420_v28  ;;  %v3496_v36 = vmul.f32 %v1144_v43, %v3428_v29  ;;  %v1145_v49 = vmul.f32 %v1081_v27, %v3439_v14  ;;  %v1083_v3 = vmul.f32 0.044715, %v3474_v11 }
 0x24d   : > { %4227 = vst [vmem:[#allocation52_spill] sm:$0xff] %v3483_v31  ;;  %4228 = vst [vmem:[#allocation53_spill] sm:$0xff] %v3487_v17  ;;  %v1146_v25 = vmul.f32 %v1082_v47, %v3442_v57  ;;  %v1148_v60 = vmul.f32 %v1084_v21, %v3448_v23  ;;  %v1243_v45 = vadd.f32 %v3284_v13, %v3249_v63 }
 0x24e   : > { %4229 = vst [vmem:[#allocation54_spill] sm:$0xff] %v3490_v2  ;;  %4230 = vst [vmem:[#allocation55_spill] sm:$0xff] %v3493_v46  ;;  %v844_v56 = vpop.f32.mrb[20].mxu0  ;;  %v957_v20 = vpop.f32.mrb[20].mxu1  ;;  %v3507_v35 = vadd.f32 %v949_v24, %v3244_v54  ;;  %v1247_v43 = vadd.f32 %v3323_v55, %v3259_v34  ;;  %v1245_v27 = vadd.f32 %v3287_v16, %v3252_v0 }
 0x24f   : > { %4231 = vst [vmem:[#allocation56_spill] sm:$0xff] %v3496_v36  ;;  %v846_v31 = vpop.f32.mrb[21].mxu0  ;;  %v3503_v12 = vpop.f32.mrb[21].mxu1  ;;  %v3518_v13 = vmul.f32 %v1143_v5, %v3436_v9  ;;  %v3521_v36 = vmul.f32 0.5, %v3249_v63  ;;  %v1307_v29 = vmul.f32 0.7978846, %v1243_v45  ;;  %v1249_v24 = vadd.f32 %v3334_v10, %v3262_v26 }
 0x250   : > { %4232 = vst [vmem:[#allocation57_spill] sm:$0xff] %v3507_v35  ;;  %v3513_v47 = vpop.f32.mrb[22].mxu0  ;;  %v3515_v21 = vpop.f32.mrb[22].mxu1  ;;  %v1311_v28 = vmul.f32 0.7978846, %v1247_v43  ;;  %v3530_v15 = vadd.f32 %v838_v22, %v3238_v52  ;;  %v3533_v2 = vadd.f32 %v951_v59, %v3240_v41  ;;  %v3536_v5 = vmul.f32 %v1145_v49, %v3439_v14 }
 0x251   : > { %4233 = vst [vmem:[#allocation58_spill] sm:$0xff] %v3518_v13  ;;  %v3525_v46 = vpop.f32.mrb[23].mxu0  ;;  %v3527_v55 = vpop.f32.mrb[23].mxu1  ;;  %v1309_v16 = vmul.f32 0.7978846, %v1245_v27  ;;  %2656 = vtanh.f32 %v1307_v29  ;;  %v1434_v45 = vadd.f32 1.0, %v3372_v7  ;;  %v1147_v49 = vmul.f32 %v1083_v3, %v3474_v11 }
 0x252   : > { %4234 = vst [vmem:[#allocation59_spill] sm:$0xff] %v3530_v15  ;;  %4235 = vst [vmem:[#allocation60_spill] sm:$0xff] %v3533_v2  ;;  %v1313_v63 = vmul.f32 0.7978846, %v1249_v24  ;;  %v1085_v10 = vmul.f32 0.044715, %v3507_v35  ;;  %2658 = vtanh.f32 %v1311_v28 }
 0x253   : > { %4236 = vst [vmem:[#allocation61_spill] sm:$0xff] %v3536_v5  ;;  %v1086_v18 = vmul.f32 0.044715, %v3530_v15  ;;  %v1438_v43 = vadd.f32 1.0, %v3402_v33  ;;  %2660 = vtanh.f32 %v1309_v16  ;;  %v1088_v22 = vmul.f32 0.044715, %v3533_v2 }
 0x254   : > { %v1436_v59 = vadd.f32 1.0, %v3392_v8  ;;  %v1440_v27 = vadd.f32 1.0, %v3422_v51  ;;  %2662 = vtanh.f32 %v1313_v63  ;;  %v3547_v29 = vmul.f32 %v1434_v45, %v3272_v1 }
 0x255   : > { %v3550_v7 = vmul.f32 %v1438_v43, %v3289_v19  ;;  %v3564_v51 = vadd.f32 %v3450_v40, %v3242_v53  ;;  %v3568_v1 = vadd.f32 %v3452_v42, %v3244_v54  ;;  %v3575_v16 = vmul.f32 %v1146_v25, %v3442_v57 }
 0x256   : > { %v3552_v28 = vpop.f32.mrb[24].mxu0  ;;  %v3554_v24 = vpop.f32.mrb[24].mxu1  ;;  %v3557_v33 = vmul.f32 %v1436_v59, %v3275_v62  ;;  %v3560_v8 = vmul.f32 %v1440_v27, %v3291_v61  ;;  %v1149_v62 = vmul.f32 %v1085_v10, %v3507_v35  ;;  %v3581_v63 = vadd.f32 %v844_v56, %v3238_v52 }
 0x257   : > { %v3570_v19 = vpop.f32.mrb[25].mxu0  ;;  %v3572_v3 = vpop.f32.mrb[25].mxu1  ;;  %4237 = vst [vmem:[#allocation62_spill] sm:$0xff] %v3575_v16  ;;  %v1150_v42 = vmul.f32 %v1086_v18, %v3530_v15  ;;  %v1152_v43 = vmul.f32 %v1088_v22, %v3533_v2  ;;  %v3592_v59 = vadd.f32 %v957_v20, %v3240_v41  ;;  %v3599_v56 = vmul.f32 %v1148_v60, %v3448_v23 }
 0x258   : > { %4238 = vst [vmem:[#allocation63_spill] sm:$0xff] %v3581_v63  ;;  %v3583_v40 = vpop.f32.mrb[26].mxu0  ;;  %v3585_v45 = vpop.f32.mrb[26].mxu1  ;;  %v991_v61 = vmul.f32 0.5, %v3259_v34  ;;  %v1087_v16 = vmul.f32 0.044715, %v3564_v51  ;;  %v3604_v18 = vadd.f32 %v846_v31, %v3242_v53  ;;  %v3607_v22 = vmul.f32 %v1147_v49, %v3474_v11 }
 0x259   : > { %4239 = vst [vmem:[#allocation64_spill] sm:$0xff] %v3592_v59  ;;  %v3594_v10 = vpop.f32.mrb[27].mxu0  ;;  %v3596_v27 = vpop.f32.mrb[27].mxu1  ;;  %4240 = vst [vmem:[#allocation65_spill] sm:$0xff] %v3599_v56  ;;  %v989_v20 = vmul.f32 0.5, %v3252_v0  ;;  %v993_v25 = vmul.f32 0.5, %v3262_v26  ;;  %v3613_v5 = vmul.f32 %v1149_v62, %v3507_v35  ;;  %v3618_v34 = vadd.f32 %v3503_v12, %v3244_v54 }
 0x25a   : > { %4241 = vst [vmem:[#allocation66_spill] sm:$0xff] %v3607_v22  ;;  %v1089_v57 = vmul.f32 0.044715, %v3568_v1  ;;  %v1090_v60 = vmul.f32 0.044715, %v3581_v63  ;;  %v1251_v31 = vadd.f32 %v3357_v37, %v3281_v30  ;;  %v3623_v56 = vmul.f32 %v1150_v42, %v3530_v15  ;;  %v4245_v62 = vld [vmem:[#allocation35_spill] sm:$0xff] }
 0x25b   : > { %4242 = vst [vmem:[#allocation67_spill] sm:$0xff] %v3613_v5  ;;  %v2657_v49 = vpop.eup %2656  ;;  %v3626_v0 = vmul.f32 %v1152_v43, %v3533_v2  ;;  %v1092_v26 = vmul.f32 0.044715, %v3592_v59  ;;  %v1255_v23 = vadd.f32 %v4245_v62, %v3309_v39  ;;  %v1151_v12 = vmul.f32 %v1087_v16, %v3564_v51 }
 0x25c   : > { %4243 = vst [vmem:[#allocation68_spill] sm:$0xff] %v3623_v56  ;;  %v2659_v5 = vpop.eup %2658  ;;  %v1435_v35 = vadd.f32 1.0, %v2657_v49  ;;  %v1091_v22 = vmul.f32 0.044715, %v3604_v18  ;;  %v3634_v37 = vmul.f32 0.5, %v3281_v30  ;;  %v1153_v2 = vmul.f32 %v1089_v57, %v3568_v1 }
 0x25d   : > { %4244 = vst [vmem:[#allocation69_spill] sm:$0xff] %v3626_v0  ;;  %v2661_v43 = vpop.eup %2660  ;;  %v1439_v0 = vadd.f32 1.0, %v2659_v5  ;;  %v1315_v56 = vmul.f32 0.7978846, %v1251_v31  ;;  %v1319_v15 = vmul.f32 0.7978846, %v1255_v23  ;;  %v1154_v16 = vmul.f32 %v1090_v60, %v3581_v63 }
 0x25e   : > { %v3636_v11 = vpop.f32.mrb[28].mxu0  ;;  %v3638_v42 = vpop.f32.mrb[28].mxu1  ;;  %v1437_v14 = vadd.f32 1.0, %v2661_v43  ;;  %v1093_v13 = vmul.f32 0.044715, %v3618_v34  ;;  %v3646_v30 = vmul.f32 0.5, %v3309_v39  ;;  %v1499_v5 = vmul.f32 %v1435_v35, %v3521_v36 }
 0x25f   : > { %4246 = vst [vmem:[#allocation35_spill] sm:$0xff] %v3636_v11  ;;  %4247 = vst [vmem:[#allocation70_spill] sm:$0xff] %v3638_v42  ;;  %v3641_v62 = vpop.f32.mrb[29].mxu0  ;;  %v2663_v49 = vpop.eup %2662  ;;  %v1503_v57 = vmul.f32 %v1439_v0, %v991_v61  ;;  %2664 = vtanh.f32 %v1315_v56  ;;  %v1156_v60 = vmul.f32 %v1092_v26, %v3592_v59  ;;  %v1155_v43 = vmul.f32 %v1091_v22, %v3604_v18  ;;  %v4251_v39 = vld [vmem:[#allocation20_spill] sm:$0xff]  ;;  %v4253_v36 = vld [vmem:[#allocation23_spill] sm:$0xff] }
 0x260   : > { %4248 = vst [vmem:[#allocation71_spill] sm:$0xff] %v3641_v62  ;;  %v3648_v9 = vpop.f32.mrb[29].mxu1  ;;  %v3650_v17 = vpop.f32.mrb[30].mxu0  ;;  %v1441_v31 = vadd.f32 1.0, %v2663_v49  ;;  %2666 = vtanh.f32 %v1319_v15  ;;  %v4252_v62 = vld [vmem:[#allocation31_spill] sm:$0xff]  ;;  %v1501_v11 = vmul.f32 %v1437_v14, %v989_v20  ;;  %v4254_v61 = vld [vmem:[#allocation36_spill] sm:$0xff]  ;;  %v3666_v0 = vmul.f32 %v1151_v12, %v3564_v51 }
 0x261   : > { %4249 = vst [vmem:[#allocation72_spill] sm:$0xff] %v3648_v9  ;;  %4250 = vst [vmem:[#allocation73_spill] sm:$0xff] %v3650_v17  ;;  %v3653_v23 = vpop.f32.mrb[30].mxu1  ;;  %v3655_v6 = vpop.f32.mrb[31].mxu0  ;;  %v1253_v42 = vadd.f32 %v4252_v62, %v4251_v39  ;;  %v1563_v17 = vpack.c.bf16 %v1503_v57, %v1499_v5  ;;  %v1257_v56 = vadd.f32 %v4254_v61, %v4253_v36  ;;  %v4258_v20 = vld [vmem:[#allocation27_spill] sm:$0xff] }
 0x262   : > { %v3661_v9 = vpop.f32.mrb[31].mxu1  ;;  %v1505_v35 = vmul.f32 %v1441_v31, %v993_v25  ;;  %v3669_v49 = vmul.f32 %v1153_v2, %v3568_v1  ;;  %v3673_v15 = vadd.f32 %v3513_v47, %v3238_v52  ;;  %v3677_v14 = vadd.f32 %v3515_v21, %v3240_v41  ;;  %v4257_v25 = vld [vmem:[#allocation18_spill] sm:$0xff] }
 0x263   : > { %v1317_v26 = vmul.f32 0.7978846, %v1253_v42  ;;  %1889 = vmatprep.mubr.bf16.mxu0 %v1563_v17  ;;  %v1321_v62 = vmul.f32 0.7978846, %v1257_v56  ;;  %v1250_v5 = vadd.f32 %v4258_v20, %v4257_v25  ;;  %v4259_v12 = vpack.c.bf16 %v3550_v7, %v3547_v29  ;;  %v4261_v17 = vld [vmem:[#allocation21_spill] sm:$0xff]  ;;  %v4267_v56 = vld [vmem:[#allocation22_spill] sm:$0xff] }
 0x264   : > { %4255 = vst [vmem:[#allocation20_spill] sm:$0xff] %v3673_v15  ;;  %v1565_v22 = vpack.c.bf16 %v1505_v35, %v1501_v11  ;;  %4256 = vst [vmem:[#allocation31_spill] sm:$0xff] %v3677_v14  ;;  %v3685_v2 = vmul.f32 %v1154_v16, %v3581_v63  ;;  %v1157_v47 = vmul.f32 %v1093_v13, %v3618_v34  ;;  %v4262_v11 = vld [vmem:[#allocation32_spill] sm:$0xff]  ;;  %v1094_v7 = vmul.f32 0.044715, %v3673_v15  ;;  %v4265_v16 = vld [vmem:[#allocation19_spill] sm:$0xff] }
 0x265   : > { %1890 = vmatmul.mubr.bf16.vlgmr.msra.gmra.mrb[32].mxu0 %v4259_v12  ;;  %2668 = vtanh.f32 %v1317_v26  ;;  %v1254_v42 = vadd.f32 %v4262_v11, %v4261_v17  ;;  %v3691_v21 = vmul.f32 %v1156_v60, %v3592_v59  ;;  %v3694_v57 = vmul.f32 %v1155_v43, %v3604_v18  ;;  %v4266_v35 = vld [vmem:[#allocation28_spill] sm:$0xff]  ;;  %v4268_v26 = vld [vmem:[#allocation33_spill] sm:$0xff] }
 0x266   : > { %4260 = vst [vmem:[#allocation23_spill] sm:$0xff] %v3685_v2  ;;  %1986 = vmatprep.mubr.bf16.mxu1 %v1565_v22  ;;  %2670 = vtanh.f32 %v1321_v62  ;;  %v1314_v31 = vmul.f32 0.7978846, %v1250_v5  ;;  %v4264_v29 = vpack.c.bf16 %v3560_v8, %v3557_v33  ;;  %v1252_v61 = vadd.f32 %v4266_v35, %v4265_v16 }
 0x267   : > { %4263 = vst [vmem:[#allocation36_spill] sm:$0xff] %v3691_v21  ;;  %v1318_v13 = vmul.f32 0.7978846, %v1254_v42  ;;  %v1256_v22 = vadd.f32 %v4268_v26, %v4267_v56  ;;  %v1096_v60 = vmul.f32 0.044715, %v3677_v14  ;;  %v3707_v43 = vadd.f32 %v3525_v46, %v3242_v53 }
 0x268   : > { %1987 = vmatmul.mubr.bf16.vlgmr.msra.gmra.mrb[32].mxu1 %v4264_v29  ;;  %2672 = vtanh.f32 %v1314_v31  ;;  %v3711_v33 = vadd.f32 %v3527_v55, %v3244_v54  ;;  %v3714_v8 = vmul.f32 %v1157_v47, %v3618_v34  ;;  %v1316_v62 = vmul.f32 0.7978846, %v1252_v61 }
 0x269   : > { %2674 = vtanh.f32 %v1318_v13  ;;  %v1320_v20 = vmul.f32 0.7978846, %v1256_v22  ;;  %v2665_v5 = vpop.eup %2664  ;;  %v997_v12 = vmul.f32 0.5, %v4251_v39  ;;  %v1095_v11 = vmul.f32 0.044715, %v3707_v43 }
 0x26a   : > { %v1097_v42 = vmul.f32 0.044715, %v3711_v33  ;;  %v3721_v46 = vadd.f32 %v3552_v28, %v3238_v52  ;;  %v2667_v31 = vpop.eup %2666  ;;  %v1443_v55 = vadd.f32 1.0, %v2665_v5  ;;  %v1001_v29 = vmul.f32 0.5, %v4253_v36 }
 0x26b   : > { %2676 = vtanh.f32 %v1316_v62  ;;  %v3726_v47 = vadd.f32 %v3554_v24, %v3240_v41  ;;  %v1447_v13 = vadd.f32 1.0, %v2667_v31  ;;  %v1158_v39 = vmul.f32 %v1094_v7, %v3673_v15 }
 0x26c   : > { %v1160_v35 = vmul.f32 %v1096_v60, %v3677_v14  ;;  %2678 = vtanh.f32 %v1320_v20  ;;  %v994_v61 = vmul.f32 0.5, %v4257_v25  ;;  %v1159_v28 = vmul.f32 %v1095_v11, %v3707_v43 }
 0x26d   : > { %4269 = vst [vmem:[#allocation18_spill] sm:$0xff] %v3726_v47  ;;  %v1161_v26 = vmul.f32 %v1097_v42, %v3711_v33  ;;  %v3735_v36 = vadd.f32 %v3570_v19, %v3242_v53  ;;  %v1507_v22 = vmul.f32 %v1443_v55, %v3634_v37  ;;  %v1511_v24 = vmul.f32 %v1447_v13, %v3646_v30 }
 0x26e   : > { %v1098_v62 = vmul.f32 0.044715, %v3721_v46  ;;  %v3742_v7 = vadd.f32 %v3572_v3, %v3244_v54  ;;  %v998_v25 = vmul.f32 0.5, %v4261_v17  ;;  %v996_v20 = vmul.f32 0.5, %v4265_v16 }
 0x26f   : > { %v2669_v60 = vpop.eup %2668  ;;  %v1000_v5 = vmul.f32 0.5, %v4267_v56  ;;  %v1100_v19 = vmul.f32 0.044715, %v3726_v47  ;;  %v1567_v42 = vpack.c.bf16 %v1511_v24, %v1507_v22  ;;  %v3749_v30 = vmul.f32 %v1158_v39, %v3673_v15  ;;  %v4273_v39 = vld [vmem:[#allocation26_spill] sm:$0xff]  ;;  %v4274_v24 = vld [vmem:[#allocation40_spill] sm:$0xff] }
 0x270   : > { %v2671_v11 = vpop.eup %2670  ;;  %v1445_v37 = vadd.f32 1.0, %v2669_v60  ;;  %v3752_v31 = vmul.f32 %v1160_v35, %v3677_v14  ;;  %v3755_v55 = vmul.f32 %v1159_v28, %v3707_v43  ;;  %v3758_v17 = vmul.f32 %v1161_v26, %v3711_v33  ;;  %v4276_v15 = vld [vmem:[#allocation48_spill] sm:$0xff] }
 0x271   : > { %4270 = vst [vmem:[#allocation27_spill] sm:$0xff] %v3749_v30  ;;  %v1449_v3 = vadd.f32 1.0, %v2671_v11  ;;  %v1099_v16 = vmul.f32 0.044715, %v3735_v36  ;;  %1897 = vmatprep.mubr.bf16.mxu0 %v1567_v42  ;;  %v1162_v13 = vmul.f32 %v1098_v62, %v3721_v46  ;;  %v1101_v22 = vmul.f32 0.044715, %v3742_v7 }
 0x272   : > { %4271 = vst [vmem:[#allocation21_spill] sm:$0xff] %v3752_v31  ;;  %4272 = vst [vmem:[#allocation32_spill] sm:$0xff] %v3758_v17  ;;  %v2673_v56 = vpop.eup %2672  ;;  %v1259_v60 = vadd.f32 %v4274_v24, %v4273_v39  ;;  %v1263_v35 = vadd.f32 %v3471_v44, %v3364_v4  ;;  %v1509_v28 = vmul.f32 %v1445_v37, %v997_v12  ;;  %v4275_v42 = vld [vmem:[#allocation29_spill] sm:$0xff] }
 0x273   : > { %v2675_v11 = vpop.eup %2674  ;;  %v1513_v31 = vmul.f32 %v1449_v3, %v1001_v29  ;;  %v1442_v14 = vadd.f32 1.0, %v2673_v56  ;;  %v1164_v26 = vmul.f32 %v1100_v19, %v3726_v47  ;;  %v1261_v62 = vadd.f32 %v4276_v15, %v4275_v42 }
 0x274   : > { %v1446_v21 = vadd.f32 1.0, %v2675_v11  ;;  %v1323_v59 = vmul.f32 0.7978846, %v1259_v60  ;;  %v1327_v30 = vmul.f32 0.7978846, %v1263_v35  ;;  %v1265_v24 = vadd.f32 %v3477_v58, %v3367_v48  ;;  %v4282_v60 = vld [vmem:[#allocation25_spill] sm:$0xff] }
 0x275   : > { %v2677_v2 = vpop.eup %2676  ;;  %v1569_v63 = vpack.c.bf16 %v1513_v31, %v1509_v28  ;;  %v1506_v17 = vmul.f32 %v1442_v14, %v994_v61  ;;  %v3774_v44 = vadd.f32 %v3583_v40, %v3238_v52  ;;  %v1325_v19 = vmul.f32 0.7978846, %v1261_v62  ;;  %v4283_v35 = vld [vmem:[#allocation39_spill] sm:$0xff] }
 0x276   : > { %v2679_v12 = vpop.eup %2678  ;;  %v1510_v29 = vmul.f32 %v1446_v21, %v998_v25  ;;  %v1444_v37 = vadd.f32 1.0, %v2677_v2  ;;  %2680 = vtanh.f32 %v1323_v59  ;;  %v1163_v56 = vmul.f32 %v1099_v16, %v3735_v36  ;;  %v4279_v21 = vld [vmem:[#allocation24_spill] sm:$0xff]  ;;  %v4280_v25 = vld [vmem:[#allocation38_spill] sm:$0xff] }
 0x277   : > { %4277 = vst [vmem:[#allocation19_spill] sm:$0xff] %v3774_v44  ;;  %1994 = vmatprep.mubr.bf16.mxu1 %v1569_v63  ;;  %v1448_v3 = vadd.f32 1.0, %v2679_v12  ;;  %2682 = vtanh.f32 %v1327_v30  ;;  %v1329_v15 = vmul.f32 0.7978846, %v1265_v24  ;;  %v1165_v14 = vmul.f32 %v1101_v22, %v3742_v7 }
 0x278   : > { %v1566_v31 = vpack.c.bf16 %v1510_v29, %v1506_v17  ;;  %v1003_v58 = vmul.f32 0.5, %v4273_v39  ;;  %2684 = vtanh.f32 %v1325_v19  ;;  %v1508_v61 = vmul.f32 %v1444_v37, %v996_v20  ;;  %v4285_v19 = vld [vmem:[#allocation35_spill] sm:$0xff] }
 0x279   : > { %v1512_v40 = vmul.f32 %v1448_v3, %v1000_v5  ;;  %2686 = vtanh.f32 %v1329_v15  ;;  %v3781_v2 = vadd.f32 %v3585_v45, %v3240_v41  ;;  %v1007_v63 = vmul.f32 0.5, %v3364_v4 }
 0x27a   : > { %1898 = vmatmul.mubr.bf16.gmra.mrb[36].mxu0 %v1566_v31  ;;  %v1102_v59 = vmul.f32 0.044715, %v3774_v44  ;;  %v1258_v30 = vadd.f32 %v4280_v25, %v4279_v21  ;;  %v1262_v17 = vadd.f32 %v3465_v32, %v3351_v38  ;;  %v3790_v20 = vmul.f32 %v1162_v13, %v3721_v46  ;;  %v4284_v13 = vld [vmem:[#allocation49_spill] sm:$0xff] }
 0x27b   : > { %4278 = vst [vmem:[#allocation28_spill] sm:$0xff] %v3781_v2  ;;  %v1568_v16 = vpack.c.bf16 %v1512_v40, %v1508_v61  ;;  %v3793_v5 = vmul.f32 %v1164_v26, %v3726_v47  ;;  %v3796_v45 = vmul.f32 %v1163_v56, %v3735_v36  ;;  %v3799_v4 = vmul.f32 %v1165_v14, %v3742_v7  ;;  %v4286_v56 = vld [vmem:[#allocation70_spill] sm:$0xff] }
 0x27c   : > { %v1322_v22 = vmul.f32 0.7978846, %v1258_v30  ;;  %v1326_v39 = vmul.f32 0.7978846, %v1262_v17  ;;  %v1260_v11 = vadd.f32 %v4283_v35, %v4282_v60  ;;  %v1104_v32 = vmul.f32 0.044715, %v3781_v2 }
 0x27d   : > { %4281 = vst [vmem:[#allocation22_spill] sm:$0xff] %v3793_v5  ;;  %1995 = vmatmul.mubr.bf16.gmra.mrb[36].mxu1 %v1568_v16  ;;  %v1264_v28 = vadd.f32 %v4284_v13, %v3354_v50  ;;  %v3808_v26 = vadd.f32 %v3594_v10, %v3242_v53  ;;  %v3812_v62 = vadd.f32 %v3596_v27, %v3244_v54  ;;  %v1005_v24 = vmul.f32 0.5, %v4275_v42 }
 0x27e   : > { %v1166_v12 = vmul.f32 %v1102_v59, %v3774_v44  ;;  %2688 = vtanh.f32 %v1322_v22  ;;  %v1324_v29 = vmul.f32 0.7978846, %v1260_v11  ;;  %v3818_v3 = vadd.f32 %v4285_v19, %v3238_v52  ;;  %v4288_v11 = vld [vmem:[#allocation71_spill] sm:$0xff]  ;;  %v4290_v19 = vld [vmem:[#allocation72_spill] sm:$0xff] }
 0x27f   : > { %2690 = vtanh.f32 %v1326_v39  ;;  %v1328_v37 = vmul.f32 0.7978846, %v1264_v28  ;;  %v3822_v10 = vadd.f32 %v4286_v56, %v3240_v41  ;;  %v1009_v27 = vmul.f32 0.5, %v3367_v48 }
 0x280   : > { %v2681_v15 = vpop.eup %2680  ;;  %v1002_v31 = vmul.f32 0.5, %v4279_v21  ;;  %2692 = vtanh.f32 %v1324_v29  ;;  %v1103_v42 = vmul.f32 0.044715, %v3808_v26  ;;  %v1168_v40 = vmul.f32 %v1104_v32, %v3781_v2 }
 0x281   : > { %v2683_v14 = vpop.eup %2682  ;;  %v1451_v61 = vadd.f32 1.0, %v2681_v15  ;;  %2694 = vtanh.f32 %v1328_v37  ;;  %v1105_v59 = vmul.f32 0.044715, %v3812_v62  ;;  %v3830_v17 = vmul.f32 %v1166_v12, %v3774_v44 }
 0x282   : > { %v2685_v25 = vpop.eup %2684  ;;  %v1455_v30 = vadd.f32 1.0, %v2683_v14  ;;  %v1006_v16 = vmul.f32 0.5, %v3351_v38  ;;  %v1004_v48 = vmul.f32 0.5, %v4282_v60  ;;  %v1106_v39 = vmul.f32 0.044715, %v3818_v3 }
 0x283   : > { %4287 = vst [vmem:[#allocation33_spill] sm:$0xff] %v3830_v17  ;;  %v2687_v21 = vpop.eup %2686  ;;  %v1453_v22 = vadd.f32 1.0, %v2685_v25  ;;  %v1108_v35 = vmul.f32 0.044715, %v3822_v10  ;;  %v3838_v32 = vadd.f32 %v4288_v11, %v3242_v53  ;;  %v1515_v13 = vmul.f32 %v1451_v61, %v1003_v58  ;;  %v4291_v11 = vld [vmem:[#allocation37_spill] sm:$0xff] }
 0x284   : > { %v1519_v28 = vmul.f32 %v1455_v30, %v1007_v63  ;;  %v1457_v29 = vadd.f32 1.0, %v2687_v21  ;;  %v1167_v12 = vmul.f32 %v1103_v42, %v3808_v26  ;;  %v3842_v37 = vmul.f32 %v1168_v40, %v3781_v2  ;;  %v4292_v58 = vld [vmem:[#allocation53_spill] sm:$0xff]  ;;  %v4293_v30 = vld [vmem:[#allocation44_spill] sm:$0xff] }
 0x285   : > { %v1008_v38 = vmul.f32 0.5, %v3354_v50  ;;  %v1169_v60 = vmul.f32 %v1105_v59, %v3812_v62  ;;  %v3848_v56 = vadd.f32 %v4290_v19, %v3244_v54  ;;  %v1517_v14 = vmul.f32 %v1453_v22, %v1005_v24  ;;  %v4294_v50 = vld [vmem:[#allocation58_spill] sm:$0xff]  ;;  %v4298_v2 = vld [vmem:[#allocation61_spill] sm:$0xff] }
 0x286   : > { %4289 = vst [vmem:[#allocation26_spill] sm:$0xff] %v3842_v37  ;;  %v1571_v15 = vpack.c.bf16 %v1519_v28, %v1515_v13  ;;  %v1521_v25 = vmul.f32 %v1457_v29, %v1009_v27  ;;  %v1267_v63 = vadd.f32 %v4292_v58, %v4291_v11  ;;  %v1170_v61 = vmul.f32 %v1106_v39, %v3818_v3  ;;  %v4295_v27 = vld [vmem:[#allocation41_spill] sm:$0xff]  ;;  %v4296_v22 = vld [vmem:[#allocation54_spill] sm:$0xff] }
 0x287   : > { %v1172_v42 = vmul.f32 %v1108_v35, %v3822_v10  ;;  %v1107_v40 = vmul.f32 0.044715, %v3838_v32  ;;  %v1271_v21 = vadd.f32 %v4294_v50, %v4293_v30  ;;  %v3858_v19 = vmul.f32 %v1167_v12, %v3808_v26  ;;  %v4297_v58 = vld [vmem:[#allocation45_spill] sm:$0xff] }
 0x288   : > { %v2689_v59 = vpop.eup %2688  ;;  %1905 = vmatprep.mubr.bf16.mxu0 %v1571_v15  ;;  %v1573_v37 = vpack.c.bf16 %v1521_v25, %v1517_v14  ;;  %v1331_v24 = vmul.f32 0.7978846, %v1267_v63  ;;  %v1269_v13 = vadd.f32 %v4296_v22, %v4295_v27  ;;  %v1109_v39 = vmul.f32 0.044715, %v3848_v56 }
 0x289   : > { %v2691_v28 = vpop.eup %2690  ;;  %v1450_v29 = vadd.f32 1.0, %v2689_v59  ;;  %v1335_v35 = vmul.f32 0.7978846, %v1271_v21  ;;  %v1273_v5 = vadd.f32 %v4298_v2, %v4297_v58  ;;  %v3866_v15 = vmul.f32 %v1169_v60, %v3812_v62  ;;  %v4299_v59 = vld [vmem:[#allocation73_spill] sm:$0xff] }
 0x28a   : > { %v2693_v47 = vpop.eup %2692  ;;  %2002 = vmatprep.mubr.bf16.mxu1 %v1573_v37  ;;  %v1454_v50 = vadd.f32 1.0, %v2691_v28  ;;  %2696 = vtanh.f32 %v1331_v24  ;;  %v1333_v12 = vmul.f32 0.7978846, %v1269_v13  ;;  %v3870_v22 = vadd.f32 %v4299_v59, %v3238_v52  ;;  %v4302_v28 = vld [vmem:[#allocation51_spill] sm:$0xff]  ;;  %v4308_v59 = vld [vmem:[#allocation56_spill] sm:$0xff] }
 0x28b   : > { %v2695_v14 = vpop.eup %2694  ;;  %v1514_v25 = vmul.f32 %v1450_v29, %v1002_v31  ;;  %v1452_v63 = vadd.f32 1.0, %v2693_v47  ;;  %2698 = vtanh.f32 %v1335_v35  ;;  %v1337_v44 = vmul.f32 0.7978846, %v1273_v5  ;;  %v4301_v5 = vld [vmem:[#allocation30_spill] sm:$0xff]  ;;  %v4304_v35 = vld [vmem:[#allocation55_spill] sm:$0xff] }
 0x28c   : > { %v1518_v21 = vmul.f32 %v1454_v50, %v1006_v16  ;;  %v1456_v17 = vadd.f32 1.0, %v2695_v14  ;;  %2700 = vtanh.f32 %v1333_v12  ;;  %v3873_v2 = vmul.f32 %v1170_v61, %v3818_v3  ;;  %v4303_v61 = vld [vmem:[#allocation42_spill] sm:$0xff] }
 0x28d   : > { %v3876_v37 = vmul.f32 %v1172_v42, %v3822_v10  ;;  %v1171_v60 = vmul.f32 %v1107_v40, %v3838_v32  ;;  %v1173_v31 = vmul.f32 %v1109_v39, %v3848_v56  ;;  %v1516_v24 = vmul.f32 %v1452_v63, %v1004_v48  ;;  %v4307_v63 = vld [vmem:[#allocation43_spill] sm:$0xff] }
 0x28e   : > { %v1570_v47 = vpack.c.bf16 %v1518_v21, %v1514_v25  ;;  %v1520_v13 = vmul.f32 %v1456_v17, %v1008_v38  ;;  %2702 = vtanh.f32 %v1337_v44  ;;  %v1011_v52 = vmul.f32 0.5, %v4291_v11  ;;  %v4305_v17 = vld [vmem:[#allocation34_spill] sm:$0xff]  ;;  %v4306_v44 = vld [vmem:[#allocation52_spill] sm:$0xff] }
 0x28f   : > { %4300 = vst [vmem:[#allocation40_spill] sm:$0xff] %v3876_v37  ;;  %v1110_v16 = vmul.f32 0.044715, %v3870_v22  ;;  %v1266_v29 = vadd.f32 %v4302_v28, %v4301_v5  ;;  %v1270_v50 = vadd.f32 %v4304_v35, %v4303_v61  ;;  %v1015_v40 = vmul.f32 0.5, %v4293_v30  ;;  %v4320_v37 = vld [vmem:[#allocation69_spill] sm:$0xff] }
 0x290   : > { %1906 = vmatmul.mubr.bf16.gmra.mrb[40].mxu0 %v1570_v47  ;;  %v1572_v42 = vpack.c.bf16 %v1520_v13, %v1516_v24  ;;  %v3889_v39 = vadd.f32 %v3653_v23, %v3240_v41  ;;  %v1268_v48 = vadd.f32 %v4306_v44, %v4305_v17  ;;  %v3894_v38 = vmul.f32 %v1171_v60, %v3838_v32 }
 0x291   : > { %v1013_v11 = vmul.f32 0.5, %v4295_v27  ;;  %v1330_v12 = vmul.f32 0.7978846, %v1266_v29  ;;  %v1334_v14 = vmul.f32 0.7978846, %v1270_v50  ;;  %v3898_v25 = vmul.f32 %v1173_v31, %v3848_v56  ;;  %v4310_v29 = vld [vmem:[#allocation66_spill] sm:$0xff] }
 0x292   : > { %2003 = vmatmul.mubr.bf16.gmra.mrb[40].mxu1 %v1572_v42  ;;  %v1017_v30 = vmul.f32 0.5, %v4297_v58  ;;  %v1272_v41 = vadd.f32 %v4308_v59, %v4307_v63  ;;  %v1332_v23 = vmul.f32 0.7978846, %v1268_v48  ;;  %v1174_v21 = vmul.f32 %v1110_v16, %v3870_v22  ;;  %v4309_v16 = vld [vmem:[#allocation50_spill] sm:$0xff] }
 0x293   : > { %v3905_v47 = vmul.f32 0.5, %v4301_v5  ;;  %v3908_v60 = vmul.f32 0.5, %v4303_v61  ;;  %2704 = vtanh.f32 %v1330_v12  ;;  %v1112_v24 = vmul.f32 0.044715, %v3889_v39 }
 0x294   : > { %v2697_v27 = vpop.eup %2696  ;;  %2706 = vtanh.f32 %v1334_v14  ;;  %v1336_v31 = vmul.f32 0.7978846, %v1272_v41  ;;  %v3913_v58 = vadd.f32 %v3655_v6, %v3242_v53  ;;  %v1275_v5 = vadd.f32 %v4310_v29, %v4309_v16  ;;  %v4313_v29 = vld [vmem:[#allocation46_spill] sm:$0xff] }
 0x295   : > { %v2699_v13 = vpop.eup %2698  ;;  %v1459_v28 = vadd.f32 1.0, %v2697_v27  ;;  %2708 = vtanh.f32 %v1332_v23  ;;  %v1279_v61 = vadd.f32 %v3666_v0, %v3564_v51  ;;  %v1012_v42 = vmul.f32 0.5, %v4305_v17 }
 0x296   : > { %v2701_v35 = vpop.eup %2700  ;;  %v1463_v50 = vadd.f32 1.0, %v2699_v13  ;;  %v1016_v44 = vmul.f32 0.5, %v4307_v63  ;;  %2710 = vtanh.f32 %v1336_v31  ;;  %v3923_v6 = vadd.f32 %v3661_v9, %v3244_v54  ;;  %v4311_v54 = vld [vmem:[#allocation57_spill] sm:$0xff]  ;;  %v4312_v9 = vld [vmem:[#allocation67_spill] sm:$0xff] }
 0x297   : > { %v1461_v48 = vadd.f32 1.0, %v2701_v35  ;;  %v1339_v53 = vmul.f32 0.7978846, %v1275_v5  ;;  %v1343_v12 = vmul.f32 0.7978846, %v1279_v61  ;;  %v1523_v59 = vmul.f32 %v1459_v28, %v1011_v52  ;;  %v4314_v5 = vld [vmem:[#allocation62_spill] sm:$0xff] }
 0x298   : > { %v2703_v14 = vpop.eup %2702  ;;  %v1527_v41 = vmul.f32 %v1463_v50, %v1015_v40  ;;  %v3926_v23 = vmul.f32 %v1174_v21, %v3870_v22  ;;  %v1111_v0 = vmul.f32 0.044715, %v3913_v58  ;;  %v3930_v17 = vmul.f32 %v1112_v24, %v3889_v39  ;;  %v4315_v50 = vld [vmem:[#allocation59_spill] sm:$0xff] }
 0x299   : > { %v1465_v27 = vadd.f32 1.0, %v2703_v14  ;;  %v1019_v63 = vmul.f32 0.5, %v4309_v16  ;;  %2712 = vtanh.f32 %v1339_v53  ;;  %v1277_v13 = vadd.f32 %v4312_v9, %v4311_v54  ;;  %v4316_v53 = vld [vmem:[#allocation68_spill] sm:$0xff] }
 0x29a   : > { %v1575_v31 = vpack.c.bf16 %v1527_v41, %v1523_v59  ;;  %2714 = vtanh.f32 %v1343_v12  ;;  %v1281_v52 = vadd.f32 %v3669_v49, %v3568_v1  ;;  %v1525_v40 = vmul.f32 %v1461_v48, %v1013_v11  ;;  %v4317_v11 = vld [vmem:[#allocation47_spill] sm:$0xff] }
 0x29b   : > { %v1529_v21 = vmul.f32 %v1465_v27, %v1017_v30  ;;  %v1113_v28 = vmul.f32 0.044715, %v3923_v6  ;;  %v1274_v61 = vadd.f32 %v4314_v5, %v4313_v29  ;;  %v1175_v24 = vmul.f32 %v1111_v0, %v3913_v58  ;;  %v4318_v30 = vld [vmem:[#allocation65_spill] sm:$0xff] }
 0x29c   : > { %1913 = vmatprep.mubr.bf16.mxu0 %v1575_v31  ;;  %v1341_v16 = vmul.f32 0.7978846, %v1277_v13  ;;  %v1345_v35 = vmul.f32 0.7978846, %v1281_v52  ;;  %v1278_v12 = vadd.f32 %v4316_v53, %v4315_v50  ;;  %v1023_v41 = vmul.f32 0.5, %v3564_v51  ;;  %v4319_v31 = vld [vmem:[#allocation60_spill] sm:$0xff] }
 0x29d   : > { %v2705_v14 = vpop.eup %2704  ;;  %v1577_v59 = vpack.c.bf16 %v1529_v21, %v1525_v40  ;;  %v1338_v49 = vmul.f32 0.7978846, %v1274_v61  ;;  %v1276_v48 = vadd.f32 %v4318_v30, %v4317_v11  ;;  %v1280_v0 = vadd.f32 %v4320_v37, %v4319_v31 }
 0x29e   : > { %v2707_v27 = vpop.eup %2706  ;;  %v1458_v9 = vadd.f32 1.0, %v2705_v14  ;;  %2716 = vtanh.f32 %v1341_v16  ;;  %v1342_v5 = vmul.f32 0.7978846, %v1278_v12  ;;  %v3949_v53 = vmul.f32 %v1113_v28, %v3923_v6 }
 0x29f   : > { %v2709_v13 = vpop.eup %2708  ;;  %2010 = vmatprep.mubr.bf16.mxu1 %v1577_v59  ;;  %v1462_v52 = vadd.f32 1.0, %v2707_v27  ;;  %2718 = vtanh.f32 %v1345_v35  ;;  %v1340_v40 = vmul.f32 0.7978846, %v1276_v48  ;;  %v3952_v61 = vmul.f32 %v1175_v24, %v3913_v58 }
 0x2a0   : > { %v2711_v51 = vpop.eup %2710  ;;  %v1460_v21 = vadd.f32 1.0, %v2709_v13  ;;  %2720 = vtanh.f32 %v1338_v49  ;;  %v1344_v14 = vmul.f32 0.7978846, %v1280_v0  ;;  %v1522_v16 = vmul.f32 %v1458_v9, %v3905_v47  ;;  %v4321_v13 = vld [vmem:[#allocation32_spill] sm:$0xff] }
 0x2a1   : > { %v1526_v12 = vmul.f32 %v1462_v52, %v3908_v60  ;;  %v1464_v37 = vadd.f32 1.0, %v2711_v51  ;;  %2722 = vtanh.f32 %v1342_v5  ;;  %v1021_v59 = vmul.f32 0.5, %v4311_v54 }
 0x2a2   : > { %2724 = vtanh.f32 %v1340_v40  ;;  %v1283_v28 = vadd.f32 %v3694_v57, %v3604_v18  ;;  %v1287_v35 = vadd.f32 %v3755_v55, %v3707_v43  ;;  %v1524_v48 = vmul.f32 %v1460_v21, %v1012_v42 }
 0x2a3   : > { %v2713_v30 = vpop.eup %2712  ;;  %v1574_v24 = vpack.c.bf16 %v1526_v12, %v1522_v16  ;;  %v1528_v49 = vmul.f32 %v1464_v37, %v1016_v44  ;;  %2726 = vtanh.f32 %v1344_v14  ;;  %v1025_v60 = vmul.f32 0.5, %v3568_v1  ;;  %v4323_v12 = vld [vmem:[#allocation23_spill] sm:$0xff] }
 0x2a4   : > { %v2715_v27 = vpop.eup %2714  ;;  %v1467_v47 = vadd.f32 1.0, %v2713_v30  ;;  %v1347_v9 = vmul.f32 0.7978846, %v1283_v28  ;;  %v1351_v5 = vmul.f32 0.7978846, %v1287_v35  ;;  %v1285_v57 = vadd.f32 %v3714_v8, %v3618_v34  ;;  %v4322_v8 = vld [vmem:[#allocation63_spill] sm:$0xff] }
 0x2a5   : > { %1914 = vmatmul.mubr.bf16.gmra.mrb[44].mxu0 %v1574_v24  ;;  %v1576_v54 = vpack.c.bf16 %v1528_v49, %v1524_v48  ;;  %v1471_v0 = vadd.f32 1.0, %v2715_v27  ;;  %v1289_v55 = vadd.f32 %v4321_v13, %v3711_v33  ;;  %v1018_v42 = vmul.f32 0.5, %v4313_v29  ;;  %v4324_v28 = vld [vmem:[#allocation20_spill] sm:$0xff] }
 0x2a6   : > { %v1531_v52 = vmul.f32 %v1467_v47, %v1019_v63  ;;  %v1022_v44 = vmul.f32 0.5, %v4315_v50  ;;  %2728 = vtanh.f32 %v1347_v9  ;;  %v1349_v1 = vmul.f32 0.7978846, %v1285_v57  ;;  %v4325_v63 = vld [vmem:[#allocation27_spill] sm:$0xff]  ;;  %v4326_v24 = vld [vmem:[#allocation64_spill] sm:$0xff] }
 0x2a7   : > { %2011 = vmatmul.mubr.bf16.gmra.mrb[44].mxu1 %v1576_v54  ;;  %v1535_v40 = vmul.f32 %v1471_v0, %v1023_v41  ;;  %2730 = vtanh.f32 %v1351_v5  ;;  %v1353_v51 = vmul.f32 0.7978846, %v1289_v55  ;;  %v1020_v14 = vmul.f32 0.5, %v4317_v11  ;;  %v4327_v41 = vld [vmem:[#allocation36_spill] sm:$0xff]  ;;  %v4328_v54 = vld [vmem:[#allocation31_spill] sm:$0xff]  ;;  %v4329_v0 = vld [vmem:[#allocation21_spill] sm:$0xff] }
 0x2a8   : > { %v2717_v21 = vpop.eup %2716  ;;  %v1024_v16 = vmul.f32 0.5, %v4319_v31  ;;  %v1282_v37 = vadd.f32 %v4323_v12, %v4322_v8  ;;  %v1286_v35 = vadd.f32 %v4325_v63, %v4324_v28  ;;  %2732 = vtanh.f32 %v1349_v1 }
 0x2a9   : > { %v2719_v29 = vpop.eup %2718  ;;  %v1579_v30 = vpack.c.bf16 %v1535_v40, %v1531_v52  ;;  %v1469_v50 = vadd.f32 1.0, %v2717_v21  ;;  %v1284_v48 = vadd.f32 %v4327_v41, %v4326_v24  ;;  %2734 = vtanh.f32 %v1353_v51 }
 0x2aa   : > { %v2721_v49 = vpop.eup %2720  ;;  %v1473_v27 = vadd.f32 1.0, %v2719_v29  ;;  %v1346_v47 = vmul.f32 0.7978846, %v1282_v37  ;;  %v1350_v11 = vmul.f32 0.7978846, %v1286_v35  ;;  %v1027_v5 = vmul.f32 0.5, %v3604_v18 }
 0x2ab   : > { %v2723_v9 = vpop.eup %2722  ;;  %1921 = vmatprep.mubr.bf16.mxu0 %v1579_v30  ;;  %v1466_v31 = vadd.f32 1.0, %v2721_v49  ;;  %v1288_v57 = vadd.f32 %v4329_v0, %v4328_v54  ;;  %v1348_v13 = vmul.f32 0.7978846, %v1284_v48  ;;  %v1533_v52 = vmul.f32 %v1469_v50, %v1021_v59 }
 0x2ac   : > { %v2725_v55 = vpop.eup %2724  ;;  %v1537_v40 = vmul.f32 %v1473_v27, %v1025_v60  ;;  %v1470_v1 = vadd.f32 1.0, %v2723_v9  ;;  %2736 = vtanh.f32 %v1346_v47  ;;  %v1031_v18 = vmul.f32 0.5, %v3707_v43 }
 0x2ad   : > { %v2727_v21 = vpop.eup %2726  ;;  %v1530_v12 = vmul.f32 %v1466_v31, %v1018_v42  ;;  %v1468_v63 = vadd.f32 1.0, %v2725_v55  ;;  %2738 = vtanh.f32 %v1350_v11  ;;  %v1352_v51 = vmul.f32 0.7978846, %v1288_v57 }
 0x2ae   : > { %v1581_v37 = vpack.c.bf16 %v1537_v40, %v1533_v52  ;;  %v1534_v35 = vmul.f32 %v1470_v1, %v1022_v44  ;;  %v1472_v29 = vadd.f32 1.0, %v2727_v21  ;;  %2740 = vtanh.f32 %v1348_v13  ;;  %v4331_v1 = vld [vmem:[#allocation33_spill] sm:$0xff] }
 0x2af   : > { %v1029_v30 = vmul.f32 0.5, %v3618_v34  ;;  %2742 = vtanh.f32 %v1352_v51  ;;  %v1291_v59 = vadd.f32 %v3796_v45, %v3735_v36  ;;  %v1532_v41 = vmul.f32 %v1468_v63, %v1020_v14 }
 0x2b0   : > { %v2729_v60 = vpop.eup %2728  ;;  %2018 = vmatprep.mubr.bf16.mxu1 %v1581_v37  ;;  %v1578_v50 = vpack.c.bf16 %v1534_v35, %v1530_v12  ;;  %v1536_v42 = vmul.f32 %v1472_v29, %v1024_v16  ;;  %v1295_v48 = vadd.f32 %v3858_v19, %v3808_v26  ;;  %v1033_v27 = vmul.f32 0.5, %v3711_v33 }
 0x2b1   : > { %v2731_v49 = vpop.eup %2730  ;;  %v1475_v44 = vadd.f32 1.0, %v2729_v60  ;;  %v1355_v47 = vmul.f32 0.7978846, %v1291_v59  ;;  %v1293_v34 = vadd.f32 %v3799_v4, %v3742_v7  ;;  %v1297_v9 = vadd.f32 %v3866_v15, %v3812_v62  ;;  %v4333_v60 = vld [vmem:[#allocation22_spill] sm:$0xff] }
 0x2b2   : > { %1922 = vmatmul.mubr.bf16.gmra.mrb[48].mxu0 %v1578_v50  ;;  %v1580_v43 = vpack.c.bf16 %v1536_v42, %v1532_v41  ;;  %v1479_v11 = vadd.f32 1.0, %v2731_v49  ;;  %v1359_v45 = vmul.f32 0.7978846, %v1295_v48  ;;  %v2733_v14 = vpop.eup %2732  ;;  %v1026_v31 = vmul.f32 0.5, %v4322_v8  ;;  %v4330_v8 = vld [vmem:[#allocation19_spill] sm:$0xff] }
 0x2b3   : > { %v1539_v16 = vmul.f32 %v1475_v44, %v1027_v5  ;;  %2744 = vtanh.f32 %v1355_v47  ;;  %v1357_v19 = vmul.f32 0.7978846, %v1293_v34  ;;  %v2735_v0 = vpop.eup %2734  ;;  %v1477_v57 = vadd.f32 1.0, %v2733_v14 }
 0x2b4   : > { %2019 = vmatmul.mubr.bf16.gmra.mrb[48].mxu1 %v1580_v43  ;;  %v1543_v33 = vmul.f32 %v1479_v11, %v1031_v18  ;;  %2746 = vtanh.f32 %v1359_v45  ;;  %v1361_v13 = vmul.f32 0.7978846, %v1297_v9  ;;  %v1481_v4 = vadd.f32 1.0, %v2735_v0 }
 0x2b5   : > { %v1030_v55 = vmul.f32 0.5, %v4324_v28  ;;  %2748 = vtanh.f32 %v1357_v19  ;;  %v1290_v52 = vadd.f32 %v3790_v20, %v3721_v46  ;;  %v1028_v5 = vmul.f32 0.5, %v4326_v24  ;;  %v4332_v20 = vld [vmem:[#allocation18_spill] sm:$0xff] }
 0x2b6   : > { %v2737_v15 = vpop.eup %2736  ;;  %v1583_v40 = vpack.c.bf16 %v1543_v33, %v1539_v16  ;;  %2750 = vtanh.f32 %v1361_v13  ;;  %v1294_v21 = vadd.f32 %v4331_v1, %v4330_v8  ;;  %v1541_v63 = vmul.f32 %v1477_v57, %v1029_v30  ;;  %v4334_v30 = vld [vmem:[#allocation28_spill] sm:$0xff] }
 0x2b7   : > { %v2739_v12 = vpop.eup %2738  ;;  %v1545_v51 = vmul.f32 %v1481_v4, %v1033_v27  ;;  %v1474_v37 = vadd.f32 1.0, %v2737_v15  ;;  %v1354_v35 = vmul.f32 0.7978846, %v1290_v52  ;;  %v1032_v18 = vmul.f32 0.5, %v4328_v54  ;;  %v4335_v27 = vld [vmem:[#allocation26_spill] sm:$0xff] }
 0x2b8   : > { %v2741_v29 = vpop.eup %2740  ;;  %1929 = vmatprep.mubr.bf16.mxu0 %v1583_v40  ;;  %v1478_v28 = vadd.f32 1.0, %v2739_v12  ;;  %v1358_v59 = vmul.f32 0.7978846, %v1294_v21  ;;  %v1292_v50 = vadd.f32 %v4333_v60, %v4332_v20  ;;  %v1296_v47 = vadd.f32 %v4335_v27, %v4334_v30 }
 0x2b9   : > { %v2743_v41 = vpop.eup %2742  ;;  %v1585_v24 = vpack.c.bf16 %v1545_v51, %v1541_v63  ;;  %v1538_v42 = vmul.f32 %v1474_v37, %v1026_v31  ;;  %v1476_v48 = vadd.f32 1.0, %v2741_v29  ;;  %2752 = vtanh.f32 %v1354_v35 }
 0x2ba   : > { %v1542_v49 = vmul.f32 %v1478_v28, %v1030_v55  ;;  %v1480_v44 = vadd.f32 1.0, %v2743_v41  ;;  %2754 = vtanh.f32 %v1358_v59  ;;  %v1241_v34 = vmul.f32 %v3949_v53, %v3923_v6 }
 0x2bb   : > { %2026 = vmatprep.mubr.bf16.mxu1 %v1585_v24  ;;  %v1540_v54 = vmul.f32 %v1476_v48, %v1028_v5  ;;  %v1035_v43 = vmul.f32 0.5, %v3735_v36  ;;  %v1356_v11 = vmul.f32 0.7978846, %v1292_v50  ;;  %v1360_v14 = vmul.f32 0.7978846, %v1296_v47 }
 0x2bc   : > { %v1582_v45 = vpack.c.bf16 %v1542_v49, %v1538_v42  ;;  %v1544_v9 = vmul.f32 %v1480_v44, %v1032_v18  ;;  %v1299_v16 = vadd.f32 %v3894_v38, %v3838_v32  ;;  %v1039_v19 = vmul.f32 0.5, %v3808_v26 }
 0x2bd   : > { %v2745_v31 = vpop.eup %2744  ;;  %v1037_v0 = vmul.f32 0.5, %v3742_v7  ;;  %2756 = vtanh.f32 %v1356_v11  ;;  %v1303_v53 = vadd.f32 %v3952_v61, %v3913_v58  ;;  %v1301_v38 = vadd.f32 %v3898_v25, %v3848_v56 }
 0x2be   : > { %v2747_v33 = vpop.eup %2746  ;;  %1930 = vmatmul.mubr.bf16.gmra.mrb[52].mxu0 %v1582_v45  ;;  %v1584_v57 = vpack.c.bf16 %v1544_v9, %v1540_v54  ;;  %v1483_v36 = vadd.f32 1.0, %v2745_v31  ;;  %2758 = vtanh.f32 %v1360_v14  ;;  %v1363_v13 = vmul.f32 0.7978846, %v1299_v16 }
 0x2bf   : > { %v2749_v4 = vpop.eup %2748  ;;  %v1487_v55 = vadd.f32 1.0, %v2747_v33  ;;  %v1367_v52 = vmul.f32 0.7978846, %v1303_v53  ;;  %v1305_v26 = vadd.f32 %v1241_v34, %v3923_v6  ;;  %v1041_v40 = vmul.f32 0.5, %v3812_v62 }
 0x2c0   : > { %v2751_v15 = vpop.eup %2750  ;;  %2027 = vmatmul.mubr.bf16.gmra.mrb[52].mxu1 %v1584_v57  ;;  %v1547_v7 = vmul.f32 %v1483_v36, %v1035_v43  ;;  %v1485_v61 = vadd.f32 1.0, %v2749_v4  ;;  %2760 = vtanh.f32 %v1363_v13  ;;  %v1365_v21 = vmul.f32 0.7978846, %v1301_v38 }
 0x2c1   : > { %v1551_v5 = vmul.f32 %v1487_v55, %v1039_v19  ;;  %v1489_v1 = vadd.f32 1.0, %v2751_v15  ;;  %2762 = vtanh.f32 %v1367_v52  ;;  %v1240_v12 = vmul.f32 %v3930_v17, %v3889_v39 }
 0x2c2   : > { %v1549_v63 = vmul.f32 %v1485_v61, %v1037_v0  ;;  %v1369_v51 = vmul.f32 0.7978846, %v1305_v26  ;;  %v1298_v25 = vadd.f32 %v3873_v2, %v3818_v3  ;;  %2764 = vtanh.f32 %v1365_v21  ;;  %v4336_v2 = vld [vmem:[#allocation40_spill] sm:$0xff] }
 0x2c3   : > { %v2753_v37 = vpop.eup %2752  ;;  %v1587_v35 = vpack.c.bf16 %v1551_v5, %v1547_v7  ;;  %v1553_v29 = vmul.f32 %v1489_v1, %v1041_v40  ;;  %v1302_v62 = vadd.f32 %v3926_v23, %v3870_v22  ;;  %v1034_v18 = vmul.f32 0.5, %v3721_v46 }
 0x2c4   : > { %v2755_v28 = vpop.eup %2754  ;;  %v1482_v59 = vadd.f32 1.0, %v2753_v37  ;;  %2766 = vtanh.f32 %v1369_v51  ;;  %v1362_v60 = vmul.f32 0.7978846, %v1298_v25  ;;  %v1038_v50 = vmul.f32 0.5, %v4330_v8 }
 0x2c5   : > { %1937 = vmatprep.mubr.bf16.mxu0 %v1587_v35  ;;  %v1589_v17 = vpack.c.bf16 %v1553_v29, %v1549_v63  ;;  %v1486_v41 = vadd.f32 1.0, %v2755_v28  ;;  %v1366_v24 = vmul.f32 0.7978846, %v1302_v62  ;;  %v1300_v42 = vadd.f32 %v4336_v2, %v3822_v10  ;;  %v4039_v28 = vld [vmem:[%s4097_s6] ss:$0 sm:$0xff] }
 0x2c6   : > { %2768 = vtanh.f32 %v1362_v60  ;;  %v1304_v48 = vadd.f32 %v1240_v12, %v3889_v39  ;;  %v1546_v23 = vmul.f32 %v1482_v59, %v1034_v18  ;;  %v1036_v8 = vmul.f32 0.5, %v4332_v20 }
 0x2c7   : > { %v2757_v49 = vpop.eup %2756  ;;  %2034 = vmatprep.mubr.bf16.mxu1 %v1589_v17  ;;  %v1550_v44 = vmul.f32 %v1486_v41, %v1038_v50  ;;  %2770 = vtanh.f32 %v1366_v24  ;;  %v1364_v47 = vmul.f32 0.7978846, %v1300_v42  ;;  %v1040_v43 = vmul.f32 0.5, %v4334_v30 }
 0x2c8   : > { %v2759_v46 = vpop.eup %2758  ;;  %v1484_v27 = vadd.f32 1.0, %v2757_v49  ;;  %v1368_v34 = vmul.f32 0.7978846, %v1304_v48  ;;  %v1043_v19 = vmul.f32 0.5, %v3838_v32  ;;  %v1047_v0 = vmul.f32 0.5, %v3913_v58 }
 0x2c9   : > { %v1586_v54 = vpack.c.bf16 %v1550_v44, %v1546_v23  ;;  %v1488_v11 = vadd.f32 1.0, %v2759_v46  ;;  %2772 = vtanh.f32 %v1364_v47  ;;  %v1045_v4 = vmul.f32 0.5, %v3848_v56  ;;  %v4337_v46 = vld [vmem:[#allocation2_spill] sm:$0xff]  ;;  %v4338_v47 = vld [vmem:[#allocation4_spill] sm:$0xff] }
 0x2ca   : > { %v2761_v45 = vpop.eup %2760  ;;  %v1548_v14 = vmul.f32 %v1484_v27, %v1036_v8  ;;  %2774 = vtanh.f32 %v1368_v34  ;;  %v1049_v55 = vmul.f32 0.5, %v3923_v6  ;;  %v1042_v58 = vmul.f32 0.5, %v3818_v3 }
 0x2cb   : > { %v2763_v9 = vpop.eup %2762  ;;  %1938 = vmatmul.mubr.bf16.gmra.mrb[56].mxu0 %v1586_v54  ;;  %v1552_v16 = vmul.f32 %v1488_v11, %v1040_v43  ;;  %v1491_v31 = vadd.f32 1.0, %v2761_v45  ;;  %v1046_v61 = vmul.f32 0.5, %v3870_v22  ;;  %v1044_v25 = vmul.f32 0.5, %v3822_v10 }
 0x2cc   : > { %v1495_v53 = vadd.f32 1.0, %v2763_v9  ;;  %v2765_v33 = vpop.eup %2764  ;;  %v1048_v37 = vmul.f32 0.5, %v3889_v39 }
 0x2cd   : > { %v1588_v57 = vpack.c.bf16 %v1552_v16, %v1548_v14  ;;  %v1555_v20 = vmul.f32 %v1491_v31, %v1043_v19  ;;  %v1493_v30 = vadd.f32 1.0, %v2765_v33 }
 0x2ce   : > { %v2767_v36 = vpop.eup %2766  ;;  %v1559_v13 = vmul.f32 %v1495_v53, %v1047_v0 }
 0x2cf   : > { %2035 = vmatmul.mubr.bf16.gmra.mrb[56].mxu1 %v1588_v57  ;;  %v1497_v52 = vadd.f32 1.0, %v2767_v36  ;;  %v1557_v7 = vmul.f32 %v1493_v30, %v1045_v4  ;;  %v4339_v30 = vld [vmem:[#allocation3_spill] sm:$0xff] }
 0x2d0   : > { %v2769_v38 = vpop.eup %2768  ;;  %v1591_v26 = vpack.c.bf16 %v1559_v13, %v1555_v20 }
 0x2d1   : > { %v2771_v15 = vpop.eup %2770  ;;  %v1561_v32 = vmul.f32 %v1497_v52, %v1049_v55  ;;  %v1490_v40 = vadd.f32 1.0, %v2769_v38  ;;  %v4340_v55 = vld [vmem:[#allocation5_spill] sm:$0xff] }
 0x2d2   : > { %1945 = vmatprep.mubr.bf16.mxu0 %v1591_v26  ;;  %v1494_v5 = vadd.f32 1.0, %v2771_v15 }
 0x2d3   : > { %v1593_v1 = vpack.c.bf16 %v1561_v32, %v1557_v7  ;;  %v2773_v21 = vpop.eup %2772  ;;  %v1554_v12 = vmul.f32 %v1490_v40, %v1042_v58 }
 0x2d4   : > { %v1558_v63 = vmul.f32 %v1494_v5, %v1046_v61  ;;  %v2775_v56 = vpop.eup %2774  ;;  %v1492_v6 = vadd.f32 1.0, %v2773_v21 }
 0x2d5   : > { %2042 = vmatprep.mubr.bf16.mxu1 %v1593_v1  ;;  %v1496_v35 = vadd.f32 1.0, %v2775_v56 }
 0x2d6   : > { %v1590_v51 = vpack.c.bf16 %v1558_v63, %v1554_v12  ;;  %v1556_v29 = vmul.f32 %v1492_v6, %v1044_v25 }
 0x2d7   : > { %v1560_v62 = vmul.f32 %v1496_v35, %v1048_v37  ;;  %v4341_v37 = vld [vmem:[#allocation6_spill] sm:$0xff] }
 0x2d8   : > { %1946 = vmatmul.mubr.bf16.gmra.mrb[60].mxu0 %v1590_v51 }
 0x2d9   : > { %v1592_v3 = vpack.c.bf16 %v1560_v62, %v1556_v29  ;;  %v4342_v29 = vld [vmem:[#allocation7_spill] sm:$0xff] }
 0x2db   : > { %2043 = vmatmul.mubr.bf16.gmra.mrb[60].mxu1 %v1592_v3 }
 0x338   : > { %v2415_v22 = vpop.f32.mrb[32].mxu0 }
 0x339   : > { %v2416_v18 = vpop.f32.mrb[33].mxu0 }
 0x33a   : > { %v2417_v60 = vadd.f32 %v2416_v18, %v2415_v22  ;;  %v2418_v17 = vpop.f32.mrb[34].mxu0 }
 0x33b   : > { %v2479_v59 = vpop.f32.mrb[32].mxu1  ;;  %v2419_v50 = vpop.f32.mrb[35].mxu0 }
 0x33c   : > { %v2480_v10 = vpop.f32.mrb[33].mxu1  ;;  %v1892_v39 = vadd.f32 %v2417_v60, %v4039_v28  ;;  %v2420_v2 = vadd.f32 %v2419_v50, %v2418_v17 }
 0x33d   : > { %v2481_v41 = vadd.f32 %v2480_v10, %v2479_v59  ;;  %v2482_v24 = vpop.f32.mrb[34].mxu1 }
 0x33e   : > { %v2483_v42 = vpop.f32.mrb[35].mxu1  ;;  %v1895_v49 = vadd.f32 %v2420_v2, %v4039_v28 }
 0x33f   : > { %v1989_v48 = vadd.f32 %v2481_v41, %v1892_v39  ;;  %v2484_v23 = vadd.f32 %v2483_v42, %v2482_v24 }
 0x341   : > { %v1992_v44 = vadd.f32 %v2484_v23, %v1895_v49  ;;  %v2051_v27 = vadd.f32 %v4337_v46, %v1989_v48  ;;  %v4343_v46 = vld [vmem:[#allocation8_spill] sm:$0xff] }
 0x343   : > { %v2052_v34 = vadd.f32 %v4338_v47, %v1992_v44  ;;  %v4344_v47 = vld [vmem:[#allocation9_spill] sm:$0xff] }
 0x345   : > { %v2348_v54 = vpack.c.bf16 %v2052_v34, %v2051_v27 }
 0x347   : > { %2349 = vst [vmem:[%s4050_s29] sm:$0xff] %v2348_v54  }
 0x34d   : > { %v2421_v8 = vpop.f32.mrb[36].mxu0 }
 0x34e   : > { %v2422_v43 = vpop.f32.mrb[37].mxu0 }
 0x34f   : > { %v2423_v11 = vadd.f32 %v2422_v43, %v2421_v8  ;;  %v2424_v45 = vpop.f32.mrb[38].mxu0 }
 0x350   : > { %v2485_v9 = vpop.f32.mrb[36].mxu1  ;;  %v2425_v14 = vpop.f32.mrb[39].mxu0 }
 0x351   : > { %v1900_v16 = vadd.f32 %v2423_v11, %v4039_v28  ;;  %v2486_v31 = vpop.f32.mrb[37].mxu1  ;;  %v2426_v19 = vadd.f32 %v2425_v14, %v2424_v45 }
 0x352   : > { %v2487_v0 = vadd.f32 %v2486_v31, %v2485_v9  ;;  %v2488_v53 = vpop.f32.mrb[38].mxu1 }
 0x353   : > { %v1903_v33 = vadd.f32 %v2426_v19, %v4039_v28  ;;  %v2489_v57 = vpop.f32.mrb[39].mxu1 }
 0x354   : > { %v1997_v36 = vadd.f32 %v2487_v0, %v1900_v16  ;;  %v2490_v20 = vadd.f32 %v2489_v57, %v2488_v53 }
 0x356   : > { %v2000_v13 = vadd.f32 %v2490_v20, %v1903_v33  ;;  %v2053_v4 = vadd.f32 %v4339_v30, %v1997_v36  ;;  %v4345_v30 = vld [vmem:[#allocation10_spill] sm:$0xff] }
 0x358   : > { %v2054_v52 = vadd.f32 %v4340_v55, %v2000_v13  ;;  %v4346_v55 = vld [vmem:[#allocation11_spill] sm:$0xff] }
 0x35a   : > { %v2353_v38 = vpack.c.bf16 %v2054_v52, %v2053_v4 }
 0x35c   : > { %2392 = vst [vmem:[%s4050_s29 + $0x8] sm:$0xff] %v2353_v38  }
 0x363   : > { %v2427_v26 = vpop.f32.mrb[40].mxu0 }
 0x364   : > { %v2428_v15 = vpop.f32.mrb[41].mxu0 }
 0x365   : > { %v2491_v7 = vpop.f32.mrb[40].mxu1  ;;  %v2429_v32 = vadd.f32 %v2428_v15, %v2427_v26  ;;  %v2430_v40 = vpop.f32.mrb[42].mxu0 }
 0x366   : > { %v2492_v58 = vpop.f32.mrb[41].mxu1  ;;  %v2431_v61 = vpop.f32.mrb[43].mxu0 }
 0x367   : > { %v1908_v5 = vadd.f32 %v2429_v32, %v4039_v28  ;;  %v2493_v1 = vadd.f32 %v2492_v58, %v2491_v7  ;;  %v2494_v21 = vpop.f32.mrb[42].mxu1  ;;  %v2432_v12 = vadd.f32 %v2431_v61, %v2430_v40 }
 0x368   : > { %v2495_v63 = vpop.f32.mrb[43].mxu1 }
 0x369   : > { %v2005_v56 = vadd.f32 %v2493_v1, %v1908_v5  ;;  %v1911_v6 = vadd.f32 %v2432_v12, %v4039_v28  ;;  %v2496_v51 = vadd.f32 %v2495_v63, %v2494_v21 }
 0x36b   : > { %v2008_v25 = vadd.f32 %v2496_v51, %v1911_v6  ;;  %v2055_v35 = vadd.f32 %v4341_v37, %v2005_v56  ;;  %v4347_v37 = vld [vmem:[#allocation12_spill] sm:$0xff] }
 0x36d   : > { %v2056_v62 = vadd.f32 %v4342_v29, %v2008_v25  ;;  %v4348_v29 = vld [vmem:[#allocation13_spill] sm:$0xff] }
 0x36f   : > { %v2358_v3 = vpack.c.bf16 %v2056_v62, %v2055_v35 }
 0x371   : > { %2393 = vst [vmem:[%s4050_s29 + $0x10] sm:$0xff] %v2358_v3  }
 0x378   : > { %v2433_v22 = vpop.f32.mrb[44].mxu0 }
 0x379   : > { %v2434_v18 = vpop.f32.mrb[45].mxu0 }
 0x37a   : > { %v2497_v59 = vpop.f32.mrb[44].mxu1  ;;  %v2435_v60 = vadd.f32 %v2434_v18, %v2433_v22  ;;  %v2436_v17 = vpop.f32.mrb[46].mxu0 }
 0x37b   : > { %v2498_v10 = vpop.f32.mrb[45].mxu1  ;;  %v2437_v50 = vpop.f32.mrb[47].mxu0 }
 0x37c   : > { %v1916_v39 = vadd.f32 %v2435_v60, %v4039_v28  ;;  %v2499_v41 = vadd.f32 %v2498_v10, %v2497_v59  ;;  %v2500_v24 = vpop.f32.mrb[46].mxu1  ;;  %v2438_v2 = vadd.f32 %v2437_v50, %v2436_v17 }
 0x37d   : > { %v2501_v42 = vpop.f32.mrb[47].mxu1 }
 0x37e   : > { %v2013_v48 = vadd.f32 %v2499_v41, %v1916_v39  ;;  %v1919_v49 = vadd.f32 %v2438_v2, %v4039_v28  ;;  %v2502_v23 = vadd.f32 %v2501_v42, %v2500_v24 }
 0x380   : > { %v2016_v44 = vadd.f32 %v2502_v23, %v1919_v49  ;;  %v2057_v27 = vadd.f32 %v4343_v46, %v2013_v48  ;;  %v4349_v46 = vld [vmem:[#allocation14_spill] sm:$0xff] }
 0x382   : > { %v2058_v34 = vadd.f32 %v4344_v47, %v2016_v44  ;;  %v4350_v47 = vld [vmem:[#allocation15_spill] sm:$0xff] }
 0x384   : > { %v2363_v54 = vpack.c.bf16 %v2058_v34, %v2057_v27 }
 0x385   : > { %v2439_v8 = vpop.f32.mrb[48].mxu0 }
 0x386   : > { %2394 = vst [vmem:[%s4050_s29 + $0x18] sm:$0xff] %v2363_v54   ;;  %v2440_v43 = vpop.f32.mrb[49].mxu0 }
 0x387   : > { %v2503_v11 = vpop.f32.mrb[48].mxu1  ;;  %v2441_v45 = vadd.f32 %v2440_v43, %v2439_v8  ;;  %v2442_v9 = vpop.f32.mrb[50].mxu0 }
 0x388   : > { %v2504_v14 = vpop.f32.mrb[49].mxu1  ;;  %v2443_v16 = vpop.f32.mrb[51].mxu0 }
 0x389   : > { %v1924_v31 = vadd.f32 %v2441_v45, %v4039_v28  ;;  %v2505_v19 = vadd.f32 %v2504_v14, %v2503_v11  ;;  %v2506_v0 = vpop.f32.mrb[50].mxu1  ;;  %v2444_v53 = vadd.f32 %v2443_v16, %v2442_v9 }
 0x38a   : > { %v2507_v33 = vpop.f32.mrb[51].mxu1 }
 0x38b   : > { %v2021_v57 = vadd.f32 %v2505_v19, %v1924_v31  ;;  %v1927_v36 = vadd.f32 %v2444_v53, %v4039_v28  ;;  %v2508_v20 = vadd.f32 %v2507_v33, %v2506_v0 }
 0x38d   : > { %v2024_v13 = vadd.f32 %v2508_v20, %v1927_v36  ;;  %v2059_v4 = vadd.f32 %v4345_v30, %v2021_v57  ;;  %v4351_v30 = vld [vmem:[#allocation16_spill] sm:$0xff] }
 0x38f   : > { %v2060_v52 = vadd.f32 %v4346_v55, %v2024_v13  ;;  %v4352_v55 = vld [vmem:[#allocation17_spill] sm:$0xff] }
 0x391   : > { %v2368_v38 = vpack.c.bf16 %v2060_v52, %v2059_v4  ;;  %v2445_v26 = vpop.f32.mrb[52].mxu0 }
 0x392   : > { %v2446_v15 = vpop.f32.mrb[53].mxu0 }
 0x393   : > { %2395 = vst [vmem:[%s4050_s29 + $0x20] sm:$0xff] %v2368_v38   ;;  %v2509_v7 = vpop.f32.mrb[52].mxu1  ;;  %v2447_v32 = vadd.f32 %v2446_v15, %v2445_v26  ;;  %v2448_v40 = vpop.f32.mrb[54].mxu0 }
 0x394   : > { %v2510_v58 = vpop.f32.mrb[53].mxu1  ;;  %v2449_v61 = vpop.f32.mrb[55].mxu0 }
 0x395   : > { %v1932_v5 = vadd.f32 %v2447_v32, %v4039_v28  ;;  %v2511_v1 = vadd.f32 %v2510_v58, %v2509_v7  ;;  %v2512_v21 = vpop.f32.mrb[54].mxu1  ;;  %v2450_v12 = vadd.f32 %v2449_v61, %v2448_v40 }
 0x396   : > { %v2513_v63 = vpop.f32.mrb[55].mxu1 }
 0x397   : > { %v2029_v56 = vadd.f32 %v2511_v1, %v1932_v5  ;;  %v1935_v6 = vadd.f32 %v2450_v12, %v4039_v28  ;;  %v2514_v51 = vadd.f32 %v2513_v63, %v2512_v21 }
 0x399   : > { %v2032_v25 = vadd.f32 %v2514_v51, %v1935_v6  ;;  %v2061_v35 = vadd.f32 %v4347_v37, %v2029_v56 }
 0x39b   : > { %v2062_v62 = vadd.f32 %v4348_v29, %v2032_v25 }
 0x39d   : > { %v2373_v3 = vpack.c.bf16 %v2062_v62, %v2061_v35 }
 0x39e   : > { %v2451_v22 = vpop.f32.mrb[56].mxu0 }
 0x39f   : > { %2396 = vst [vmem:[%s4050_s29 + $0x28] sm:$0xff] %v2373_v3   ;;  %v2452_v18 = vpop.f32.mrb[57].mxu0 }
 0x3a0   : > { %v2453_v59 = vadd.f32 %v2452_v18, %v2451_v22  ;;  %v2454_v60 = vpop.f32.mrb[58].mxu0 }
 0x3a1   : > { %v2455_v17 = vpop.f32.mrb[59].mxu0 }
 0x3a2   : > { %v2515_v10 = vpop.f32.mrb[56].mxu1  ;;  %v1940_v50 = vadd.f32 %v2453_v59, %v4039_v28  ;;  %v2456_v39 = vadd.f32 %v2455_v17, %v2454_v60 }
 0x3a3   : > { %v2516_v41 = vpop.f32.mrb[57].mxu1 }
 0x3a4   : > { %v2517_v24 = vadd.f32 %v2516_v41, %v2515_v10  ;;  %v2518_v2 = vpop.f32.mrb[58].mxu1  ;;  %v1943_v42 = vadd.f32 %v2456_v39, %v4039_v28 }
 0x3a5   : > { %v2519_v48 = vpop.f32.mrb[59].mxu1 }
 0x3a6   : > { %v2037_v49 = vadd.f32 %v2517_v24, %v1940_v50  ;;  %v2520_v23 = vadd.f32 %v2519_v48, %v2518_v2 }
 0x3a8   : > { %v2040_v44 = vadd.f32 %v2520_v23, %v1943_v42  ;;  %v2063_v27 = vadd.f32 %v4349_v46, %v2037_v49 }
 0x3aa   : > { %v2064_v34 = vadd.f32 %v4350_v47, %v2040_v44 }
 0x3ab   : > { %v2457_v54 = vpop.f32.mrb[60].mxu0 }
 0x3ac   : > { %v2378_v8 = vpack.c.bf16 %v2064_v34, %v2063_v27  ;;  %v2458_v43 = vpop.f32.mrb[61].mxu0 }
 0x3ad   : > { %v2459_v11 = vadd.f32 %v2458_v43, %v2457_v54  ;;  %v2460_v45 = vpop.f32.mrb[62].mxu0 }
 0x3ae   : > { %2397 = vst [vmem:[%s4050_s29 + $0x30] sm:$0xff] %v2378_v8   ;;  %v2461_v9 = vpop.f32.mrb[63].mxu0  ;;  %v2521_v14 = vpop.f32.mrb[60].mxu1 }
 0x3af   : > { %v1948_v16 = vadd.f32 %v2459_v11, %v4039_v28  ;;  %v2462_v31 = vadd.f32 %v2461_v9, %v2460_v45  ;;  %v2522_v19 = vpop.f32.mrb[61].mxu1 }
 0x3b0   : > { %v2523_v0 = vadd.f32 %v2522_v19, %v2521_v14  ;;  %v2524_v53 = vpop.f32.mrb[62].mxu1 }
 0x3b1   : > { %v1951_v33 = vadd.f32 %v2462_v31, %v4039_v28  ;;  %v2525_v57 = vpop.f32.mrb[63].mxu1 }
 0x3b2   : > { %v2045_v36 = vadd.f32 %v2523_v0, %v1948_v16  ;;  %v2526_v20 = vadd.f32 %v2525_v57, %v2524_v53 }
 0x3b4   : > { %v2048_v13 = vadd.f32 %v2526_v20, %v1951_v33  ;;  %v2065_v4 = vadd.f32 %v4351_v30, %v2045_v36 }
 0x3b6   : > { %v2066_v52 = vadd.f32 %v4352_v55, %v2048_v13 }
 0x3b8   : > { %v2383_v38 = vpack.c.bf16 %v2066_v52, %v2065_v4 }
 0x3ba   : > { %2398 = vst [vmem:[%s4050_s29 + $0x38] sm:$0xff] %v2383_v38  }
 0x3bb PF: > { %s17_s24 = sadd.s32 1, %s2782_s24  }
 0x3bc   : > { %p14_p4 = scmp.ge.s32.totalorder %s17_s24, 4  }
 0x3be   :  { %16 = sbr.rel (!%p14_p4) target bundleno = 1 (0x1), region = 78 }

// kernel: gpt_lm_forward.5
= control target key start
LH: loop header
LB: loop body
LE: loop exit
PB: predicated region body
PF: predicated region fallthrough
CT: control target
= control target key end

     0   :  { %s5148_s27 = smov 0   ;;  %s6782_s0 = inlined_call_operand.vmem [shape: bf16[2,128,128], index: 0, kind: input, shape index: {}]   ;;  %s6783_s1 = inlined_call_operand.vmem [shape: f32[1,128], index: 1, kind: input, shape index: {}]   ;;  %s6784_s2 = inlined_call_operand.vmem [shape: f32[1,128], index: 2, kind: input, shape index: {}]   ;;  %s6785_s3 = inlined_call_operand.vmem [shape: bf16[128,384], index: 3, kind: input, shape index: {}]   ;;  %s6786_s4 = inlined_call_operand.vmem [shape: f32[1,384], index: 4, kind: input, shape index: {}]   ;;  %s6787_s5 = inlined_call_operand.vmem [shape: bf16[128,128], index: 5, kind: input, shape index: {}]   ;;  %s6788_s6 = inlined_call_operand.vmem [shape: f32[1,128], index: 6, kind: input, shape index: {}]   ;;  %s6789_s7 = inlined_call_operand.vmem [shape: f32[2,1,128], index: 7, kind: input, shape index: {}]   ;;  %s6790_s8 = inlined_call_operand.vmem [shape: bf16[2,128,128], index: 8, kind: output, shape index: {}]  }
   0x1 LB: > { %s3834_s28 = sadd.s32 4294967295, %s5097_s27   ;;  %p3838_p0 = scmp.ge.s32.totalorder %s5097_s27, 1  ;;  %s5097_s27 = sphi %s5148_s27, %s18_s27  }
   0x2   : > { %p270_p1 = scmp.lt.s32.totalorder %s5097_s27, 3 }
   0x4   : > { %p271_p2 = pnand %p3838_p0, %p270_p1 }
   0x6   : > { %274 = sbr.rel (%p271_p2) target bundleno = 2615 (0xa37), region = 52 }
   0xd   : > { %p307_p3 = scmp.lt.s32.totalorder %s3834_s28, 1  ;;  %v4763_v24 = vld [vmem:[%s6785_s3 + $0x4] ss:$12 sps:$4 sm:$0xff]   ;;  %v4765_v25 = vld [vmem:[%s6785_s3] ss:$12 sps:$4 sm:$0xff]   ;;  %vm6791_vm0 = vcmask 261120  }
   0xe   : > { %v4766_v26 = vld [vmem:[%s6785_s3 + $0x1c] ss:$12 sps:$4 sm:$0xff]   ;;  %761 = vmatprep.subr.bf16.mxu0 %v4763_v24  ;;  %s5100_s11 = smov 96   ;;  %s5101_s15 = smov 64  }
   0xf   : > { %s7008_s28 = smov (!%p307_p3, %s3834_s28), 1  ;;  %v4768_v27 = vld [vmem:[%s6785_s3 + $0x8] ss:$12 sps:$4 sm:$0xff]   ;;  %762 = vmatpush1.bf16.msra.mxu0 %v4765_v25  ;;  %v4773_v24 = vld [vmem:[%s6785_s3 + $0x30] ss:$12 sps:$4 sm:$0xff]   ;;  %s5102_s20 = smov 32  }
  0x10   : > { %s3960_s29 = sshll.u32 %s7008_s28, 6  ;;  %4287 = vmatprep.subr.bf16.mxu1 %v4768_v27  ;;  %763 = vmatprep.subr.bf16.mxu0 %v4766_v26  ;;  %s314_s14 = scalar_lea.vmem %s6789_s7, %s7008_s28 }
  0x11   : > { %s5164_s10 = scalar_lea.vmem %s6782_s0, %s3960_s29  ;;  %4288 = vmatpush3.bf16.msra.mxu1 %v4768_v27  ;;  %s6753_s19 = scalar_lea.vmem %s6790_s8, %s3960_s29 }
  0x12   : > { %v5167_v0 = vld [vmem:[%s5164_s10] sm:$0xff]   ;;  %v5170_v1 = vld [vmem:[%s5164_s10 + $0x8] sm:$0xff]   ;;  %v5175_v4 = vld [vmem:[%s5164_s10 + $0x10] sm:$0xff]  }
  0x13   : > { %v3980_v2 = vunpack.c.l.bf16 %v5167_v0  ;;  %v3984_v3 = vunpack.c.l.bf16 %v5170_v1  ;;  %v3981_v5 = vunpack.c.h.bf16 %v5167_v0  ;;  %v3985_v6 = vunpack.c.h.bf16 %v5170_v1  ;;  %v5180_v7 = vld [vmem:[%s5164_s10 + $0x18] sm:$0xff]   ;;  %v5187_v12 = vld [vmem:[%s5164_s10 + $0x20] sm:$0xff]   ;;  %v5196_v15 = vld [vmem:[%s5164_s10 + $0x28] sm:$0xff]  }
  0x14   : > { %v3988_v8 = vunpack.c.l.bf16 %v5175_v4  ;;  %v3989_v9 = vunpack.c.h.bf16 %v5175_v4  ;;  %v3992_v10 = vunpack.c.l.bf16 %v5180_v7  ;;  %v3993_v11 = vunpack.c.h.bf16 %v5180_v7  ;;  %v5205_v18 = vld [vmem:[%s5164_s10 + $0x30] sm:$0xff]   ;;  %v5214_v21 = vld [vmem:[%s5164_s10 + $0x38] sm:$0xff]  }
  0x15   : > { %355 = vadd.xlane.f32.xlu0 %v3980_v2  ;;  %359 = vadd.xlane.f32.xlu1 %v3984_v3  ;;  %v3996_v13 = vunpack.c.l.bf16 %v5187_v12  ;;  %v3997_v14 = vunpack.c.h.bf16 %v5187_v12  ;;  %v4000_v16 = vunpack.c.l.bf16 %v5196_v15  ;;  %v4001_v17 = vunpack.c.h.bf16 %v5196_v15 }
  0x16   : > { %v4004_v19 = vunpack.c.l.bf16 %v5205_v18  ;;  %v4005_v20 = vunpack.c.h.bf16 %v5205_v18  ;;  %v4008_v22 = vunpack.c.l.bf16 %v5214_v21  ;;  %v4009_v23 = vunpack.c.h.bf16 %v5214_v21 }
  0x19   : > { %357 = vadd.xlane.f32.xlu0 %v3981_v5  ;;  %361 = vadd.xlane.f32.xlu1 %v3985_v6 }
  0x1d   : > { %363 = vadd.xlane.f32.xlu0 %v3988_v8  ;;  %365 = vadd.xlane.f32.xlu1 %v3989_v9 }
  0x21   : > { %367 = vadd.xlane.f32.xlu0 %v3992_v10  ;;  %369 = vadd.xlane.f32.xlu1 %v3993_v11 }
  0x25   : > { %371 = vadd.xlane.f32.xlu0 %v3996_v13  ;;  %373 = vadd.xlane.f32.xlu1 %v3997_v14 }
  0x29   : > { %375 = vadd.xlane.f32.xlu0 %v4000_v16  ;;  %377 = vadd.xlane.f32.xlu1 %v4001_v17 }
  0x2d   : > { %379 = vadd.xlane.f32.xlu0 %v4004_v19  ;;  %381 = vadd.xlane.f32.xlu1 %v4005_v20 }
  0x31   : > { %383 = vadd.xlane.f32.xlu0 %v4008_v22  ;;  %385 = vadd.xlane.f32.xlu1 %v4009_v23 }
  0xa2   : > { %v356_v28 = vpop.xlane.xlu0 %355  ;;  %v360_v29 = vpop.xlane.xlu1 %359 }
  0xa3   : > { %v388_v30 = vmul.f32 0.0078125, %v356_v28  ;;  %v390_v31 = vmul.f32 0.0078125, %v360_v29  ;;  %v4774_v28 = vld [vmem:[%s6785_s3 + $0x4c] ss:$12 sps:$4 sm:$0xff]  }
  0xa4   : > { %v4776_v29 = vld [vmem:[%s6785_s3 + $0x38] ss:$12 sps:$4 sm:$0xff]  }
  0xa5   : > { %v5238_v32 = vsub.f32 %v3980_v2, %v388_v30  ;;  %v5240_v33 = vsub.f32 %v3984_v3, %v390_v31  ;;  %v4769_v2 = vld [vmem:[%s6785_s3 + $0x18] ss:$12 sps:$4 sm:$0xff]  }
  0xa6   : > { %v358_v34 = vpop.xlane.xlu0 %357  ;;  %v362_v35 = vpop.xlane.xlu1 %361  ;;  %764 = vmatpush1.bf16.msra.mxu0 %v4769_v2 }
  0xa7   : > { %v389_v36 = vmul.f32 0.0078125, %v358_v34  ;;  %v420_v37 = vmul.f32 %v5238_v32, %v5238_v32  ;;  %v391_v38 = vmul.f32 0.0078125, %v362_v35  ;;  %v422_v39 = vmul.f32 %v5240_v33, %v5240_v33  ;;  %v4777_v34 = vld [vmem:[%s6785_s3 + $0x48] ss:$12 sps:$4 sm:$0xff]  }
  0xa9   : > { %436 = vadd.xlane.f32.xlu0 %v420_v37  ;;  %v5246_v40 = vsub.f32 %v3981_v5, %v389_v36  ;;  %v5248_v41 = vsub.f32 %v3985_v6, %v391_v38  ;;  %v4778_v38 = vld [vmem:[%s6785_s3 + $0x64] ss:$12 sps:$4 sm:$0xff]  }
  0xaa   : > { %v364_v42 = vpop.xlane.xlu0 %363  ;;  %v366_v43 = vpop.xlane.xlu1 %365 }
  0xab   : > { %v392_v44 = vmul.f32 0.0078125, %v364_v42  ;;  %v421_v45 = vmul.f32 %v5246_v40, %v5246_v40  ;;  %v393_v46 = vmul.f32 0.0078125, %v366_v43  ;;  %v423_v47 = vmul.f32 %v5248_v41, %v5248_v41  ;;  %v4781_v42 = vld [vmem:[%s6785_s3 + $0x60] ss:$12 sps:$4 sm:$0xff]   ;;  %v4784_v43 = vld [vmem:[%s6785_s3 + $0x68] ss:$12 sps:$4 sm:$0xff]  }
  0xad   : > { %440 = vadd.xlane.f32.xlu0 %v422_v39  ;;  %438 = vadd.xlane.f32.xlu1 %v421_v45  ;;  %v5254_v48 = vsub.f32 %v3988_v8, %v392_v44  ;;  %v5256_v49 = vsub.f32 %v3989_v9, %v393_v46  ;;  %v4770_v8 = vld [vmem:[%s6785_s3 + $0x34] ss:$12 sps:$4 sm:$0xff]   ;;  %v4780_v39 = vld [vmem:[%s6785_s3 + $0x50] ss:$12 sps:$4 sm:$0xff]   ;;  %v4785_v44 = vld [vmem:[%s6785_s3 + $0x78] ss:$12 sps:$4 sm:$0xff]  }
  0xae   : > { %v368_v50 = vpop.xlane.xlu0 %367  ;;  %v370_v51 = vpop.xlane.xlu1 %369  ;;  %v4772_v9 = vld [vmem:[%s6785_s3 + $0x20] ss:$12 sps:$4 sm:$0xff]   ;;  %765 = vmatprep.subr.bf16.mxu0 %v4770_v8 }
  0xaf   : > { %v394_v52 = vmul.f32 0.0078125, %v368_v50  ;;  %v424_v53 = vmul.f32 %v5254_v48, %v5254_v48  ;;  %v395_v54 = vmul.f32 0.0078125, %v370_v51  ;;  %v425_v55 = vmul.f32 %v5256_v49, %v5256_v49  ;;  %4289 = vmatprep.subr.bf16.mxu1 %v4772_v9  ;;  %766 = vmatpush1.bf16.msra.mxu0 %v4773_v24  ;;  %v4786_v45 = vld [vmem:[%s6785_s3 + $0x94] ss:$12 sps:$4 sm:$0xff]   ;;  %v4790_v50 = vld [vmem:[%s6785_s3 + $0xac] ss:$12 sps:$4 sm:$0xff]  }
  0xb0   : > { %4290 = vmatpush3.bf16.msra.mxu1 %v4772_v9  ;;  %767 = vmatprep.subr.bf16.mxu0 %v4774_v28  ;;  %v4788_v46 = vld [vmem:[%s6785_s3 + $0x80] ss:$12 sps:$4 sm:$0xff]   ;;  %v4792_v51 = vld [vmem:[%s6785_s3 + $0x98] ss:$12 sps:$4 sm:$0xff]  }
  0xb1   : > { %442 = vadd.xlane.f32.xlu1 %v423_v47  ;;  %444 = vadd.xlane.f32.xlu0 %v424_v53  ;;  %v5264_v56 = vsub.f32 %v3992_v10, %v394_v52  ;;  %v5268_v57 = vsub.f32 %v3993_v11, %v395_v54  ;;  %v4789_v47 = vld [vmem:[%s6785_s3 + $0x90] ss:$12 sps:$4 sm:$0xff]   ;;  %v4793_v52 = vld [vmem:[%s6785_s3 + $0xa8] ss:$12 sps:$4 sm:$0xff]   ;;  %v5099_v54 = vmov 0  }
  0xb2   : > { %v372_v58 = vpop.xlane.xlu0 %371  ;;  %v374_v59 = vpop.xlane.xlu1 %373  ;;  %4291 = vmatprep.subr.bf16.mxu1 %v4776_v29  ;;  %v4794_v53 = vld [vmem:[%s6785_s3 + $0xb0] ss:$12 sps:$4 sm:$0xff]   ;;  %793 = vmatprep.mubr.bf16.mxu0 %v5099_v54 }
  0xb3   : > { %v396_v60 = vmul.f32 0.0078125, %v372_v58  ;;  %v426_v61 = vmul.f32 %v5264_v56, %v5264_v56  ;;  %v397_v62 = vmul.f32 0.0078125, %v374_v59  ;;  %v427_v63 = vmul.f32 %v5268_v57, %v5268_v57  ;;  %768 = vmatpush1.bf16.msra.mxu0 %v4777_v34  ;;  %v5387_v34 = vld [vmem:[%s6783_s1] ss:$0 sm:$0xff] }
  0xb4   : > { %4292 = vmatpush3.bf16.msra.mxu1 %v4776_v29  ;;  %769 = vmatprep.subr.bf16.mxu0 %v4778_v38 }
  0xb5   : > { %446 = vadd.xlane.f32.xlu1 %v425_v55  ;;  %448 = vadd.xlane.f32.xlu0 %v426_v61  ;;  %v5276_v0 = vsub.f32 %v3996_v13, %v396_v60  ;;  %v5280_v1 = vsub.f32 %v3997_v14, %v397_v62 }
  0xb6   : > { %v376_v3 = vpop.xlane.xlu0 %375  ;;  %v378_v4 = vpop.xlane.xlu1 %377  ;;  %4293 = vmatprep.subr.bf16.mxu1 %v4780_v39 }
  0xb7   : > { %v398_v5 = vmul.f32 0.0078125, %v376_v3  ;;  %v428_v6 = vmul.f32 %v5276_v0, %v5276_v0  ;;  %v399_v7 = vmul.f32 0.0078125, %v378_v4  ;;  %v429_v10 = vmul.f32 %v5280_v1, %v5280_v1  ;;  %770 = vmatpush1.bf16.msra.mxu0 %v4781_v42 }
  0xb8   : > { %4294 = vmatpush3.bf16.msra.mxu1 %v4780_v39 }
  0xb9   : > { %450 = vadd.xlane.f32.xlu1 %v427_v63  ;;  %452 = vadd.xlane.f32.xlu0 %v428_v6  ;;  %v5297_v11 = vsub.f32 %v4000_v16, %v398_v5  ;;  %v5301_v12 = vsub.f32 %v4001_v17, %v399_v7 }
  0xba   : > { %v380_v13 = vpop.xlane.xlu0 %379  ;;  %v382_v14 = vpop.xlane.xlu1 %381  ;;  %4295 = vmatprep.subr.bf16.mxu1 %v4784_v43 }
  0xbb   : > { %v400_v25 = vmul.f32 0.0078125, %v380_v13  ;;  %v430_v26 = vmul.f32 %v5297_v11, %v5297_v11  ;;  %v401_v27 = vmul.f32 0.0078125, %v382_v14  ;;  %v431_v15 = vmul.f32 %v5301_v12, %v5301_v12 }
  0xbc   : > { %4296 = vmatpush3.bf16.msra.mxu1 %v4784_v43 }
  0xbd   : > { %454 = vadd.xlane.f32.xlu1 %v429_v10  ;;  %456 = vadd.xlane.f32.xlu0 %v430_v26  ;;  %v5312_v16 = vsub.f32 %v4004_v19, %v400_v25  ;;  %v5316_v17 = vsub.f32 %v4005_v20, %v401_v27 }
  0xbe   : > { %v384_v30 = vpop.xlane.xlu0 %383  ;;  %v386_v31 = vpop.xlane.xlu1 %385  ;;  %4297 = vmatprep.subr.bf16.mxu1 %v4788_v46 }
  0xbf   : > { %v402_v19 = vmul.f32 0.0078125, %v384_v30  ;;  %v432_v18 = vmul.f32 %v5312_v16, %v5312_v16  ;;  %v403_v20 = vmul.f32 0.0078125, %v386_v31  ;;  %v433_v35 = vmul.f32 %v5316_v17, %v5316_v17 }
  0xc0   : > { %4298 = vmatpush3.bf16.msra.mxu1 %v4788_v46 }
  0xc1   : > { %458 = vadd.xlane.f32.xlu1 %v431_v15  ;;  %460 = vadd.xlane.f32.xlu0 %v432_v18  ;;  %v5333_v36 = vsub.f32 %v4008_v22, %v402_v19  ;;  %v5337_v37 = vsub.f32 %v4009_v23, %v403_v20  ;;  %v4782_v23 = vld [vmem:[%s6785_s3 + $0x7c] ss:$12 sps:$4 sm:$0xff]  }
  0xc2   : > { %771 = vmatprep.subr.bf16.mxu0 %v4782_v23  ;;  %4299 = vmatprep.subr.bf16.mxu1 %v4792_v51  ;;  %v5394_v23 = vld [vmem:[%s6784_s2] ss:$0 sm:$0xff] }
  0xc3   : > { %v434_v22 = vmul.f32 %v5333_v36, %v5333_v36  ;;  %v435_v21 = vmul.f32 %v5337_v37, %v5337_v37  ;;  %772 = vmatpush1.bf16.msra.mxu0 %v4785_v44 }
  0xc4   : > { %773 = vmatprep.subr.bf16.mxu0 %v4786_v45  ;;  %4300 = vmatpush3.bf16.msra.mxu1 %v4792_v51 }
  0xc5   : > { %462 = vadd.xlane.f32.xlu1 %v433_v35  ;;  %464 = vadd.xlane.f32.xlu0 %v434_v22 }
  0xc6   : > { %4301 = vmatprep.subr.bf16.mxu1 %v4794_v53 }
  0xc7   : > { %774 = vmatpush1.bf16.msra.mxu0 %v4789_v47 }
  0xc8   : > { %775 = vmatprep.subr.bf16.mxu0 %v4790_v50  ;;  %4302 = vmatpush3.bf16.msra.mxu1 %v4794_v53 }
  0xc9   : > { %466 = vadd.xlane.f32.xlu1 %v435_v21 }
  0xcb   : > { %776 = vmatpush1.bf16.msra.mxu0 %v4793_v52 }
 0x136   : > { %v437_v55 = vpop.xlane.xlu0 %436 }
 0x137   : > { %v468_v58 = vmul.f32 0.0078125, %v437_v55 }
 0x139   : > { %v484_v59 = vadd.f32 1e-05, %v468_v58 }
 0x13a   : > { %v439_v60 = vpop.xlane.xlu1 %438  ;;  %v441_v61 = vpop.xlane.xlu0 %440 }
 0x13b   : > { %4803 = vrsqrt.f32 %v484_v59  ;;  %v469_v62 = vmul.f32 0.0078125, %v439_v60  ;;  %v470_v63 = vmul.f32 0.0078125, %v441_v61 }
 0x13d   : > { %v485_v2 = vadd.f32 1e-05, %v469_v62  ;;  %v486_v3 = vadd.f32 1e-05, %v470_v63 }
 0x13e   : > { %v443_v4 = vpop.xlane.xlu1 %442  ;;  %v445_v5 = vpop.xlane.xlu0 %444 }
 0x13f   : > { %4805 = vrsqrt.f32 %v485_v2  ;;  %v471_v6 = vmul.f32 0.0078125, %v443_v4  ;;  %v472_v7 = vmul.f32 0.0078125, %v445_v5 }
 0x140   : > { %4807 = vrsqrt.f32 %v486_v3 }
 0x141   : > { %v487_v8 = vadd.f32 1e-05, %v471_v6  ;;  %v488_v9 = vadd.f32 1e-05, %v472_v7 }
 0x142   : > { %v447_v10 = vpop.xlane.xlu1 %446  ;;  %v449_v13 = vpop.xlane.xlu0 %448 }
 0x143   : > { %4809 = vrsqrt.f32 %v487_v8  ;;  %v473_v14 = vmul.f32 0.0078125, %v447_v10  ;;  %v474_v24 = vmul.f32 0.0078125, %v449_v13 }
 0x144   : > { %4811 = vrsqrt.f32 %v488_v9 }
 0x145   : > { %v4804_v25 = vpop.eup %4803  ;;  %v489_v26 = vadd.f32 1e-05, %v473_v14  ;;  %v490_v27 = vadd.f32 1e-05, %v474_v24 }
 0x146   : > { %v451_v15 = vpop.xlane.xlu1 %450  ;;  %v453_v28 = vpop.xlane.xlu0 %452  ;;  %v516_v29 = vmul.f32 %v4804_v25, %v5238_v32 }
 0x147   : > { %4813 = vrsqrt.f32 %v489_v26  ;;  %v475_v30 = vmul.f32 0.0078125, %v451_v15  ;;  %v476_v31 = vmul.f32 0.0078125, %v453_v28 }
 0x148   : > { %4815 = vrsqrt.f32 %v490_v27  ;;  %v538_v22 = vmul.f32 %v5387_v34, %v516_v29 }
 0x149   : > { %v4806_v19 = vpop.eup %4805  ;;  %v491_v18 = vadd.f32 1e-05, %v475_v30  ;;  %v492_v20 = vadd.f32 1e-05, %v476_v31 }
 0x14a   : > { %v4808_v35 = vpop.eup %4807  ;;  %v455_v38 = vpop.xlane.xlu1 %454  ;;  %v517_v42 = vmul.f32 %v4806_v19, %v5246_v40  ;;  %v560_v53 = vadd.f32 %v5394_v23, %v538_v22 }
 0x14b   : > { %v457_v39 = vpop.xlane.xlu0 %456  ;;  %4817 = vrsqrt.f32 %v491_v18  ;;  %v477_v32 = vmul.f32 0.0078125, %v455_v38  ;;  %v518_v43 = vmul.f32 %v4808_v35, %v5240_v33 }
 0x14c   : > { %v478_v21 = vmul.f32 0.0078125, %v457_v39  ;;  %4819 = vrsqrt.f32 %v492_v20  ;;  %v539_v44 = vmul.f32 %v5387_v34, %v517_v42 }
 0x14d   : > { %v4810_v45 = vpop.eup %4809  ;;  %v493_v46 = vadd.f32 1e-05, %v477_v32  ;;  %v540_v40 = vmul.f32 %v5387_v34, %v518_v43 }
 0x14e   : > { %v494_v47 = vadd.f32 1e-05, %v478_v21  ;;  %v4812_v50 = vpop.eup %4811  ;;  %v459_v51 = vpop.xlane.xlu1 %458  ;;  %v561_v55 = vadd.f32 %v5394_v23, %v539_v44  ;;  %v519_v58 = vmul.f32 %v4810_v45, %v5248_v41 }
 0x14f   : > { %v461_v52 = vpop.xlane.xlu0 %460  ;;  %4821 = vrsqrt.f32 %v493_v46  ;;  %v479_v59 = vmul.f32 0.0078125, %v459_v51  ;;  %v520_v62 = vmul.f32 %v4812_v50, %v5254_v48  ;;  %v562_v4 = vadd.f32 %v5394_v23, %v540_v40 }
 0x150   : > { %v480_v33 = vmul.f32 0.0078125, %v461_v52  ;;  %4823 = vrsqrt.f32 %v494_v47  ;;  %v576_v60 = vpack.c.bf16 %v561_v55, %v560_v53  ;;  %v541_v61 = vmul.f32 %v5387_v34, %v519_v58 }
 0x151   : > { %v4814_v63 = vpop.eup %4813  ;;  %v495_v2 = vadd.f32 1e-05, %v479_v59  ;;  %v542_v9 = vmul.f32 %v5387_v34, %v520_v62 }
 0x152   : > { %v496_v3 = vadd.f32 1e-05, %v480_v33  ;;  %v4816_v5 = vpop.eup %4815  ;;  %v463_v6 = vpop.xlane.xlu1 %462  ;;  %794 = vmatmul.mubr.bf16.vlgmr.msra.gmra.mrb[0].mxu0 %v576_v60  ;;  %4303 = vmatprep.mubr.bf16.mxu1 %v576_v60  ;;  %v563_v41 = vadd.f32 %v5394_v23, %v541_v61  ;;  %v521_v8 = vmul.f32 %v4814_v63, %v5256_v49 }
 0x153   : > { %v465_v7 = vpop.xlane.xlu0 %464  ;;  %4825 = vrsqrt.f32 %v495_v2  ;;  %v481_v10 = vmul.f32 0.0078125, %v463_v6  ;;  %803 = vmatprep.mubr.bf16.mxu0 %v5099_v54  ;;  %v522_v48 = vmul.f32 %v4816_v5, %v5264_v56  ;;  %v564_v29 = vadd.f32 %v5394_v23, %v542_v9 }
 0x154   : > { %v482_v13 = vmul.f32 0.0078125, %v465_v7  ;;  %4827 = vrsqrt.f32 %v496_v3  ;;  %v577_v14 = vpack.c.bf16 %v563_v41, %v562_v4  ;;  %v543_v24 = vmul.f32 %v5387_v34, %v521_v8  ;;  %v616_v7 = vld [vmem:[%s6786_s4] sm:$0x7] }
 0x155   : > { %v4818_v25 = vpop.eup %4817  ;;  %v497_v26 = vadd.f32 1e-05, %v481_v10  ;;  %v544_v15 = vmul.f32 %v5387_v34, %v522_v48 }
 0x156   : > { %v498_v27 = vadd.f32 1e-05, %v482_v13  ;;  %v4820_v28 = vpop.eup %4819  ;;  %v467_v49 = vpop.xlane.xlu1 %466  ;;  %4304 = vmatmul.mubr.bf16.vlgmr.msra.gmra.mrb[0].mxu1 %v577_v14  ;;  %v565_v30 = vadd.f32 %v5394_v23, %v543_v24  ;;  %v523_v31 = vmul.f32 %v4818_v25, %v5268_v57 }
 0x157   : > { %4829 = vrsqrt.f32 %v497_v26  ;;  %v483_v56 = vmul.f32 0.0078125, %v467_v49  ;;  %v524_v19 = vmul.f32 %v4820_v28, %v5276_v0  ;;  %v566_v39 = vadd.f32 %v5394_v23, %v544_v15 }
 0x158   : > { %4831 = vrsqrt.f32 %v498_v27  ;;  %v578_v18 = vpack.c.bf16 %v565_v30, %v564_v29  ;;  %v545_v20 = vmul.f32 %v5387_v34, %v523_v31 }
 0x159   : > { %v4822_v35 = vpop.eup %4821  ;;  %v499_v38 = vadd.f32 1e-05, %v483_v56  ;;  %v546_v57 = vmul.f32 %v5387_v34, %v524_v19 }
 0x15a   : > { %v4824_v42 = vpop.eup %4823  ;;  %804 = vmatmul.mubr.bf16.gmra.mrb[4].mxu0 %v577_v14  ;;  %4307 = vmatprep.mubr.bf16.mxu1 %v578_v18  ;;  %v567_v22 = vadd.f32 %v5394_v23, %v545_v20  ;;  %v525_v32 = vmul.f32 %v4822_v35, %v5280_v1 }
 0x15b   : > { %4833 = vrsqrt.f32 %v499_v38  ;;  %813 = vmatprep.mubr.bf16.mxu0 %v5099_v54  ;;  %v526_v0 = vmul.f32 %v4824_v42, %v5297_v11  ;;  %v568_v47 = vadd.f32 %v5394_v23, %v546_v57 }
 0x15c   : > { %v579_v21 = vpack.c.bf16 %v567_v22, %v566_v39  ;;  %v547_v43 = vmul.f32 %v5387_v34, %v525_v32 }
 0x15d   : > { %v4826_v44 = vpop.eup %4825  ;;  %v548_v45 = vmul.f32 %v5387_v34, %v526_v0 }
 0x15e   : > { %v4828_v46 = vpop.eup %4827  ;;  %4308 = vmatmul.mubr.bf16.gmra.mrb[4].mxu1 %v579_v21  ;;  %v569_v40 = vadd.f32 %v5394_v23, %v547_v43  ;;  %v527_v1 = vmul.f32 %v4826_v44, %v5301_v12 }
 0x15f   : > { %v528_v50 = vmul.f32 %v4828_v46, %v5312_v16  ;;  %v570_v53 = vadd.f32 %v5394_v23, %v548_v45 }
 0x160   : > { %v580_v51 = vpack.c.bf16 %v569_v40, %v568_v47  ;;  %v549_v52 = vmul.f32 %v5387_v34, %v527_v1 }
 0x161   : > { %v4830_v11 = vpop.eup %4829  ;;  %v550_v33 = vmul.f32 %v5387_v34, %v528_v50 }
 0x162   : > { %v4832_v55 = vpop.eup %4831  ;;  %814 = vmatmul.mubr.bf16.gmra.mrb[8].mxu0 %v578_v18  ;;  %4311 = vmatprep.mubr.bf16.mxu1 %v580_v51  ;;  %v571_v58 = vadd.f32 %v5394_v23, %v549_v52  ;;  %v529_v59 = vmul.f32 %v4830_v11, %v5316_v17 }
 0x163   : > { %823 = vmatprep.mubr.bf16.mxu0 %v5099_v54  ;;  %v530_v12 = vmul.f32 %v4832_v55, %v5333_v36  ;;  %v572_v62 = vadd.f32 %v5394_v23, %v550_v33 }
 0x164   : > { %v581_v16 = vpack.c.bf16 %v571_v58, %v570_v53  ;;  %v551_v60 = vmul.f32 %v5387_v34, %v529_v59 }
 0x165   : > { %v4834_v61 = vpop.eup %4833  ;;  %v552_v3 = vmul.f32 %v5387_v34, %v530_v12 }
 0x166   : > { %4312 = vmatmul.mubr.bf16.gmra.mrb[8].mxu1 %v581_v16  ;;  %v573_v63 = vadd.f32 %v5394_v23, %v551_v60  ;;  %v531_v2 = vmul.f32 %v4834_v61, %v5337_v37  ;;  %v618_v37 = vlaneseq }
 0x167   : > { %v574_v36 = vadd.f32 %v5394_v23, %v552_v3 }
 0x168   : > { %v582_v17 = vpack.c.bf16 %v573_v63, %v572_v62  ;;  %v553_v4 = vmul.f32 %v5387_v34, %v531_v2  ;;  %v5449_v34 = vshrl.u32 %v618_v37, 7 }
 0x16a   : > { %824 = vmatmul.mubr.bf16.gmra.mrb[12].mxu0 %v579_v21  ;;  %4315 = vmatprep.mubr.bf16.mxu1 %v582_v17  ;;  %v575_v5 = vadd.f32 %v5394_v23, %v553_v4  ;;  %v620_v23 = vsub.s32 0, %v5449_v34  ;;  %v624_v41 = vsub.s32 1, %v5449_v34  ;;  %v628_v9 = vsub.s32 2, %v5449_v34 }
 0x16b   : > { %833 = vmatprep.mubr.bf16.mxu0 %v5099_v54 }
 0x16c   : > { %v583_v6 = vpack.c.bf16 %v575_v5, %v574_v36  ;;  %v5458_v8 = vrot.slane %v616_v7, %v620_v23  ;;  %v5461_v13 = vrot.slane %v616_v7, %v624_v41  ;;  %v5465_v27 = vrot.slane %v616_v7, %v628_v9 }
 0x16e   : > { %4316 = vmatmul.mubr.bf16.gmra.mrb[12].mxu1 %v583_v6 }
 0x172   : > { %834 = vmatmul.mubr.bf16.gmra.mrb[16].mxu0 %v580_v51 }
 0x173   : > { %843 = vmatprep.mubr.bf16.mxu0 %v5099_v54 }
 0x17a   : > { %844 = vmatmul.mubr.bf16.gmra.mrb[20].mxu0 %v581_v16 }
 0x17b   : > { %853 = vmatprep.mubr.bf16.mxu0 %v5099_v54 }
 0x182   : > { %854 = vmatmul.mubr.bf16.gmra.mrb[24].mxu0 %v582_v17 }
 0x183   : > { %863 = vmatprep.mubr.bf16.mxu0 %v5099_v54 }
 0x18a   : > { %864 = vmatmul.mubr.bf16.gmra.mrb[28].mxu0 %v583_v6 }
 0x225   : > { %v795_v10 = vpop.f32.mrb[0].mxu0 }
 0x226   : > { %v796_v48 = vadd.f32 %v795_v10, %v5458_v8  ;;  %v797_v14 = vpop.f32.mrb[1].mxu0 }
 0x227   : > { %v799_v24 = vpop.f32.mrb[2].mxu0  ;;  %v798_v15 = vadd.f32 %v797_v14, %v5461_v13 }
 0x228   : > { %v800_v25 = vadd.f32 %v799_v24, %v5458_v8  ;;  %v801_v26 = vpop.f32.mrb[3].mxu0  ;;  %v981_v29 = vmul.f32 0.17677669, %v796_v48 }
 0x229   : > { %v802_v28 = vadd.f32 %v801_v26, %v5461_v13  ;;  %v4305_v49 = vpop.f32.mrb[0].mxu1 }
 0x22a   : > { %v984_v30 = vmul.f32 0.17677669, %v800_v25  ;;  %v908_v31 = vpop.f32.mrb[1].mxu1  ;;  %v917_v20 = vadd.f32 %v4305_v49, %v5465_v27 }
 0x22b   : > { %v5469_v56 = vpack.c.bf16 %v802_v28, %v798_v15  ;;  %v4306_v19 = vpop.f32.mrb[2].mxu1  ;;  %v909_v39 = vadd.f32 %v908_v31, %v5465_v27 }
 0x22c   : > { %v5471_v18 = vpack.c.bf16 %v984_v30, %v981_v29  ;;  %v920_v35 = vadd.f32 %v4306_v19, %v5465_v27  ;;  %v911_v38 = vpop.f32.mrb[3].mxu1 }
 0x22d   : > { %v912_v42 = vadd.f32 %v911_v38, %v5465_v27  ;;  %1817 = vrot.lane.b32.xlu0 %v5469_v56, %s5100_s11  ;;  %v805_v22 = vpop.f32.mrb[4].mxu0  ;;  %4719 = vmatprep.subr.msk.bf16.mxu0 %vm6791_vm0, %v5469_v56  ;;  %v1239_v32 = vsel %vm6791_vm0, %v5469_v56, 0 }
 0x22e   : > { %v5483_v57 = vpack.c.bf16 %v920_v35, %v917_v20  ;;  %v806_v0 = vadd.f32 %v805_v22, %v5458_v8  ;;  %v807_v21 = vpop.f32.mrb[5].mxu0  ;;  %4320 = vmatpush3.bf16.xpose.msra.mxu0 %v1239_v32  ;;  %4335 = vmatprep.mubr.msk.bf16.mxu0 %vm6791_vm0, %v5471_v18 }
 0x22f   : > { %v5488_v43 = vpack.c.bf16 %v912_v42, %v909_v39  ;;  %v809_v44 = vpop.f32.mrb[6].mxu0  ;;  %v808_v47 = vadd.f32 %v807_v21, %v5461_v13 }
 0x230   : > { %6842 = vst [vmem:[#allocation3_spill] sm:$0xff] %v5483_v57  ;;  %v810_v45 = vadd.f32 %v809_v44, %v5458_v8  ;;  %v811_v46 = vpop.f32.mrb[7].mxu0  ;;  %v987_v50 = vmul.f32 0.17677669, %v806_v0 }
 0x231   : > { %6843 = vst [vmem:[#allocation4_spill] sm:$0xff] %v5488_v43  ;;  %v812_v40 = vadd.f32 %v811_v46, %v5461_v13  ;;  %1793 = vrot.lane.b32.xlu0 %v5471_v18, %s5100_s11  ;;  %v4309_v1 = vpop.f32.mrb[4].mxu1  ;;  %4351 = vmatprep.subr.bf16.mxu1 %v5488_v43 }
 0x232   : > { %v990_v51 = vmul.f32 0.17677669, %v810_v45  ;;  %v924_v52 = vpop.f32.mrb[5].mxu1  ;;  %4352 = vmatpush3.bf16.msra.mxu1 %v5488_v43  ;;  %v933_v58 = vadd.f32 %v4309_v1, %v5465_v27 }
 0x233   : > { %v5497_v11 = vpack.c.bf16 %v812_v40, %v808_v47  ;;  %v4310_v53 = vpop.f32.mrb[6].mxu1  ;;  %4353 = vmatprep.subr.bf16.mxu1 %v5483_v57  ;;  %v925_v12 = vadd.f32 %v924_v52, %v5465_v27 }
 0x234   : > { %v5500_v55 = vpack.c.bf16 %v990_v51, %v987_v50  ;;  %v936_v59 = vadd.f32 %v4310_v53, %v5465_v27  ;;  %v927_v33 = vpop.f32.mrb[7].mxu1 }
 0x235   : > { %v928_v16 = vadd.f32 %v927_v33, %v5465_v27  ;;  %1819 = vrot.lane.b32.xlu1 %v5497_v11, %s5100_s11  ;;  %v815_v60 = vpop.f32.mrb[8].mxu0  ;;  %4720 = vmatprep.subr.msk.bf16.mxu0 %vm6791_vm0, %v5497_v11  ;;  %v1242_v61 = vsel %vm6791_vm0, %v5497_v11, 0 }
 0x236   : > { %v5512_v62 = vpack.c.bf16 %v936_v59, %v933_v58  ;;  %v816_v63 = vadd.f32 %v815_v60, %v5458_v8  ;;  %v817_v2 = vpop.f32.mrb[9].mxu0  ;;  %4322 = vmatpush3.bf16.xpose.msra.mxu0 %v1242_v61  ;;  %4354 = vmatpush3.bf16.msra.mxu1 %v5483_v57 }
 0x237   : > { %v5516_v3 = vpack.c.bf16 %v928_v16, %v925_v12  ;;  %v819_v17 = vpop.f32.mrb[10].mxu0  ;;  %v818_v5 = vadd.f32 %v817_v2, %v5461_v13 }
 0x238   : > { %6844 = vst [vmem:[#allocation5_spill] sm:$0xff] %v5512_v62  ;;  %v820_v4 = vadd.f32 %v819_v17, %v5458_v8  ;;  %v821_v36 = vpop.f32.mrb[11].mxu0  ;;  %v993_v41 = vmul.f32 0.17677669, %v816_v63 }
 0x239   : > { %6845 = vst [vmem:[#allocation6_spill] sm:$0xff] %v5516_v3  ;;  %v822_v6 = vadd.f32 %v821_v36, %v5461_v13  ;;  %v4313_v7 = vpop.f32.mrb[8].mxu1  ;;  %4355 = vmatprep.subr.bf16.mxu1 %v5516_v3 }
 0x23a   : > { %v996_v9 = vmul.f32 0.17677669, %v820_v4  ;;  %v940_v10 = vpop.f32.mrb[9].mxu1  ;;  %4356 = vmatpush3.bf16.msra.mxu1 %v5516_v3  ;;  %v949_v25 = vadd.f32 %v4313_v7, %v5465_v27 }
 0x23b   : > { %v5523_v48 = vpack.c.bf16 %v822_v6, %v818_v5  ;;  %v4314_v14 = vpop.f32.mrb[10].mxu1  ;;  %4357 = vmatprep.subr.bf16.mxu1 %v5512_v62  ;;  %v941_v28 = vadd.f32 %v940_v10, %v5465_v27 }
 0x23c   : > { %v5526_v24 = vpack.c.bf16 %v996_v9, %v993_v41  ;;  %v952_v26 = vadd.f32 %v4314_v14, %v5465_v27  ;;  %v943_v15 = vpop.f32.mrb[11].mxu1 }
 0x23d   : > { %v944_v49 = vadd.f32 %v943_v15, %v5465_v27  ;;  %1821 = vrot.lane.b32.xlu1 %v5523_v48, %s5100_s11  ;;  %v825_v29 = vpop.f32.mrb[12].mxu0  ;;  %4721 = vmatprep.subr.msk.bf16.mxu0 %vm6791_vm0, %v5523_v48  ;;  %v1245_v30 = vsel %vm6791_vm0, %v5523_v48, 0 }
 0x23e   : > { %v5538_v31 = vpack.c.bf16 %v952_v26, %v949_v25  ;;  %v826_v19 = vadd.f32 %v825_v29, %v5458_v8  ;;  %4324 = vmatpush3.bf16.xpose.msra.mxu0 %v1245_v30  ;;  %1797 = vrot.lane.b32.xlu0 %v5526_v24, %s5100_s11  ;;  %v827_v20 = vpop.f32.mrb[13].mxu0 }
 0x23f   : > { %v5543_v35 = vpack.c.bf16 %v944_v49, %v941_v28  ;;  %4358 = vmatpush3.bf16.msra.mxu1 %v5512_v62  ;;  %v829_v38 = vpop.f32.mrb[14].mxu0  ;;  %v828_v22 = vadd.f32 %v827_v20, %v5461_v13 }
 0x240   : > { %6846 = vst [vmem:[#allocation7_spill] sm:$0xff] %v5538_v31  ;;  %v830_v39 = vadd.f32 %v829_v38, %v5458_v8  ;;  %v831_v42 = vpop.f32.mrb[15].mxu0  ;;  %v999_v21 = vmul.f32 0.17677669, %v826_v19 }
 0x241   : > { %6847 = vst [vmem:[#allocation8_spill] sm:$0xff] %v5543_v35  ;;  %v832_v32 = vadd.f32 %v831_v42, %v5461_v13  ;;  %v4317_v0 = vpop.f32.mrb[12].mxu1  ;;  %4359 = vmatprep.subr.bf16.mxu1 %v5543_v35 }
 0x242   : > { %v1002_v44 = vmul.f32 0.17677669, %v830_v39  ;;  %v956_v45 = vpop.f32.mrb[13].mxu1  ;;  %v965_v1 = vadd.f32 %v4317_v0, %v5465_v27 }
 0x243   : > { %v5550_v46 = vpack.c.bf16 %v832_v32, %v828_v22  ;;  %4360 = vmatpush3.bf16.msra.mxu1 %v5543_v35  ;;  %v4318_v47 = vpop.f32.mrb[14].mxu1  ;;  %v957_v52 = vadd.f32 %v956_v45, %v5465_v27 }
 0x244   : > { %v5553_v40 = vpack.c.bf16 %v1002_v44, %v999_v21  ;;  %v968_v50 = vadd.f32 %v4318_v47, %v5465_v27  ;;  %4361 = vmatprep.subr.bf16.mxu1 %v5538_v31  ;;  %v959_v51 = vpop.f32.mrb[15].mxu1 }
 0x245   : > { %v960_v53 = vadd.f32 %v959_v51, %v5465_v27  ;;  %1823 = vrot.lane.b32.xlu1 %v5550_v46, %s5100_s11  ;;  %v835_v58 = vpop.f32.mrb[16].mxu0  ;;  %4722 = vmatprep.subr.msk.bf16.mxu0 %vm6791_vm0, %v5550_v46  ;;  %v1248_v59 = vsel %vm6791_vm0, %v5550_v46, 0 }
 0x246   : > { %v5566_v33 = vpack.c.bf16 %v968_v50, %v965_v1  ;;  %v836_v12 = vadd.f32 %v835_v58, %v5458_v8  ;;  %v837_v16 = vpop.f32.mrb[17].mxu0  ;;  %4326 = vmatpush3.bf16.xpose.msra.mxu0 %v1248_v59 }
 0x247   : > { %v5569_v60 = vpack.c.bf16 %v960_v53, %v957_v52  ;;  %4362 = vmatpush3.bf16.msra.mxu1 %v5538_v31  ;;  %v839_v27 = vpop.f32.mrb[18].mxu0  ;;  %v838_v2 = vadd.f32 %v837_v16, %v5461_v13 }
 0x248   : > { %6848 = vst [vmem:[#allocation9_spill] sm:$0xff] %v5566_v33  ;;  %v840_v61 = vadd.f32 %v839_v27, %v5458_v8  ;;  %v841_v63 = vpop.f32.mrb[19].mxu0  ;;  %v1005_v4 = vmul.f32 0.17677669, %v836_v12 }
 0x249   : > { %6849 = vst [vmem:[#allocation10_spill] sm:$0xff] %v5569_v60  ;;  %v842_v17 = vadd.f32 %v841_v63, %v5461_v13  ;;  %1795 = vrot.lane.b32.xlu1 %v5500_v55, %s5100_s11  ;;  %4363 = vmatprep.subr.bf16.mxu1 %v5569_v60 }
 0x24a   : > { %v1008_v36 = vmul.f32 0.17677669, %v840_v61 }
 0x24b   : > { %v5578_v5 = vpack.c.bf16 %v842_v17, %v838_v2  ;;  %4364 = vmatpush3.bf16.msra.mxu1 %v5569_v60 }
 0x24c   : > { %v5581_v6 = vpack.c.bf16 %v1008_v36, %v1005_v4  ;;  %4365 = vmatprep.subr.bf16.mxu1 %v5566_v33 }
 0x24d   : > { %1799 = vrot.lane.b32.xlu1 %v5553_v40, %s5100_s11  ;;  %1825 = vrot.lane.b32.xlu0 %v5578_v5, %s5100_s11  ;;  %v845_v7 = vpop.f32.mrb[20].mxu0  ;;  %v1251_v41 = vsel %vm6791_vm0, %v5578_v5, 0 }
 0x24e   : > { %v846_v9 = vadd.f32 %v845_v7, %v5458_v8  ;;  %4723 = vmatprep.subr.msk.bf16.mxu0 %vm6791_vm0, %v5578_v5  ;;  %v847_v10 = vpop.f32.mrb[21].mxu0 }
 0x24f   : > { %4328 = vmatpush3.bf16.xpose.msra.mxu0 %v1251_v41  ;;  %4366 = vmatpush3.bf16.msra.mxu1 %v5566_v33  ;;  %v849_v14 = vpop.f32.mrb[22].mxu0  ;;  %v848_v15 = vadd.f32 %v847_v10, %v5461_v13 }
 0x250   : > { %v850_v25 = vadd.f32 %v849_v14, %v5458_v8  ;;  %v851_v26 = vpop.f32.mrb[23].mxu0  ;;  %v1011_v49 = vmul.f32 0.17677669, %v846_v9 }
 0x251   : > { %v852_v28 = vadd.f32 %v851_v26, %v5461_v13  ;;  %1801 = vrot.lane.b32.xlu0 %v5581_v6, %s5100_s11 }
 0x252   : > { %v1014_v29 = vmul.f32 0.17677669, %v850_v25 }
 0x253   : > { %v5599_v30 = vpack.c.bf16 %v852_v28, %v848_v15 }
 0x254   : > { %v5601_v19 = vpack.c.bf16 %v1014_v29, %v1011_v49 }
 0x255   : > { %1827 = vrot.lane.b32.xlu1 %v5599_v30, %s5100_s11  ;;  %v855_v20 = vpop.f32.mrb[24].mxu0  ;;  %4724 = vmatprep.subr.msk.bf16.mxu0 %vm6791_vm0, %v5599_v30  ;;  %v1254_v38 = vsel %vm6791_vm0, %v5599_v30, 0 }
 0x256   : > { %v856_v39 = vadd.f32 %v855_v20, %v5458_v8  ;;  %v857_v42 = vpop.f32.mrb[25].mxu0 }
 0x257   : > { %4330 = vmatpush3.bf16.xpose.msra.mxu0 %v1254_v38  ;;  %v859_v22 = vpop.f32.mrb[26].mxu0  ;;  %v858_v21 = vadd.f32 %v857_v42, %v5461_v13 }
 0x258   : > { %v860_v32 = vadd.f32 %v859_v22, %v5458_v8  ;;  %v861_v0 = vpop.f32.mrb[27].mxu0  ;;  %v1017_v45 = vmul.f32 0.17677669, %v856_v39 }
 0x259   : > { %v862_v44 = vadd.f32 %v861_v0, %v5461_v13  ;;  %1803 = vrot.lane.b32.xlu1 %v5601_v19, %s5100_s11 }
 0x25a   : > { %v1020_v47 = vmul.f32 0.17677669, %v860_v32 }
 0x25b   : > { %v5615_v1 = vpack.c.bf16 %v862_v44, %v858_v21 }
 0x25c   : > { %v5617_v50 = vpack.c.bf16 %v1020_v47, %v1017_v45  ;;  %v1077_v47 = vld [vmem:[%s314_s14] sm:$0x1] }
 0x25d   : > { %1829 = vrot.lane.b32.xlu0 %v5615_v1, %s5100_s11  ;;  %v865_v51 = vpop.f32.mrb[28].mxu0  ;;  %4725 = vmatprep.subr.msk.bf16.mxu0 %vm6791_vm0, %v5615_v1  ;;  %v1257_v52 = vsel %vm6791_vm0, %v5615_v1, 0  ;;  %vm1078_vm1 = vcmp.gt.f32.partialorder %v1077_v47, 0.0 }
 0x25e   : > { %v866_v53 = vadd.f32 %v865_v51, %v5458_v8  ;;  %v867_v58 = vpop.f32.mrb[29].mxu0  ;;  %v1112_v51 = vsel %vm1078_vm1, 1, %v5099_v54 }
 0x25f   : > { %4332 = vmatpush3.bf16.xpose.msra.mxu0 %v1257_v52  ;;  %v869_v59 = vpop.f32.mrb[30].mxu0  ;;  %v868_v27 = vadd.f32 %v867_v58, %v5461_v13  ;;  %v5685_v52 = vrot.slane %v1112_v51, %v620_v23  ;;  %v1081_v58 = vadd.s32 8, %v5449_v34  ;;  %v1091_v51 = vadd.s32 88, %v5449_v34 }
 0x260   : > { %v870_v12 = vadd.f32 %v869_v59, %v5458_v8  ;;  %v871_v16 = vpop.f32.mrb[31].mxu0  ;;  %v1023_v63 = vmul.f32 0.17677669, %v866_v53  ;;  %v5688_v53 = vand.u32 127, %v618_v37  ;;  %v1082_v59 = vadd.s32 16, %v5449_v34 }
 0x261   : > { %v872_v61 = vadd.f32 %v871_v16, %v5461_v13  ;;  %1805 = vrot.lane.b32.xlu0 %v5617_v50, %s5100_s11  ;;  %vm1117_vm2 = vcmp.eq.s32.totalorder %v5685_v52, 1  ;;  %v1083_v37 = vadd.s32 24, %v5449_v34 }
 0x262   : > { %v1026_v2 = vmul.f32 0.17677669, %v870_v12  ;;  %vm1096_vm3 = vcmp.le.s32.totalorder %v5688_v53, %v5449_v34  ;;  %vm1097_vm4 = vcmp.le.s32.totalorder %v5688_v53, %v1081_v58  ;;  %vm1098_vm6 = vcmp.le.s32.totalorder %v5688_v53, %v1082_v59 }
 0x263   : > { %v5631_v17 = vpack.c.bf16 %v872_v61, %v868_v27  ;;  %vm5698_vm5 = vmand %vm1096_vm3, %vm1117_vm2  ;;  %vm1099_vm9 = vcmp.le.s32.totalorder %v5688_v53, %v1083_v37 }
 0x264   : > { %v5633_v4 = vpack.c.bf16 %v1026_v2, %v1023_v63  ;;  %vm5706_vm7 = vmand %vm1097_vm4, %vm1117_vm2 }
 0x265   : > { %1831 = vrot.lane.b32.xlu1 %v5631_v17, %s5100_s11  ;;  %4726 = vmatprep.subr.msk.bf16.mxu0 %vm6791_vm0, %v5631_v17  ;;  %v1260_v8 = vsel %vm6791_vm0, %v5631_v17, 0  ;;  %vm5717_vm8 = vmand %vm1098_vm6, %vm1117_vm2 }
 0x266   : > { %vm5735_vm10 = vmand %vm1099_vm9, %vm1117_vm2 }
 0x267   : > { %4334 = vmatpush3.bf16.xpose.msra.mxu0 %v1260_v8 }
 0x26e   : > { %4336 = vmatmul.mubr.msk.bf16.vlgmr.msra.gmra.mrb[32].mxu0 %vm6791_vm0, %v5500_v55 }
 0x26f   : > { %4339 = vmatprep.mubr.msk.bf16.mxu0 %vm6791_vm0, %v5526_v24 }
 0x276   : > { %4340 = vmatmul.mubr.msk.bf16.gmra.mrb[36].mxu0 %vm6791_vm0, %v5553_v40 }
 0x277   : > { %4343 = vmatprep.mubr.msk.bf16.mxu0 %vm6791_vm0, %v5581_v6 }
 0x27e   : > { %4344 = vmatmul.mubr.msk.bf16.gmra.mrb[40].mxu0 %vm6791_vm0, %v5601_v19 }
 0x27f   : > { %4347 = vmatprep.mubr.msk.bf16.mxu0 %vm6791_vm0, %v5617_v50 }
 0x286   : > { %4348 = vmatmul.mubr.msk.bf16.gmra.mrb[44].mxu0 %vm6791_vm0, %v5633_v4 }
 0x29f   : > { %v1818_v13 = vpop.permute.xlu0 %1817 }
 0x2a0   : > { %4727 = vmatprep.subr.msk.bf16.mxu0 %vm6791_vm0, %v1818_v13  ;;  %v1858_v36 = vsel %vm6791_vm0, %v1818_v13, 0  ;;  %v1086_v13 = vadd.s32 48, %v5449_v34 }
 0x2a1   : > { %4404 = vmatpush3.bf16.xpose.msra.mxu0 %v1858_v36 }
 0x2a2   : > { %vm1102_vm11 = vcmp.le.s32.totalorder %v5688_v53, %v1086_v13  ;;  %v6871_v13 = vmov 0 }
 0x2a3   : > { %v1794_v7 = vpop.permute.xlu0 %1793  ;;  %vm5750_vm12 = vmand %vm1102_vm11, %vm1117_vm2  ;;  %vm1107_vm11 = vcmp.le.s32.totalorder %v5688_v53, %v1091_v51  ;;  %v1087_v51 = vadd.s32 56, %v5449_v34 }
 0x2a4   : > { %4419 = vmatprep.mubr.msk.bf16.mxu0 %vm6791_vm0, %v1794_v7 }
 0x2a7   : > { %v1820_v41 = vpop.permute.xlu1 %1819 }
 0x2a8   : > { %4728 = vmatprep.subr.msk.bf16.mxu0 %vm6791_vm0, %v1820_v41  ;;  %v1861_v9 = vsel %vm6791_vm0, %v1820_v41, 0 }
 0x2a9   : > { %4406 = vmatpush3.bf16.xpose.msra.mxu0 %v1861_v9  ;;  %v1084_v9 = vadd.s32 32, %v5449_v34 }
 0x2ab   : > { %vm1100_vm13 = vcmp.le.s32.totalorder %v5688_v53, %v1084_v9 }
 0x2ac   : > { %vm5763_vm14 = vmand %vm1100_vm13, %vm1117_vm2 }
 0x2ad   : > { %vm5817_vm13 = vmand %vm1107_vm11, %vm1117_vm2 }
 0x2ae   : > { %v6872_v13 = vsel %vm5817_vm13, 4294967295, %v6871_v13 }
 0x2af   : > { %v1822_v10 = vpop.permute.xlu1 %1821  ;;  %6873 = vst [vmem:[#allocation14_spill] sm:$0xff] %v6872_v13 }
 0x2b0   : > { %4729 = vmatprep.subr.msk.bf16.mxu0 %vm6791_vm0, %v1822_v10  ;;  %v1864_v14 = vsel %vm6791_vm0, %v1822_v10, 0  ;;  %v1798_v15 = vpop.permute.xlu0 %1797 }
 0x2b1   : > { %4408 = vmatpush3.bf16.xpose.msra.mxu0 %v1864_v14 }
 0x2b7   : > { %v1824_v25 = vpop.permute.xlu1 %1823 }
 0x2b8   : > { %4730 = vmatprep.subr.msk.bf16.mxu0 %vm6791_vm0, %v1824_v25  ;;  %v1867_v26 = vsel %vm6791_vm0, %v1824_v25, 0 }
 0x2b9   : > { %4410 = vmatpush3.bf16.xpose.msra.mxu0 %v1867_v26 }
 0x2bb   : > { %v1796_v28 = vpop.permute.xlu1 %1795 }
 0x2bf   : > { %v1826_v49 = vpop.permute.xlu0 %1825  ;;  %v1800_v20 = vpop.permute.xlu1 %1799 }
 0x2c0   : > { %4731 = vmatprep.subr.msk.bf16.mxu0 %vm6791_vm0, %v1826_v49  ;;  %v1870_v29 = vsel %vm6791_vm0, %v1826_v49, 0 }
 0x2c1   : > { %4412 = vmatpush3.bf16.xpose.msra.mxu0 %v1870_v29 }
 0x2c3   : > { %v1802_v42 = vpop.permute.xlu0 %1801 }
 0x2c7   : > { %v1828_v38 = vpop.permute.xlu1 %1827 }
 0x2c8   : > { %4732 = vmatprep.subr.msk.bf16.mxu0 %vm6791_vm0, %v1828_v38  ;;  %v1873_v39 = vsel %vm6791_vm0, %v1828_v38, 0  ;;  %v1090_v38 = vadd.s32 80, %v5449_v34 }
 0x2c9   : > { %4414 = vmatpush3.bf16.xpose.msra.mxu0 %v1873_v39 }
 0x2ca   : > { %vm1106_vm3 = vcmp.le.s32.totalorder %v5688_v53, %v1090_v38  ;;  %v1093_v38 = vadd.s32 104, %v5449_v34 }
 0x2cb   : > { %v1804_v0 = vpop.permute.xlu1 %1803  ;;  %vm5789_vm4 = vmand %vm1106_vm3, %vm1117_vm2 }
 0x2cf   : > { %v1830_v22 = vpop.permute.xlu0 %1829 }
 0x2d0   : > { %4733 = vmatprep.subr.msk.bf16.mxu0 %vm6791_vm0, %v1830_v22  ;;  %v1876_v32 = vsel %vm6791_vm0, %v1830_v22, 0 }
 0x2d1   : > { %4416 = vmatpush3.bf16.xpose.msra.mxu0 %v1876_v32 }
 0x2d3   : > { %v1806_v45 = vpop.permute.xlu0 %1805 }
 0x2d7   : > { %v1832_v21 = vpop.permute.xlu1 %1831 }
 0x2d8   : > { %4734 = vmatprep.subr.msk.bf16.mxu0 %vm6791_vm0, %v1832_v21  ;;  %v1879_v44 = vsel %vm6791_vm0, %v1832_v21, 0  ;;  %v1088_v21 = vadd.s32 64, %v5449_v34 }
 0x2d9   : > { %4418 = vmatpush3.bf16.xpose.msra.mxu0 %v1879_v44 }
 0x2da   : > { %vm1104_vm6 = vcmp.le.s32.totalorder %v5688_v53, %v1088_v21 }
 0x2db   : > { %vm5804_vm9 = vmand %vm1104_vm6, %vm1117_vm2 }
 0x2e0   : > { %4420 = vmatmul.mubr.msk.bf16.vlgmr.msra.gmra.mrb[48].mxu0 %vm6791_vm0, %v1796_v28  ;;  %v1085_v28 = vadd.s32 40, %v5449_v34 }
 0x2e1   : > { %4423 = vmatprep.mubr.msk.bf16.mxu0 %vm6791_vm0, %v1798_v15  ;;  %v6858_v15 = vmov 0 }
 0x2e2   : > { %v6859_v15 = vsel %vm5750_vm12, 4294967295, %v6858_v15  ;;  %vm1101_vm15 = vcmp.le.s32.totalorder %v5688_v53, %v1085_v28 }
 0x2e3   : > { %6860 = vst [vmem:[#allocation11_spill] sm:$0xff] %v6859_v15  ;;  %vm5776_vm1 = vmand %vm1101_vm15, %vm1117_vm2 }
 0x2e8   : > { %4424 = vmatmul.mubr.msk.bf16.gmra.mrb[52].mxu0 %vm6791_vm0, %v1800_v20 }
 0x2e9   : > { %4427 = vmatprep.mubr.msk.bf16.mxu0 %vm6791_vm0, %v1802_v42 }
 0x2f0   : > { %4428 = vmatmul.mubr.msk.bf16.gmra.mrb[56].mxu0 %vm6791_vm0, %v1804_v0 }
 0x2f1   : > { %4431 = vmatprep.mubr.msk.bf16.mxu0 %vm6791_vm0, %v1806_v45  ;;  %v6865_v45 = vmov 0 }
 0x2f2   : > { %v6866_v45 = vsel %vm5789_vm4, 4294967295, %v6865_v45 }
 0x2f3   : > { %6867 = vst [vmem:[#allocation12_spill] sm:$0xff] %v6866_v45 }
 0x341   : > { %v4337_v23 = vpop.f32.mrb[32].mxu0 }
 0x342   : > { %v1296_v12 = vpop.f32.mrb[33].mxu0  ;;  %v5730_v36 = vsel %vm5717_vm8, %v4337_v23, -1e+30 }
 0x343   : > { %v4338_v27 = vpop.f32.mrb[34].mxu0  ;;  %v5712_v61 = vsel %vm5698_vm5, %v1296_v12, -1e+30  ;;  %v6868_v12 = vmov 0 }
 0x344   : > { %1375 = vmax.xlane.f32.xlu1 %v5712_v61  ;;  %v1299_v63 = vpop.f32.mrb[35].mxu0  ;;  %v5745_v25 = vsel %vm5735_vm10, %v4338_v27, -1e+30  ;;  %v6869_v12 = vsel %vm5804_vm9, 4294967295, %v6868_v12  ;;  %v1089_v27 = vadd.s32 72, %v5449_v34 }
 0x345   : > { %v5723_v8 = vsel %vm5706_vm7, %v1299_v63, -1e+30  ;;  %6870 = vst [vmem:[#allocation13_spill] sm:$0xff] %v6869_v12 }
 0x346   : > { %1377 = vmax.xlane.f32.xlu0 %v5723_v8  ;;  %vm1105_vm15 = vcmp.le.s32.totalorder %v5688_v53, %v1089_v27 }
 0x347   : > { %vm5830_vm3 = vmand %vm1105_vm15, %vm1117_vm2 }
 0x348   : > { %1379 = vmax.xlane.f32.xlu1 %v5730_v36 }
 0x349   : > { %v4341_v41 = vpop.f32.mrb[36].mxu0 }
 0x34a   : > { %v1312_v10 = vpop.f32.mrb[37].mxu0  ;;  %v5758_v49 = vsel %vm5750_vm12, %v4341_v41, -1e+30  ;;  %v1094_v41 = vadd.s32 112, %v5449_v34 }
 0x34b   : > { %v5741_v14 = vpop.f32.mrb[38].mxu0  ;;  %v5771_v22 = vsel %vm5763_vm14, %v1312_v10, -1e+30  ;;  %v6874_v10 = vmov 0 }
 0x34c   : > { %1381 = vmax.xlane.f32.xlu1 %v5745_v25  ;;  %v1315_v26 = vpop.f32.mrb[39].mxu0  ;;  %v6875_v10 = vsel %vm5830_vm3, 4294967295, %v6874_v10  ;;  %vm1110_vm6 = vcmp.le.s32.totalorder %v5688_v53, %v1094_v41 }
 0x34d   : > { %v5784_v44 = vsel %vm5776_vm1, %v1315_v26, -1e+30  ;;  %6876 = vst [vmem:[#allocation15_spill] sm:$0xff] %v6875_v10  ;;  %v1092_v26 = vadd.s32 96, %v5449_v34  ;;  %vm5843_vm11 = vmand %vm1110_vm6, %vm1117_vm2  ;;  %vm1109_vm6 = vcmp.le.s32.totalorder %v5688_v53, %v1093_v38 }
 0x34f   : > { %vm1108_vm15 = vcmp.le.s32.totalorder %v5688_v53, %v1092_v26 }
 0x350   : > { %1387 = vmax.xlane.f32.xlu1 %v5758_v49  ;;  %vm5856_vm0 = vmand %vm1108_vm15, %vm1117_vm2 }
 0x351   : > { %v4345_v20 = vpop.f32.mrb[40].mxu0 }
 0x352   : > { %v1328_v39 = vpop.f32.mrb[41].mxu0  ;;  %v5797_v23 = vsel %vm5789_vm4, %v4345_v20, -1e+30  ;;  %v6877_v20 = vmov 0 }
 0x353   : > { %v4346_v42 = vpop.f32.mrb[42].mxu0  ;;  %v5812_v63 = vsel %vm5804_vm9, %v1328_v39, -1e+30  ;;  %v6878_v20 = vsel %vm5843_vm11, 4294967295, %v6877_v20 }
 0x354   : > { %1383 = vmax.xlane.f32.xlu1 %v5771_v22  ;;  %v1331_v32 = vpop.f32.mrb[43].mxu0  ;;  %v5825_v9 = vsel %vm5817_vm13, %v4346_v42, -1e+30  ;;  %6879 = vst [vmem:[#allocation16_spill] sm:$0xff] %v6878_v20  ;;  %v6880_v42 = vmov 0 }
 0x355   : > { %v5838_v28 = vsel %vm5830_vm3, %v1331_v32, -1e+30  ;;  %v6881_v42 = vsel %vm5856_vm0, 4294967295, %v6880_v42  ;;  %v1095_v32 = vadd.s32 120, %v5449_v34  ;;  %v6889_v34 = vmov 0 }
 0x356   : > { %6882 = vst [vmem:[#allocation17_spill] sm:$0xff] %v6881_v42 }
 0x357   : > { %vm1111_vm15 = vcmp.le.s32.totalorder %v5688_v53, %v1095_v32 }
 0x358   : > { %1385 = vmax.xlane.f32.xlu1 %v5784_v44 }
 0x359   : > { %v4349_v47 = vpop.f32.mrb[44].mxu0 }
 0x35a   : > { %v1344_v58 = vpop.f32.mrb[45].mxu0  ;;  %v5851_v39 = vsel %vm5843_vm11, %v4349_v47, -1e+30  ;;  %vm5869_vm11 = vmand %vm1109_vm6, %vm1117_vm2  ;;  %v6883_v47 = vmov 0  ;;  %vm1103_vm6 = vcmp.le.s32.totalorder %v5688_v53, %v1087_v51 }
 0x35b   : > { %v4350_v59 = vpop.f32.mrb[46].mxu0  ;;  %v5864_v21 = vsel %vm5856_vm0, %v1344_v58, -1e+30  ;;  %v6884_v47 = vsel %vm5869_vm11, 4294967295, %v6883_v47  ;;  %vm5882_vm0 = vmand %vm1111_vm15, %vm1117_vm2  ;;  %v6886_v58 = vmov 0 }
 0x35c   : > { %1395 = vmax.xlane.f32.xlu1 %v5797_v23  ;;  %1807 = vrot.lane.b32.xlu0 %v5633_v4, %s5100_s11  ;;  %v1347_v37 = vpop.f32.mrb[47].mxu0  ;;  %6885 = vst [vmem:[#allocation18_spill] sm:$0xff] %v6884_v47  ;;  %v6887_v58 = vsel %vm5882_vm0, 4294967295, %v6886_v58  ;;  %v5889_v41 = vsel %vm5882_vm0, %v4350_v59, -1e+30  ;;  %vm5893_vm13 = vmand %vm1103_vm6, %vm1117_vm2  ;;  %vm6895_vm2 = vcmask 261120  }
 0x35d   : > { %v5877_v27 = vsel %vm5869_vm11, %v1347_v37, -1e+30  ;;  %6888 = vst [vmem:[#allocation19_spill] sm:$0xff] %v6887_v58  ;;  %v6890_v34 = vsel %vm5893_vm13, 4294967295, %v6889_v34  ;;  %v5901_v37 = vsel %vm5893_vm13, %v5741_v14, -1e+30  ;;  %vm6903_vm6 = vmmov %vm6895_vm2 }
 0x35e   : > { %6891 = vst [vmem:[#allocation20_spill] sm:$0xff] %v6890_v34 }
 0x360   : > { %1391 = vmax.xlane.f32.xlu1 %v5812_v63 }
 0x364   : > { %1397 = vmax.xlane.f32.xlu1 %v5825_v9 }
 0x368   : > { %1393 = vmax.xlane.f32.xlu1 %v5838_v28 }
 0x36c   : > { %1403 = vmax.xlane.f32.xlu1 %v5851_v39 }
 0x370   : > { %1399 = vmax.xlane.f32.xlu1 %v5864_v21 }
 0x374   : > { %1401 = vmax.xlane.f32.xlu1 %v5877_v27 }
 0x378   : > { %1405 = vmax.xlane.f32.xlu1 %v5889_v41 }
 0x37b   : > { %1389 = vmax.xlane.f32.xlu0 %v5901_v37 }
 0x3b3   : > { %v5904_v53 = vpop.f32.mrb[48].mxu0 }
 0x3b4   : > { %v5906_v26 = vpop.f32.mrb[49].mxu0 }
 0x3b5   : > { %v5908_v59 = vpop.f32.mrb[50].mxu0 }
 0x3b6   : > { %v5910_v52 = vpop.f32.mrb[51].mxu0 }
 0x3bb   : > { %v5912_v38 = vpop.f32.mrb[52].mxu0 }
 0x3bc   : > { %v5914_v32 = vpop.f32.mrb[53].mxu0 }
 0x3bd   : > { %v5916_v51 = vpop.f32.mrb[54].mxu0 }
 0x3be   : > { %v5918_v33 = vpop.f32.mrb[55].mxu0 }
 0x3c3   : > { %v5920_v14 = vpop.f32.mrb[56].mxu0 }
 0x3c4   : > { %6892 = vst [vmem:[#allocation21_spill] sm:$0xff] %v5920_v14  ;;  %v5922_v60 = vpop.f32.mrb[57].mxu0 }
 0x3c5   : > { %v5924_v62 = vpop.f32.mrb[58].mxu0 }
 0x3c6   : > { %6893 = vst [vmem:[#allocation22_spill] sm:$0xff] %v5924_v62  ;;  %v5926_v31 = vpop.f32.mrb[59].mxu0 }
 0x3c7   : > { %6894 = vst [vmem:[#allocation23_spill] sm:$0xff] %v5926_v31 }
 0x3d1   : > { %v1376_v57 = vpop.xlane.xlu1 %1375 }
 0x3d2   : > { %v1407_v3 = vsub.f32 %v5712_v61, %v1376_v57 }
 0x3d3   : > { %v1378_v35 = vpop.xlane.xlu0 %1377 }
 0x3d4   : > { %v1408_v43 = vsub.f32 %v5723_v8, %v1378_v35  ;;  %v1423_v45 = vmul.f32 1.442695, %v1407_v3 }
 0x3d5   : > { %v1380_v20 = vpop.xlane.xlu1 %1379 }
 0x3d6   : > { %v1425_v47 = vmul.f32 1.442695, %v1408_v43  ;;  %v1409_v58 = vsub.f32 %v5730_v36, %v1380_v20 }
 0x3d7   : > { %v1808_v42 = vpop.permute.xlu0 %1807 }
 0x3d8   : > { %4835 = vpow2.f32 %v1425_v47  ;;  %v1427_v13 = vmul.f32 1.442695, %v1409_v58  ;;  %4432 = vmatmul.mubr.msk.bf16.gmra.mrb[60].mxu0 %vm6895_vm2, %v1808_v42 }
 0x3d9   : > { %v1382_v14 = vpop.xlane.xlu1 %1381 }
 0x3da   : > { %4837 = vpow2.f32 %v1427_v13  ;;  %v1410_v62 = vsub.f32 %v5745_v25, %v1382_v14 }
 0x3db   : > { %4839 = vpow2.f32 %v1423_v45 }
 0x3dc   : > { %v1429_v10 = vmul.f32 1.442695, %v1410_v62 }
 0x3dd   : > { %v1388_v31 = vpop.xlane.xlu1 %1387 }
 0x3de   : > { %4841 = vpow2.f32 %v1429_v10  ;;  %v1413_v57 = vsub.f32 %v5758_v49, %v1388_v31 }
 0x3e0   : > { %v1435_v35 = vmul.f32 1.442695, %v1413_v57 }
 0x3e1   : > { %v1384_v43 = vpop.xlane.xlu1 %1383 }
 0x3e2   : > { %v5934_v61 = vpop.eup %4835  ;;  %4843 = vpow2.f32 %v1435_v35  ;;  %v1411_v8 = vsub.f32 %v5771_v22, %v1384_v43 }
 0x3e3   : > { %1457 = vadd.xlane.f32.xlu1 %v5934_v61 }
 0x3e4   : > { %v5938_v3 = vpop.eup %4837  ;;  %v1431_v36 = vmul.f32 1.442695, %v1411_v8 }
 0x3e5   : > { %v1386_v13 = vpop.xlane.xlu1 %1385  ;;  %1459 = vadd.xlane.f32.xlu0 %v5938_v3  ;;  %v5942_v25 = vpop.eup %4839 }
 0x3e6   : > { %4845 = vpow2.f32 %v1431_v36  ;;  %v1412_v62 = vsub.f32 %v5784_v44, %v1386_v13 }
 0x3e8   : > { %v5944_v31 = vpop.eup %4841  ;;  %v1433_v49 = vmul.f32 1.442695, %v1412_v62 }
 0x3e9   : > { %v1396_v45 = vpop.xlane.xlu1 %1395  ;;  %1455 = vadd.xlane.f32.xlu0 %v5942_v25  ;;  %1461 = vadd.xlane.f32.xlu1 %v5944_v31 }
 0x3ea   : > { %4847 = vpow2.f32 %v1433_v49  ;;  %v1417_v22 = vsub.f32 %v5797_v23, %v1396_v45 }
 0x3ec   : > { %v5949_v10 = vpop.eup %4843  ;;  %v1443_v20 = vmul.f32 1.442695, %v1417_v22 }
 0x3ed   : > { %v1392_v42 = vpop.xlane.xlu1 %1391  ;;  %1467 = vadd.xlane.f32.xlu0 %v5949_v10 }
 0x3ee   : > { %4849 = vpow2.f32 %v1443_v20  ;;  %v1415_v44 = vsub.f32 %v5812_v63, %v1392_v42 }
 0x3f0   : > { %v5953_v47 = vpop.eup %4845  ;;  %v1439_v58 = vmul.f32 1.442695, %v1415_v44 }
 0x3f1   : > { %v1398_v14 = vpop.xlane.xlu1 %1397  ;;  %1463 = vadd.xlane.f32.xlu0 %v5953_v47 }
 0x3f2   : > { %4851 = vpow2.f32 %v1439_v58 }
 0x3f4   : > { %v5956_v57 = vpop.eup %4847 }
 0x3f5   : > { %v1394_v35 = vpop.xlane.xlu1 %1393  ;;  %1465 = vadd.xlane.f32.xlu1 %v5956_v57 }
 0x3f6   : > { %v1416_v20 = vsub.f32 %v5838_v28, %v1394_v35 }
 0x3f8   : > { %v5959_v23 = vpop.eup %4849 }
 0x3f9   : > { %1475 = vadd.xlane.f32.xlu0 %v5959_v23  ;;  %v1404_v43 = vpop.xlane.xlu1 %1403 }
 0x3fa   : > { %v1421_v8 = vsub.f32 %v5851_v39, %v1404_v43  ;;  %v1418_v43 = vsub.f32 %v5825_v9, %v1398_v14 }
 0x3fc   : > { %v5963_v63 = vpop.eup %4851  ;;  %v1451_v36 = vmul.f32 1.442695, %v1421_v8  ;;  %v1441_v8 = vmul.f32 1.442695, %v1416_v20 }
 0x3fd   : > { %1471 = vadd.xlane.f32.xlu0 %v5963_v63  ;;  %v1400_v13 = vpop.xlane.xlu1 %1399 }
 0x3fe   : > { %4853 = vpow2.f32 %v1451_v36  ;;  %v1419_v62 = vsub.f32 %v5864_v21, %v1400_v13  ;;  %v1445_v21 = vmul.f32 1.442695, %v1418_v43  ;;  %v6040_v43 = vsel %vm5717_vm8, %v5904_v53, -1e+30 }
 0x400   : > { %v1447_v49 = vmul.f32 1.442695, %v1419_v62 }
 0x401   : > { %v1402_v58 = vpop.xlane.xlu1 %1401 }
 0x402   : > { %4855 = vpow2.f32 %v1447_v49  ;;  %v1420_v36 = vsub.f32 %v5877_v27, %v1402_v58  ;;  %v6026_v49 = vsel %vm5698_vm5, %v5906_v26, -1e+30  ;;  %v6034_v58 = vsel %vm5706_vm7, %v5910_v52, -1e+30 }
 0x404   : > { %v1449_v28 = vmul.f32 1.442695, %v1420_v36 }
 0x405   : > { %v1406_v13 = vpop.xlane.xlu1 %1405 }
 0x408   : > { %v5967_v45 = vpop.eup %4853  ;;  %v1390_v22 = vpop.xlane.xlu0 %1389 }
 0x409   : > { %v1414_v42 = vsub.f32 %v5901_v37, %v1390_v22  ;;  %1483 = vadd.xlane.f32.xlu0 %v5967_v45  ;;  %v1422_v37 = vsub.f32 %v5889_v41, %v1406_v13  ;;  %v6046_v13 = vsel %vm5735_vm10, %v5908_v59, -1e+30  ;;  %v6056_v59 = vsel %vm5763_vm14, %v5914_v32, -1e+30 }
 0x40b   : > { %v1437_v39 = vmul.f32 1.442695, %v1414_v42  ;;  %v1453_v62 = vmul.f32 1.442695, %v1422_v37 }
 0x40c   : > { %v5972_v44 = vpop.eup %4855 }
 0x40d   : > { %4857 = vpow2.f32 %v1437_v39  ;;  %1479 = vadd.xlane.f32.xlu0 %v5972_v44 }
 0x40e   : > { %4859 = vpow2.f32 %v1441_v8 }
 0x40f   : > { %4861 = vpow2.f32 %v1445_v21 }
 0x410   : > { %4863 = vpow2.f32 %v1449_v28 }
 0x411   : > { %4865 = vpow2.f32 %v1453_v62 }
 0x417   : > { %v5978_v35 = vpop.eup %4857 }
 0x418   : > { %1469 = vadd.xlane.f32.xlu1 %v5978_v35  ;;  %v5981_v9 = vpop.eup %4859 }
 0x419   : > { %v5984_v14 = vpop.eup %4861 }
 0x41a   : > { %v5987_v27 = vpop.eup %4863 }
 0x41b   : > { %v5992_v41 = vpop.eup %4865 }
 0x41c   : > { %1473 = vadd.xlane.f32.xlu1 %v5981_v9 }
 0x420   : > { %1477 = vadd.xlane.f32.xlu1 %v5984_v14 }
 0x423   : > { %2452 = vrot.lane.b32.xlu0 %v5469_v56, %s5101_s15 }
 0x424   : > { %1481 = vadd.xlane.f32.xlu1 %v5987_v27 }
 0x427   : > { %2458 = vrot.lane.b32.xlu0 %v5550_v46, %s5101_s15 }
 0x428   : > { %1485 = vadd.xlane.f32.xlu1 %v5992_v41 }
 0x42b   : > { %2462 = vrot.lane.b32.xlu0 %v5599_v30, %s5101_s15 }
 0x42f   : > { %2466 = vrot.lane.b32.xlu0 %v5631_v17, %s5101_s15 }
 0x433   : > { %2438 = vrot.lane.b32.xlu0 %v5500_v55, %s5101_s15 }
 0x437   : > { %2442 = vrot.lane.b32.xlu0 %v5553_v40, %s5101_s15 }
 0x439   : > { %2454 = vrot.lane.b32.xlu1 %v5497_v11, %s5101_s15 }
 0x43b   : > { %2446 = vrot.lane.b32.xlu0 %v5601_v19, %s5101_s15 }
 0x43d   : > { %2456 = vrot.lane.b32.xlu1 %v5523_v48, %s5101_s15 }
 0x441   : > { %2460 = vrot.lane.b32.xlu1 %v5578_v5, %s5101_s15 }
 0x445   : > { %2464 = vrot.lane.b32.xlu1 %v5615_v1, %s5101_s15 }
 0x449   : > { %2436 = vrot.lane.b32.xlu1 %v5471_v18, %s5101_s15 }
 0x44d   : > { %2440 = vrot.lane.b32.xlu1 %v5526_v24, %s5101_s15 }
 0x451   : > { %2444 = vrot.lane.b32.xlu1 %v5581_v6, %s5101_s15 }
 0x455   : > { %2448 = vrot.lane.b32.xlu1 %v5617_v50, %s5101_s15 }
 0x45a   : > { %1994 = vmax.xlane.f32.xlu0 %v6026_v49 }
 0x470   : > { %2450 = vrot.lane.b32.xlu0 %v5633_v4, %s5101_s15  ;;  %v1458_v22 = vpop.xlane.xlu1 %1457 }
 0x472   : > { %v1460_v20 = vpop.xlane.xlu0 %1459 }
 0x473   : > { %4867 = vrcp.f32 %v1460_v20 }
 0x474   : > { %4869 = vrcp.f32 %v1458_v22 }
 0x476   : > { %v1462_v42 = vpop.xlane.xlu1 %1461  ;;  %v1456_v39 = vpop.xlane.xlu0 %1455 }
 0x477   : > { %4871 = vrcp.f32 %v1462_v42 }
 0x478   : > { %4873 = vrcp.f32 %v1456_v39 }
 0x479   : > { %1996 = vmax.xlane.f32.xlu1 %v6034_v58 }
 0x47a   : > { %v1468_v26 = vpop.xlane.xlu0 %1467 }
 0x47d   : > { %1998 = vmax.xlane.f32.xlu1 %v6040_v43  ;;  %v4868_v21 = vpop.eup %4867 }
 0x47e   : > { %v1464_v8 = vpop.xlane.xlu0 %1463  ;;  %v4870_v36 = vpop.eup %4869  ;;  %v1505_v37 = vmul.f32 %v4868_v21, %v5938_v3  ;;  %v6062_v3 = vsel %vm5776_vm1, %v5918_v33, -1e+30 }
 0x47f   : > { %4875 = vrcp.f32 %v1464_v8  ;;  %v1504_v20 = vmul.f32 %v4870_v36, %v5934_v61  ;;  %v6068_v61 = vsel %vm5893_vm13, %v5916_v51, -1e+30  ;;  %v6074_v8 = vsel %vm5750_vm12, %v5912_v38, -1e+30 }
 0x480   : > { %v6082_v51 = vsel %vm5804_vm9, %v5922_v60, -1e+30 }
 0x481   : > { %v4872_v52 = vpop.eup %4871  ;;  %2000 = vmax.xlane.f32.xlu1 %v6046_v13 }
 0x482   : > { %v4874_v28 = vpop.eup %4873  ;;  %v1506_v53 = vmul.f32 %v4872_v52, %v5944_v31  ;;  %v1466_v62 = vpop.xlane.xlu1 %1465 }
 0x483   : > { %4877 = vrcp.f32 %v1466_v62  ;;  %v1503_v22 = vmul.f32 %v4874_v28, %v5942_v25  ;;  %v6896_v28 = vld [vmem:[#allocation23_spill] sm:$0xff] }
 0x484   : > { %v1520_v42 = vpack.c.bf16 %v1506_v53, %v1505_v37  ;;  %v6088_v38 = vsel %vm5830_vm3, %v6896_v28, -1e+30  ;;  %4879 = vrcp.f32 %v1468_v26  ;;  %v6904_v28 = vld [vmem:[#allocation17_spill] sm:$0xff] }
 0x485   : > { %2002 = vmax.xlane.f32.xlu1 %v6056_v59  ;;  %v1519_v39 = vpack.c.bf16 %v1504_v20, %v1503_v22  ;;  %v6900_v22 = vld [vmem:[#allocation22_spill] sm:$0xff]  ;;  %vm6905_vm13 = vnez %v6904_v28  ;;  %v6908_v28 = vld [vmem:[#allocation16_spill] sm:$0xff] }
 0x486   : > { %v1476_v32 = vpop.xlane.xlu0 %1475  ;;  %v6901_v20 = vld [vmem:[#allocation14_spill] sm:$0xff] }
 0x487   : > { %4367 = vmatprep.mubr.bf16.mxu1 %v1519_v39  ;;  %vm6902_vm15 = vnez %v6901_v20 }
 0x488   : > { %4368 = vmatmul.mubr.bf16.vlgmr.msra.gmra.mrb[16].mxu1 %v1520_v42  ;;  %v6100_v42 = vsel %vm6902_vm15, %v6900_v22, -1e+30 }
 0x489   : > { %2004 = vmax.xlane.f32.xlu1 %v6062_v3  ;;  %v4876_v25 = vpop.eup %4875 }
 0x48a   : > { %v1507_v33 = vmul.f32 %v4876_v25, %v5953_v47  ;;  %v1472_v52 = vpop.xlane.xlu0 %1471 }
 0x48d   : > { %v4878_v31 = vpop.eup %4877  ;;  %2008 = vmax.xlane.f32.xlu1 %v6068_v61 }
 0x48e   : > { %v1508_v21 = vmul.f32 %v4878_v31, %v5956_v57  ;;  %v6898_v57 = vld [vmem:[#allocation21_spill] sm:$0xff]  ;;  %v4880_v20 = vpop.eup %4879 }
 0x48f   : > { %2006 = vmax.xlane.f32.xlu0 %v6074_v8  ;;  %v6094_v62 = vsel %vm5789_vm4, %v6898_v57, -1e+30 }
 0x490   : > { %v1521_v36 = vpack.c.bf16 %v1508_v21, %v1507_v33 }
 0x491   : > { %2010 = vmax.xlane.f32.xlu1 %v6082_v51 }
 0x492   : > { %4371 = vmatprep.mubr.bf16.mxu1 %v1521_v36 }
 0x495   : > { %2012 = vmax.xlane.f32.xlu1 %v6088_v38 }
 0x496   : > { %v1484_v47 = vpop.xlane.xlu0 %1483 }
 0x499   : > { %2014 = vmax.xlane.f32.xlu1 %v6094_v62 }
 0x49a   : > { %v1480_v60 = vpop.xlane.xlu0 %1479 }
 0x49d   : > { %2016 = vmax.xlane.f32.xlu1 %v6100_v42 }
 0x49e   : > { %v2453_v39 = vpop.permute.xlu0 %2452 }
 0x49f   : > { %4735 = vmatprep.subr.msk.bf16.mxu0 %vm6903_vm6, %v2453_v39  ;;  %v2493_v25 = vsel %vm6895_vm2, %v2453_v39, 0  ;;  %vm6909_vm6 = vnez %v6908_v28 }
 0x4a0   : > { %4488 = vmatpush3.bf16.xpose.msra.mxu0 %v2493_v25 }
 0x4a5   : > { %v1470_v31 = vpop.xlane.xlu1 %1469 }
 0x4a6   : > { %4881 = vrcp.f32 %v1470_v31 }
 0x4a7   : > { %4883 = vrcp.f32 %v1472_v52 }
 0x4a9   : > { %v1474_v33 = vpop.xlane.xlu1 %1473 }
 0x4aa   : > { %4885 = vrcp.f32 %v1474_v33  ;;  %v1509_v33 = vmul.f32 %v4880_v20, %v5949_v10 }
 0x4ab   : > { %v4433_v21 = vpop.f32.mrb[60].mxu0  ;;  %4887 = vrcp.f32 %v1476_v32 }
 0x4ac   : > { %v1963_v36 = vpop.f32.mrb[61].mxu0  ;;  %v6124_v37 = vsel %vm6909_vm6, %v4433_v21, -1e+30 }
 0x4ad   : > { %v6107_v57 = vsel %vm6905_vm13, %v1963_v36, -1e+30  ;;  %v4434_v22 = vpop.f32.mrb[62].mxu0  ;;  %v1478_v34 = vpop.xlane.xlu1 %1477 }
 0x4ae   : > { %4889 = vrcp.f32 %v1478_v34  ;;  %v1966_v53 = vpop.f32.mrb[63].mxu0  ;;  %2018 = vmax.xlane.f32.xlu1 %v6107_v57  ;;  %v6112_v39 = vsel %vm5882_vm0, %v4434_v22, -1e+30  ;;  %vm6910_vm0 = vmmov %vm6895_vm2 }
 0x4af   : > { %2024 = vmax.xlane.f32.xlu0 %v6112_v39  ;;  %4891 = vrcp.f32 %v1480_v60  ;;  %v6117_v25 = vsel %vm5869_vm11, %v1966_v53, -1e+30  ;;  %vm6911_vm6 = vmmov %vm6910_vm0 }
 0x4b0   : > { %v4882_v52 = vpop.eup %4881  ;;  %vm6921_vm11 = vmmov %vm6910_vm0 }
 0x4b1   : > { %v1482_v31 = vpop.xlane.xlu1 %1481  ;;  %v1510_v34 = vmul.f32 %v4882_v52, %v5978_v35  ;;  %v4884_v36 = vpop.eup %4883  ;;  %vm6924_vm13 = vmmov %vm6910_vm0 }
 0x4b2   : > { %4893 = vrcp.f32 %v1482_v31  ;;  %2020 = vmax.xlane.f32.xlu1 %v6117_v25  ;;  %v1511_v53 = vmul.f32 %v4884_v36, %v5963_v63  ;;  %vm6926_vm15 = vmmov %vm6910_vm0 }
 0x4b3   : > { %v1522_v26 = vpack.c.bf16 %v1510_v34, %v1509_v33  ;;  %4895 = vrcp.f32 %v1484_v47  ;;  %vm6927_vm4 = vmmov %vm6910_vm0 }
 0x4b4   : > { %v4886_v22 = vpop.eup %4885  ;;  %vm6929_vm3 = vmmov %vm6910_vm0 }
 0x4b5   : > { %v1486_v60 = vpop.xlane.xlu1 %1485  ;;  %4372 = vmatmul.mubr.bf16.gmra.mrb[20].mxu1 %v1522_v26  ;;  %v1512_v32 = vmul.f32 %v4886_v22, %v5981_v9  ;;  %v4888_v10 = vpop.eup %4887 }
 0x4b6   : > { %4897 = vrcp.f32 %v1486_v60  ;;  %2022 = vmax.xlane.f32.xlu1 %v6124_v37  ;;  %v1513_v47 = vmul.f32 %v4888_v10, %v5959_v23  ;;  %v4795_v10 = vld [vmem:[%s6787_s5] sm:$0xff]  }
 0x4b7   : > { %v1523_v35 = vpack.c.bf16 %v1512_v32, %v1511_v53  ;;  %4383 = vmatprep.subr.bf16.mxu1 %v4795_v10 }
 0x4b8   : > { %v4890_v20 = vpop.eup %4889  ;;  %4384 = vmatpush3.bf16.msra.mxu1 %v4795_v10 }
 0x4b9   : > { %v2455_v52 = vpop.permute.xlu1 %2454  ;;  %4375 = vmatprep.mubr.bf16.mxu1 %v1523_v35  ;;  %v1514_v31 = vmul.f32 %v4890_v20, %v5984_v14  ;;  %v4892_v21 = vpop.eup %4891  ;;  %v6913_v20 = vld [vmem:[#allocation6_spill] sm:$0xff] }
 0x4ba   : > { %4736 = vmatprep.subr.msk.bf16.mxu0 %vm6895_vm2, %v2455_v52  ;;  %v2496_v26 = vsel %vm6910_vm0, %v2455_v52, 0  ;;  %v1515_v34 = vmul.f32 %v4892_v21, %v5972_v44  ;;  %v2459_v44 = vpop.permute.xlu0 %2458  ;;  %vm6912_vm2 = vmmov %vm6910_vm0 }
 0x4bb   : > { %4490 = vmatpush3.bf16.xpose.msra.mxu0 %v2496_v26  ;;  %v1524_v63 = vpack.c.bf16 %v1514_v31, %v1513_v47  ;;  %v6915_v47 = vld [vmem:[#allocation8_spill] sm:$0xff]  ;;  %v2502_v21 = vsel %vm6910_vm0, %v2459_v44, 0  ;;  %v6917_v26 = vld [vmem:[#allocation3_spill] sm:$0xff] }
 0x4bc   : > { %v4894_v9 = vpop.eup %4893 }
 0x4bd   : > { %v2457_v33 = vpop.permute.xlu1 %2456  ;;  %4376 = vmatmul.mubr.bf16.gmra.mrb[24].mxu1 %v1524_v63  ;;  %v1516_v32 = vmul.f32 %v4894_v9, %v5987_v27  ;;  %v4896_v36 = vpop.eup %4895  ;;  %v6919_v63 = vld [vmem:[#allocation7_spill] sm:$0xff]  ;;  %v6920_v9 = vld [vmem:[#allocation5_spill] sm:$0xff] }
 0x4be   : > { %4737 = vmatprep.subr.msk.bf16.mxu0 %vm6911_vm6, %v2457_v33  ;;  %v1517_v60 = vmul.f32 %v4896_v36, %v5967_v45  ;;  %v2499_v35 = vsel %vm6910_vm0, %v2457_v33, 0  ;;  %v4796_v45 = vld [vmem:[%s6787_s5 + $0x8] sm:$0xff]   ;;  %vm6916_vm6 = vmmov %vm6910_vm0 }
 0x4bf   : > { %v1525_v23 = vpack.c.bf16 %v1516_v32, %v1515_v34  ;;  %4385 = vmatprep.subr.bf16.mxu1 %v4796_v45  ;;  %v2463_v34 = vpop.permute.xlu0 %2462  ;;  %v6922_v32 = vld [vmem:[#allocation10_spill] sm:$0xff] }
 0x4c0   : > { %v4898_v22 = vpop.eup %4897  ;;  %4386 = vmatpush3.bf16.msra.mxu1 %v4796_v45  ;;  %v2508_v36 = vsel %vm6910_vm0, %v2463_v34, 0 }
 0x4c1   : > { %v2461_v14 = vpop.permute.xlu1 %2460  ;;  %4379 = vmatprep.mubr.bf16.mxu1 %v1525_v23  ;;  %v1518_v53 = vmul.f32 %v4898_v22, %v5992_v41  ;;  %v6914_v41 = vld [vmem:[#allocation4_spill] sm:$0xff] }
 0x4c2   : > { %v2505_v33 = vsel %vm6921_vm11, %v2461_v14, 0  ;;  %vm6928_vm11 = vmmov %vm6910_vm0 }
 0x4c3   : > { %4492 = vmatpush3.bf16.xpose.msra.mxu0 %v2499_v35  ;;  %v1526_v27 = vpack.c.bf16 %v1518_v53, %v1517_v60  ;;  %v2467_v22 = vpop.permute.xlu0 %2466 }
 0x4c4   : > { %4738 = vmatprep.subr.msk.bf16.mxu0 %vm6912_vm2, %v2459_v44  ;;  %vm6918_vm2 = vmmov %vm6910_vm0 }
 0x4c5   : > { %2158 = vrot.lane.b32.xlu0 %v6913_v20, %s5100_s11  ;;  %v2465_v52 = vpop.permute.xlu1 %2464  ;;  %4380 = vmatmul.mubr.bf16.gmra.mrb[28].mxu1 %v1526_v27 }
 0x4c7   : > { %2154 = vrot.lane.b32.xlu1 %v6914_v41, %s5100_s11  ;;  %v2439_v60 = vpop.permute.xlu0 %2438 }
 0x4c9   : > { %2162 = vrot.lane.b32.xlu0 %v6915_v47, %s5100_s11  ;;  %v2437_v31 = vpop.permute.xlu1 %2436 }
 0x4ca   : > { %4503 = vmatprep.mubr.msk.bf16.mxu0 %vm6916_vm6, %v2437_v31  ;;  %vm6923_vm6 = vmmov %vm6910_vm0 }
 0x4cb   : > { %2156 = vrot.lane.b32.xlu1 %v6917_v26, %s5100_s11  ;;  %4494 = vmatpush3.bf16.xpose.msra.mxu0 %v2502_v21  ;;  %v2443_v10 = vpop.permute.xlu0 %2442 }
 0x4cc   : > { %4739 = vmatprep.subr.msk.bf16.mxu0 %vm6918_vm2, %v2461_v14  ;;  %vm6925_vm2 = vmmov %vm6910_vm0  ;;  %v2514_v14 = vsel %vm6927_vm4, %v2467_v22, 0 }
 0x4cd   : > { %2164 = vrot.lane.b32.xlu0 %v6919_v63, %s5100_s11  ;;  %v2511_v23 = vsel %vm6925_vm2, %v2465_v52, 0  ;;  %v2441_v53 = vpop.permute.xlu1 %2440  ;;  %vm6933_vm4 = vmmov %vm6910_vm0 }
 0x4ce   : > { %vm6935_vm2 = vmmov %vm6910_vm0 }
 0x4cf   : > { %2160 = vrot.lane.b32.xlu1 %v6920_v9, %s5100_s11  ;;  %v2447_v44 = vpop.permute.xlu0 %2446 }
 0x4d1   : > { %v2445_v35 = vpop.permute.xlu1 %2444 }
 0x4d3   : > { %2166 = vrot.lane.b32.xlu1 %v6922_v32, %s5100_s11  ;;  %4496 = vmatpush3.bf16.xpose.msra.mxu0 %v2505_v33 }
 0x4d4   : > { %4740 = vmatprep.subr.msk.bf16.mxu0 %vm6923_vm6, %v2463_v34  ;;  %vm6930_vm6 = vmmov %vm6910_vm0 }
 0x4d5   : > { %v2449_v27 = vpop.permute.xlu1 %2448 }
 0x4db   : > { %4498 = vmatpush3.bf16.xpose.msra.mxu0 %v2508_v36 }
 0x4dc   : > { %4741 = vmatprep.subr.msk.bf16.mxu0 %vm6924_vm13, %v2465_v52  ;;  %vm6931_vm13 = vmmov %vm6910_vm0 }
 0x4e3   : > { %4500 = vmatpush3.bf16.xpose.msra.mxu0 %v2511_v23 }
 0x4e4   : > { %4742 = vmatprep.subr.msk.bf16.mxu0 %vm6926_vm15, %v2467_v22  ;;  %vm6932_vm15 = vmmov %vm6910_vm0 }
 0x4e7   : > { %v1995_v52 = vpop.xlane.xlu0 %1994 }
 0x4e8   : > { %v2026_v33 = vsub.f32 %v6026_v49, %v1995_v52 }
 0x4ea   : > { %v2042_v22 = vmul.f32 1.442695, %v2026_v33 }
 0x4eb   : > { %4502 = vmatpush3.bf16.xpose.msra.mxu0 %v2514_v14  ;;  %v2451_v31 = vpop.permute.xlu0 %2450 }
 0x4f2   : > { %4504 = vmatmul.mubr.msk.bf16.vlgmr.msra.gmra.mrb[64].mxu0 %vm6928_vm11, %v2439_v60  ;;  %vm6937_vm11 = vmmov %vm6910_vm0 }
 0x4f3   : > { %4507 = vmatprep.mubr.msk.bf16.mxu0 %vm6929_vm3, %v2441_v53  ;;  %vm6934_vm3 = vmmov %vm6910_vm0 }
 0x4fa   : > { %4508 = vmatmul.mubr.msk.bf16.gmra.mrb[68].mxu0 %vm6930_vm6, %v2443_v10  ;;  %vm6938_vm6 = vmmov %vm6910_vm0 }
 0x4fb   : > { %4511 = vmatprep.mubr.msk.bf16.mxu0 %vm6931_vm13, %v2445_v35  ;;  %vm6939_vm13 = vmmov %vm6910_vm0 }
 0x502   : > { %4512 = vmatmul.mubr.msk.bf16.gmra.mrb[72].mxu0 %vm6910_vm0, %v2447_v44 }
 0x503   : > { %4515 = vmatprep.mubr.msk.bf16.mxu0 %vm6932_vm15, %v2449_v27  ;;  %vm6940_vm15 = vmmov %vm6910_vm0 }
 0x506   : > { %v1997_v45 = vpop.xlane.xlu1 %1996 }
 0x507   : > { %v2027_v53 = vsub.f32 %v6034_v58, %v1997_v45 }
 0x509   : > { %v2044_v44 = vmul.f32 1.442695, %v2027_v53 }
 0x50a   : > { %v1999_v21 = vpop.xlane.xlu1 %1998  ;;  %4516 = vmatmul.mubr.msk.bf16.gmra.mrb[76].mxu0 %vm6933_vm4, %v2451_v31  ;;  %vm6941_vm4 = vmmov %vm6910_vm0 }
 0x50b   : > { %v2028_v34 = vsub.f32 %v6040_v43, %v1999_v21 }
 0x50d   : > { %v2046_v36 = vmul.f32 1.442695, %v2028_v34 }
 0x50e   : > { %v2001_v23 = vpop.xlane.xlu1 %2000 }
 0x50f   : > { %4899 = vpow2.f32 %v2046_v36  ;;  %v2029_v14 = vsub.f32 %v6046_v13, %v2001_v23 }
 0x510   : > { %4901 = vpow2.f32 %v2042_v22 }
 0x511   : > { %v2048_v10 = vmul.f32 1.442695, %v2029_v14 }
 0x512   : > { %v2003_v60 = vpop.xlane.xlu1 %2002 }
 0x513   : > { %4903 = vpow2.f32 %v2048_v10  ;;  %v2030_v13 = vsub.f32 %v6056_v59, %v2003_v60 }
 0x514   : > { %4905 = vpow2.f32 %v2044_v44 }
 0x515   : > { %v2050_v34 = vmul.f32 1.442695, %v2030_v13 }
 0x516   : > { %v2005_v35 = vpop.xlane.xlu1 %2004 }
 0x517   : > { %v2031_v27 = vsub.f32 %v6062_v3, %v2005_v35 }
 0x519   : > { %v6182_v31 = vpop.eup %4899  ;;  %v2052_v43 = vmul.f32 1.442695, %v2031_v27 }
 0x51a   : > { %2078 = vadd.xlane.f32.xlu0 %v6182_v31  ;;  %v2009_v49 = vpop.xlane.xlu1 %2008  ;;  %v6185_v21 = vpop.eup %4901 }
 0x51b   : > { %4907 = vpow2.f32 %v2052_v43  ;;  %v2033_v36 = vsub.f32 %v6068_v61, %v2009_v49 }
 0x51c   : > { %v2007_v52 = vpop.xlane.xlu0 %2006 }
 0x51d   : > { %v2032_v58 = vsub.f32 %v6074_v8, %v2007_v52  ;;  %v6190_v3 = vpop.eup %4903  ;;  %v2056_v59 = vmul.f32 1.442695, %v2033_v36 }
 0x51e   : > { %v2011_v45 = vpop.xlane.xlu1 %2010  ;;  %2074 = vadd.xlane.f32.xlu0 %v6185_v21  ;;  %v6195_v14 = vpop.eup %4905 }
 0x51f   : > { %v2054_v33 = vmul.f32 1.442695, %v2032_v58  ;;  %v2034_v61 = vsub.f32 %v6082_v51, %v2011_v45 }
 0x521   : > { %4909 = vpow2.f32 %v2054_v33  ;;  %v2058_v27 = vmul.f32 1.442695, %v2034_v61 }
 0x522   : > { %v2013_v23 = vpop.xlane.xlu1 %2012  ;;  %2080 = vadd.xlane.f32.xlu0 %v6190_v3  ;;  %4911 = vpow2.f32 %v2050_v34 }
 0x523   : > { %v2035_v22 = vsub.f32 %v6088_v38, %v2013_v23 }
 0x525   : > { %v2060_v8 = vmul.f32 1.442695, %v2035_v22  ;;  %v6199_v10 = vpop.eup %4907 }
 0x526   : > { %v2015_v60 = vpop.xlane.xlu1 %2014  ;;  %2076 = vadd.xlane.f32.xlu0 %v6195_v14 }
 0x527   : > { %4913 = vpow2.f32 %v2060_v8  ;;  %v2036_v53 = vsub.f32 %v6094_v62, %v2015_v60 }
 0x528   : > { %4915 = vpow2.f32 %v2056_v59 }
 0x529   : > { %v2062_v35 = vmul.f32 1.442695, %v2036_v53 }
 0x52a   : > { %v2017_v44 = vpop.xlane.xlu1 %2016  ;;  %2084 = vadd.xlane.f32.xlu0 %v6199_v10 }
 0x52b   : > { %v6203_v38 = vpop.eup %4909  ;;  %4917 = vpow2.f32 %v2062_v35  ;;  %v2037_v49 = vsub.f32 %v6100_v42, %v2017_v44 }
 0x52c   : > { %2086 = vadd.xlane.f32.xlu1 %v6203_v38  ;;  %v6207_v43 = vpop.eup %4911  ;;  %4919 = vpow2.f32 %v2058_v27 }
 0x52d   : > { %v2064_v51 = vmul.f32 1.442695, %v2037_v49 }
 0x52f   : > { %4921 = vpow2.f32 %v2064_v51 }
 0x530   : > { %2082 = vadd.xlane.f32.xlu1 %v6207_v43 }
 0x531   : > { %v6210_v62 = vpop.eup %4913 }
 0x532   : > { %2092 = vadd.xlane.f32.xlu0 %v6210_v62  ;;  %v6213_v52 = vpop.eup %4915 }
 0x534   : > { %2088 = vadd.xlane.f32.xlu1 %v6213_v52 }
 0x535   : > { %v6216_v13 = vpop.eup %4917 }
 0x536   : > { %v6219_v42 = vpop.eup %4919 }
 0x538   : > { %2094 = vadd.xlane.f32.xlu1 %v6216_v13 }
 0x539   : > { %v6224_v23 = vpop.eup %4921 }
 0x53b   : > { %v2019_v58 = vpop.xlane.xlu1 %2018 }
 0x53c   : > { %v2038_v45 = vsub.f32 %v6107_v57, %v2019_v58  ;;  %2090 = vadd.xlane.f32.xlu1 %v6219_v42  ;;  %v2025_v33 = vpop.xlane.xlu0 %2024 }
 0x53d   : > { %v2041_v34 = vsub.f32 %v6112_v39, %v2025_v33 }
 0x53e   : > { %v2066_v36 = vmul.f32 1.442695, %v2038_v45 }
 0x53f   : > { %v2021_v22 = vpop.xlane.xlu1 %2020  ;;  %v2072_v59 = vmul.f32 1.442695, %v2041_v34 }
 0x540   : > { %4923 = vpow2.f32 %v2066_v36  ;;  %2096 = vadd.xlane.f32.xlu1 %v6224_v23  ;;  %v2039_v60 = vsub.f32 %v6117_v25, %v2021_v22  ;;  %v2159_v36 = vpop.permute.xlu0 %2158 }
 0x541   : > { %4925 = vpow2.f32 %v2072_v59  ;;  %v6936_v59 = vld [vmem:[#allocation9_spill] sm:$0xff] }
 0x542   : > { %v2068_v35 = vmul.f32 1.442695, %v2039_v60 }
 0x543   : > { %v2023_v8 = vpop.xlane.xlu1 %2022 }
 0x544   : > { %v2040_v53 = vsub.f32 %v6124_v37, %v2023_v8 }
 0x546   : > { %v2070_v57 = vmul.f32 1.442695, %v2040_v53 }
 0x547   : > { %v2155_v61 = vpop.permute.xlu1 %2154 }
 0x548   : > { %4927 = vpow2.f32 %v2070_v57  ;;  %4435 = vmatprep.subr.bf16.mxu1 %v2155_v61 }
 0x549   : > { %4929 = vpow2.f32 %v2068_v35 }
 0x54a   : > { %v6229_v39 = vpop.eup %4923 }
 0x54b   : > { %2098 = vadd.xlane.f32.xlu1 %v6229_v39  ;;  %v6232_v44 = vpop.eup %4925  ;;  %v2157_v34 = vpop.permute.xlu1 %2156 }
 0x54f   : > { %2104 = vadd.xlane.f32.xlu1 %v6232_v44  ;;  %v2161_v22 = vpop.permute.xlu1 %2160 }
 0x552   : > { %v6235_v27 = vpop.eup %4927 }
 0x553   : > { %2102 = vadd.xlane.f32.xlu0 %v6235_v27  ;;  %v6238_v25 = vpop.eup %4929 }
 0x557   : > { %2100 = vadd.xlane.f32.xlu0 %v6238_v25 }
 0x55b   : > { %v4369_v37 = vpop.f32.mrb[16].mxu1 }
 0x55c   : > { %v1561_v49 = vpop.f32.mrb[17].mxu1 }
 0x55d   : > { %v4370_v51 = vpop.f32.mrb[18].mxu1 }
 0x55e   : > { %v1625_v58 = vpack.c.bf16 %v4370_v51, %v4369_v37  ;;  %v1564_v45 = vpop.f32.mrb[19].mxu1 }
 0x55f   : > { %v1624_v33 = vpack.c.bf16 %v1564_v45, %v1561_v49 }
 0x560   : > { %3079 = vrot.lane.b32.xlu1 %v5469_v56, %s5102_s20  ;;  %v2163_v56 = vpop.permute.xlu0 %2162 }
 0x561   : > { %4387 = vmatprep.mubr.msk.bf16.mxu1 %vm6934_vm3, %v1624_v33  ;;  %vm6942_vm3 = vmmov %vm6910_vm0 }
 0x562   : > { %4388 = vmatmul.mubr.msk.bf16.vlgmr.msra.gmra.mrb[32].mxu1 %vm6935_vm2, %v1625_v58  ;;  %vm6943_vm2 = vmmov %vm6910_vm0 }
 0x563   : > { %4436 = vmatpush3.bf16.msra.mxu1 %v2155_v61 }
 0x564   : > { %4437 = vmatprep.subr.bf16.mxu1 %v2157_v34  ;;  %3081 = vrot.lane.b32.xlu1 %v5497_v11, %s5102_s20  ;;  %v2165_v11 = vpop.permute.xlu0 %2164 }
 0x567   : > { %4438 = vmatpush3.bf16.msra.mxu1 %v2157_v34 }
 0x568   : > { %4439 = vmatprep.subr.bf16.mxu1 %v2159_v36  ;;  %3085 = vrot.lane.b32.xlu1 %v5550_v46, %s5102_s20  ;;  %v2167_v46 = vpop.permute.xlu1 %2166 }
 0x56b   : > { %4440 = vmatpush3.bf16.msra.mxu1 %v2159_v36 }
 0x56c   : > { %4441 = vmatprep.subr.bf16.mxu1 %v2161_v22  ;;  %3089 = vrot.lane.b32.xlu1 %v5599_v30, %s5102_s20 }
 0x56d   : > { %2168 = vrot.lane.b32.xlu0 %v6936_v59, %s5100_s11 }
 0x56f   : > { %4442 = vmatpush3.bf16.msra.mxu1 %v2161_v22 }
 0x570   : > { %4443 = vmatprep.subr.bf16.mxu1 %v2163_v56  ;;  %3093 = vrot.lane.b32.xlu1 %v5631_v17, %s5102_s20 }
 0x571   : > { %3083 = vrot.lane.b32.xlu0 %v5523_v48, %s5102_s20 }
 0x573   : > { %4444 = vmatpush3.bf16.msra.mxu1 %v2163_v56 }
 0x574   : > { %4445 = vmatprep.subr.bf16.mxu1 %v2165_v11  ;;  %3065 = vrot.lane.b32.xlu1 %v5500_v55, %s5102_s20 }
 0x575   : > { %3087 = vrot.lane.b32.xlu0 %v5578_v5, %s5102_s20 }
 0x577   : > { %4446 = vmatpush3.bf16.msra.mxu1 %v2165_v11 }
 0x578   : > { %4447 = vmatprep.subr.bf16.mxu1 %v2167_v46  ;;  %3069 = vrot.lane.b32.xlu1 %v5553_v40, %s5102_s20 }
 0x579   : > { %3091 = vrot.lane.b32.xlu0 %v5615_v1, %s5102_s20 }
 0x57b   : > { %4448 = vmatpush3.bf16.msra.mxu1 %v2167_v46 }
 0x57c   : > { %3073 = vrot.lane.b32.xlu1 %v5601_v19, %s5102_s20 }
 0x57d   : > { %3063 = vrot.lane.b32.xlu0 %v5471_v18, %s5102_s20 }
 0x581   : > { %3067 = vrot.lane.b32.xlu0 %v5526_v24, %s5102_s20 }
 0x585   : > { %3071 = vrot.lane.b32.xlu0 %v5581_v6, %s5102_s20 }
 0x588   : > { %v4373_v55 = vpop.f32.mrb[20].mxu1 }
 0x589   : > { %v1577_v48 = vpop.f32.mrb[21].mxu1  ;;  %3075 = vrot.lane.b32.xlu0 %v5617_v50, %s5102_s20 }
 0x58a   : > { %v4374_v40 = vpop.f32.mrb[22].mxu1 }
 0x58b   : > { %v1627_v5 = vpack.c.bf16 %v4374_v40, %v4373_v55  ;;  %v1580_v30 = vpop.f32.mrb[23].mxu1 }
 0x58c   : > { %v1626_v1 = vpack.c.bf16 %v1580_v30, %v1577_v48 }
 0x58e   : > { %4391 = vmatprep.mubr.msk.bf16.mxu1 %vm6937_vm11, %v1626_v1 }
 0x58f   : > { %4392 = vmatmul.mubr.msk.bf16.gmra.mrb[36].mxu1 %vm6938_vm6, %v1627_v5  ;;  %vm6946_vm6 = vmmov %vm6910_vm0 }
 0x590   : > { %v4377_v18 = vpop.f32.mrb[24].mxu1 }
 0x591   : > { %v1593_v19 = vpop.f32.mrb[25].mxu1 }
 0x592   : > { %v4378_v17 = vpop.f32.mrb[26].mxu1 }
 0x593   : > { %v1629_v24 = vpack.c.bf16 %v4378_v17, %v4377_v18  ;;  %v1596_v8 = vpop.f32.mrb[27].mxu1 }
 0x594   : > { %v1628_v60 = vpack.c.bf16 %v1596_v8, %v1593_v19 }
 0x596   : > { %4395 = vmatprep.mubr.msk.bf16.mxu1 %vm6939_vm13, %v1628_v60 }
 0x597   : > { %4396 = vmatmul.mubr.msk.bf16.gmra.mrb[40].mxu1 %vm6910_vm0, %v1629_v24 }
 0x598   : > { %v4381_v6 = vpop.f32.mrb[28].mxu1 }
 0x599   : > { %v1609_v50 = vpop.f32.mrb[29].mxu1 }
 0x59a   : > { %v4382_v53 = vpop.f32.mrb[30].mxu1 }
 0x59b   : > { %v1631_v57 = vpack.c.bf16 %v4382_v53, %v4381_v6  ;;  %v1612_v61 = vpop.f32.mrb[31].mxu1 }
 0x59c   : > { %v1630_v35 = vpack.c.bf16 %v1612_v61, %v1609_v50 }
 0x59e   : > { %4399 = vmatprep.mubr.msk.bf16.mxu1 %vm6940_vm15, %v1630_v35 }
 0x59f   : > { %4400 = vmatmul.mubr.msk.bf16.gmra.mrb[44].mxu1 %vm6941_vm4, %v1631_v57  ;;  %vm6951_vm4 = vmmov %vm6910_vm0 }
 0x5a7   : > { %v2079_v37 = vpop.xlane.xlu0 %2078 }
 0x5ab   : > { %v2075_v49 = vpop.xlane.xlu0 %2074 }
 0x5ac   : > { %4931 = vrcp.f32 %v2075_v49 }
 0x5af   : > { %v2081_v51 = vpop.xlane.xlu0 %2080 }
 0x5b3   : > { %v2077_v58 = vpop.xlane.xlu0 %2076 }
 0x5b4   : > { %4933 = vrcp.f32 %v2077_v58 }
 0x5b5   : > { %4935 = vrcp.f32 %v2081_v51 }
 0x5b6   : > { %v4932_v33 = vpop.eup %4931 }
 0x5b7   : > { %v2122_v22 = vmul.f32 %v4932_v33, %v6185_v21  ;;  %v2085_v33 = vpop.xlane.xlu0 %2084 }
 0x5b9   : > { %v6281_v45 = vpop.xlane.xlu1 %2086 }
 0x5bd   : > { %v2083_v34 = vpop.xlane.xlu1 %2082 }
 0x5be   : > { %v4934_v36 = vpop.eup %4933  ;;  %4937 = vrcp.f32 %v2083_v34 }
 0x5bf   : > { %v2123_v56 = vmul.f32 %v4934_v36, %v6195_v14  ;;  %4939 = vrcp.f32 %v2079_v37 }
 0x5c0   : > { %4941 = vrcp.f32 %v2085_v33 }
 0x5c1   : > { %v2138_v11 = vpack.c.bf16 %v2123_v56, %v2122_v22  ;;  %v2089_v46 = vpop.xlane.xlu1 %2088  ;;  %v2093_v56 = vpop.xlane.xlu0 %2092 }
 0x5c2   : > { %4943 = vrcp.f32 %v2089_v46 }
 0x5c3   : > { %4451 = vmatprep.mubr.bf16.mxu1 %v2138_v11 }
 0x5c5   : > { %v4505_v55 = vpop.f32.mrb[64].mxu0  ;;  %v6289_v30 = vpop.xlane.xlu1 %2094 }
 0x5c6   : > { %v2550_v48 = vpop.f32.mrb[65].mxu0  ;;  %v6299_v14 = vsel %vm5717_vm8, %v4505_v55, -1e+30 }
 0x5c7   : > { %v6287_v40 = vsel %vm5698_vm5, %v2550_v48, -1e+30  ;;  %v4506_v5 = vpop.f32.mrb[66].mxu0 }
 0x5c8   : > { %v2553_v1 = vpop.f32.mrb[67].mxu0  ;;  %2629 = vmax.xlane.f32.xlu1 %v6287_v40  ;;  %v6304_v24 = vsel %vm5735_vm10, %v4506_v5, -1e+30 }
 0x5c9   : > { %v6294_v21 = vsel %vm5706_vm7, %v2553_v1, -1e+30  ;;  %v2091_v19 = vpop.xlane.xlu1 %2090 }
 0x5ca   : > { %2631 = vmax.xlane.f32.xlu0 %v6294_v21  ;;  %4945 = vrcp.f32 %v2091_v19 }
 0x5cb   : > { %4947 = vrcp.f32 %v6281_v45 }
 0x5cc   : > { %2633 = vmax.xlane.f32.xlu1 %v6299_v14  ;;  %4949 = vrcp.f32 %v2093_v56  ;;  %v6949_v56 = vld [vmem:[#allocation14_spill] sm:$0xff] }
 0x5cd   : > { %v4509_v18 = vpop.f32.mrb[68].mxu0  ;;  %v2097_v50 = vpop.xlane.xlu1 %2096  ;;  %vm6950_vm15 = vnez %v6949_v56 }
 0x5ce   : > { %v2566_v17 = vpop.f32.mrb[69].mxu0  ;;  %v6321_v36 = vsel %vm5750_vm12, %v4509_v18, -1e+30  ;;  %v6944_v18 = vld [vmem:[#allocation15_spill] sm:$0xff]  ;;  %4951 = vrcp.f32 %v2097_v50  ;;  %v6952_v50 = vld [vmem:[#allocation17_spill] sm:$0xff] }
 0x5cf   : > { %v6306_v8 = vpop.f32.mrb[70].mxu0  ;;  %v6311_v6 = vsel %vm5763_vm14, %v2566_v17, -1e+30  ;;  %vm6945_vm11 = vnez %v6944_v18 }
 0x5d0   : > { %v2569_v60 = vpop.f32.mrb[71].mxu0  ;;  %2635 = vmax.xlane.f32.xlu1 %v6304_v24 }
 0x5d1   : > { %v6316_v61 = vsel %vm5776_vm1, %v2569_v60, -1e+30 }
 0x5d4   : > { %2637 = vmax.xlane.f32.xlu1 %v6311_v6 }
 0x5d5   : > { %v4513_v53 = vpop.f32.mrb[72].mxu0 }
 0x5d6   : > { %v2582_v57 = vpop.f32.mrb[73].mxu0 }
 0x5d7   : > { %v4514_v35 = vpop.f32.mrb[74].mxu0  ;;  %v6330_v48 = vsel %vm5804_vm9, %v2582_v57, -1e+30 }
 0x5d8   : > { %v2585_v49 = vpop.f32.mrb[75].mxu0  ;;  %v2099_v58 = vpop.xlane.xlu1 %2098  ;;  %2639 = vmax.xlane.f32.xlu1 %v6316_v61 }
 0x5d9   : > { %v6341_v17 = vsel %vm6945_vm11, %v2585_v49, -1e+30 }
 0x5dc   : > { %2641 = vmax.xlane.f32.xlu1 %v6321_v36  ;;  %v6324_v22 = vpop.xlane.xlu1 %2104 }
 0x5dd   : > { %v6326_v11 = vpop.f32.mrb[76].mxu0 }
 0x5de   : > { %v2598_v55 = vpop.f32.mrb[77].mxu0 }
 0x5df   : > { %v6332_v51 = vpop.f32.mrb[78].mxu0 }
 0x5e0   : > { %3077 = vrot.lane.b32.xlu0 %v5633_v4, %s5102_s20  ;;  %v2601_v34 = vpop.f32.mrb[79].mxu0  ;;  %2645 = vmax.xlane.f32.xlu1 %v6330_v48  ;;  %v3080_v5 = vpop.permute.xlu1 %3079 }
 0x5e1   : > { %v3120_v37 = vsel %vm6942_vm3, %v3080_v5, 0  ;;  %v2103_v1 = vpop.xlane.xlu0 %2102  ;;  %4743 = vmatprep.subr.msk.bf16.mxu0 %vm6943_vm2, %v3080_v5  ;;  %v4936_v4 = vpop.eup %4935  ;;  %v6947_v5 = vld [vmem:[#allocation12_spill] sm:$0xff]  ;;  %vm6953_vm3 = vnez %v6952_v50  ;;  %vm6954_vm2 = vmmov %vm6910_vm0 }
 0x5e2   : > { %4572 = vmatpush3.bf16.xpose.msra.mxu0 %v3120_v37  ;;  %v4938_v33 = vpop.eup %4937  ;;  %vm6948_vm13 = vnez %v6947_v5  ;;  %v2125_v49 = vmul.f32 %v4936_v4, %v6190_v3  ;;  %v6357_v5 = vsel %vm6950_vm15, %v4514_v35, -1e+30  ;;  %v6365_v35 = vsel %vm6953_vm3, %v2598_v55, -1e+30  ;;  %vm6961_vm3 = vmmov %vm6910_vm0 }
 0x5e3   : > { %v4940_v12 = vpop.eup %4939  ;;  %v6348_v46 = vsel %vm6948_vm13, %v4513_v53, -1e+30  ;;  %v2126_v45 = vmul.f32 %v4938_v33, %v6207_v43  ;;  %vm6973_vm15 = vmmov %vm6910_vm0 }
 0x5e4   : > { %2647 = vmax.xlane.f32.xlu1 %v6341_v17  ;;  %v3082_v60 = vpop.permute.xlu1 %3081  ;;  %v4942_v37 = vpop.eup %4941  ;;  %v2124_v15 = vmul.f32 %v4940_v12, %v6182_v31  ;;  %vm6974_vm13 = vmmov %vm6910_vm0 }
 0x5e5   : > { %v2101_v57 = vpop.xlane.xlu0 %2100  ;;  %4744 = vmatprep.subr.msk.bf16.mxu0 %vm6946_vm6, %v3082_v60  ;;  %v3123_v19 = vsel %vm6910_vm0, %v3082_v60, 0  ;;  %v2127_v53 = vmul.f32 %v4942_v37, %v6199_v10  ;;  %v4944_v60 = vpop.eup %4943  ;;  %v6955_v37 = vld [vmem:[#allocation18_spill] sm:$0xff] }
 0x5e6   : > { %4953 = vrcp.f32 %v2101_v57  ;;  %v2139_v3 = vpack.c.bf16 %v2125_v49, %v2124_v15  ;;  %v4946_v12 = vpop.eup %4945  ;;  %v2129_v15 = vmul.f32 %v4944_v60, %v6213_v52  ;;  %vm6956_vm6 = vnez %v6955_v37 }
 0x5e7   : > { %4955 = vrcp.f32 %v6289_v30  ;;  %v2140_v4 = vpack.c.bf16 %v2127_v53, %v2126_v45  ;;  %v4948_v31 = vpop.eup %4947  ;;  %v2130_v57 = vmul.f32 %v4946_v12, %v6219_v42  ;;  %v6374_v49 = vsel %vm6956_vm6, %v2601_v34, -1e+30 }
 0x5e8   : > { %2649 = vmax.xlane.f32.xlu1 %v6348_v46  ;;  %4957 = vrcp.f32 %v2099_v58  ;;  %v4950_v10 = vpop.eup %4949  ;;  %v3086_v58 = vpop.permute.xlu1 %3085  ;;  %v2128_v33 = vmul.f32 %v4948_v31, %v6203_v38 }
 0x5e9   : > { %v2169_v18 = vpop.permute.xlu0 %2168  ;;  %4959 = vrcp.f32 %v2103_v1  ;;  %v2131_v55 = vmul.f32 %v4950_v10, %v6210_v62 }
 0x5ea   : > { %4449 = vmatprep.subr.bf16.mxu1 %v2169_v18  ;;  %4574 = vmatpush3.bf16.xpose.msra.mxu0 %v3123_v19  ;;  %v2141_v52 = vpack.c.bf16 %v2129_v15, %v2128_v33  ;;  %v4952_v19 = vpop.eup %4951  ;;  %4961 = vrcp.f32 %v6324_v22  ;;  %v4797_v33 = vld [vmem:[%s6787_s5 + $0x10] sm:$0xff]  }
 0x5eb   : > { %4450 = vmatpush3.bf16.msra.mxu1 %v2169_v18  ;;  %v2142_v45 = vpack.c.bf16 %v2131_v55, %v2130_v57  ;;  %v2133_v62 = vmul.f32 %v4952_v19, %v6224_v23 }
 0x5ec   : > { %2651 = vmax.xlane.f32.xlu1 %v6357_v5  ;;  %4467 = vmatprep.subr.bf16.mxu1 %v4797_v33 }
 0x5ed   : > { %v3084_v43 = vpop.permute.xlu0 %3083 }
 0x5ee   : > { %4452 = vmatmul.mubr.bf16.vlgmr.msra.gmra.mrb[48].mxu1 %v2139_v3  ;;  %4745 = vmatprep.subr.msk.bf16.mxu0 %vm6951_vm4, %v3084_v43  ;;  %v3126_v30 = vsel %vm6954_vm2, %v3084_v43, 0  ;;  %vm6957_vm4 = vnez %v6908_v28  ;;  %vm6958_vm2 = vmmov %vm6910_vm0 }
 0x5ef   : > { %4455 = vmatprep.mubr.bf16.mxu1 %v2140_v4  ;;  %v6383_v34 = vsel %vm6957_vm4, %v6326_v11, -1e+30  ;;  %v3129_v3 = vsel %vm6958_vm2, %v3086_v58, 0  ;;  %v6959_v4 = vld [vmem:[#allocation19_spill] sm:$0xff]  ;;  %vm6966_vm4 = vmmov %vm6910_vm0  ;;  %4468 = vmatpush3.bf16.msra.mxu1 %v4797_v33 }
 0x5f0   : > { %2653 = vmax.xlane.f32.xlu1 %v6365_v35  ;;  %v4954_v53 = vpop.eup %4953  ;;  %vm6960_vm6 = vnez %v6959_v4 }
 0x5f1   : > { %v3088_v18 = vpop.permute.xlu0 %3087  ;;  %v4956_v38 = vpop.eup %4955  ;;  %v2135_v22 = vmul.f32 %v4954_v53, %v6238_v25  ;;  %v6394_v11 = vsel %vm6960_vm6, %v6332_v51, -1e+30  ;;  %v6962_v25 = vld [vmem:[#allocation20_spill] sm:$0xff]  ;;  %vm6965_vm6 = vmmov %vm6910_vm0 }
 0x5f2   : > { %4576 = vmatpush3.bf16.xpose.msra.mxu0 %v3126_v30  ;;  %v4958_v1 = vpop.eup %4957  ;;  %v2132_v43 = vmul.f32 %v4956_v38, %v6216_v13  ;;  %vm6963_vm2 = vnez %v6962_v25 }
 0x5f3   : > { %4746 = vmatprep.subr.msk.bf16.mxu0 %vm6910_vm0, %v3086_v58  ;;  %v2134_v12 = vmul.f32 %v4958_v1, %v6229_v39  ;;  %v4960_v31 = vpop.eup %4959  ;;  %v6402_v15 = vsel %vm6963_vm2, %v6306_v8, -1e+30  ;;  %v3090_v39 = vpop.permute.xlu1 %3089 }
 0x5f4   : > { %2655 = vmax.xlane.f32.xlu1 %v6374_v49  ;;  %v2143_v23 = vpack.c.bf16 %v2133_v62, %v2132_v43  ;;  %v4962_v13 = vpop.eup %4961  ;;  %v2136_v51 = vmul.f32 %v4960_v31, %v6235_v27  ;;  %v3135_v8 = vsel %vm6965_vm6, %v3090_v39, 0  ;;  %vm6968_vm6 = vmmov %vm6910_vm0 }
 0x5f5   : > { %v3092_v42 = vpop.permute.xlu0 %3091  ;;  %v2144_v10 = vpack.c.bf16 %v2135_v22, %v2134_v12  ;;  %v2137_v57 = vmul.f32 %v4962_v13, %v6232_v44  ;;  %v4798_v44 = vld [vmem:[%s6787_s5 + $0x18] sm:$0xff]  }
 0x5f6   : > { %4456 = vmatmul.mubr.bf16.gmra.mrb[52].mxu1 %v2141_v52  ;;  %4469 = vmatprep.subr.bf16.mxu1 %v4798_v44 }
 0x5f7   : > { %4459 = vmatprep.mubr.bf16.mxu1 %v2142_v45  ;;  %v2145_v58 = vpack.c.bf16 %v2137_v57, %v2136_v51  ;;  %4470 = vmatpush3.bf16.msra.mxu1 %v4798_v44 }
 0x5f8   : > { %2657 = vmax.xlane.f32.xlu1 %v6383_v34 }
 0x5f9   : > { %v3064_v60 = vpop.permute.xlu0 %3063 }
 0x5fa   : > { %4587 = vmatprep.mubr.msk.bf16.mxu0 %vm6910_vm0, %v3064_v60  ;;  %4578 = vmatpush3.bf16.xpose.msra.mxu0 %v3129_v3 }
 0x5fb   : > { %4747 = vmatprep.subr.msk.bf16.mxu0 %vm6961_vm3, %v3088_v18  ;;  %vm6964_vm3 = vmmov %vm6910_vm0 }
 0x5fc   : > { %2659 = vmax.xlane.f32.xlu1 %v6394_v11  ;;  %v3132_v30 = vsel %vm6964_vm3, %v3088_v18, 0  ;;  %vm6967_vm3 = vmmov %vm6910_vm0  ;;  %v3094_v18 = vpop.permute.xlu1 %3093 }
 0x5fd   : > { %v3138_v27 = vsel %vm6967_vm3, %v3092_v42, 0  ;;  %v3068_v19 = vpop.permute.xlu0 %3067  ;;  %vm6970_vm3 = vmmov %vm6910_vm0 }
 0x5fe   : > { %4460 = vmatmul.mubr.bf16.gmra.mrb[56].mxu1 %v2143_v23 }
 0x5ff   : > { %4463 = vmatprep.mubr.bf16.mxu1 %v2144_v10  ;;  %2643 = vmax.xlane.f32.xlu0 %v6402_v15 }
 0x600   : > { %v3066_v52 = vpop.permute.xlu1 %3065 }
 0x601   : > { %v3072_v45 = vpop.permute.xlu0 %3071 }
 0x602   : > { %4580 = vmatpush3.bf16.xpose.msra.mxu0 %v3132_v30 }
 0x603   : > { %4748 = vmatprep.subr.msk.bf16.mxu0 %vm6910_vm0, %v3090_v39 }
 0x605   : > { %v3076_v38 = vpop.permute.xlu0 %3075 }
 0x606   : > { %4464 = vmatmul.mubr.bf16.gmra.mrb[60].mxu1 %v2145_v58 }
 0x60a   : > { %4582 = vmatpush3.bf16.xpose.msra.mxu0 %v3135_v8 }
 0x60b   : > { %4749 = vmatprep.subr.msk.bf16.mxu0 %vm6966_vm4, %v3092_v42  ;;  %vm6969_vm4 = vmmov %vm6910_vm0  ;;  %v3070_v42 = vpop.permute.xlu1 %3069 }
 0x60c   : > { %v3141_v55 = vsel %vm6969_vm4, %v3094_v18, 0  ;;  %vm6972_vm4 = vmmov %vm6910_vm0 }
 0x60d   : > { %2783 = vrot.lane.b32.xlu1 %v6917_v26, %s5101_s15 }
 0x60f   : > { %v3074_v53 = vpop.permute.xlu1 %3073 }
 0x611   : > { %2789 = vrot.lane.b32.xlu1 %v6915_v47, %s5101_s15 }
 0x612   : > { %4584 = vmatpush3.bf16.xpose.msra.mxu0 %v3138_v27 }
 0x613   : > { %4750 = vmatprep.subr.msk.bf16.mxu0 %vm6968_vm6, %v3094_v18  ;;  %vm6971_vm6 = vmmov %vm6910_vm0 }
 0x615   : > { %2781 = vrot.lane.b32.xlu0 %v6914_v41, %s5101_s15  ;;  %2791 = vrot.lane.b32.xlu1 %v6919_v63, %s5101_s15 }
 0x619   : > { %2785 = vrot.lane.b32.xlu0 %v6913_v20, %s5101_s15 }
 0x61a   : > { %4586 = vmatpush3.bf16.xpose.msra.mxu0 %v3141_v55 }
 0x61d   : > { %2787 = vrot.lane.b32.xlu0 %v6920_v9, %s5101_s15 }
 0x621   : > { %2793 = vrot.lane.b32.xlu0 %v6922_v32, %s5101_s15  ;;  %4588 = vmatmul.mubr.msk.bf16.vlgmr.msra.gmra.mrb[80].mxu0 %vm6910_vm0, %v3066_v52 }
 0x622   : > { %4591 = vmatprep.mubr.msk.bf16.mxu0 %vm6970_vm3, %v3068_v19  ;;  %vm6977_vm3 = vmmov %vm6910_vm0 }
 0x629   : > { %4592 = vmatmul.mubr.msk.bf16.gmra.mrb[84].mxu0 %vm6971_vm6, %v3070_v42  ;;  %vm6978_vm6 = vmmov %vm6910_vm0 }
 0x62a   : > { %4595 = vmatprep.mubr.msk.bf16.mxu0 %vm6972_vm4, %v3072_v45  ;;  %vm6979_vm4 = vmmov %vm6910_vm0 }
 0x631   : > { %4596 = vmatmul.mubr.msk.bf16.gmra.mrb[88].mxu0 %vm6973_vm15, %v3074_v53  ;;  %vm6976_vm15 = vmmov %vm6910_vm0 }
 0x632   : > { %4599 = vmatprep.mubr.msk.bf16.mxu0 %vm6974_vm13, %v3076_v38  ;;  %vm6975_vm13 = vmmov %vm6910_vm0 }
 0x655   : > { %v2630_v1 = vpop.xlane.xlu1 %2629 }
 0x656   : > { %v2661_v60 = vsub.f32 %v6287_v40, %v2630_v1 }
 0x657   : > { %v2632_v62 = vpop.xlane.xlu0 %2631 }
 0x658   : > { %v2677_v31 = vmul.f32 1.442695, %v2661_v60  ;;  %v2662_v51 = vsub.f32 %v6294_v21, %v2632_v62 }
 0x659   : > { %v2634_v3 = vpop.xlane.xlu1 %2633 }
 0x65a   : > { %v2663_v22 = vsub.f32 %v6299_v14, %v2634_v3  ;;  %v2679_v57 = vmul.f32 1.442695, %v2662_v51 }
 0x65b   : > { %v3078_v43 = vpop.permute.xlu0 %3077 }
 0x65c   : > { %v2681_v12 = vmul.f32 1.442695, %v2663_v22  ;;  %4600 = vmatmul.mubr.msk.bf16.gmra.mrb[92].mxu0 %vm6910_vm0, %v3078_v43 }
 0x65d   : > { %v2636_v23 = vpop.xlane.xlu1 %2635 }
 0x65e   : > { %4963 = vpow2.f32 %v2681_v12  ;;  %v2664_v10 = vsub.f32 %v6304_v24, %v2636_v23 }
 0x65f   : > { %4965 = vpow2.f32 %v2677_v31 }
 0x660   : > { %v2683_v30 = vmul.f32 1.442695, %v2664_v10 }
 0x661   : > { %v2638_v13 = vpop.xlane.xlu1 %2637 }
 0x662   : > { %4967 = vpow2.f32 %v2683_v30  ;;  %v2665_v33 = vsub.f32 %v6311_v6, %v2638_v13 }
 0x663   : > { %4969 = vpow2.f32 %v2679_v57 }
 0x664   : > { %v2685_v18 = vmul.f32 1.442695, %v2665_v33 }
 0x665   : > { %v2640_v39 = vpop.xlane.xlu1 %2639 }
 0x666   : > { %v2666_v40 = vsub.f32 %v6316_v61, %v2640_v39 }
 0x668   : > { %v6446_v14 = vpop.eup %4963  ;;  %v2687_v58 = vmul.f32 1.442695, %v2666_v40 }
 0x669   : > { %2713 = vadd.xlane.f32.xlu1 %v6446_v14  ;;  %v2642_v8 = vpop.xlane.xlu1 %2641  ;;  %v6451_v44 = vpop.eup %4965 }
 0x66a   : > { %v2667_v24 = vsub.f32 %v6321_v36, %v2642_v8  ;;  %4971 = vpow2.f32 %v2687_v58 }
 0x66c   : > { %v2689_v21 = vmul.f32 1.442695, %v2667_v24  ;;  %v6454_v61 = vpop.eup %4967 }
 0x66d   : > { %2709 = vadd.xlane.f32.xlu1 %v6451_v44  ;;  %v2646_v27 = vpop.xlane.xlu1 %2645  ;;  %v6458_v6 = vpop.eup %4969 }
 0x66e   : > { %4973 = vpow2.f32 %v2689_v21  ;;  %v2669_v30 = vsub.f32 %v6330_v48, %v2646_v27 }
 0x66f   : > { %4975 = vpow2.f32 %v2685_v18 }
 0x671   : > { %2715 = vadd.xlane.f32.xlu1 %v6454_v61  ;;  %v2648_v55 = vpop.xlane.xlu1 %2647 }
 0x672   : > { %v2670_v52 = vsub.f32 %v6341_v17, %v2648_v55 }
 0x674   : > { %v2695_v36 = vmul.f32 1.442695, %v2670_v52  ;;  %v6461_v42 = vpop.eup %4971 }
 0x675   : > { %v2650_v19 = vpop.xlane.xlu1 %2649  ;;  %2711 = vadd.xlane.f32.xlu1 %v6458_v6 }
 0x676   : > { %4977 = vpow2.f32 %v2695_v36  ;;  %v2671_v31 = vsub.f32 %v6348_v46, %v2650_v19 }
 0x678   : > { %v6463_v45 = vpop.eup %4973  ;;  %v2697_v39 = vmul.f32 1.442695, %v2671_v31 }
 0x679   : > { %2721 = vadd.xlane.f32.xlu0 %v6463_v45  ;;  %v2652_v53 = vpop.xlane.xlu1 %2651  ;;  %2719 = vadd.xlane.f32.xlu1 %v6461_v42  ;;  %v6467_v38 = vpop.eup %4975 }
 0x67d   : > { %2717 = vadd.xlane.f32.xlu0 %v6467_v38  ;;  %v2654_v17 = vpop.xlane.xlu1 %2653 }
 0x67e   : > { %v2673_v60 = vsub.f32 %v6365_v35, %v2654_v17  ;;  %v2693_v35 = vmul.f32 1.442695, %v2669_v30 }
 0x680   : > { %v6470_v1 = vpop.eup %4977  ;;  %v2701_v12 = vmul.f32 1.442695, %v2673_v60 }
 0x681   : > { %v2656_v62 = vpop.xlane.xlu1 %2655  ;;  %2727 = vadd.xlane.f32.xlu1 %v6470_v1 }
 0x685   : > { %v2658_v3 = vpop.xlane.xlu1 %2657 }
 0x686   : > { %v2675_v22 = vsub.f32 %v6383_v34, %v2658_v3  ;;  %v2672_v34 = vsub.f32 %v6357_v5, %v2652_v53 }
 0x688   : > { %v2705_v43 = vmul.f32 1.442695, %v2675_v22  ;;  %v2699_v46 = vmul.f32 1.442695, %v2672_v34 }
 0x689   : > { %v2660_v48 = vpop.xlane.xlu1 %2659 }
 0x68a   : > { %4979 = vpow2.f32 %v2705_v43  ;;  %v2676_v33 = vsub.f32 %v6394_v11, %v2660_v48 }
 0x68b   : > { %4981 = vpow2.f32 %v2701_v12 }
 0x68c   : > { %v2644_v23 = vpop.xlane.xlu0 %2643  ;;  %v2707_v24 = vmul.f32 1.442695, %v2676_v33 }
 0x68d   : > { %v2668_v10 = vsub.f32 %v6402_v15, %v2644_v23  ;;  %v2674_v15 = vsub.f32 %v6374_v49, %v2656_v62  ;;  %v2784_v17 = vpop.permute.xlu1 %2783 }
 0x68f   : > { %v2691_v13 = vmul.f32 1.442695, %v2668_v10  ;;  %v2703_v8 = vmul.f32 1.442695, %v2674_v15 }
 0x690   : > { %v2782_v51 = vpop.permute.xlu0 %2781 }
 0x691   : > { %4983 = vpow2.f32 %v2691_v13  ;;  %4519 = vmatprep.subr.bf16.mxu1 %v2782_v51 }
 0x692   : > { %4985 = vpow2.f32 %v2697_v39 }
 0x693   : > { %4987 = vpow2.f32 %v2693_v35 }
 0x694   : > { %v6478_v57 = vpop.eup %4979  ;;  %4989 = vpow2.f32 %v2699_v46  ;;  %v2786_v60 = vpop.permute.xlu0 %2785 }
 0x695   : > { %2737 = vadd.xlane.f32.xlu1 %v6478_v57  ;;  %v6482_v40 = vpop.eup %4981  ;;  %4991 = vpow2.f32 %v2703_v8 }
 0x696   : > { %4993 = vpow2.f32 %v2707_v24 }
 0x698   : > { %v2788_v31 = vpop.permute.xlu0 %2787 }
 0x699   : > { %2733 = vadd.xlane.f32.xlu1 %v6482_v40 }
 0x69b   : > { %v6486_v58 = vpop.eup %4983 }
 0x69c   : > { %2723 = vadd.xlane.f32.xlu0 %v6486_v58  ;;  %v6490_v5 = vpop.eup %4985 }
 0x69d   : > { %v6493_v21 = vpop.eup %4987 }
 0x69e   : > { %v6496_v49 = vpop.eup %4989 }
 0x69f   : > { %v6501_v27 = vpop.eup %4991 }
 0x6a0   : > { %2729 = vadd.xlane.f32.xlu0 %v6490_v5  ;;  %v6504_v11 = vpop.eup %4993 }
 0x6a4   : > { %2725 = vadd.xlane.f32.xlu0 %v6493_v21 }
 0x6a8   : > { %2731 = vadd.xlane.f32.xlu0 %v6496_v49 }
 0x6aa   : > { %2795 = vrot.lane.b32.xlu1 %v6936_v59, %s5101_s15 }
 0x6ac   : > { %2735 = vadd.xlane.f32.xlu0 %v6501_v27 }
 0x6b0   : > { %2739 = vadd.xlane.f32.xlu0 %v6504_v11 }
 0x6c1   : > { %v4453_v18 = vpop.f32.mrb[48].mxu1 }
 0x6c2   : > { %v2212_v55 = vpop.f32.mrb[49].mxu1 }
 0x6c3   : > { %v4454_v52 = vpop.f32.mrb[50].mxu1 }
 0x6c4   : > { %v2276_v36 = vpack.c.bf16 %v4454_v52, %v4453_v18  ;;  %v2215_v19 = vpop.f32.mrb[51].mxu1  ;;  %v2794_v18 = vpop.permute.xlu0 %2793 }
 0x6c5   : > { %v2275_v53 = vpack.c.bf16 %v2215_v19, %v2212_v55 }
 0x6c7   : > { %4471 = vmatprep.mubr.msk.bf16.mxu1 %vm6975_vm13, %v2275_v53  ;;  %vm6980_vm13 = vmmov %vm6910_vm0 }
 0x6c8   : > { %4472 = vmatmul.mubr.msk.bf16.vlgmr.msra.gmra.mrb[32].mxu1 %vm6976_vm15, %v2276_v36  ;;  %vm6981_vm15 = vmmov %vm6910_vm0 }
 0x6c9   : > { %4520 = vmatpush3.bf16.msra.mxu1 %v2782_v51  ;;  %v4457_v62 = vpop.f32.mrb[52].mxu1  ;;  %v2790_v51 = vpop.permute.xlu1 %2789 }
 0x6ca   : > { %4521 = vmatprep.subr.bf16.mxu1 %v2784_v17  ;;  %v2228_v3 = vpop.f32.mrb[53].mxu1 }
 0x6cb   : > { %v4458_v22 = vpop.f32.mrb[54].mxu1 }
 0x6cc   : > { %v2278_v43 = vpack.c.bf16 %v4458_v22, %v4457_v62  ;;  %v2231_v12 = vpop.f32.mrb[55].mxu1 }
 0x6cd   : > { %v2277_v23 = vpack.c.bf16 %v2231_v12, %v2228_v3  ;;  %4522 = vmatpush3.bf16.msra.mxu1 %v2784_v17  ;;  %v2792_v46 = vpop.permute.xlu1 %2791 }
 0x6ce   : > { %4523 = vmatprep.subr.bf16.mxu1 %v2786_v60 }
 0x6cf   : > { %4475 = vmatprep.mubr.msk.bf16.mxu1 %vm6977_vm3, %v2277_v23  ;;  %vm6996_vm3 = vmmov %vm6910_vm0 }
 0x6d0   : > { %4476 = vmatmul.mubr.msk.bf16.gmra.mrb[36].mxu1 %vm6978_vm6, %v2278_v43  ;;  %vm6997_vm6 = vmmov %vm6910_vm0 }
 0x6d1   : > { %4524 = vmatpush3.bf16.msra.mxu1 %v2786_v60  ;;  %v4461_v10 = vpop.f32.mrb[56].mxu1 }
 0x6d2   : > { %4525 = vmatprep.subr.bf16.mxu1 %v2788_v31  ;;  %v2244_v13 = vpop.f32.mrb[57].mxu1 }
 0x6d3   : > { %v4462_v30 = vpop.f32.mrb[58].mxu1 }
 0x6d4   : > { %v2280_v39 = vpack.c.bf16 %v4462_v30, %v4461_v10  ;;  %v2247_v35 = vpop.f32.mrb[59].mxu1 }
 0x6d5   : > { %v2279_v34 = vpack.c.bf16 %v2247_v35, %v2244_v13  ;;  %4526 = vmatpush3.bf16.msra.mxu1 %v2788_v31 }
 0x6d6   : > { %4527 = vmatprep.subr.bf16.mxu1 %v2790_v51 }
 0x6d7   : > { %4479 = vmatprep.mubr.msk.bf16.mxu1 %vm6979_vm4, %v2279_v34  ;;  %vm6998_vm4 = vmmov %vm6910_vm0 }
 0x6d8   : > { %4480 = vmatmul.mubr.msk.bf16.gmra.mrb[40].mxu1 %vm6910_vm0, %v2280_v39 }
 0x6d9   : > { %4528 = vmatpush3.bf16.msra.mxu1 %v2790_v51  ;;  %v4465_v15 = vpop.f32.mrb[60].mxu1 }
 0x6da   : > { %4529 = vmatprep.subr.bf16.mxu1 %v2792_v46  ;;  %v2260_v48 = vpop.f32.mrb[61].mxu1 }
 0x6db   : > { %v4466_v8 = vpop.f32.mrb[62].mxu1 }
 0x6dc   : > { %v2282_v33 = vpack.c.bf16 %v4466_v8, %v4465_v15  ;;  %v2263_v24 = vpop.f32.mrb[63].mxu1 }
 0x6dd   : > { %v2281_v55 = vpack.c.bf16 %v2263_v24, %v2260_v48  ;;  %4530 = vmatpush3.bf16.msra.mxu1 %v2792_v46 }
 0x6de   : > { %4531 = vmatprep.subr.bf16.mxu1 %v2794_v18 }
 0x6df   : > { %4483 = vmatprep.mubr.msk.bf16.mxu1 %vm6980_vm13, %v2281_v55  ;;  %vm6999_vm13 = vmmov %vm6910_vm0 }
 0x6e0   : > { %4484 = vmatmul.mubr.msk.bf16.gmra.mrb[44].mxu1 %vm6981_vm15, %v2282_v33  ;;  %vm7000_vm15 = vmmov %vm6910_vm0 }
 0x6e1   : > { %4532 = vmatpush3.bf16.msra.mxu1 %v2794_v18 }
 0x6f4   : > { %v4589_v52 = vpop.f32.mrb[80].mxu0 }
 0x6f5   : > { %v3177_v36 = vpop.f32.mrb[81].mxu0  ;;  %v6527_v12 = vsel %vm5717_vm8, %v4589_v52, -1e+30  ;;  %vm6988_vm8 = vnez %v6908_v28 }
 0x6f6   : > { %v6517_v19 = vsel %vm5698_vm5, %v3177_v36, -1e+30  ;;  %v2714_v53 = vpop.xlane.xlu1 %2713  ;;  %v4590_v17 = vpop.f32.mrb[82].mxu0 }
 0x6f7   : > { %v3180_v62 = vpop.f32.mrb[83].mxu0  ;;  %3256 = vmax.xlane.f32.xlu0 %v6517_v19  ;;  %v6537_v16 = vsel %vm5735_vm10, %v4590_v17, -1e+30  ;;  %vm6989_vm10 = vnez %v6952_v50 }
 0x6f8   : > { %v6522_v3 = vsel %vm5706_vm7, %v3180_v62, -1e+30  ;;  %vm6987_vm7 = vnez %v6949_v56 }
 0x6fa   : > { %v2710_v60 = vpop.xlane.xlu1 %2709 }
 0x6fb   : > { %3258 = vmax.xlane.f32.xlu0 %v6522_v3  ;;  %4995 = vrcp.f32 %v2710_v60 }
 0x6fc   : > { %v4593_v22 = vpop.f32.mrb[84].mxu0 }
 0x6fd   : > { %v3193_v43 = vpop.f32.mrb[85].mxu0  ;;  %v6547_v34 = vsel %vm5750_vm12, %v4593_v22, -1e+30  ;;  %vm6990_vm12 = vnez %v6955_v37 }
 0x6fe   : > { %v6531_v54 = vsel %vm5763_vm14, %v3193_v43, -1e+30  ;;  %v2716_v23 = vpop.xlane.xlu1 %2715  ;;  %v4594_v31 = vpop.f32.mrb[86].mxu0  ;;  %vm6991_vm14 = vnez %v6959_v4 }
 0x6ff   : > { %v3196_v10 = vpop.f32.mrb[87].mxu0  ;;  %3264 = vmax.xlane.f32.xlu1 %v6531_v54  ;;  %3260 = vmax.xlane.f32.xlu0 %v6527_v12  ;;  %v6552_v15 = vsel %vm6963_vm2, %v4594_v31, -1e+30  ;;  %vm6995_vm2 = vmmov %vm6910_vm0 }
 0x700   : > { %v6542_v51 = vsel %vm5776_vm1, %v3196_v10, -1e+30  ;;  %vm6992_vm1 = vmmov %vm6910_vm0 }
 0x702   : > { %v2712_v13 = vpop.xlane.xlu1 %2711 }
 0x703   : > { %4997 = vrcp.f32 %v2712_v13  ;;  %3262 = vmax.xlane.f32.xlu0 %v6537_v16 }
 0x704   : > { %v4597_v2 = vpop.f32.mrb[88].mxu0  ;;  %4999 = vrcp.f32 %v2716_v23 }
 0x705   : > { %v3209_v29 = vpop.f32.mrb[89].mxu0  ;;  %v4996_v7 = vpop.eup %4995 }
 0x706   : > { %v4598_v30 = vpop.f32.mrb[90].mxu0  ;;  %v2757_v0 = vmul.f32 %v4996_v7, %v6451_v44  ;;  %v6559_v24 = vsel %vm5804_vm9, %v3209_v29, -1e+30  ;;  %v2722_v18 = vpop.xlane.xlu0 %2721  ;;  %v6985_v44 = vld [vmem:[#allocation12_spill] sm:$0xff]  ;;  %vm6993_vm9 = vmmov %vm6910_vm0 }
 0x707   : > { %v3212_v39 = vpop.f32.mrb[91].mxu0  ;;  %3266 = vmax.xlane.f32.xlu0 %v6542_v51  ;;  %vm6986_vm5 = vnez %v6985_v44  ;;  %v2720_v52 = vpop.xlane.xlu1 %2719  ;;  %v6574_v17 = vsel %vm6987_vm7, %v4598_v30, -1e+30  ;;  %vm7002_vm7 = vmmov %vm6910_vm0 }
 0x708   : > { %v6564_v25 = vsel %vm6945_vm11, %v3212_v39, -1e+30  ;;  %vm6994_vm11 = vmmov %vm6910_vm0 }
 0x70a   : > { %v2718_v36 = vpop.xlane.xlu0 %2717 }
 0x70b   : > { %3268 = vmax.xlane.f32.xlu0 %v6547_v34  ;;  %5001 = vrcp.f32 %v2718_v36 }
 0x70c   : > { %5003 = vrcp.f32 %v2714_v53 }
 0x70d   : > { %v4998_v46 = vpop.eup %4997  ;;  %5005 = vrcp.f32 %v2720_v52 }
 0x70e   : > { %v2758_v48 = vmul.f32 %v4998_v46, %v6458_v6  ;;  %v6569_v6 = vsel %vm6986_vm5, %v4597_v2, -1e+30  ;;  %v2728_v62 = vpop.xlane.xlu1 %2727  ;;  %v5000_v22 = vpop.eup %4999  ;;  %5007 = vrcp.f32 %v2722_v18  ;;  %vm7001_vm5 = vmmov %vm6910_vm0 }
 0x70f   : > { %3270 = vmax.xlane.f32.xlu0 %v6552_v15  ;;  %v2760_v2 = vmul.f32 %v5000_v22, %v6454_v61 }
 0x710   : > { %v2773_v8 = vpack.c.bf16 %v2758_v48, %v2757_v0 }
 0x712   : > { %4535 = vmatprep.mubr.bf16.mxu1 %v2773_v8 }
 0x713   : > { %3272 = vmax.xlane.f32.xlu0 %v6559_v24 }
 0x715   : > { %v5002_v31 = vpop.eup %5001 }
 0x716   : > { %v5004_v10 = vpop.eup %5003  ;;  %v2761_v56 = vmul.f32 %v5002_v31, %v6467_v38 }
 0x717   : > { %3274 = vmax.xlane.f32.xlu0 %v6564_v25  ;;  %v5006_v13 = vpop.eup %5005  ;;  %v2759_v29 = vmul.f32 %v5004_v10, %v6446_v14 }
 0x718   : > { %v2762_v30 = vmul.f32 %v5006_v13, %v6461_v42  ;;  %v5008_v48 = vpop.eup %5007 }
 0x719   : > { %v2774_v35 = vpack.c.bf16 %v2760_v2, %v2759_v29  ;;  %v2763_v50 = vmul.f32 %v5008_v48, %v6463_v45  ;;  %v4799_v45 = vld [vmem:[%s6787_s5 + $0x20] sm:$0xff]   ;;  %v4800_v2 = vld [vmem:[%s6787_s5 + $0x28] sm:$0xff]  }
 0x71a   : > { %v2775_v7 = vpack.c.bf16 %v2762_v30, %v2761_v56 }
 0x71b   : > { %3276 = vmax.xlane.f32.xlu0 %v6569_v6 }
 0x71f   : > { %3278 = vmax.xlane.f32.xlu0 %v6574_v17 }
 0x722   : > { %v2738_v60 = vpop.xlane.xlu1 %2737 }
 0x726   : > { %v2734_v43 = vpop.xlane.xlu1 %2733 }
 0x729   : > { %v2724_v23 = vpop.xlane.xlu0 %2723 }
 0x72a   : > { %5009 = vrcp.f32 %v2724_v23  ;;  %v2796_v53 = vpop.permute.xlu1 %2795 }
 0x72b   : > { %4533 = vmatprep.subr.bf16.mxu1 %v2796_v53  ;;  %5011 = vrcp.f32 %v2728_v62 }
 0x72c   : > { %4534 = vmatpush3.bf16.msra.mxu1 %v2796_v53 }
 0x72d   : > { %v2730_v39 = vpop.xlane.xlu0 %2729  ;;  %4551 = vmatprep.subr.bf16.mxu1 %v4799_v45 }
 0x72f   : > { %4536 = vmatmul.mubr.bf16.vlgmr.msra.gmra.mrb[64].mxu1 %v2774_v35  ;;  %v4601_v46 = vpop.f32.mrb[92].mxu0 }
 0x730   : > { %v6583_v61 = vsel %vm6988_vm8, %v4601_v46, -1e+30  ;;  %4539 = vmatprep.mubr.bf16.mxu1 %v2775_v7  ;;  %v3225_v0 = vpop.f32.mrb[93].mxu0  ;;  %4552 = vmatpush3.bf16.msra.mxu1 %v4799_v45  ;;  %vm7003_vm8 = vmmov %vm6910_vm0 }
 0x731   : > { %v6587_v38 = vsel %vm6989_vm10, %v3225_v0, -1e+30  ;;  %3284 = vmax.xlane.f32.xlu1 %v6583_v61  ;;  %v4602_v14 = vpop.f32.mrb[94].mxu0  ;;  %v2726_v42 = vpop.xlane.xlu0 %2725  ;;  %4553 = vmatprep.subr.bf16.mxu1 %v4800_v2  ;;  %vm7004_vm10 = vmmov %vm6910_vm0 }
 0x732   : > { %5013 = vrcp.f32 %v2726_v42  ;;  %v3228_v8 = vpop.f32.mrb[95].mxu0  ;;  %3280 = vmax.xlane.f32.xlu0 %v6587_v38  ;;  %v6600_v52 = vsel %vm6991_vm14, %v4602_v14, -1e+30  ;;  %vm7006_vm14 = vmmov %vm6910_vm0 }
 0x733   : > { %5015 = vrcp.f32 %v2730_v39  ;;  %v6593_v28 = vsel %vm6990_vm12, %v3228_v8, -1e+30  ;;  %vm7005_vm12 = vmmov %vm6910_vm0 }
 0x734   : > { %v5010_v33 = vpop.eup %5009  ;;  %4554 = vmatpush3.bf16.msra.mxu1 %v4800_v2 }
 0x735   : > { %v2732_v18 = vpop.xlane.xlu0 %2731  ;;  %v2764_v55 = vmul.f32 %v5010_v33, %v6486_v58  ;;  %v5012_v62 = vpop.eup %5011 }
 0x736   : > { %5017 = vrcp.f32 %v2732_v18  ;;  %3282 = vmax.xlane.f32.xlu0 %v6593_v28 }
 0x737   : > { %v2776_v44 = vpack.c.bf16 %v2764_v55, %v2763_v50  ;;  %5019 = vrcp.f32 %v2734_v43  ;;  %v2766_v43 = vmul.f32 %v5012_v62, %v6470_v1 }
 0x739   : > { %4540 = vmatmul.mubr.bf16.gmra.mrb[68].mxu1 %v2776_v44  ;;  %v2736_v36 = vpop.xlane.xlu0 %2735 }
 0x73a   : > { %5021 = vrcp.f32 %v2736_v36  ;;  %3286 = vmax.xlane.f32.xlu0 %v6600_v52 }
 0x73b   : > { %5023 = vrcp.f32 %v2738_v60 }
 0x73c   : > { %v5014_v37 = vpop.eup %5013 }
 0x73d   : > { %v2740_v58 = vpop.xlane.xlu0 %2739  ;;  %v2765_v22 = vmul.f32 %v5014_v37, %v6493_v21  ;;  %v5016_v4 = vpop.eup %5015 }
 0x73e   : > { %5025 = vrcp.f32 %v2740_v58  ;;  %v2767_v13 = vmul.f32 %v5016_v4, %v6490_v5 }
 0x73f   : > { %v2777_v31 = vpack.c.bf16 %v2766_v43, %v2765_v22 }
 0x740   : > { %v5018_v10 = vpop.eup %5017 }
 0x741   : > { %4543 = vmatprep.mubr.bf16.mxu1 %v2777_v31  ;;  %v2768_v60 = vmul.f32 %v5018_v10, %v6496_v49  ;;  %v5020_v23 = vpop.eup %5019 }
 0x742   : > { %3408 = vrot.lane.b32.xlu1 %v6914_v41, %s5102_s20  ;;  %v2769_v53 = vmul.f32 %v5020_v23, %v6482_v40 }
 0x743   : > { %v2778_v1 = vpack.c.bf16 %v2768_v60, %v2767_v13 }
 0x744   : > { %v5022_v21 = vpop.eup %5021 }
 0x745   : > { %4544 = vmatmul.mubr.bf16.gmra.mrb[72].mxu1 %v2778_v1  ;;  %v2770_v56 = vmul.f32 %v5022_v21, %v6501_v27  ;;  %v5024_v5 = vpop.eup %5023 }
 0x746   : > { %3410 = vrot.lane.b32.xlu1 %v6917_v26, %s5102_s20  ;;  %v2771_v30 = vmul.f32 %v5024_v5, %v6478_v57 }
 0x747   : > { %v2779_v49 = vpack.c.bf16 %v2770_v56, %v2769_v53 }
 0x748   : > { %v5026_v29 = vpop.eup %5025 }
 0x749   : > { %4547 = vmatprep.mubr.bf16.mxu1 %v2779_v49  ;;  %v2772_v41 = vmul.f32 %v5026_v29, %v6504_v11 }
 0x74a   : > { %3414 = vrot.lane.b32.xlu1 %v6920_v9, %s5102_s20 }
 0x74b   : > { %v2780_v39 = vpack.c.bf16 %v2772_v41, %v2771_v30 }
 0x74d   : > { %4548 = vmatmul.mubr.bf16.gmra.mrb[76].mxu1 %v2780_v39 }
 0x74e   : > { %3420 = vrot.lane.b32.xlu1 %v6922_v32, %s5102_s20 }
 0x750   : > { %3412 = vrot.lane.b32.xlu0 %v6913_v20, %s5102_s20 }
 0x754   : > { %3416 = vrot.lane.b32.xlu0 %v6915_v47, %s5102_s20 }
 0x758   : > { %3418 = vrot.lane.b32.xlu0 %v6919_v63, %s5102_s20 }
 0x784   : > { %v3257_v26 = vpop.xlane.xlu0 %3256 }
 0x785   : > { %v3288_v9 = vsub.f32 %v6517_v19, %v3257_v26 }
 0x787   : > { %v3304_v7 = vmul.f32 1.442695, %v3288_v9 }
 0x788   : > { %v3259_v57 = vpop.xlane.xlu0 %3258 }
 0x789   : > { %v3289_v47 = vsub.f32 %v6522_v3, %v3259_v57 }
 0x78c   : > { %v3261_v40 = vpop.xlane.xlu0 %3260  ;;  %v3265_v46 = vpop.xlane.xlu1 %3264 }
 0x78d   : > { %v3290_v27 = vsub.f32 %v6527_v12, %v3261_v40  ;;  %v3292_v14 = vsub.f32 %v6531_v54, %v3265_v46  ;;  %v3306_v12 = vmul.f32 1.442695, %v3289_v47 }
 0x78f   : > { %v3308_v11 = vmul.f32 1.442695, %v3290_v27 }
 0x790   : > { %v3263_v35 = vpop.xlane.xlu0 %3262 }
 0x791   : > { %5027 = vpow2.f32 %v3308_v11  ;;  %v3291_v32 = vsub.f32 %v6537_v16, %v3263_v35  ;;  %v3312_v16 = vmul.f32 1.442695, %v3292_v14 }
 0x792   : > { %5029 = vpow2.f32 %v3304_v7 }
 0x793   : > { %v3310_v0 = vmul.f32 1.442695, %v3291_v32 }
 0x794   : > { %v3267_v20 = vpop.xlane.xlu0 %3266 }
 0x795   : > { %5031 = vpow2.f32 %v3310_v0  ;;  %v3293_v19 = vsub.f32 %v6542_v51, %v3267_v20 }
 0x797   : > { %v3314_v18 = vmul.f32 1.442695, %v3293_v19 }
 0x798   : > { %v3269_v63 = vpop.xlane.xlu0 %3268 }
 0x799   : > { %v3294_v42 = vsub.f32 %v6547_v34, %v3269_v63 }
 0x79b   : > { %v3316_v48 = vmul.f32 1.442695, %v3294_v42  ;;  %v6638_v8 = vpop.eup %5027 }
 0x79c   : > { %v3271_v33 = vpop.xlane.xlu0 %3270  ;;  %3340 = vadd.xlane.f32.xlu0 %v6638_v8  ;;  %v6642_v50 = vpop.eup %5029 }
 0x79d   : > { %5033 = vpow2.f32 %v3316_v48  ;;  %v3295_v3 = vsub.f32 %v6552_v15, %v3271_v33 }
 0x79e   : > { %5035 = vpow2.f32 %v3306_v12 }
 0x79f   : > { %5037 = vpow2.f32 %v3312_v16  ;;  %v3318_v34 = vmul.f32 1.442695, %v3295_v3  ;;  %v6645_v51 = vpop.eup %5031 }
 0x7a0   : > { %v3273_v54 = vpop.xlane.xlu0 %3272  ;;  %3336 = vadd.xlane.f32.xlu0 %v6642_v50  ;;  %5039 = vpow2.f32 %v3314_v18 }
 0x7a1   : > { %5041 = vpow2.f32 %v3318_v34  ;;  %v3296_v45 = vsub.f32 %v6559_v24, %v3273_v54 }
 0x7a3   : > { %v3320_v31 = vmul.f32 1.442695, %v3296_v45 }
 0x7a4   : > { %v3275_v55 = vpop.xlane.xlu0 %3274  ;;  %3342 = vadd.xlane.f32.xlu0 %v6645_v51 }
 0x7a5   : > { %v3297_v44 = vsub.f32 %v6564_v25, %v3275_v55 }
 0x7a7   : > { %v6649_v36 = vpop.eup %5033  ;;  %v3322_v15 = vmul.f32 1.442695, %v3297_v44 }
 0x7a8   : > { %v6651_v62 = vpop.eup %5035  ;;  %3348 = vadd.xlane.f32.xlu1 %v6649_v36  ;;  %v3277_v37 = vpop.xlane.xlu0 %3276 }
 0x7a9   : > { %5043 = vpow2.f32 %v3322_v15  ;;  %3338 = vadd.xlane.f32.xlu0 %v6651_v62  ;;  %v3298_v58 = vsub.f32 %v6569_v6, %v3277_v37  ;;  %v6657_v22 = vpop.eup %5037 }
 0x7aa   : > { %v6659_v4 = vpop.eup %5039 }
 0x7ab   : > { %v3324_v43 = vmul.f32 1.442695, %v3298_v58  ;;  %v6664_v24 = vpop.eup %5041 }
 0x7ac   : > { %3344 = vadd.xlane.f32.xlu1 %v6657_v22  ;;  %v3279_v25 = vpop.xlane.xlu0 %3278 }
 0x7ad   : > { %5045 = vpow2.f32 %v3324_v43  ;;  %3346 = vadd.xlane.f32.xlu0 %v6659_v4  ;;  %v3299_v10 = vsub.f32 %v6574_v17, %v3279_v25 }
 0x7ae   : > { %5047 = vpow2.f32 %v3320_v31 }
 0x7af   : > { %v3326_v6 = vmul.f32 1.442695, %v3299_v10 }
 0x7b0   : > { %3350 = vadd.xlane.f32.xlu1 %v6664_v24 }
 0x7b1   : > { %5049 = vpow2.f32 %v3326_v6 }
 0x7b3   : > { %v6667_v13 = vpop.eup %5043 }
 0x7b4   : > { %3354 = vadd.xlane.f32.xlu0 %v6667_v13 }
 0x7b7   : > { %v6670_v60 = vpop.eup %5045 }
 0x7b8   : > { %3356 = vadd.xlane.f32.xlu1 %v6670_v60  ;;  %v6673_v2 = vpop.eup %5047 }
 0x7bb   : > { %v6676_v23 = vpop.eup %5049 }
 0x7bc   : > { %3352 = vadd.xlane.f32.xlu1 %v6673_v2 }
 0x7be   : > { %v3285_v17 = vpop.xlane.xlu1 %3284 }
 0x7bf   : > { %v3302_v1 = vsub.f32 %v6583_v61, %v3285_v17  ;;  %v3281_v21 = vpop.xlane.xlu0 %3280 }
 0x7c0   : > { %v3300_v53 = vsub.f32 %v6587_v38, %v3281_v21  ;;  %3358 = vadd.xlane.f32.xlu1 %v6676_v23 }
 0x7c1   : > { %v3332_v56 = vmul.f32 1.442695, %v3302_v1 }
 0x7c2   : > { %v3328_v5 = vmul.f32 1.442695, %v3300_v53  ;;  %v3409_v49 = vpop.permute.xlu1 %3408 }
 0x7c3   : > { %5051 = vpow2.f32 %v3332_v56  ;;  %4603 = vmatprep.subr.bf16.mxu1 %v3409_v49  ;;  %v3283_v29 = vpop.xlane.xlu0 %3282 }
 0x7c4   : > { %5053 = vpow2.f32 %v3328_v5  ;;  %v3301_v30 = vsub.f32 %v6593_v28, %v3283_v29 }
 0x7c6   : > { %v3330_v41 = vmul.f32 1.442695, %v3301_v30  ;;  %v3411_v32 = vpop.permute.xlu1 %3410 }
 0x7c7   : > { %v3287_v39 = vpop.xlane.xlu0 %3286 }
 0x7c8   : > { %5055 = vpow2.f32 %v3330_v41  ;;  %v3303_v26 = vsub.f32 %v6600_v52, %v3287_v39 }
 0x7ca   : > { %v3334_v61 = vmul.f32 1.442695, %v3303_v26  ;;  %v3415_v42 = vpop.permute.xlu1 %3414 }
 0x7cb   : > { %v3413_v46 = vpop.permute.xlu0 %3412 }
 0x7cc   : > { %5057 = vpow2.f32 %v3334_v61 }
 0x7cd   : > { %v6683_v57 = vpop.eup %5051 }
 0x7ce   : > { %v6685_v38 = vpop.eup %5053  ;;  %3364 = vadd.xlane.f32.xlu0 %v6683_v57  ;;  %v3421_v34 = vpop.permute.xlu1 %3420 }
 0x7cf   : > { %3360 = vadd.xlane.f32.xlu1 %v6685_v38  ;;  %v3417_v12 = vpop.permute.xlu0 %3416 }
 0x7d2   : > { %v6689_v40 = vpop.eup %5055 }
 0x7d3   : > { %3362 = vadd.xlane.f32.xlu0 %v6689_v40  ;;  %v3419_v33 = vpop.permute.xlu0 %3418 }
 0x7d6   : > { %v6692_v28 = vpop.eup %5057 }
 0x7d7   : > { %3366 = vadd.xlane.f32.xlu1 %v6692_v28 }
 0x7e9   : > { %3422 = vrot.lane.b32.xlu0 %v6936_v59, %s5102_s20 }
 0x802   : > { %v4537_v52 = vpop.f32.mrb[64].mxu1 }
 0x803   : > { %v2839_v27 = vpop.f32.mrb[65].mxu1 }
 0x804   : > { %v4538_v9 = vpop.f32.mrb[66].mxu1 }
 0x805   : > { %v2903_v11 = vpack.c.bf16 %v4538_v9, %v4537_v52  ;;  %v2842_v35 = vpop.f32.mrb[67].mxu1 }
 0x806   : > { %v2902_v7 = vpack.c.bf16 %v2842_v35, %v2839_v27  ;;  %v4801_v35 = vld [vmem:[%s6787_s5 + $0x30] sm:$0xff]  }
 0x808   : > { %4555 = vmatprep.mubr.msk.bf16.mxu1 %vm6992_vm1, %v2902_v7 }
 0x809   : > { %4556 = vmatmul.mubr.msk.bf16.vlgmr.msra.gmra.mrb[32].mxu1 %vm6993_vm9, %v2903_v11 }
 0x80a   : > { %4604 = vmatpush3.bf16.msra.mxu1 %v3409_v49 }
 0x80b   : > { %4605 = vmatprep.subr.bf16.mxu1 %v3411_v32 }
 0x80c   : > { %v4541_v20 = vpop.f32.mrb[68].mxu1 }
 0x80d   : > { %v2855_v47 = vpop.f32.mrb[69].mxu1 }
 0x80e   : > { %4606 = vmatpush3.bf16.msra.mxu1 %v3411_v32  ;;  %v4542_v0 = vpop.f32.mrb[70].mxu1 }
 0x80f   : > { %v2905_v63 = vpack.c.bf16 %v4542_v0, %v4541_v20  ;;  %4607 = vmatprep.subr.bf16.mxu1 %v3413_v46  ;;  %v2858_v59 = vpop.f32.mrb[71].mxu1 }
 0x810   : > { %v2904_v14 = vpack.c.bf16 %v2858_v59, %v2855_v47 }
 0x812   : > { %4608 = vmatpush3.bf16.msra.mxu1 %v3413_v46  ;;  %4559 = vmatprep.mubr.msk.bf16.mxu1 %vm6994_vm11, %v2904_v14 }
 0x813   : > { %4609 = vmatprep.subr.bf16.mxu1 %v3415_v42  ;;  %4560 = vmatmul.mubr.msk.bf16.gmra.mrb[36].mxu1 %vm6995_vm2, %v2905_v63 }
 0x816   : > { %4610 = vmatpush3.bf16.msra.mxu1 %v3415_v42 }
 0x817   : > { %4611 = vmatprep.subr.bf16.mxu1 %v3417_v12 }
 0x818   : > { %v4545_v19 = vpop.f32.mrb[72].mxu1 }
 0x819   : > { %v2871_v48 = vpop.f32.mrb[73].mxu1 }
 0x81a   : > { %4612 = vmatpush3.bf16.msra.mxu1 %v3417_v12  ;;  %v4546_v16 = vpop.f32.mrb[74].mxu1 }
 0x81b   : > { %v2907_v3 = vpack.c.bf16 %v4546_v16, %v4545_v19  ;;  %4613 = vmatprep.subr.bf16.mxu1 %v3419_v33  ;;  %v2874_v18 = vpop.f32.mrb[75].mxu1 }
 0x81c   : > { %v2906_v54 = vpack.c.bf16 %v2874_v18, %v2871_v48 }
 0x81e   : > { %4614 = vmatpush3.bf16.msra.mxu1 %v3419_v33  ;;  %4563 = vmatprep.mubr.msk.bf16.mxu1 %vm6996_vm3, %v2906_v54 }
 0x81f   : > { %4615 = vmatprep.subr.bf16.mxu1 %v3421_v34  ;;  %4564 = vmatmul.mubr.msk.bf16.gmra.mrb[40].mxu1 %vm6997_vm6, %v2907_v3 }
 0x820   : > { %v4549_v55 = vpop.f32.mrb[76].mxu1 }
 0x821   : > { %v2887_v44 = vpop.f32.mrb[77].mxu1 }
 0x822   : > { %4616 = vmatpush3.bf16.msra.mxu1 %v3421_v34  ;;  %v4550_v15 = vpop.f32.mrb[78].mxu1 }
 0x823   : > { %v2909_v37 = vpack.c.bf16 %v4550_v15, %v4549_v55  ;;  %v2890_v45 = vpop.f32.mrb[79].mxu1 }
 0x824   : > { %v2908_v58 = vpack.c.bf16 %v2890_v45, %v2887_v44 }
 0x826   : > { %4567 = vmatprep.mubr.msk.bf16.mxu1 %vm6998_vm4, %v2908_v58 }
 0x827   : > { %4568 = vmatmul.mubr.msk.bf16.gmra.mrb[44].mxu1 %vm6910_vm0, %v2909_v37 }
 0x829   : > { %v3341_v43 = vpop.xlane.xlu0 %3340 }
 0x82d   : > { %v3337_v25 = vpop.xlane.xlu0 %3336 }
 0x82e   : > { %5059 = vrcp.f32 %v3337_v25 }
 0x831   : > { %v3343_v31 = vpop.xlane.xlu0 %3342 }
 0x835   : > { %v3349_v56 = vpop.xlane.xlu1 %3348 }
 0x836   : > { %v3339_v10 = vpop.xlane.xlu0 %3338 }
 0x837   : > { %5061 = vrcp.f32 %v3339_v10 }
 0x838   : > { %v5060_v6 = vpop.eup %5059  ;;  %5063 = vrcp.f32 %v3343_v31 }
 0x839   : > { %v3384_v1 = vmul.f32 %v5060_v6, %v6642_v50  ;;  %v3345_v5 = vpop.xlane.xlu1 %3344 }
 0x83a   : > { %v3347_v29 = vpop.xlane.xlu0 %3346  ;;  %5065 = vrcp.f32 %v3345_v5 }
 0x83b   : > { %5067 = vrcp.f32 %v3347_v29 }
 0x83c   : > { %5069 = vrcp.f32 %v3341_v43 }
 0x83d   : > { %v3351_v49 = vpop.xlane.xlu1 %3350 }
 0x83e   : > { %5071 = vrcp.f32 %v3351_v49 }
 0x841   : > { %v5062_v17 = vpop.eup %5061  ;;  %v3355_v41 = vpop.xlane.xlu0 %3354 }
 0x842   : > { %v3385_v21 = vmul.f32 %v5062_v17, %v6651_v62  ;;  %v5064_v61 = vpop.eup %5063 }
 0x843   : > { %v3387_v11 = vmul.f32 %v5064_v61, %v6645_v51  ;;  %v4802_v51 = vld [vmem:[%s6787_s5 + $0x38] sm:$0xff]  }
 0x844   : > { %v3400_v53 = vpack.c.bf16 %v3385_v21, %v3384_v1  ;;  %v5066_v50 = vpop.eup %5065 }
 0x845   : > { %v3357_v30 = vpop.xlane.xlu1 %3356  ;;  %v5068_v52 = vpop.eup %5067  ;;  %v3388_v32 = vmul.f32 %v5066_v50, %v6657_v22 }
 0x846   : > { %4619 = vmatprep.mubr.bf16.mxu1 %v3400_v53  ;;  %v5070_v27 = vpop.eup %5069  ;;  %v3389_v20 = vmul.f32 %v5068_v52, %v6659_v4  ;;  %v4011_v52 = vld [vmem:[%s5164_s10] sm:$0xff]  }
 0x847   : > { %v3386_v47 = vmul.f32 %v5070_v27, %v6638_v8 }
 0x848   : > { %v5072_v63 = vpop.eup %5071  ;;  %v3402_v59 = vpack.c.bf16 %v3389_v20, %v3388_v32 }
 0x849   : > { %v3353_v26 = vpop.xlane.xlu1 %3352  ;;  %v3401_v0 = vpack.c.bf16 %v3387_v11, %v3386_v47  ;;  %v3391_v42 = vmul.f32 %v5072_v63, %v6664_v24  ;;  %v6740_v11 = vld [vmem:[%s6788_s6] ss:$0 sm:$0xff] }
 0x84a   : > { %5073 = vrcp.f32 %v3353_v26 }
 0x84b   : > { %5075 = vrcp.f32 %v3349_v56 }
 0x84c   : > { %5077 = vrcp.f32 %v3355_v41 }
 0x84d   : > { %v3359_v9 = vpop.xlane.xlu1 %3358 }
 0x84e   : > { %5079 = vrcp.f32 %v3359_v9 }
 0x854   : > { %v5074_v14 = vpop.eup %5073 }
 0x855   : > { %v5076_v22 = vpop.eup %5075  ;;  %v3392_v12 = vmul.f32 %v5074_v14, %v6673_v2 }
 0x856   : > { %v5078_v8 = vpop.eup %5077  ;;  %v3390_v19 = vmul.f32 %v5076_v22, %v6649_v36 }
 0x857   : > { %v3393_v48 = vmul.f32 %v5078_v8, %v6667_v13 }
 0x858   : > { %v3403_v33 = vpack.c.bf16 %v3391_v42, %v3390_v19  ;;  %v5080_v16 = vpop.eup %5079 }
 0x859   : > { %v3404_v3 = vpack.c.bf16 %v3393_v48, %v3392_v12  ;;  %v3395_v24 = vmul.f32 %v5080_v16, %v6676_v23 }
 0x85b   : > { %v3365_v39 = vpop.xlane.xlu0 %3364 }
 0x85c   : > { %v3361_v46 = vpop.xlane.xlu1 %3360 }
 0x860   : > { %v3363_v62 = vpop.xlane.xlu0 %3362 }
 0x861   : > { %5081 = vrcp.f32 %v3363_v62  ;;  %v4089_v62 = vld [vmem:[%s5164_s10 + $0x8] sm:$0xff]  }
 0x862   : > { %5083 = vrcp.f32 %v3357_v30  ;;  %v4016_v27 = vunpack.c.l.bf16 %v4089_v62  ;;  %v4017_v9 = vunpack.c.h.bf16 %v4089_v62 }
 0x863   : > { %5085 = vrcp.f32 %v3361_v46 }
 0x864   : > { %v3423_v7 = vpop.permute.xlu0 %3422  ;;  %v3367_v4 = vpop.xlane.xlu1 %3366  ;;  %v1175_v32 = vadd.f32 %v4016_v27, %v6740_v11  ;;  %v1176_v20 = vadd.f32 %v4017_v9, %v6740_v11 }
 0x865   : > { %4617 = vmatprep.subr.bf16.mxu1 %v3423_v7  ;;  %5087 = vrcp.f32 %v3367_v4 }
 0x866   : > { %4618 = vmatpush3.bf16.msra.mxu1 %v3423_v7  ;;  %5089 = vrcp.f32 %v3365_v39  ;;  %v4013_v7 = vunpack.c.h.bf16 %v4011_v52 }
 0x867   : > { %4635 = vmatprep.subr.bf16.mxu1 %v4801_v35 }
 0x869   : > { %4620 = vmatmul.mubr.bf16.vlgmr.msra.gmra.mrb[80].mxu1 %v3401_v0  ;;  %v1174_v0 = vadd.f32 %v4013_v7, %v6740_v11 }
 0x86a   : > { %4623 = vmatprep.mubr.bf16.mxu1 %v3402_v59  ;;  %4636 = vmatpush3.bf16.msra.mxu1 %v4801_v35  ;;  %v4012_v35 = vunpack.c.l.bf16 %v4011_v52  ;;  %v4090_v59 = vld [vmem:[%s5164_s10 + $0x10] sm:$0xff]  }
 0x86b   : > { %4637 = vmatprep.subr.bf16.mxu1 %v4802_v51  ;;  %v5082_v18 = vpop.eup %5081  ;;  %v4021_v16 = vunpack.c.h.bf16 %v4090_v59 }
 0x86c   : > { %v5084_v54 = vpop.eup %5083  ;;  %v3397_v55 = vmul.f32 %v5082_v18, %v6689_v40  ;;  %v1173_v46 = vadd.f32 %v4012_v35, %v6740_v11 }
 0x86d   : > { %v5086_v34 = vpop.eup %5085  ;;  %v3394_v2 = vmul.f32 %v5084_v54, %v6670_v60 }
 0x86e   : > { %4638 = vmatpush3.bf16.msra.mxu1 %v4802_v51  ;;  %v3396_v36 = vmul.f32 %v5086_v34, %v6685_v38  ;;  %v4091_v51 = vld [vmem:[%s5164_s10 + $0x18] sm:$0xff]  }
 0x86f   : > { %v3405_v44 = vpack.c.bf16 %v3395_v24, %v3394_v2  ;;  %v5088_v13 = vpop.eup %5087  ;;  %v4024_v42 = vunpack.c.l.bf16 %v4091_v51  ;;  %v4025_v12 = vunpack.c.h.bf16 %v4091_v51  ;;  %v1178_v2 = vadd.f32 %v4021_v16, %v6740_v11 }
 0x870   : > { %v3406_v15 = vpack.c.bf16 %v3397_v55, %v3396_v36  ;;  %v5090_v37 = vpop.eup %5089  ;;  %v3399_v45 = vmul.f32 %v5088_v13, %v6692_v28  ;;  %v4093_v36 = vld [vmem:[%s5164_s10 + $0x28] sm:$0xff]   ;;  %v4092_v13 = vld [vmem:[%s5164_s10 + $0x20] sm:$0xff]  }
 0x871   : > { %4624 = vmatmul.mubr.bf16.gmra.mrb[84].mxu1 %v3403_v33  ;;  %v3398_v58 = vmul.f32 %v5090_v37, %v6683_v57  ;;  %v4020_v33 = vunpack.c.l.bf16 %v4090_v59  ;;  %v1179_v54 = vadd.f32 %v4024_v42, %v6740_v11  ;;  %v1180_v34 = vadd.f32 %v4025_v12, %v6740_v11 }
 0x872   : > { %4627 = vmatprep.mubr.bf16.mxu1 %v3404_v3 }
 0x873   : > { %v3407_v43 = vpack.c.bf16 %v3399_v45, %v3398_v58  ;;  %v1177_v55 = vadd.f32 %v4020_v33, %v6740_v11 }
 0x879   : > { %4628 = vmatmul.mubr.bf16.gmra.mrb[88].mxu1 %v3405_v44 }
 0x87a   : > { %4631 = vmatprep.mubr.bf16.mxu1 %v3406_v15 }
 0x881   : > { %4632 = vmatmul.mubr.bf16.gmra.mrb[92].mxu1 %v3407_v43  ;;  %v4032_v43 = vunpack.c.l.bf16 %v4093_v36 }
 0x93c   : > { %v4621_v25 = vpop.f32.mrb[80].mxu1 }
 0x93d   : > { %v3466_v23 = vpop.f32.mrb[81].mxu1 }
 0x93e   : > { %v4622_v31 = vpop.f32.mrb[82].mxu1 }
 0x93f   : > { %v3530_v40 = vpack.c.bf16 %v4622_v31, %v4621_v25  ;;  %v3469_v10 = vpop.f32.mrb[83].mxu1  ;;  %v4033_v25 = vunpack.c.h.bf16 %v4093_v36 }
 0x940   : > { %v3529_v60 = vpack.c.bf16 %v3469_v10, %v3466_v23  ;;  %v4029_v10 = vunpack.c.h.bf16 %v4092_v13 }
 0x942   : > { %4639 = vmatprep.mubr.msk.bf16.mxu1 %vm6999_vm13, %v3529_v60 }
 0x943   : > { %4640 = vmatmul.mubr.msk.bf16.vlgmr.msra.gmra.mrb[32].mxu1 %vm7000_vm15, %v3530_v40  ;;  %v4028_v40 = vunpack.c.l.bf16 %v4092_v13 }
 0x944   : > { %v4625_v38 = vpop.f32.mrb[84].mxu1 }
 0x945   : > { %v3482_v6 = vpop.f32.mrb[85].mxu1 }
 0x946   : > { %v4626_v17 = vpop.f32.mrb[86].mxu1 }
 0x947   : > { %v3532_v1 = vpack.c.bf16 %v4626_v17, %v4625_v38  ;;  %v3485_v21 = vpop.f32.mrb[87].mxu1  ;;  %v1184_v17 = vadd.f32 %v4033_v25, %v6740_v11 }
 0x948   : > { %v3531_v28 = vpack.c.bf16 %v3485_v21, %v3482_v6  ;;  %v1183_v6 = vadd.f32 %v4032_v43, %v6740_v11  ;;  %v1181_v21 = vadd.f32 %v4028_v40, %v6740_v11 }
 0x94a   : > { %4643 = vmatprep.mubr.msk.bf16.mxu1 %vm7001_vm5, %v3531_v28  ;;  %v1182_v28 = vadd.f32 %v4029_v10, %v6740_v11 }
 0x94b   : > { %4644 = vmatmul.mubr.msk.bf16.gmra.mrb[36].mxu1 %vm7002_vm7, %v3532_v1 }
 0x94c   : > { %v4629_v57 = vpop.f32.mrb[88].mxu1 }
 0x94d   : > { %v3498_v53 = vpop.f32.mrb[89].mxu1 }
 0x94e   : > { %v4630_v56 = vpop.f32.mrb[90].mxu1 }
 0x94f   : > { %v3534_v5 = vpack.c.bf16 %v4630_v56, %v4629_v57  ;;  %v3501_v49 = vpop.f32.mrb[91].mxu1  ;;  %v4095_v57 = vld [vmem:[%s5164_s10 + $0x38] sm:$0xff]   ;;  %v4094_v56 = vld [vmem:[%s5164_s10 + $0x30] sm:$0xff]  }
 0x950   : > { %v3533_v29 = vpack.c.bf16 %v3501_v49, %v3498_v53  ;;  %v4037_v62 = vunpack.c.h.bf16 %v4094_v56 }
 0x952   : > { %4647 = vmatprep.mubr.msk.bf16.mxu1 %vm7003_vm8, %v3533_v29 }
 0x953   : > { %4648 = vmatmul.mubr.msk.bf16.gmra.mrb[40].mxu1 %vm7004_vm10, %v3534_v5 }
 0x954   : > { %v4633_v30 = vpop.f32.mrb[92].mxu1 }
 0x955   : > { %v3514_v41 = vpop.f32.mrb[93].mxu1 }
 0x956   : > { %v4634_v39 = vpop.f32.mrb[94].mxu1 }
 0x957   : > { %v3536_v26 = vpack.c.bf16 %v4634_v39, %v4633_v30  ;;  %v3517_v61 = vpop.f32.mrb[95].mxu1  ;;  %v4041_v39 = vunpack.c.h.bf16 %v4095_v57 }
 0x958   : > { %v3535_v50 = vpack.c.bf16 %v3517_v61, %v3514_v41  ;;  %v4040_v41 = vunpack.c.l.bf16 %v4095_v57 }
 0x959   : > { %v1188_v35 = vadd.f32 %v4041_v39, %v6740_v11 }
 0x95a   : > { %4651 = vmatprep.mubr.msk.bf16.mxu1 %vm7005_vm12, %v3535_v50  ;;  %v4036_v50 = vunpack.c.l.bf16 %v4094_v56  ;;  %v1187_v9 = vadd.f32 %v4040_v41, %v6740_v11 }
 0x95b   : > { %4652 = vmatmul.mubr.msk.bf16.gmra.mrb[44].mxu1 %vm7006_vm14, %v3536_v26 }
 0xa16   : > { %v4641_v47 = vpop.f32.mrb[32].mxu1 }
 0xa17   : > { %v3611_v63 = vpop.f32.mrb[33].mxu1  ;;  %v4655_v22 = vadd.f32 %v4641_v47, %v1175_v32  ;;  %v1185_v32 = vadd.f32 %v4036_v50, %v6740_v11 }
 0xa18   : > { %v4642_v14 = vpop.f32.mrb[34].mxu1  ;;  %v4656_v19 = vadd.f32 %v3611_v63, %v1173_v46 }
 0xa19   : > { %v4657_v8 = vadd.f32 %v4642_v14, %v1176_v20  ;;  %v3614_v4 = vpop.f32.mrb[35].mxu1  ;;  %v1186_v20 = vadd.f32 %v4037_v62, %v6740_v11 }
 0xa1a   : > { %v4658_v48 = vadd.f32 %v3614_v4, %v1174_v0 }
 0xa1b   : > { %v4050_v3 = vpack.c.bf16 %v4657_v8, %v4655_v22 }
 0xa1c   : > { %v4045_v18 = vpack.c.bf16 %v4658_v48, %v4656_v19 }
 0xa1d   : > { %4096 = vst [vmem:[%s6753_s19 + $0x8] sm:$0xff] %v4050_v3  }
 0xa1e   : > { %4046 = vst [vmem:[%s6753_s19] sm:$0xff] %v4045_v18   ;;  %v4645_v24 = vpop.f32.mrb[36].mxu1 }
 0xa1f   : > { %v3627_v44 = vpop.f32.mrb[37].mxu1  ;;  %v4659_v37 = vadd.f32 %v4645_v24, %v1179_v54 }
 0xa20   : > { %v4646_v15 = vpop.f32.mrb[38].mxu1  ;;  %v4660_v23 = vadd.f32 %v3627_v44, %v1177_v55 }
 0xa21   : > { %v4661_v45 = vadd.f32 %v4646_v15, %v1180_v34  ;;  %v3630_v58 = vpop.f32.mrb[39].mxu1 }
 0xa22   : > { %v4662_v31 = vadd.f32 %v3630_v58, %v1178_v2 }
 0xa23   : > { %v4060_v60 = vpack.c.bf16 %v4661_v45, %v4659_v37 }
 0xa24   : > { %v4055_v38 = vpack.c.bf16 %v4662_v31, %v4660_v23 }
 0xa25   : > { %4098 = vst [vmem:[%s6753_s19 + $0x18] sm:$0xff] %v4060_v60  }
 0xa26   : > { %4097 = vst [vmem:[%s6753_s19 + $0x10] sm:$0xff] %v4055_v38   ;;  %v4649_v1 = vpop.f32.mrb[40].mxu1 }
 0xa27   : > { %v3643_v53 = vpop.f32.mrb[41].mxu1  ;;  %v4663_v49 = vadd.f32 %v4649_v1, %v1183_v6 }
 0xa28   : > { %v4650_v5 = vpop.f32.mrb[42].mxu1  ;;  %v4664_v26 = vadd.f32 %v3643_v53, %v1181_v21 }
 0xa29   : > { %v4665_v29 = vadd.f32 %v4650_v5, %v1184_v17  ;;  %v3646_v30 = vpop.f32.mrb[43].mxu1 }
 0xa2a   : > { %v4666_v61 = vadd.f32 %v3646_v30, %v1182_v28 }
 0xa2b   : > { %v4070_v52 = vpack.c.bf16 %v4665_v29, %v4663_v49 }
 0xa2c   : > { %v4065_v27 = vpack.c.bf16 %v4666_v61, %v4664_v26 }
 0xa2d   : > { %4100 = vst [vmem:[%s6753_s19 + $0x28] sm:$0xff] %v4070_v52  }
 0xa2e   : > { %4099 = vst [vmem:[%s6753_s19 + $0x20] sm:$0xff] %v4065_v27   ;;  %v4653_v7 = vpop.f32.mrb[44].mxu1 }
 0xa2f   : > { %v3659_v47 = vpop.f32.mrb[45].mxu1  ;;  %v4667_v0 = vadd.f32 %v4653_v7, %v1187_v9 }
 0xa30   : > { %v4654_v46 = vpop.f32.mrb[46].mxu1  ;;  %v4668_v59 = vadd.f32 %v3659_v47, %v1185_v32 }
 0xa31   : > { %v4669_v51 = vadd.f32 %v4654_v46, %v1188_v35  ;;  %v3662_v63 = vpop.f32.mrb[47].mxu1 }
 0xa32   : > { %v4670_v14 = vadd.f32 %v3662_v63, %v1186_v20 }
 0xa33   : > { %v4080_v22 = vpack.c.bf16 %v4669_v51, %v4667_v0 }
 0xa34   : > { %v4075_v8 = vpack.c.bf16 %v4670_v14, %v4668_v59 }
 0xa35   : > { %4102 = vst [vmem:[%s6753_s19 + $0x38] sm:$0xff] %v4080_v22  }
 0xa36   : > { %4101 = vst [vmem:[%s6753_s19 + $0x30] sm:$0xff] %v4075_v8  }
 0xa37 PF: > { %s18_s27 = sadd.s32 1, %s5097_s27  }
 0xa38   : > { %p15_p4 = scmp.ge.s32.totalorder %s18_s27, 4  }
 0xa3a   :  { %17 = sbr.rel (!%p15_p4) target bundleno = 1 (0x1), region = 85 }

</bundles_post_ra>
